<compile_context>
chip_gen: v6e
topology: v6e:2x2x1
jax: 0.10.0
libtpu: 0.0.40
codegen_flags: <defaults>
</compile_context>

<pallas_src>
import functools
import math

import jax
import jax.numpy as jnp
from jax import lax
from jax.experimental import pallas as pl
from jax.experimental.pallas import tpu as pltpu


def _round_up(x, m):
    return (x + m - 1) // m * m


# ----------------------------------------------------------------------------
# Core kernel: one output-row tile per grid step, taps unrolled, acc in vregs.
# ----------------------------------------------------------------------------
def _conv_mm_kernel(x_ref, w_ref, o_ref, *, tile_rows, tap_offsets, align, act,
                    resident):
    """o_tile = act( sum_t  x[tile_base + off_t : +tile_rows, :] @ w[t] ).

    x_ref : (L, Kc) bf16   — resident=True : whole layer slab, VMEM-resident
                             resident=False: this tile's (tile_rows, Kc) block
    w_ref : (T, Kc, OC) bf16 — resident
    o_ref : (tile_rows, OC) — written exactly once (no per-tap RMW).
    """
    if resident:
        base = pl.program_id(0) * tile_rows
        acc = None
        for t, off in enumerate(tap_offsets):            # static unroll, T <= 8
            start = pl.multiple_of(base + off, align)    # provably aligned
            xs = x_ref[pl.ds(start, tile_rows), :]
            part = jnp.dot(xs, w_ref[t], preferred_element_type=jnp.float32)
            acc = part if acc is None else acc + part
    else:
        acc = jnp.dot(x_ref[...], w_ref[0], preferred_element_type=jnp.float32)

    if act == "relu":
        acc = jnp.maximum(acc, 0.0)
    elif act == "sigmoid":
        acc = jax.nn.sigmoid(acc)
    o_ref[...] = acc.astype(o_ref.dtype)


def _conv_matmul(x, w_taps, *, tap_offsets, n_rows, act, out_dtype,
                 tile_rows=None):
    """x: (L, Kc) bf16 slab; w_taps: (T, Kc, OC) bf16 -> (n_rows_pad, OC)."""
    L, k_c = x.shape
    n_taps, k_c2, oc = w_taps.shape
    assert k_c2 == k_c and n_taps == len(tap_offsets)
    resident = n_taps > 1

    if tile_rows is None:
        tile_rows = min(512, _round_up(n_rows, 8))
    n_rows_pad = _round_up(n_rows, tile_rows)
    grid = (n_rows_pad // tile_rows,)
    align = functools.reduce(math.gcd, [o for o in tap_offsets if o], tile_rows)

    if resident:
        need = n_rows_pad + max(tap_offsets)
        if L < need:
            x = jnp.pad(x, ((0, need - L), (0, 0)))
        slab = x.shape[0]
        x_spec = pl.BlockSpec((slab, k_c), lambda i: (0, 0))   # VMEM-resident
    else:
        if L < n_rows_pad:
            x = jnp.pad(x, ((0, n_rows_pad - L), (0, 0)))
        elif L > n_rows_pad:
            x = x[:n_rows_pad]
        x_spec = pl.BlockSpec((tile_rows, k_c), lambda i: (i, 0))

    kernel = functools.partial(
        _conv_mm_kernel, tile_rows=tile_rows, tap_offsets=tuple(tap_offsets),
        align=max(align, 8), act=act, resident=resident)

    return pl.pallas_call(
        kernel,
        out_shape=jax.ShapeDtypeStruct((n_rows_pad, oc), out_dtype),
        grid=grid,
        in_specs=[x_spec, pl.BlockSpec((n_taps, k_c, oc), lambda i: (0, 0, 0))],
        out_specs=pl.BlockSpec((tile_rows, oc), lambda i: (i, 0)),
        compiler_params=pltpu.CompilerParams(
            dimension_semantics=("parallel",),        # row tiles -> 2 TCs on v7x
            vmem_limit_bytes=32 * 1024 * 1024,
        ),
    )(x, w_taps)


# ----------------------------------------------------------------------------
# Conv2d (VALID, torch cross-correlation semantics, bias=False).
# ----------------------------------------------------------------------------
# Below this im2col size (elements) the whole receptive field folds into K;
# above it (only the final 8x8 decoder conv) we keep a per-dy tap loop.
_IM2COL_MAX_ELEMS = 4 * 1024 * 1024


def conv2d_nhwc(a, w, stride, act, out_dtype):
    """a: (B, H, W, C) NHWC;  w: (OC, IC, kh, kw) torch OIHW layout."""
    B, H, W, C = a.shape
    OC, IC, kh, kw = w.shape
    assert IC == C
    oh = (H - kh) // stride + 1
    ow = (W - kw) // stride + 1
    n_rows = B * oh * ow
    k_full = kh * kw * C

    if n_rows * k_full <= _IM2COL_MAX_ELEMS:
        # Full receptive field folded into K: a single matmul per layer.
        cols = []
        for dy in range(kh):
            for dx in range(kw):
                cols.append(a[:, dy:dy + (oh - 1) * stride + 1:stride,
                              dx:dx + (ow - 1) * stride + 1:stride, :])
        patches = jnp.concatenate(cols, axis=-1).astype(jnp.bfloat16)
        patches = patches.reshape(n_rows, k_full)
        w_mat = jnp.transpose(w, (2, 3, 1, 0)).reshape(1, k_full, OC)
        out = _conv_matmul(patches, w_mat.astype(jnp.bfloat16),
                           tap_offsets=(0,), n_rows=n_rows, act=act,
                           out_dtype=out_dtype)
        return out[:n_rows].reshape(B, oh, ow, OC)

    # Large stride-1 conv (final decoder layer): fold kw*C into K and loop
    # over the kh row-taps on a VMEM-resident width-window slab.
    assert stride == 1
    tile_rows = 512
    w_row = _round_up(W, 8)                      # 8/16-aligned flat row stride
    n_grid_rows = B * H * w_row                  # output laid on the input grid
    n_rows_pad = _round_up(n_grid_rows, tile_rows)
    slab_rows = n_rows_pad + (kh - 1) * w_row

    a_p = jnp.pad(a, ((0, 0), (0, 0), (0, w_row - W), (0, 0))).astype(jnp.bfloat16)
    x_flat = a_p.reshape(B * H * w_row, C)
    x_flat = jnp.pad(x_flat, ((0, slab_rows + kw - 1 - n_grid_rows), (0, 0)))
    x_win = jnp.concatenate([x_flat[dx:dx + slab_rows] for dx in range(kw)],
                            axis=-1)             # (slab_rows, kw*C)
    w_taps = jnp.transpose(w, (2, 3, 1, 0)).reshape(kh, kw * IC, OC)

    out = _conv_matmul(x_win, w_taps.astype(jnp.bfloat16),
                       tap_offsets=tuple(dy * w_row for dy in range(kh)),
                       n_rows=n_grid_rows, act=act, out_dtype=out_dtype,
                       tile_rows=tile_rows)
    out = out[:n_grid_rows].reshape(B, H, w_row, OC)
    return out[:, :oh, :ow, :]


# ----------------------------------------------------------------------------
# ConvTranspose2d via output-phase (sub-pixel) decomposition.
# ----------------------------------------------------------------------------
def _subpixel_conv_weights(w, s):
    """torch ConvTranspose2d weight (IC, OC, k, k) -> equivalent stride-1 conv
    weight (s*s*OC, IC, M, M), M = ceil(k/s) (OIHW, correlation semantics)."""
    IC, OC, k, _ = w.shape
    if s == 1:
        return jnp.flip(w, axis=(2, 3)).transpose(1, 0, 2, 3)
    M = -(-k // s)
    zero = jnp.zeros((OC, IC), w.dtype)
    phases = []
    for ry in range(s):
        for rx in range(s):
            rows = []
            for my in range(M):                       # flipped tap index
                ky = ry + s * (M - 1 - my)
                cols = []
                for mx in range(M):
                    kx = rx + s * (M - 1 - mx)
                    if ky < k and kx < k:
                        cols.append(w[:, :, ky, kx].T)   # (OC, IC)
                    else:
                        cols.append(zero)
                rows.append(jnp.stack(cols, axis=-1))    # (OC, IC, M)
            phases.append(jnp.stack(rows, axis=-2))      # (OC, IC, M, M)
    return jnp.concatenate(phases, axis=0)               # (s*s*OC, IC, M, M)


def conv_transpose2d_nhwc(a, w, stride, act, out_dtype):
    """a: (B, H, W, IC) NHWC;  w: (IC, OC, k, k) torch ConvTranspose2d layout."""
    B, H, W, IC = a.shape
    _, OC, k, _ = w.shape
    s = stride
    OH, OW = (H - 1) * s + k, (W - 1) * s + k
    M = -(-k // s)
    w_eq = _subpixel_conv_weights(w, s)                       # (s*s*OC, IC, M, M)
    a_p = jnp.pad(a, ((0, 0), (M - 1, M - 1), (M - 1, M - 1), (0, 0)))
    y = conv2d_nhwc(a_p, w_eq, 1, act, out_dtype)             # (B, Q, Q, s*s*OC)
    Q = H + M - 1
    y = y.reshape(B, Q, Q, s, s, OC)
    y = jnp.transpose(y, (0, 1, 3, 2, 4, 5)).reshape(B, Q * s, Q * s, OC)
    return y[:, :OH, :OW, :]                                  # pixel shuffle+crop


# ----------------------------------------------------------------------------
# Fused bottleneck: LayerNorm -> mu/var heads -> reparam -> decoder_input.
# ----------------------------------------------------------------------------
def _bottleneck_kernel(flat_ref, g_ref, b_ref, muw_ref, mub_ref, vaw_ref,
                       vab_ref, dw_ref, db_ref, noise_ref,
                       mu_ref, var_ref, dec_ref):
    x = flat_ref[...].astype(jnp.float32)
    mean = jnp.mean(x, axis=-1, keepdims=True)
    c = x - mean
    v = jnp.mean(c * c, axis=-1, keepdims=True)
    xn = c * lax.rsqrt(v + 1e-5) * g_ref[...] + b_ref[...]
    xb = xn.astype(jnp.bfloat16)                    # bf16 MXU operands
    mu = jnp.dot(xb, muw_ref[...], preferred_element_type=jnp.float32) + mub_ref[...]
    lv = jnp.dot(xb, vaw_ref[...], preferred_element_type=jnp.float32) + vab_ref[...]
    z = jnp.tanh(noise_ref[...] * jnp.exp(lv * 0.5) + mu)
    d = jnp.dot(z.astype(jnp.bfloat16), dw_ref[...],
                preferred_element_type=jnp.float32) + db_ref[...]
    mu_ref[...] = mu
    var_ref[...] = lv
    dec_ref[...] = d


def bottleneck(flat, params, noise):
    B = flat.shape[0]
    zd = params["mu_w"].shape[1]
    dd = params["dec_in_w"].shape[1]
    bf = jnp.bfloat16
    return pl.pallas_call(
        _bottleneck_kernel,
        out_shape=(jax.ShapeDtypeStruct((B, zd), jnp.float32),
                   jax.ShapeDtypeStruct((B, zd), jnp.float32),
                   jax.ShapeDtypeStruct((B, dd), jnp.float32)),
    )(flat,
      params["ln_g"].reshape(1, -1), params["ln_b"].reshape(1, -1),
      params["mu_w"].astype(bf), params["mu_b"].reshape(1, -1),
      params["var_w"].astype(bf), params["var_b"].reshape(1, -1),
      params["dec_in_w"].astype(bf), params["dec_in_b"].reshape(1, -1),
      noise)


# ----------------------------------------------------------------------------
# VAE forward
# ----------------------------------------------------------------------------
def vae_forward(x, params, noise):
    B = x.shape[0]
    cdt = jnp.bfloat16                                  # inter-layer activations
    a = jnp.transpose(x, (0, 2, 3, 1))                  # NCHW -> NHWC (once)
    a = conv2d_nhwc(a, params["enc_w1"], 3, "relu", cdt)
    a = conv2d_nhwc(a, params["enc_w2"], 2, "relu", cdt)
    a = conv2d_nhwc(a, params["enc_w3"], 2, "relu", cdt)
    # torch.flatten(start_dim=1) on NCHW => channel-major 512 vector
    flat = jnp.transpose(a, (0, 3, 1, 2)).reshape(B, -1)
    # TODO(synk): torch.randn_like noise is drawn host-side via jax.random so
    # the reparam trick stays deterministic per PRNGKey(0).
    mu, var, d = bottleneck(flat, params, noise)
    a = jnp.transpose(d.reshape(B, 32, 4, 4), (0, 2, 3, 1))   # view + NCHW->NHWC
    a = conv_transpose2d_nhwc(a, params["dec_w1"], 2, "relu", cdt)
    a = conv_transpose2d_nhwc(a, params["dec_w2"], 2, "relu", cdt)
    a = conv_transpose2d_nhwc(a, params["dec_w3"], 3, "relu", cdt)
    a = conv_transpose2d_nhwc(a, params["dec_w4"], 1, "sigmoid", jnp.float32)
    x_hat = jnp.transpose(a, (0, 3, 1, 2))                    # NHWC -> NCHW (once)
    return x_hat, mu, var


# ----------------------------------------------------------------------------
# Pure-JAX (XLA) reference for correctness checking.
# ----------------------------------------------------------------------------
def vae_reference(x, params, noise):
    dn = ("NCHW", "OIHW", "NCHW")

    def conv(h, w, s):
        return lax.conv_general_dilated(h, w, (s, s), "VALID",
                                        dimension_numbers=dn)

    def convT(h, w, s):
        w_eq = jnp.flip(w, axis=(2, 3)).transpose(1, 0, 2, 3)
        k = w.shape[2]
        return lax.conv_general_dilated(h, w_eq, (1, 1),
                                        padding=((k - 1, k - 1), (k - 1, k - 1)),
                                        lhs_dilation=(s, s),
                                        dimension_numbers=dn)

    B = x.shape[0]
    h = jax.nn.relu(conv(x, params["enc_w1"], 3))
    h = jax.nn.relu(conv(h, params["enc_w2"], 2))
    h = jax.nn.relu(conv(h, params["enc_w3"], 2))
    flat = h.reshape(B, -1)
    mean = flat.mean(-1, keepdims=True)
    c = flat - mean
    v = (c * c).mean(-1, keepdims=True)
    flat = c * lax.rsqrt(v + 1e-5) * params["ln_g"] + params["ln_b"]
    mu = flat @ params["mu_w"] + params["mu_b"]
    lv = flat @ params["var_w"] + params["var_b"]
    z = jnp.tanh(noise * jnp.exp(lv / 2) + mu)
    d = (z @ params["dec_in_w"] + params["dec_in_b"]).reshape(B, 32, 4, 4)
    d = jax.nn.relu(convT(d, params["dec_w1"], 2))
    d = jax.nn.relu(convT(d, params["dec_w2"], 2))
    d = jax.nn.relu(convT(d, params["dec_w3"], 3))
    xh = jax.nn.sigmoid(convT(d, params["dec_w4"], 1))
    return xh, mu, lv


def init_params(key, state_cc=3, num_filters=32, z_dims=32):
    ks = jax.random.split(key, 13)
    n = lambda k, s: jax.random.normal(k, s, jnp.float32) * 0.05
    return {
        # Conv2d weights: (out_c, in_c, kh, kw)
        "enc_w1": n(ks[0], (num_filters, state_cc, 7, 7)),
        "enc_w2": n(ks[1], (num_filters, num_filters, 5, 5)),
        "enc_w3": n(ks[2], (num_filters, num_filters, 5, 5)),
        "ln_g": jnp.ones((512,), jnp.float32),
        "ln_b": jnp.zeros((512,), jnp.float32),
        # Linear weights stored pre-transposed (in, out): y = x @ W + b
        "mu_w": n(ks[3], (512, z_dims)),
        "mu_b": n(ks[4], (z_dims,)),
        "var_w": n(ks[5], (512, z_dims)),
        "var_b": n(ks[6], (z_dims,)),
        "dec_in_w": n(ks[7], (z_dims, 512)),
        "dec_in_b": n(ks[8], (512,)),
        # ConvTranspose2d weights: (in_c, out_c, kh, kw)
        "dec_w1": n(ks[9], (32, num_filters, 5, 5)),
        "dec_w2": n(ks[10], (num_filters, num_filters, 5, 5)),
        "dec_w3": n(ks[11], (num_filters, num_filters, 5, 5)),
        "dec_w4": n(ks[12], (num_filters, state_cc, 8, 8)),
    }


if __name__ == "__main__":
    key = jax.random.PRNGKey(0)
    k_x, k_p, k_e = jax.random.split(key, 3)

    B, state_cc, num_filters, z_dims = 2, 3, 32, 32
    x = jax.random.uniform(k_x, (B, state_cc, 84, 84), jnp.float32)
    params = init_params(k_p, state_cc, num_filters, z_dims)
    noise = jax.random.normal(k_e, (B, z_dims), jnp.float32)

    fwd = jax.jit(vae_forward)
    x_hat, mu, var = fwd(x, params, noise)
    jax.block_until_ready((x_hat, mu, var))

    # shape / range checks
    assert x_hat.shape == (B, state_cc, 84, 84), x_hat.shape
    assert mu.shape == (B, z_dims) and var.shape == (B, z_dims)
    assert bool(jnp.all(jnp.isfinite(x_hat)))
    assert bool(jnp.all((x_hat >= 0.0) & (x_hat <= 1.0)))   # sigmoid output

    # numerical check vs pure-XLA reference (bf16 operands => loose tol)
    r_hat, r_mu, r_var = jax.jit(vae_reference)(x, params, noise)
    jax.block_until_ready((r_hat, r_mu, r_var))
    assert bool(jnp.allclose(mu, r_mu, atol=6e-2, rtol=6e-2))
    assert bool(jnp.allclose(var, r_var, atol=6e-2, rtol=6e-2))
    assert bool(jnp.allclose(x_hat, r_hat, atol=6e-2, rtol=6e-2))

    print("KERNEL_OK")
</pallas_src>

<mosaic_0001>
module attributes {stable_mosaic.version = 11 : i64} {
  func.func @_conv_mm_kernel(%arg0: i32, %arg1: memref<512x147xbf16, #tpu.memory_space<vmem>>, %arg2: memref<1x147x32xbf16, #tpu.memory_space<vmem>>, %arg3: memref<512x32xbf16, #tpu.memory_space<vmem>>) attributes {dimension_semantics = [#tpu.dimension_semantics<parallel>], iteration_bounds = array<i64: 3>, scalar_prefetch = 0 : i64, scratch_operands = 0 : i64, tpu.core_type = #tpu.core_type<tc>, window_params = [{transform_indices = @transform_0, window_bounds = array<i64: 512, 147>}, {pipeline_mode = #tpu.pipeline_mode<synchronous>, transform_indices = @transform_1, window_bounds = array<i64: 1, 147, 32>}, {transform_indices = @transform_2, window_bounds = array<i64: 512, 32>}]} {
    %c0 = arith.constant 0 : index
    %c0_0 = arith.constant 0 : index
    %0 = vector.load %arg1[%c0, %c0_0] : memref<512x147xbf16, #tpu.memory_space<vmem>>, vector<512x147xbf16>
    %c0_1 = arith.constant 0 : index
    %c0_2 = arith.constant 0 : index
    %c0_3 = arith.constant 0 : index
    %1 = vector.load %arg2[%c0_1, %c0_2, %c0_3] : memref<1x147x32xbf16, #tpu.memory_space<vmem>>, vector<1x147x32xbf16>
    %2 = vector.shape_cast %1 : vector<1x147x32xbf16> to vector<147x32xbf16>
    %cst = arith.constant dense<0.000000e+00> : vector<512x32xf32>
    %3 = tpu.matmul %0, %2, %cst {dimension_numbers = #tpu.dot_dimension_numbers<[1], [0], [0], [1], [0, 0, 1, 1], [], []>} : vector<512x147xbf16>, vector<147x32xbf16>, vector<512x32xf32> -> vector<512x32xf32>
    %cst_4 = arith.constant 0.000000e+00 : f32
    %4 = vector.broadcast %cst_4 : f32 to vector<512x32xf32>
    %5 = arith.maximumf %3, %4 : vector<512x32xf32>
    %6 = arith.truncf %5 : vector<512x32xf32> to vector<512x32xbf16>
    %c0_5 = arith.constant 0 : index
    %c0_6 = arith.constant 0 : index
    %7 = vector.load %arg3[%c0_5, %c0_6] : memref<512x32xbf16, #tpu.memory_space<vmem>>, vector<512x32xbf16>
    tpu.vector_store %arg3[%c0_5, %c0_6], %6 {strides = array<i32>} : memref<512x32xbf16, #tpu.memory_space<vmem>>, vector<512x32xbf16>,
    return
  }
  func.func @transform_0(%arg0: i32) -> (i32, i32) {
    %c0_i32 = arith.constant 0 : i32
    %c0_i32_0 = arith.constant 0 : i32
    return %arg0, %c0_i32 : i32, i32
  }
  func.func @transform_1(%arg0: i32) -> (i32, i32, i32) {
    %c0_i32 = arith.constant 0 : i32
    %c0_i32_0 = arith.constant 0 : i32
    %c0_i32_1 = arith.constant 0 : i32
    %c0_i32_2 = arith.constant 0 : i32
    return %c0_i32, %c0_i32_0, %c0_i32_1 : i32, i32, i32
  }
  func.func @transform_2(%arg0: i32) -> (i32, i32) {
    %c0_i32 = arith.constant 0 : i32
    %c0_i32_0 = arith.constant 0 : i32
    return %arg0, %c0_i32 : i32, i32
  }
}

module attributes {stable_mosaic.version = 11 : i64} {
  func.func @_conv_mm_kernel(%arg0: i32, %arg1: memref<248x800xbf16, #tpu.memory_space<vmem>>, %arg2: memref<1x800x32xbf16, #tpu.memory_space<vmem>>, %arg3: memref<248x32xbf16, #tpu.memory_space<vmem>>) attributes {dimension_semantics = [#tpu.dimension_semantics<parallel>], iteration_bounds = array<i64: 1>, scalar_prefetch = 0 : i64, scratch_operands = 0 : i64, tpu.core_type = #tpu.core_type<tc>, window_params = [{transform_indices = @transform_0, window_bounds = array<i64: 248, 800>}, {pipeline_mode = #tpu.pipeline_mode<synchronous>, transform_indices = @transform_1, window_bounds = array<i64: 1, 800, 32>}, {transform_indices = @transform_2, window_bounds = array<i64: 248, 32>}]} {
    %c0 = arith.constant 0 : index
    %c0_0 = arith.constant 0 : index
    %0 = vector.load %arg1[%c0, %c0_0] : memref<248x800xbf16, #tpu.memory_space<vmem>>, vector<248x800xbf16>
    %c0_1 = arith.constant 0 : index
    %c0_2 = arith.constant 0 : index
    %c0_3 = arith.constant 0 : index
    %1 = vector.load %arg2[%c0_1, %c0_2, %c0_3] : memref<1x800x32xbf16, #tpu.memory_space<vmem>>, vector<1x800x32xbf16>
    %2 = vector.shape_cast %1 : vector<1x800x32xbf16> to vector<800x32xbf16>
    %cst = arith.constant dense<0.000000e+00> : vector<248x32xf32>
    %3 = tpu.matmul %0, %2, %cst {dimension_numbers = #tpu.dot_dimension_numbers<[1], [0], [0], [1], [0, 0, 1, 1], [], []>} : vector<248x800xbf16>, vector<800x32xbf16>, vector<248x32xf32> -> vector<248x32xf32>
    %cst_4 = arith.constant 0.000000e+00 : f32
    %4 = vector.broadcast %cst_4 : f32 to vector<248x32xf32>
    %5 = arith.maximumf %3, %4 : vector<248x32xf32>
    %6 = arith.truncf %5 : vector<248x32xf32> to vector<248x32xbf16>
    %c0_5 = arith.constant 0 : index
    %c0_6 = arith.constant 0 : index
    %7 = vector.load %arg3[%c0_5, %c0_6] : memref<248x32xbf16, #tpu.memory_space<vmem>>, vector<248x32xbf16>
    tpu.vector_store %arg3[%c0_5, %c0_6], %6 {strides = array<i32>} : memref<248x32xbf16, #tpu.memory_space<vmem>>, vector<248x32xbf16>,
    return
  }
  func.func @transform_0(%arg0: i32) -> (i32, i32) {
    %c0_i32 = arith.constant 0 : i32
    %c0_i32_0 = arith.constant 0 : i32
    return %arg0, %c0_i32 : i32, i32
  }
  func.func @transform_1(%arg0: i32) -> (i32, i32, i32) {
    %c0_i32 = arith.constant 0 : i32
    %c0_i32_0 = arith.constant 0 : i32
    %c0_i32_1 = arith.constant 0 : i32
    %c0_i32_2 = arith.constant 0 : i32
    return %c0_i32, %c0_i32_0, %c0_i32_1 : i32, i32, i32
  }
  func.func @transform_2(%arg0: i32) -> (i32, i32) {
    %c0_i32 = arith.constant 0 : i32
    %c0_i32_0 = arith.constant 0 : i32
    return %arg0, %c0_i32 : i32, i32
  }
}

module attributes {stable_mosaic.version = 11 : i64} {
  func.func @_conv_mm_kernel(%arg0: i32, %arg1: memref<32x800xbf16, #tpu.memory_space<vmem>>, %arg2: memref<1x800x32xbf16, #tpu.memory_space<vmem>>, %arg3: memref<32x32xbf16, #tpu.memory_space<vmem>>) attributes {dimension_semantics = [#tpu.dimension_semantics<parallel>], iteration_bounds = array<i64: 1>, scalar_prefetch = 0 : i64, scratch_operands = 0 : i64, tpu.core_type = #tpu.core_type<tc>, window_params = [{transform_indices = @transform_0, window_bounds = array<i64: 32, 800>}, {pipeline_mode = #tpu.pipeline_mode<synchronous>, transform_indices = @transform_1, window_bounds = array<i64: 1, 800, 32>}, {transform_indices = @transform_2, window_bounds = array<i64: 32, 32>}]} {
    %c0 = arith.constant 0 : index
    %c0_0 = arith.constant 0 : index
    %0 = vector.load %arg1[%c0, %c0_0] : memref<32x800xbf16, #tpu.memory_space<vmem>>, vector<32x800xbf16>
    %c0_1 = arith.constant 0 : index
    %c0_2 = arith.constant 0 : index
    %c0_3 = arith.constant 0 : index
    %1 = vector.load %arg2[%c0_1, %c0_2, %c0_3] : memref<1x800x32xbf16, #tpu.memory_space<vmem>>, vector<1x800x32xbf16>
    %2 = vector.shape_cast %1 : vector<1x800x32xbf16> to vector<800x32xbf16>
    %cst = arith.constant dense<0.000000e+00> : vector<32x32xf32>
    %3 = tpu.matmul %0, %2, %cst {dimension_numbers = #tpu.dot_dimension_numbers<[1], [0], [0], [1], [0, 0, 1, 1], [], []>} : vector<32x800xbf16>, vector<800x32xbf16>, vector<32x32xf32> -> vector<32x32xf32>
    %cst_4 = arith.constant 0.000000e+00 : f32
    %4 = vector.broadcast %cst_4 : f32 to vector<32x32xf32>
    %5 = arith.maximumf %3, %4 : vector<32x32xf32>
    %6 = arith.truncf %5 : vector<32x32xf32> to vector<32x32xbf16>
    %c0_5 = arith.constant 0 : index
    %c0_6 = arith.constant 0 : index
    %7 = vector.load %arg3[%c0_5, %c0_6] : memref<32x32xbf16, #tpu.memory_space<vmem>>, vector<32x32xbf16>
    tpu.vector_store %arg3[%c0_5, %c0_6], %6 {strides = array<i32>} : memref<32x32xbf16, #tpu.memory_space<vmem>>, vector<32x32xbf16>,
    return
  }
  func.func @transform_0(%arg0: i32) -> (i32, i32) {
    %c0_i32 = arith.constant 0 : i32
    %c0_i32_0 = arith.constant 0 : i32
    return %arg0, %c0_i32 : i32, i32
  }
  func.func @transform_1(%arg0: i32) -> (i32, i32, i32) {
    %c0_i32 = arith.constant 0 : i32
    %c0_i32_0 = arith.constant 0 : i32
    %c0_i32_1 = arith.constant 0 : i32
    %c0_i32_2 = arith.constant 0 : i32
    return %c0_i32, %c0_i32_0, %c0_i32_1 : i32, i32, i32
  }
  func.func @transform_2(%arg0: i32) -> (i32, i32) {
    %c0_i32 = arith.constant 0 : i32
    %c0_i32_0 = arith.constant 0 : i32
    return %arg0, %c0_i32 : i32, i32
  }
}

module attributes {stable_mosaic.version = 11 : i64} {
  func.func @_bottleneck_kernel(%arg0: memref<2x512xbf16, #tpu.memory_space<vmem>>, %arg1: memref<1x512xf32, #tpu.memory_space<vmem>>, %arg2: memref<1x512xf32, #tpu.memory_space<vmem>>, %arg3: memref<512x32xbf16, #tpu.memory_space<vmem>>, %arg4: memref<1x32xf32, #tpu.memory_space<vmem>>, %arg5: memref<512x32xbf16, #tpu.memory_space<vmem>>, %arg6: memref<1x32xf32, #tpu.memory_space<vmem>>, %arg7: memref<32x512xbf16, #tpu.memory_space<vmem>>, %arg8: memref<1x512xf32, #tpu.memory_space<vmem>>, %arg9: memref<2x32xf32, #tpu.memory_space<vmem>>, %arg10: memref<2x32xf32, #tpu.memory_space<vmem>>, %arg11: memref<2x32xf32, #tpu.memory_space<vmem>>, %arg12: memref<2x512xf32, #tpu.memory_space<vmem>>) attributes {dimension_semantics = [], scalar_prefetch = 0 : i64, scratch_operands = 0 : i64, tpu.core_type = #tpu.core_type<tc>} {
    %c0 = arith.constant 0 : index
    %c0_0 = arith.constant 0 : index
    %0 = vector.load %arg0[%c0, %c0_0] : memref<2x512xbf16, #tpu.memory_space<vmem>>, vector<2x512xbf16>
    %1 = arith.extf %0 : vector<2x512xbf16> to vector<2x512xf32>
    %cst = arith.constant dense<0.000000e+00> : vector<2xf32>
    %2 = vector.multi_reduction <add>, %1, %cst [1] : vector<2x512xf32> to vector<2xf32>
    %3 = vector.shape_cast %2 : vector<2xf32> to vector<2x1xf32>
    %cst_1 = arith.constant 5.120000e+02 : f32
    %4 = vector.broadcast %cst_1 : f32 to vector<2x1xf32>
    %5 = arith.divf %3, %4 : vector<2x1xf32>
    %6 = vector.broadcast %5 : vector<2x1xf32> to vector<2x512xf32>
    %7 = arith.subf %1, %6 : vector<2x512xf32>
    %8 = arith.mulf %7, %7 : vector<2x512xf32>
    %cst_2 = arith.constant dense<0.000000e+00> : vector<2xf32>
    %9 = vector.multi_reduction <add>, %8, %cst_2 [1] : vector<2x512xf32> to vector<2xf32>
    %10 = vector.shape_cast %9 : vector<2xf32> to vector<2x1xf32>
    %cst_3 = arith.constant 5.120000e+02 : f32
    %11 = vector.broadcast %cst_3 : f32 to vector<2x1xf32>
    %12 = arith.divf %10, %11 : vector<2x1xf32>
    %cst_4 = arith.constant 9.99999974E-6 : f32
    %13 = vector.broadcast %cst_4 : f32 to vector<2x1xf32>
    %14 = arith.addf %12, %13 : vector<2x1xf32>
    %15 = math.rsqrt %14 : vector<2x1xf32>
    %16 = vector.broadcast %15 : vector<2x1xf32> to vector<2x512xf32>
    %17 = arith.mulf %7, %16 : vector<2x512xf32>
    %c0_5 = arith.constant 0 : index
    %c0_6 = arith.constant 0 : index
    %18 = vector.load %arg1[%c0_5, %c0_6] : memref<1x512xf32, #tpu.memory_space<vmem>>, vector<1x512xf32>
    %19 = vector.broadcast %18 : vector<1x512xf32> to vector<2x512xf32>
    %20 = arith.mulf %17, %19 : vector<2x512xf32>
    %c0_7 = arith.constant 0 : index
    %c0_8 = arith.constant 0 : index
    %21 = vector.load %arg2[%c0_7, %c0_8] : memref<1x512xf32, #tpu.memory_space<vmem>>, vector<1x512xf32>
    %22 = vector.broadcast %21 : vector<1x512xf32> to vector<2x512xf32>
    %23 = arith.addf %20, %22 : vector<2x512xf32>
    %24 = arith.truncf %23 : vector<2x512xf32> to vector<2x512xbf16>
    %c0_9 = arith.constant 0 : index
    %c0_10 = arith.constant 0 : index
    %25 = vector.load %arg3[%c0_9, %c0_10] : memref<512x32xbf16, #tpu.memory_space<vmem>>, vector<512x32xbf16>
    %cst_11 = arith.constant dense<0.000000e+00> : vector<2x32xf32>
    %26 = tpu.matmul %24, %25, %cst_11 {dimension_numbers = #tpu.dot_dimension_numbers<[1], [0], [0], [1], [0, 0, 1, 1], [], []>} : vector<2x512xbf16>, vector<512x32xbf16>, vector<2x32xf32> -> vector<2x32xf32>
    %c0_12 = arith.constant 0 : index
    %c0_13 = arith.constant 0 : index
    %27 = vector.load %arg4[%c0_12, %c0_13] : memref<1x32xf32, #tpu.memory_space<vmem>>, vector<1x32xf32>
    %28 = vector.broadcast %27 : vector<1x32xf32> to vector<2x32xf32>
    %29 = arith.addf %26, %28 : vector<2x32xf32>
    %c0_14 = arith.constant 0 : index
    %c0_15 = arith.constant 0 : index
    %30 = vector.load %arg5[%c0_14, %c0_15] : memref<512x32xbf16, #tpu.memory_space<vmem>>, vector<512x32xbf16>
    %cst_16 = arith.constant dense<0.000000e+00> : vector<2x32xf32>
    %31 = tpu.matmul %24, %30, %cst_16 {dimension_numbers = #tpu.dot_dimension_numbers<[1], [0], [0], [1], [0, 0, 1, 1], [], []>} : vector<2x512xbf16>, vector<512x32xbf16>, vector<2x32xf32> -> vector<2x32xf32>
    %c0_17 = arith.constant 0 : index
    %c0_18 = arith.constant 0 : index
    %32 = vector.load %arg6[%c0_17, %c0_18] : memref<1x32xf32, #tpu.memory_space<vmem>>, vector<1x32xf32>
    %33 = vector.broadcast %32 : vector<1x32xf32> to vector<2x32xf32>
    %34 = arith.addf %31, %33 : vector<2x32xf32>
    %c0_19 = arith.constant 0 : index
    %c0_20 = arith.constant 0 : index
    %35 = vector.load %arg9[%c0_19, %c0_20] : memref<2x32xf32, #tpu.memory_space<vmem>>, vector<2x32xf32>
    %cst_21 = arith.constant 5.000000e-01 : f32
    %36 = vector.broadcast %cst_21 : f32 to vector<2x32xf32>
    %37 = arith.mulf %34, %36 : vector<2x32xf32>
    %38 = math.exp %37 : vector<2x32xf32>
    %39 = arith.mulf %35, %38 : vector<2x32xf32>
    %40 = arith.addf %39, %29 : vector<2x32xf32>
    %41 = math.tanh %40 : vector<2x32xf32>
    %42 = arith.truncf %41 : vector<2x32xf32> to vector<2x32xbf16>
    %c0_22 = arith.constant 0 : index
    %c0_23 = arith.constant 0 : index
    %43 = vector.load %arg7[%c0_22, %c0_23] : memref<32x512xbf16, #tpu.memory_space<vmem>>, vector<32x512xbf16>
    %cst_24 = arith.constant dense<0.000000e+00> : vector<2x512xf32>
    %44 = tpu.matmul %42, %43, %cst_24 {dimension_numbers = #tpu.dot_dimension_numbers<[1], [0], [0], [1], [0, 0, 1, 1], [], []>} : vector<2x32xbf16>, vector<32x512xbf16>, vector<2x512xf32> -> vector<2x512xf32>
    %c0_25 = arith.constant 0 : index
    %c0_26 = arith.constant 0 : index
    %45 = vector.load %arg8[%c0_25, %c0_26] : memref<1x512xf32, #tpu.memory_space<vmem>>, vector<1x512xf32>
    %46 = vector.broadcast %45 : vector<1x512xf32> to vector<2x512xf32>
    %47 = arith.addf %44, %46 : vector<2x512xf32>
    %c0_27 = arith.constant 0 : index
    %c0_28 = arith.constant 0 : index
    %48 = vector.load %arg10[%c0_27, %c0_28] : memref<2x32xf32, #tpu.memory_space<vmem>>, vector<2x32xf32>
    tpu.vector_store %arg10[%c0_27, %c0_28], %29 {strides = array<i32>} : memref<2x32xf32, #tpu.memory_space<vmem>>, vector<2x32xf32>,
    %c0_29 = arith.constant 0 : index
    %c0_30 = arith.constant 0 : index
    %49 = vector.load %arg11[%c0_29, %c0_30] : memref<2x32xf32, #tpu.memory_space<vmem>>, vector<2x32xf32>
    tpu.vector_store %arg11[%c0_29, %c0_30], %34 {strides = array<i32>} : memref<2x32xf32, #tpu.memory_space<vmem>>, vector<2x32xf32>,
    %c0_31 = arith.constant 0 : index
    %c0_32 = arith.constant 0 : index
    %50 = vector.load %arg12[%c0_31, %c0_32] : memref<2x512xf32, #tpu.memory_space<vmem>>, vector<2x512xf32>
    tpu.vector_store %arg12[%c0_31, %c0_32], %47 {strides = array<i32>} : memref<2x512xf32, #tpu.memory_space<vmem>>, vector<2x512xf32>,
    return
  }
}

module attributes {stable_mosaic.version = 11 : i64} {
  func.func @_conv_mm_kernel(%arg0: i32, %arg1: memref<72x288xbf16, #tpu.memory_space<vmem>>, %arg2: memref<1x288x128xbf16, #tpu.memory_space<vmem>>, %arg3: memref<72x128xbf16, #tpu.memory_space<vmem>>) attributes {dimension_semantics = [#tpu.dimension_semantics<parallel>], iteration_bounds = array<i64: 1>, scalar_prefetch = 0 : i64, scratch_operands = 0 : i64, tpu.core_type = #tpu.core_type<tc>, window_params = [{transform_indices = @transform_0, window_bounds = array<i64: 72, 288>}, {pipeline_mode = #tpu.pipeline_mode<synchronous>, transform_indices = @transform_1, window_bounds = array<i64: 1, 288, 128>}, {transform_indices = @transform_2, window_bounds = array<i64: 72, 128>}]} {
    %c0 = arith.constant 0 : index
    %c0_0 = arith.constant 0 : index
    %0 = vector.load %arg1[%c0, %c0_0] : memref<72x288xbf16, #tpu.memory_space<vmem>>, vector<72x288xbf16>
    %c0_1 = arith.constant 0 : index
    %c0_2 = arith.constant 0 : index
    %c0_3 = arith.constant 0 : index
    %1 = vector.load %arg2[%c0_1, %c0_2, %c0_3] : memref<1x288x128xbf16, #tpu.memory_space<vmem>>, vector<1x288x128xbf16>
    %2 = vector.shape_cast %1 : vector<1x288x128xbf16> to vector<288x128xbf16>
    %cst = arith.constant dense<0.000000e+00> : vector<72x128xf32>
    %3 = tpu.matmul %0, %2, %cst {dimension_numbers = #tpu.dot_dimension_numbers<[1], [0], [0], [1], [0, 0, 1, 1], [], []>} : vector<72x288xbf16>, vector<288x128xbf16>, vector<72x128xf32> -> vector<72x128xf32>
    %cst_4 = arith.constant 0.000000e+00 : f32
    %4 = vector.broadcast %cst_4 : f32 to vector<72x128xf32>
    %5 = arith.maximumf %3, %4 : vector<72x128xf32>
    %6 = arith.truncf %5 : vector<72x128xf32> to vector<72x128xbf16>
    %c0_5 = arith.constant 0 : index
    %c0_6 = arith.constant 0 : index
    %7 = vector.load %arg3[%c0_5, %c0_6] : memref<72x128xbf16, #tpu.memory_space<vmem>>, vector<72x128xbf16>
    tpu.vector_store %arg3[%c0_5, %c0_6], %6 {strides = array<i32>} : memref<72x128xbf16, #tpu.memory_space<vmem>>, vector<72x128xbf16>,
    return
  }
  func.func @transform_0(%arg0: i32) -> (i32, i32) {
    %c0_i32 = arith.constant 0 : i32
    %c0_i32_0 = arith.constant 0 : i32
    return %arg0, %c0_i32 : i32, i32
  }
  func.func @transform_1(%arg0: i32) -> (i32, i32, i32) {
    %c0_i32 = arith.constant 0 : i32
    %c0_i32_0 = arith.constant 0 : i32
    %c0_i32_1 = arith.constant 0 : i32
    %c0_i32_2 = arith.constant 0 : i32
    return %c0_i32, %c0_i32_0, %c0_i32_1 : i32, i32, i32
  }
  func.func @transform_2(%arg0: i32) -> (i32, i32) {
    %c0_i32 = arith.constant 0 : i32
    %c0_i32_0 = arith.constant 0 : i32
    return %arg0, %c0_i32 : i32, i32
  }
}

module attributes {stable_mosaic.version = 11 : i64} {
  func.func @_conv_mm_kernel(%arg0: i32, %arg1: memref<344x288xbf16, #tpu.memory_space<vmem>>, %arg2: memref<1x288x128xbf16, #tpu.memory_space<vmem>>, %arg3: memref<344x128xbf16, #tpu.memory_space<vmem>>) attributes {dimension_semantics = [#tpu.dimension_semantics<parallel>], iteration_bounds = array<i64: 1>, scalar_prefetch = 0 : i64, scratch_operands = 0 : i64, tpu.core_type = #tpu.core_type<tc>, window_params = [{transform_indices = @transform_0, window_bounds = array<i64: 344, 288>}, {pipeline_mode = #tpu.pipeline_mode<synchronous>, transform_indices = @transform_1, window_bounds = array<i64: 1, 288, 128>}, {transform_indices = @transform_2, window_bounds = array<i64: 344, 128>}]} {
    %c0 = arith.constant 0 : index
    %c0_0 = arith.constant 0 : index
    %0 = vector.load %arg1[%c0, %c0_0] : memref<344x288xbf16, #tpu.memory_space<vmem>>, vector<344x288xbf16>
    %c0_1 = arith.constant 0 : index
    %c0_2 = arith.constant 0 : index
    %c0_3 = arith.constant 0 : index
    %1 = vector.load %arg2[%c0_1, %c0_2, %c0_3] : memref<1x288x128xbf16, #tpu.memory_space<vmem>>, vector<1x288x128xbf16>
    %2 = vector.shape_cast %1 : vector<1x288x128xbf16> to vector<288x128xbf16>
    %cst = arith.constant dense<0.000000e+00> : vector<344x128xf32>
    %3 = tpu.matmul %0, %2, %cst {dimension_numbers = #tpu.dot_dimension_numbers<[1], [0], [0], [1], [0, 0, 1, 1], [], []>} : vector<344x288xbf16>, vector<288x128xbf16>, vector<344x128xf32> -> vector<344x128xf32>
    %cst_4 = arith.constant 0.000000e+00 : f32
    %4 = vector.broadcast %cst_4 : f32 to vector<344x128xf32>
    %5 = arith.maximumf %3, %4 : vector<344x128xf32>
    %6 = arith.truncf %5 : vector<344x128xf32> to vector<344x128xbf16>
    %c0_5 = arith.constant 0 : index
    %c0_6 = arith.constant 0 : index
    %7 = vector.load %arg3[%c0_5, %c0_6] : memref<344x128xbf16, #tpu.memory_space<vmem>>, vector<344x128xbf16>
    tpu.vector_store %arg3[%c0_5, %c0_6], %6 {strides = array<i32>} : memref<344x128xbf16, #tpu.memory_space<vmem>>, vector<344x128xbf16>,
    return
  }
  func.func @transform_0(%arg0: i32) -> (i32, i32) {
    %c0_i32 = arith.constant 0 : i32
    %c0_i32_0 = arith.constant 0 : i32
    return %arg0, %c0_i32 : i32, i32
  }
  func.func @transform_1(%arg0: i32) -> (i32, i32, i32) {
    %c0_i32 = arith.constant 0 : i32
    %c0_i32_0 = arith.constant 0 : i32
    %c0_i32_1 = arith.constant 0 : i32
    %c0_i32_2 = arith.constant 0 : i32
    return %c0_i32, %c0_i32_0, %c0_i32_1 : i32, i32, i32
  }
  func.func @transform_2(%arg0: i32) -> (i32, i32) {
    %c0_i32 = arith.constant 0 : i32
    %c0_i32_0 = arith.constant 0 : i32
    return %arg0, %c0_i32 : i32, i32
  }
}

module attributes {stable_mosaic.version = 11 : i64} {
  func.func @_conv_mm_kernel(%arg0: i32, %arg1: memref<512x128xbf16, #tpu.memory_space<vmem>>, %arg2: memref<1x128x288xbf16, #tpu.memory_space<vmem>>, %arg3: memref<512x288xbf16, #tpu.memory_space<vmem>>) attributes {dimension_semantics = [#tpu.dimension_semantics<parallel>], iteration_bounds = array<i64: 3>, scalar_prefetch = 0 : i64, scratch_operands = 0 : i64, tpu.core_type = #tpu.core_type<tc>, window_params = [{transform_indices = @transform_0, window_bounds = array<i64: 512, 128>}, {pipeline_mode = #tpu.pipeline_mode<synchronous>, transform_indices = @transform_1, window_bounds = array<i64: 1, 128, 288>}, {transform_indices = @transform_2, window_bounds = array<i64: 512, 288>}]} {
    %c0 = arith.constant 0 : index
    %c0_0 = arith.constant 0 : index
    %0 = vector.load %arg1[%c0, %c0_0] : memref<512x128xbf16, #tpu.memory_space<vmem>>, vector<512x128xbf16>
    %c0_1 = arith.constant 0 : index
    %c0_2 = arith.constant 0 : index
    %c0_3 = arith.constant 0 : index
    %1 = vector.load %arg2[%c0_1, %c0_2, %c0_3] : memref<1x128x288xbf16, #tpu.memory_space<vmem>>, vector<1x128x288xbf16>
    %2 = vector.shape_cast %1 : vector<1x128x288xbf16> to vector<128x288xbf16>
    %cst = arith.constant dense<0.000000e+00> : vector<512x288xf32>
    %3 = tpu.matmul %0, %2, %cst {dimension_numbers = #tpu.dot_dimension_numbers<[1], [0], [0], [1], [0, 0, 1, 1], [], []>} : vector<512x128xbf16>, vector<128x288xbf16>, vector<512x288xf32> -> vector<512x288xf32>
    %cst_4 = arith.constant 0.000000e+00 : f32
    %4 = vector.broadcast %cst_4 : f32 to vector<512x288xf32>
    %5 = arith.maximumf %3, %4 : vector<512x288xf32>
    %6 = arith.truncf %5 : vector<512x288xf32> to vector<512x288xbf16>
    %c0_5 = arith.constant 0 : index
    %c0_6 = arith.constant 0 : index
    %7 = vector.load %arg3[%c0_5, %c0_6] : memref<512x288xbf16, #tpu.memory_space<vmem>>, vector<512x288xbf16>
    tpu.vector_store %arg3[%c0_5, %c0_6], %6 {strides = array<i32>} : memref<512x288xbf16, #tpu.memory_space<vmem>>, vector<512x288xbf16>,
    return
  }
  func.func @transform_0(%arg0: i32) -> (i32, i32) {
    %c0_i32 = arith.constant 0 : i32
    %c0_i32_0 = arith.constant 0 : i32
    return %arg0, %c0_i32 : i32, i32
  }
  func.func @transform_1(%arg0: i32) -> (i32, i32, i32) {
    %c0_i32 = arith.constant 0 : i32
    %c0_i32_0 = arith.constant 0 : i32
    %c0_i32_1 = arith.constant 0 : i32
    %c0_i32_2 = arith.constant 0 : i32
    return %c0_i32, %c0_i32_0, %c0_i32_1 : i32, i32, i32
  }
  func.func @transform_2(%arg0: i32) -> (i32, i32) {
    %c0_i32 = arith.constant 0 : i32
    %c0_i32_0 = arith.constant 0 : i32
    return %arg0, %c0_i32 : i32, i32
  }
}

module attributes {stable_mosaic.version = 11 : i64} {
  func.func @_conv_mm_kernel(%arg0: i32, %arg1: memref<18592x256xbf16, #tpu.memory_space<vmem>>, %arg2: memref<8x256x3xbf16, #tpu.memory_space<vmem>>, %arg3: memref<512x3xf32, #tpu.memory_space<vmem>>) attributes {dimension_semantics = [#tpu.dimension_semantics<parallel>], iteration_bounds = array<i64: 35>, scalar_prefetch = 0 : i64, scratch_operands = 0 : i64, tpu.core_type = #tpu.core_type<tc>, window_params = [{pipeline_mode = #tpu.pipeline_mode<synchronous>, transform_indices = @transform_0, window_bounds = array<i64: 18592, 256>}, {pipeline_mode = #tpu.pipeline_mode<synchronous>, transform_indices = @transform_1, window_bounds = array<i64: 8, 256, 3>}, {transform_indices = @transform_2, window_bounds = array<i64: 512, 3>}]} {
    %c512_i32 = arith.constant 512 : i32
    %0 = arith.muli %arg0, %c512_i32 : i32
    %c0_i32 = arith.constant 0 : i32
    %1 = arith.addi %0, %c0_i32 : i32
    %2 = tpu.assume_multiple %1, 32 : i32
    %3 = arith.index_cast %2 : i32 to index
    %c0 = arith.constant 0 : index
    %4 = vector.load %arg1[%3, %c0] : memref<18592x256xbf16, #tpu.memory_space<vmem>>, vector<512x256xbf16>
    %c0_0 = arith.constant 0 : index
    %c0_1 = arith.constant 0 : index
    %c0_2 = arith.constant 0 : index
    %5 = vector.load %arg2[%c0_0, %c0_1, %c0_2] : memref<8x256x3xbf16, #tpu.memory_space<vmem>>, vector<1x256x3xbf16>
    %6 = vector.shape_cast %5 : vector<1x256x3xbf16> to vector<256x3xbf16>
    %cst = arith.constant dense<0.000000e+00> : vector<512x3xf32>
    %7 = tpu.matmul %4, %6, %cst {dimension_numbers = #tpu.dot_dimension_numbers<[1], [0], [0], [1], [0, 0, 1, 1], [], []>} : vector<512x256xbf16>, vector<256x3xbf16>, vector<512x3xf32> -> vector<512x3xf32>
    %c96_i32 = arith.constant 96 : i32
    %8 = arith.addi %0, %c96_i32 : i32
    %9 = tpu.assume_multiple %8, 32 : i32
    %10 = arith.index_cast %9 : i32 to index
    %c0_3 = arith.constant 0 : index
    %11 = vector.load %arg1[%10, %c0_3] : memref<18592x256xbf16, #tpu.memory_space<vmem>>, vector<512x256xbf16>
    %c1 = arith.constant 1 : index
    %c0_4 = arith.constant 0 : index
    %c0_5 = arith.constant 0 : index
    %12 = vector.load %arg2[%c1, %c0_4, %c0_5] : memref<8x256x3xbf16, #tpu.memory_space<vmem>>, vector<1x256x3xbf16>
    %13 = vector.shape_cast %12 : vector<1x256x3xbf16> to vector<256x3xbf16>
    %cst_6 = arith.constant dense<0.000000e+00> : vector<512x3xf32>
    %14 = tpu.matmul %11, %13, %cst_6 {dimension_numbers = #tpu.dot_dimension_numbers<[1], [0], [0], [1], [0, 0, 1, 1], [], []>} : vector<512x256xbf16>, vector<256x3xbf16>, vector<512x3xf32> -> vector<512x3xf32>
    %15 = arith.addf %7, %14 : vector<512x3xf32>
    %c192_i32 = arith.constant 192 : i32
    %16 = arith.addi %0, %c192_i32 : i32
    %17 = tpu.assume_multiple %16, 32 : i32
    %18 = arith.index_cast %17 : i32 to index
    %c0_7 = arith.constant 0 : index
    %19 = vector.load %arg1[%18, %c0_7] : memref<18592x256xbf16, #tpu.memory_space<vmem>>, vector<512x256xbf16>
    %c2 = arith.constant 2 : index
    %c0_8 = arith.constant 0 : index
    %c0_9 = arith.constant 0 : index
    %20 = vector.load %arg2[%c2, %c0_8, %c0_9] : memref<8x256x3xbf16, #tpu.memory_space<vmem>>, vector<1x256x3xbf16>
    %21 = vector.shape_cast %20 : vector<1x256x3xbf16> to vector<256x3xbf16>
    %cst_10 = arith.constant dense<0.000000e+00> : vector<512x3xf32>
    %22 = tpu.matmul %19, %21, %cst_10 {dimension_numbers = #tpu.dot_dimension_numbers<[1], [0], [0], [1], [0, 0, 1, 1], [], []>} : vector<512x256xbf16>, vector<256x3xbf16>, vector<512x3xf32> -> vector<512x3xf32>
    %23 = arith.addf %15, %22 : vector<512x3xf32>
    %c288_i32 = arith.constant 288 : i32
    %24 = arith.addi %0, %c288_i32 : i32
    %25 = tpu.assume_multiple %24, 32 : i32
    %26 = arith.index_cast %25 : i32 to index
    %c0_11 = arith.constant 0 : index
    %27 = vector.load %arg1[%26, %c0_11] : memref<18592x256xbf16, #tpu.memory_space<vmem>>, vector<512x256xbf16>
    %c3 = arith.constant 3 : index
    %c0_12 = arith.constant 0 : index
    %c0_13 = arith.constant 0 : index
    %28 = vector.load %arg2[%c3, %c0_12, %c0_13] : memref<8x256x3xbf16, #tpu.memory_space<vmem>>, vector<1x256x3xbf16>
    %29 = vector.shape_cast %28 : vector<1x256x3xbf16> to vector<256x3xbf16>
    %cst_14 = arith.constant dense<0.000000e+00> : vector<512x3xf32>
    %30 = tpu.matmul %27, %29, %cst_14 {dimension_numbers = #tpu.dot_dimension_numbers<[1], [0], [0], [1], [0, 0, 1, 1], [], []>} : vector<512x256xbf16>, vector<256x3xbf16>, vector<512x3xf32> -> vector<512x3xf32>
    %31 = arith.addf %23, %30 : vector<512x3xf32>
    %c384_i32 = arith.constant 384 : i32
    %32 = arith.addi %0, %c384_i32 : i32
    %33 = tpu.assume_multiple %32, 32 : i32
    %34 = arith.index_cast %33 : i32 to index
    %c0_15 = arith.constant 0 : index
    %35 = vector.load %arg1[%34, %c0_15] : memref<18592x256xbf16, #tpu.memory_space<vmem>>, vector<512x256xbf16>
    %c4 = arith.constant 4 : index
    %c0_16 = arith.constant 0 : index
    %c0_17 = arith.constant 0 : index
    %36 = vector.load %arg2[%c4, %c0_16, %c0_17] : memref<8x256x3xbf16, #tpu.memory_space<vmem>>, vector<1x256x3xbf16>
    %37 = vector.shape_cast %36 : vector<1x256x3xbf16> to vector<256x3xbf16>
    %cst_18 = arith.constant dense<0.000000e+00> : vector<512x3xf32>
    %38 = tpu.matmul %35, %37, %cst_18 {dimension_numbers = #tpu.dot_dimension_numbers<[1], [0], [0], [1], [0, 0, 1, 1], [], []>} : vector<512x256xbf16>, vector<256x3xbf16>, vector<512x3xf32> -> vector<512x3xf32>
    %39 = arith.addf %31, %38 : vector<512x3xf32>
    %c480_i32 = arith.constant 480 : i32
    %40 = arith.addi %0, %c480_i32 : i32
    %41 = tpu.assume_multiple %40, 32 : i32
    %42 = arith.index_cast %41 : i32 to index
    %c0_19 = arith.constant 0 : index
    %43 = vector.load %arg1[%42, %c0_19] : memref<18592x256xbf16, #tpu.memory_space<vmem>>, vector<512x256xbf16>
    %c5 = arith.constant 5 : index
    %c0_20 = arith.constant 0 : index
    %c0_21 = arith.constant 0 : index
    %44 = vector.load %arg2[%c5, %c0_20, %c0_21] : memref<8x256x3xbf16, #tpu.memory_space<vmem>>, vector<1x256x3xbf16>
    %45 = vector.shape_cast %44 : vector<1x256x3xbf16> to vector<256x3xbf16>
    %cst_22 = arith.constant dense<0.000000e+00> : vector<512x3xf32>
    %46 = tpu.matmul %43, %45, %cst_22 {dimension_numbers = #tpu.dot_dimension_numbers<[1], [0], [0], [1], [0, 0, 1, 1], [], []>} : vector<512x256xbf16>, vector<256x3xbf16>, vector<512x3xf32> -> vector<512x3xf32>
    %47 = arith.addf %39, %46 : vector<512x3xf32>
    %c576_i32 = arith.constant 576 : i32
    %48 = arith.addi %0, %c576_i32 : i32
    %49 = tpu.assume_multiple %48, 32 : i32
    %50 = arith.index_cast %49 : i32 to index
    %c0_23 = arith.constant 0 : index
    %51 = vector.load %arg1[%50, %c0_23] : memref<18592x256xbf16, #tpu.memory_space<vmem>>, vector<512x256xbf16>
    %c6 = arith.constant 6 : index
    %c0_24 = arith.constant 0 : index
    %c0_25 = arith.constant 0 : index
    %52 = vector.load %arg2[%c6, %c0_24, %c0_25] : memref<8x256x3xbf16, #tpu.memory_space<vmem>>, vector<1x256x3xbf16>
    %53 = vector.shape_cast %52 : vector<1x256x3xbf16> to vector<256x3xbf16>
    %cst_26 = arith.constant dense<0.000000e+00> : vector<512x3xf32>
    %54 = tpu.matmul %51, %53, %cst_26 {dimension_numbers = #tpu.dot_dimension_numbers<[1], [0], [0], [1], [0, 0, 1, 1], [], []>} : vector<512x256xbf16>, vector<256x3xbf16>, vector<512x3xf32> -> vector<512x3xf32>
    %55 = arith.addf %47, %54 : vector<512x3xf32>
    %c672_i32 = arith.constant 672 : i32
    %56 = arith.addi %0, %c672_i32 : i32
    %57 = tpu.assume_multiple %56, 32 : i32
    %58 = arith.index_cast %57 : i32 to index
    %c0_27 = arith.constant 0 : index
    %59 = vector.load %arg1[%58, %c0_27] : memref<18592x256xbf16, #tpu.memory_space<vmem>>, vector<512x256xbf16>
    %c7 = arith.constant 7 : index
    %c0_28 = arith.constant 0 : index
    %c0_29 = arith.constant 0 : index
    %60 = vector.load %arg2[%c7, %c0_28, %c0_29] : memref<8x256x3xbf16, #tpu.memory_space<vmem>>, vector<1x256x3xbf16>
    %61 = vector.shape_cast %60 : vector<1x256x3xbf16> to vector<256x3xbf16>
    %cst_30 = arith.constant dense<0.000000e+00> : vector<512x3xf32>
    %62 = tpu.matmul %59, %61, %cst_30 {dimension_numbers = #tpu.dot_dimension_numbers<[1], [0], [0], [1], [0, 0, 1, 1], [], []>} : vector<512x256xbf16>, vector<256x3xbf16>, vector<512x3xf32> -> vector<512x3xf32>
    %63 = arith.addf %55, %62 : vector<512x3xf32>
    %64 = arith.negf %63 : vector<512x3xf32>
    %65 = math.exp %64 : vector<512x3xf32>
    %cst_31 = arith.constant 1.000000e+00 : f32
    %66 = vector.broadcast %cst_31 : f32 to vector<512x3xf32>
    %67 = arith.addf %66, %65 : vector<512x3xf32>
    %68 = arith.divf %66, %67 : vector<512x3xf32>
    %c0_32 = arith.constant 0 : index
    %c0_33 = arith.constant 0 : index
    %69 = vector.load %arg3[%c0_32, %c0_33] : memref<512x3xf32, #tpu.memory_space<vmem>>, vector<512x3xf32>
    tpu.vector_store %arg3[%c0_32, %c0_33], %68 {strides = array<i32>} : memref<512x3xf32, #tpu.memory_space<vmem>>, vector<512x3xf32>,
    return
  }
  func.func @transform_0(%arg0: i32) -> (i32, i32) {
    %c0_i32 = arith.constant 0 : i32
    %c0_i32_0 = arith.constant 0 : i32
    %c0_i32_1 = arith.constant 0 : i32
    return %c0_i32, %c0_i32_0 : i32, i32
  }
  func.func @transform_1(%arg0: i32) -> (i32, i32, i32) {
    %c0_i32 = arith.constant 0 : i32
    %c0_i32_0 = arith.constant 0 : i32
    %c0_i32_1 = arith.constant 0 : i32
    %c0_i32_2 = arith.constant 0 : i32
    return %c0_i32, %c0_i32_0, %c0_i32_1 : i32, i32, i32
  }
  func.func @transform_2(%arg0: i32) -> (i32, i32) {
    %c0_i32 = arith.constant 0 : i32
    %c0_i32_0 = arith.constant 0 : i32
    return %arg0, %c0_i32 : i32, i32
  }
}

</mosaic_0001>

<bundles_post_ra>
// kernel: vae_forward.8
= control target key start
LH: loop header
LB: loop body
LE: loop exit
PB: predicated region body
PF: predicated region fallthrough
CT: control target
= control target key end

     0   :  { %s1821_s9 = smov 0   ;;  %s2100_s0 = inlined_call_operand.vmem [shape: bf16[1536,147], index: 0, kind: input, shape index: {}]   ;;  %s2101_s1 = inlined_call_operand.vmem [shape: bf16[1,147,32], index: 1, kind: input, shape index: {}]   ;;  %s2102_s2 = inlined_call_operand.vmem [shape: bf16[1536,32], index: 2, kind: output, shape index: {}]  }
   0x1 LB: > { %s1413_s10 = sadd.s32 4294967295, %s1802_s9   ;;  %p1417_p0 = scmp.ge.s32.totalorder %s1802_s9, 1  ;;  %s1802_s9 = sphi %s1821_s9, %s12_s9  }
   0x2   : > { %p114_p1 = scmp.lt.s32.totalorder %s1802_s9, 4 }
   0x4   : > { %p115_p2 = pnand %p1417_p0, %p114_p1 }
   0x5   : > { %s1418_s17 = sshll.u32 (!%p115_p2), %s1413_s10, 6 }
   0x6   : > { %118 = sbr.rel (%p115_p2) target bundleno = 374 (0x176), region = 28  ;;  %p138_p3 = scmp.lt.s32.totalorder (!%p115_p2), %s1418_s17, 191 }
   0xb   : > { %v1690_v0 = vld [vmem:[%s2101_s1 + $0x38] sm:$0xff]   ;;  %v1804_v1 = vmov 0   ;;  %v1691_v2 = vld [vmem:[%s2101_s1 + $0x30] sm:$0xff]   ;;  %v1692_v3 = vld [vmem:[%s2101_s1 + $0x28] sm:$0xff]   ;;  %s2104_s17 = smov (!%p138_p3, %s1418_s17), 191  ;;  %vm579_vm0 = vcmask 154624  }
   0xc   : > { %683 = vmatprep.subr.bf16.mxu0 %v1804_v1  ;;  %1660 = vmatprep.subr.bf16.mxu1 %v1804_v1  ;;  %v1693_v4 = vld [vmem:[%s2101_s1 + $0x20] sm:$0xff]   ;;  %s1595_s20 = sshll.u32 %s2104_s17, 3  ;;  %v1694_v5 = vld [vmem:[%s2101_s1 + $0x18] sm:$0xff]   ;;  %v1695_v8 = vld [vmem:[%s2101_s1 + $0x10] sm:$0xff]   ;;  %vm676_vm1 = vcmask 1040384   ;;  %vm677_vm2 = vcmask 1041408  }
   0xd   : > { %684 = vmatpush1.bf16.msra.mxu0 %v1690_v0  ;;  %1670 = vmatpush1.bf16.msra.mxu1 %v1690_v0  ;;  %s1847_s23 = scalar_lea.vmem %s2100_s0, %s1595_s20  ;;  %v1696_v9 = vld [vmem:[%s2101_s1 + $0x8] sm:$0xff]   ;;  %v1805_v10 = vmov 65535   ;;  %v1697_v12 = vld [vmem:[%s2101_s1] sm:$0xff]   ;;  %s1422_s8 = sshll.u32 %s2104_s17, 2  ;;  %vm1292_vm3 = vcmask 257024  }
   0xe   : > { %685 = vmatprep.subr.bf16.mxu0 %v1804_v1  ;;  %1661 = vmatprep.subr.bf16.mxu1 %v1804_v1  ;;  %v1702_v6 = vld [vmem:[%s1847_s23 + $0x4] ss:$8 sps:$4 sm:$0xff]   ;;  %v678_v11 = vsel %vm676_vm1, 4294967295, %v1805_v10  ;;  %v1698_v13 = vld [vmem:[%s2101_s1 + $0x48] ss:$0 sps:$4 sm:$0x33]   ;;  %s1967_s12 = scalar_lea.vmem %s2102_s2, %s1422_s8 }
   0xf   : > { %v1705_v7 = vld [vmem:[%s1847_s23 + $0x104] ss:$8 sps:$4 sm:$0xff]   ;;  %1497 = vmatprep.mubr.msk.bf16.mxu0 %vm579_vm0, %v1702_v6  ;;  %v679_v14 = vsel %vm677_vm2, %v678_v11, 0  ;;  %v1700_v17 = vld [vmem:[%s1847_s23] ss:$8 sps:$4 sm:$0xff]  }
  0x10   : > { %1513 = vmatprep.mubr.msk.bf16.mxu1 %vm579_vm0, %v1705_v7  ;;  %v681_v15 = vand.u32 %v1698_v13, %v679_v14  ;;  %v1699_v16 = vld [vmem:[%s2101_s1 + $0x40] sm:$0xff]   ;;  %v1706_v19 = vld [vmem:[%s1847_s23 + $0x14] ss:$8 sps:$4 sm:$0xff]   ;;  %v1710_v21 = vld [vmem:[%s1847_s23 + $0x10] ss:$8 sps:$4 sm:$0xff]  }
  0x11   : > { %686 = vmatpush1.bf16.msra.mxu0 %v1691_v2  ;;  %1671 = vmatpush1.bf16.msra.mxu1 %v1691_v2  ;;  %v1703_v18 = vld [vmem:[%s1847_s23 + $0x100] ss:$8 sps:$4 sm:$0xff]   ;;  %v1708_v20 = vld [vmem:[%s1847_s23 + $0x114] ss:$8 sps:$4 sm:$0xff]   ;;  %v1711_v22 = vld [vmem:[%s1847_s23 + $0x110] ss:$8 sps:$4 sm:$0xff]  }
  0x12   : > { %687 = vmatprep.subr.bf16.mxu0 %v1804_v1  ;;  %1662 = vmatprep.subr.bf16.mxu1 %v1804_v1  ;;  %v1712_v23 = vld [vmem:[%s1847_s23 + $0x24] ss:$8 sps:$4 sm:$0xff]   ;;  %v1716_v25 = vld [vmem:[%s1847_s23 + $0x20] ss:$8 sps:$4 sm:$0xff]   ;;  %v1718_v27 = vld [vmem:[%s1847_s23 + $0x34] ss:$8 sps:$4 sm:$0xff]  }
  0x13   : > { %v1714_v24 = vld [vmem:[%s1847_s23 + $0x124] ss:$8 sps:$4 sm:$0xff]   ;;  %v1717_v26 = vld [vmem:[%s1847_s23 + $0x120] ss:$8 sps:$4 sm:$0xff]   ;;  %v1720_v28 = vld [vmem:[%s1847_s23 + $0x134] ss:$8 sps:$4 sm:$0xff]  }
  0x14   : > { %v1722_v29 = vld [vmem:[%s1847_s23 + $0x30] ss:$8 sps:$4 sm:$0xff]   ;;  %v1724_v31 = vld [vmem:[%s1847_s23 + $0x44] ss:$8 sps:$4 sm:$0xff]   ;;  %v1728_v33 = vld [vmem:[%s1847_s23 + $0x40] ss:$8 sps:$4 sm:$0xff]  }
  0x15   : > { %688 = vmatpush1.bf16.msra.mxu0 %v1692_v3  ;;  %1672 = vmatpush1.bf16.msra.mxu1 %v1692_v3  ;;  %v1723_v30 = vld [vmem:[%s1847_s23 + $0x130] ss:$8 sps:$4 sm:$0xff]   ;;  %v1726_v32 = vld [vmem:[%s1847_s23 + $0x144] ss:$8 sps:$4 sm:$0xff]   ;;  %v1729_v34 = vld [vmem:[%s1847_s23 + $0x140] ss:$8 sps:$4 sm:$0xff]  }
  0x16   : > { %689 = vmatprep.subr.bf16.mxu0 %v1804_v1  ;;  %1663 = vmatprep.subr.bf16.mxu1 %v1804_v1  ;;  %v1730_v35 = vld [vmem:[%s1847_s23 + $0x54] ss:$8 sps:$4 sm:$0xff]   ;;  %v1734_v37 = vld [vmem:[%s1847_s23 + $0x50] ss:$8 sps:$4 sm:$0xff]   ;;  %v1736_v39 = vld [vmem:[%s1847_s23 + $0x64] ss:$8 sps:$4 sm:$0xff]  }
  0x17   : > { %v1732_v36 = vld [vmem:[%s1847_s23 + $0x154] ss:$8 sps:$4 sm:$0xff]   ;;  %v1735_v38 = vld [vmem:[%s1847_s23 + $0x150] ss:$8 sps:$4 sm:$0xff]   ;;  %v1738_v40 = vld [vmem:[%s1847_s23 + $0x164] ss:$8 sps:$4 sm:$0xff]  }
  0x18   : > { %v1740_v41 = vld [vmem:[%s1847_s23 + $0x60] ss:$8 sps:$4 sm:$0xff]   ;;  %v1742_v43 = vld [vmem:[%s1847_s23 + $0x74] ss:$8 sps:$4 sm:$0xff]   ;;  %v1746_v45 = vld [vmem:[%s1847_s23 + $0x70] ss:$8 sps:$4 sm:$0xff]  }
  0x19   : > { %690 = vmatpush1.bf16.msra.mxu0 %v1693_v4  ;;  %1673 = vmatpush1.bf16.msra.mxu1 %v1693_v4  ;;  %v1741_v42 = vld [vmem:[%s1847_s23 + $0x160] ss:$8 sps:$4 sm:$0xff]   ;;  %v1744_v44 = vld [vmem:[%s1847_s23 + $0x174] ss:$8 sps:$4 sm:$0xff]   ;;  %v1747_v46 = vld [vmem:[%s1847_s23 + $0x170] ss:$8 sps:$4 sm:$0xff]  }
  0x1a   : > { %691 = vmatprep.subr.bf16.mxu0 %v1804_v1  ;;  %1664 = vmatprep.subr.bf16.mxu1 %v1804_v1  ;;  %v1748_v47 = vld [vmem:[%s1847_s23 + $0x84] ss:$8 sps:$4 sm:$0xff]   ;;  %v1752_v49 = vld [vmem:[%s1847_s23 + $0x80] ss:$8 sps:$4 sm:$0xff]   ;;  %v1754_v51 = vld [vmem:[%s1847_s23 + $0x94] ss:$8 sps:$4 sm:$0xff]  }
  0x1b   : > { %v1750_v48 = vld [vmem:[%s1847_s23 + $0x184] ss:$8 sps:$4 sm:$0xff]   ;;  %v1753_v50 = vld [vmem:[%s1847_s23 + $0x180] ss:$8 sps:$4 sm:$0xff]   ;;  %v1756_v52 = vld [vmem:[%s1847_s23 + $0x194] ss:$8 sps:$4 sm:$0xff]  }
  0x1c   : > { %v1758_v53 = vld [vmem:[%s1847_s23 + $0x90] ss:$8 sps:$4 sm:$0xff]   ;;  %v1760_v55 = vld [vmem:[%s1847_s23 + $0xa4] ss:$8 sps:$4 sm:$0xff]   ;;  %v1764_v57 = vld [vmem:[%s1847_s23 + $0xa0] ss:$8 sps:$4 sm:$0xff]  }
  0x1d   : > { %692 = vmatpush1.bf16.msra.mxu0 %v1694_v5  ;;  %1674 = vmatpush1.bf16.msra.mxu1 %v1694_v5  ;;  %v1759_v54 = vld [vmem:[%s1847_s23 + $0x190] ss:$8 sps:$4 sm:$0xff]   ;;  %v1762_v56 = vld [vmem:[%s1847_s23 + $0x1a4] ss:$8 sps:$4 sm:$0xff]   ;;  %v1765_v58 = vld [vmem:[%s1847_s23 + $0x1a0] ss:$8 sps:$4 sm:$0xff]  }
  0x1e   : > { %693 = vmatprep.subr.bf16.mxu0 %v1804_v1  ;;  %1665 = vmatprep.subr.bf16.mxu1 %v1804_v1  ;;  %v1766_v59 = vld [vmem:[%s1847_s23 + $0xb4] ss:$8 sps:$4 sm:$0xff]   ;;  %v1770_v61 = vld [vmem:[%s1847_s23 + $0xb0] ss:$8 sps:$4 sm:$0xff]   ;;  %v1772_v63 = vld [vmem:[%s1847_s23 + $0xc4] ss:$8 sps:$4 sm:$0xff]  }
  0x1f   : > { %v1768_v60 = vld [vmem:[%s1847_s23 + $0x1b4] ss:$8 sps:$4 sm:$0xff]   ;;  %v1771_v62 = vld [vmem:[%s1847_s23 + $0x1b0] ss:$8 sps:$4 sm:$0xff]   ;;  %v1774_v0 = vld [vmem:[%s1847_s23 + $0x1c4] ss:$8 sps:$4 sm:$0xff]  }
  0x20   : > { %v1777_v2 = vld [vmem:[%s1847_s23 + $0x1c0] ss:$8 sps:$4 sm:$0xff]   ;;  %v1778_v3 = vld [vmem:[%s1847_s23 + $0xd4] ss:$8 sps:$4 sm:$0xff]   ;;  %v1782_v5 = vld [vmem:[%s1847_s23 + $0xd0] ss:$8 sps:$4 sm:$0xff]  }
  0x21   : > { %694 = vmatpush1.bf16.msra.mxu0 %v1695_v8  ;;  %1675 = vmatpush1.bf16.msra.mxu1 %v1695_v8  ;;  %v1780_v4 = vld [vmem:[%s1847_s23 + $0x1d4] ss:$8 sps:$4 sm:$0xff]   ;;  %v1783_v6 = vld [vmem:[%s1847_s23 + $0x1d0] ss:$8 sps:$4 sm:$0xff]   ;;  %v1784_v7 = vld [vmem:[%s1847_s23 + $0xe4] ss:$8 sps:$4 sm:$0xff]  }
  0x22   : > { %695 = vmatprep.subr.bf16.mxu0 %v1804_v1  ;;  %1666 = vmatprep.subr.bf16.mxu1 %v1804_v1  ;;  %v1786_v8 = vld [vmem:[%s1847_s23 + $0x1e4] ss:$8 sps:$4 sm:$0xff]   ;;  %v1789_v10 = vld [vmem:[%s1847_s23 + $0x1e0] ss:$8 sps:$4 sm:$0xff]   ;;  %v1790_v11 = vld [vmem:[%s1847_s23 + $0xf4] ss:$8 sps:$4 sm:$0xff]  }
  0x23   : > { %v1794_v13 = vld [vmem:[%s1847_s23 + $0xf0] ss:$8 sps:$4 sm:$0xff]  }
  0x24   : > { %v1795_v14 = vld [vmem:[%s1847_s23 + $0x1f0] ss:$8 sps:$4 sm:$0xff]  }
  0x25   : > { %696 = vmatpush1.bf16.msra.mxu0 %v1696_v9  ;;  %1676 = vmatpush1.bf16.msra.mxu1 %v1696_v9  ;;  %v1788_v9 = vld [vmem:[%s1847_s23 + $0xe0] ss:$8 sps:$4 sm:$0xff]  }
  0x26   : > { %697 = vmatprep.subr.bf16.mxu0 %v1804_v1  ;;  %1667 = vmatprep.subr.bf16.mxu1 %v1804_v1 }
  0x29   : > { %698 = vmatpush1.bf16.msra.mxu0 %v1697_v12  ;;  %1677 = vmatpush1.bf16.msra.mxu1 %v1697_v12  ;;  %v1792_v12 = vld [vmem:[%s1847_s23 + $0x1f4] ss:$8 sps:$4 sm:$0xff]  }
  0x2a   : > { %711 = vmatprep.subr.bf16.mxu0 %v1804_v1  ;;  %1668 = vmatprep.subr.bf16.mxu1 %v1804_v1 }
  0x2d   : > { %712 = vmatpush2.bf16.msra.mxu0 %v681_v15  ;;  %1678 = vmatpush2.bf16.msra.mxu1 %v681_v15 }
  0x2e   : > { %713 = vmatprep.subr.bf16.mxu0 %v1804_v1  ;;  %1669 = vmatprep.subr.bf16.mxu1 %v1804_v1  ;;  %v1776_v1 = vld [vmem:[%s1847_s23 + $0xc0] ss:$8 sps:$4 sm:$0xff]  }
  0x31   : > { %714 = vmatpush2.bf16.msra.mxu0 %v1699_v16  ;;  %1679 = vmatpush2.bf16.msra.mxu1 %v1699_v16 }
  0x34   : > { %716 = vmatmul.mubr.bf16.vlgmr.msra.gmra.mxu0 %v1700_v17  ;;  %844 = vmatmul.mubr.bf16.vlgmr.msra.gmra.mxu1 %v1703_v18 }
  0x35   : > { %1498 = vmatprep.mubr.msk.bf16.mxu0 %vm579_vm0, %v1706_v19  ;;  %1514 = vmatprep.mubr.msk.bf16.mxu1 %vm579_vm0, %v1708_v20 }
  0x3c   : > { %724 = vmatmul.mubr.bf16.gmra.mxu0 %v1710_v21  ;;  %852 = vmatmul.mubr.bf16.gmra.mxu1 %v1711_v22 }
  0x3d   : > { %1499 = vmatprep.mubr.msk.bf16.mxu0 %vm579_vm0, %v1712_v23  ;;  %1515 = vmatprep.mubr.msk.bf16.mxu1 %vm579_vm0, %v1714_v24 }
  0x44   : > { %732 = vmatmul.mubr.bf16.gmra.mxu0 %v1716_v25  ;;  %860 = vmatmul.mubr.bf16.gmra.mxu1 %v1717_v26 }
  0x45   : > { %1500 = vmatprep.mubr.msk.bf16.mxu0 %vm579_vm0, %v1718_v27  ;;  %1516 = vmatprep.mubr.msk.bf16.mxu1 %vm579_vm0, %v1720_v28 }
  0x4c   : > { %740 = vmatmul.mubr.bf16.gmra.mxu0 %v1722_v29  ;;  %868 = vmatmul.mubr.bf16.gmra.mxu1 %v1723_v30 }
  0x4d   : > { %1501 = vmatprep.mubr.msk.bf16.mxu0 %vm579_vm0, %v1724_v31  ;;  %1517 = vmatprep.mubr.msk.bf16.mxu1 %vm579_vm0, %v1726_v32 }
  0x54   : > { %748 = vmatmul.mubr.bf16.gmra.mxu0 %v1728_v33  ;;  %876 = vmatmul.mubr.bf16.gmra.mxu1 %v1729_v34 }
  0x55   : > { %1502 = vmatprep.mubr.msk.bf16.mxu0 %vm579_vm0, %v1730_v35  ;;  %1518 = vmatprep.mubr.msk.bf16.mxu1 %vm579_vm0, %v1732_v36 }
  0x5c   : > { %756 = vmatmul.mubr.bf16.gmra.mxu0 %v1734_v37  ;;  %884 = vmatmul.mubr.bf16.gmra.mxu1 %v1735_v38 }
  0x5d   : > { %1503 = vmatprep.mubr.msk.bf16.mxu0 %vm579_vm0, %v1736_v39  ;;  %1519 = vmatprep.mubr.msk.bf16.mxu1 %vm579_vm0, %v1738_v40 }
  0x64   : > { %764 = vmatmul.mubr.bf16.gmra.mxu0 %v1740_v41  ;;  %892 = vmatmul.mubr.bf16.gmra.mxu1 %v1741_v42 }
  0x65   : > { %1504 = vmatprep.mubr.msk.bf16.mxu0 %vm579_vm0, %v1742_v43  ;;  %1520 = vmatprep.mubr.msk.bf16.mxu1 %vm579_vm0, %v1744_v44 }
  0x6c   : > { %772 = vmatmul.mubr.bf16.gmra.mxu0 %v1746_v45  ;;  %900 = vmatmul.mubr.bf16.gmra.mxu1 %v1747_v46 }
  0x6d   : > { %1505 = vmatprep.mubr.msk.bf16.mxu0 %vm579_vm0, %v1748_v47  ;;  %1521 = vmatprep.mubr.msk.bf16.mxu1 %vm579_vm0, %v1750_v48 }
  0x74   : > { %780 = vmatmul.mubr.bf16.gmra.mxu0 %v1752_v49  ;;  %908 = vmatmul.mubr.bf16.gmra.mxu1 %v1753_v50 }
  0x75   : > { %1506 = vmatprep.mubr.msk.bf16.mxu0 %vm579_vm0, %v1754_v51  ;;  %1522 = vmatprep.mubr.msk.bf16.mxu1 %vm579_vm0, %v1756_v52 }
  0x7c   : > { %788 = vmatmul.mubr.bf16.gmra.mxu0 %v1758_v53  ;;  %916 = vmatmul.mubr.bf16.gmra.mxu1 %v1759_v54 }
  0x7d   : > { %1507 = vmatprep.mubr.msk.bf16.mxu0 %vm579_vm0, %v1760_v55  ;;  %1523 = vmatprep.mubr.msk.bf16.mxu1 %vm579_vm0, %v1762_v56 }
  0x84   : > { %796 = vmatmul.mubr.bf16.gmra.mxu0 %v1764_v57  ;;  %924 = vmatmul.mubr.bf16.gmra.mxu1 %v1765_v58 }
  0x85   : > { %1508 = vmatprep.mubr.msk.bf16.mxu0 %vm579_vm0, %v1766_v59  ;;  %1524 = vmatprep.mubr.msk.bf16.mxu1 %vm579_vm0, %v1768_v60 }
  0x8c   : > { %804 = vmatmul.mubr.bf16.gmra.mxu0 %v1770_v61  ;;  %932 = vmatmul.mubr.bf16.gmra.mxu1 %v1771_v62 }
  0x8d   : > { %1509 = vmatprep.mubr.msk.bf16.mxu0 %vm579_vm0, %v1772_v63  ;;  %1525 = vmatprep.mubr.msk.bf16.mxu1 %vm579_vm0, %v1774_v0 }
  0x94   : > { %812 = vmatmul.mubr.bf16.gmra.mxu0 %v1776_v1  ;;  %940 = vmatmul.mubr.bf16.gmra.mxu1 %v1777_v2 }
  0x95   : > { %1510 = vmatprep.mubr.msk.bf16.mxu0 %vm579_vm0, %v1778_v3  ;;  %1526 = vmatprep.mubr.msk.bf16.mxu1 %vm579_vm0, %v1780_v4 }
  0x9c   : > { %820 = vmatmul.mubr.bf16.gmra.mxu0 %v1782_v5  ;;  %948 = vmatmul.mubr.bf16.gmra.mxu1 %v1783_v6 }
  0x9d   : > { %1511 = vmatprep.mubr.msk.bf16.mxu0 %vm579_vm0, %v1784_v7  ;;  %1527 = vmatprep.mubr.msk.bf16.mxu1 %vm579_vm0, %v1786_v8 }
  0xa4   : > { %828 = vmatmul.mubr.bf16.gmra.mxu0 %v1788_v9  ;;  %956 = vmatmul.mubr.bf16.gmra.mxu1 %v1789_v10 }
  0xa5   : > { %1512 = vmatprep.mubr.msk.bf16.mxu0 %vm579_vm0, %v1790_v11  ;;  %1528 = vmatprep.mubr.msk.bf16.mxu1 %vm579_vm0, %v1792_v12 }
  0xac   : > { %836 = vmatmul.mubr.bf16.gmra.mxu0 %v1794_v13  ;;  %964 = vmatmul.mubr.bf16.gmra.mxu1 %v1795_v14 }
  0xf4   : > { %v717_v15 = vpop.f32.mrf.mxu0  ;;  %v845_v16 = vpop.f32.mrf.mxu1 }
  0xf5   : > { %v972_v17 = vmax.f32 %v717_v15, 0.0  ;;  %v1004_v18 = vmax.f32 %v845_v16, 0.0 }
  0xf6   : > { %v719_v19 = vpop.f32.mrf.mxu0  ;;  %v847_v20 = vpop.f32.mrf.mxu1 }
  0xf7   : > { %v1596_v21 = vpack.c.bf16 %v972_v17, %v972_v17  ;;  %v1628_v22 = vpack.c.bf16 %v1004_v18, %v1004_v18 }
  0xf8   : > { %v720_v23 = vpop.f32.mrf.mxu0  ;;  %v848_v24 = vpop.f32.mrf.mxu1 }
  0xf9   : > { %1293 = vst.msk [vmem:[%s1967_s12] sm:$0xf] %vm1292_vm3, %v1596_v21  ;;  %1325 = vst.msk [vmem:[%s1967_s12 + $0x80] sm:$0xf] %vm1292_vm3, %v1628_v22  ;;  %v973_v25 = vmax.f32 %v720_v23, 0.0  ;;  %v1005_v26 = vmax.f32 %v848_v24, 0.0 }
  0xfa   : > { %v722_v27 = vpop.f32.mrf.mxu0  ;;  %v850_v28 = vpop.f32.mrf.mxu1 }
  0xfb   : > { %v1597_v29 = vpack.c.bf16 %v973_v25, %v973_v25  ;;  %v1629_v30 = vpack.c.bf16 %v1005_v26, %v1005_v26 }
  0xfc   : > { %v725_v31 = vpop.f32.mrf.mxu0  ;;  %v853_v32 = vpop.f32.mrf.mxu1 }
  0xfd   : > { %1294 = vst.msk [vmem:[%s1967_s12 + $0x4] sm:$0xf] %vm1292_vm3, %v1597_v29  ;;  %1326 = vst.msk [vmem:[%s1967_s12 + $0x84] sm:$0xf] %vm1292_vm3, %v1629_v30  ;;  %v974_v33 = vmax.f32 %v725_v31, 0.0  ;;  %v1006_v34 = vmax.f32 %v853_v32, 0.0 }
  0xfe   : > { %v727_v35 = vpop.f32.mrf.mxu0  ;;  %v855_v36 = vpop.f32.mrf.mxu1 }
  0xff   : > { %v1598_v37 = vpack.c.bf16 %v974_v33, %v974_v33  ;;  %v1630_v38 = vpack.c.bf16 %v1006_v34, %v1006_v34 }
 0x100   : > { %v728_v39 = vpop.f32.mrf.mxu0  ;;  %v856_v40 = vpop.f32.mrf.mxu1 }
 0x101   : > { %1295 = vst.msk [vmem:[%s1967_s12 + $0x8] sm:$0xf] %vm1292_vm3, %v1598_v37  ;;  %1327 = vst.msk [vmem:[%s1967_s12 + $0x88] sm:$0xf] %vm1292_vm3, %v1630_v38  ;;  %v975_v41 = vmax.f32 %v728_v39, 0.0  ;;  %v1007_v42 = vmax.f32 %v856_v40, 0.0 }
 0x102   : > { %v730_v43 = vpop.f32.mrf.mxu0  ;;  %v858_v44 = vpop.f32.mrf.mxu1 }
 0x103   : > { %v1599_v45 = vpack.c.bf16 %v975_v41, %v975_v41  ;;  %v1631_v46 = vpack.c.bf16 %v1007_v42, %v1007_v42 }
 0x104   : > { %v733_v47 = vpop.f32.mrf.mxu0  ;;  %v861_v48 = vpop.f32.mrf.mxu1 }
 0x105   : > { %1296 = vst.msk [vmem:[%s1967_s12 + $0xc] sm:$0xf] %vm1292_vm3, %v1599_v45  ;;  %1328 = vst.msk [vmem:[%s1967_s12 + $0x8c] sm:$0xf] %vm1292_vm3, %v1631_v46  ;;  %v976_v49 = vmax.f32 %v733_v47, 0.0  ;;  %v1008_v50 = vmax.f32 %v861_v48, 0.0 }
 0x106   : > { %v735_v51 = vpop.f32.mrf.mxu0  ;;  %v863_v52 = vpop.f32.mrf.mxu1 }
 0x107   : > { %v1600_v53 = vpack.c.bf16 %v976_v49, %v976_v49  ;;  %v1632_v54 = vpack.c.bf16 %v1008_v50, %v1008_v50 }
 0x108   : > { %v736_v55 = vpop.f32.mrf.mxu0  ;;  %v864_v56 = vpop.f32.mrf.mxu1 }
 0x109   : > { %1297 = vst.msk [vmem:[%s1967_s12 + $0x10] sm:$0xf] %vm1292_vm3, %v1600_v53  ;;  %1329 = vst.msk [vmem:[%s1967_s12 + $0x90] sm:$0xf] %vm1292_vm3, %v1632_v54  ;;  %v977_v57 = vmax.f32 %v736_v55, 0.0  ;;  %v1009_v58 = vmax.f32 %v864_v56, 0.0 }
 0x10a   : > { %v738_v59 = vpop.f32.mrf.mxu0  ;;  %v866_v60 = vpop.f32.mrf.mxu1 }
 0x10b   : > { %v1601_v61 = vpack.c.bf16 %v977_v57, %v977_v57  ;;  %v1633_v62 = vpack.c.bf16 %v1009_v58, %v1009_v58 }
 0x10c   : > { %v741_v63 = vpop.f32.mrf.mxu0  ;;  %v869_v0 = vpop.f32.mrf.mxu1 }
 0x10d   : > { %1298 = vst.msk [vmem:[%s1967_s12 + $0x14] sm:$0xf] %vm1292_vm3, %v1601_v61  ;;  %1330 = vst.msk [vmem:[%s1967_s12 + $0x94] sm:$0xf] %vm1292_vm3, %v1633_v62  ;;  %v978_v1 = vmax.f32 %v741_v63, 0.0  ;;  %v1010_v2 = vmax.f32 %v869_v0, 0.0 }
 0x10e   : > { %v743_v3 = vpop.f32.mrf.mxu0  ;;  %v871_v4 = vpop.f32.mrf.mxu1 }
 0x10f   : > { %v1602_v5 = vpack.c.bf16 %v978_v1, %v978_v1  ;;  %v1634_v6 = vpack.c.bf16 %v1010_v2, %v1010_v2 }
 0x110   : > { %v744_v7 = vpop.f32.mrf.mxu0  ;;  %v872_v8 = vpop.f32.mrf.mxu1 }
 0x111   : > { %1299 = vst.msk [vmem:[%s1967_s12 + $0x18] sm:$0xf] %vm1292_vm3, %v1602_v5  ;;  %1331 = vst.msk [vmem:[%s1967_s12 + $0x98] sm:$0xf] %vm1292_vm3, %v1634_v6  ;;  %v979_v9 = vmax.f32 %v744_v7, 0.0  ;;  %v1011_v10 = vmax.f32 %v872_v8, 0.0 }
 0x112   : > { %v746_v11 = vpop.f32.mrf.mxu0  ;;  %v874_v12 = vpop.f32.mrf.mxu1 }
 0x113   : > { %v1603_v13 = vpack.c.bf16 %v979_v9, %v979_v9  ;;  %v1635_v14 = vpack.c.bf16 %v1011_v10, %v1011_v10 }
 0x114   : > { %v749_v15 = vpop.f32.mrf.mxu0  ;;  %v877_v16 = vpop.f32.mrf.mxu1 }
 0x115   : > { %1300 = vst.msk [vmem:[%s1967_s12 + $0x1c] sm:$0xf] %vm1292_vm3, %v1603_v13  ;;  %1332 = vst.msk [vmem:[%s1967_s12 + $0x9c] sm:$0xf] %vm1292_vm3, %v1635_v14  ;;  %v980_v17 = vmax.f32 %v749_v15, 0.0  ;;  %v1012_v18 = vmax.f32 %v877_v16, 0.0 }
 0x116   : > { %v751_v19 = vpop.f32.mrf.mxu0  ;;  %v879_v20 = vpop.f32.mrf.mxu1 }
 0x117   : > { %v1604_v21 = vpack.c.bf16 %v980_v17, %v980_v17  ;;  %v1636_v22 = vpack.c.bf16 %v1012_v18, %v1012_v18 }
 0x118   : > { %v752_v23 = vpop.f32.mrf.mxu0  ;;  %v880_v24 = vpop.f32.mrf.mxu1 }
 0x119   : > { %1301 = vst.msk [vmem:[%s1967_s12 + $0x20] sm:$0xf] %vm1292_vm3, %v1604_v21  ;;  %1333 = vst.msk [vmem:[%s1967_s12 + $0xa0] sm:$0xf] %vm1292_vm3, %v1636_v22  ;;  %v981_v25 = vmax.f32 %v752_v23, 0.0  ;;  %v1013_v26 = vmax.f32 %v880_v24, 0.0 }
 0x11a   : > { %v754_v27 = vpop.f32.mrf.mxu0  ;;  %v882_v28 = vpop.f32.mrf.mxu1 }
 0x11b   : > { %v1605_v29 = vpack.c.bf16 %v981_v25, %v981_v25  ;;  %v1637_v30 = vpack.c.bf16 %v1013_v26, %v1013_v26 }
 0x11c   : > { %v757_v31 = vpop.f32.mrf.mxu0  ;;  %v885_v32 = vpop.f32.mrf.mxu1 }
 0x11d   : > { %1302 = vst.msk [vmem:[%s1967_s12 + $0x24] sm:$0xf] %vm1292_vm3, %v1605_v29  ;;  %1334 = vst.msk [vmem:[%s1967_s12 + $0xa4] sm:$0xf] %vm1292_vm3, %v1637_v30  ;;  %v982_v33 = vmax.f32 %v757_v31, 0.0  ;;  %v1014_v34 = vmax.f32 %v885_v32, 0.0 }
 0x11e   : > { %v759_v35 = vpop.f32.mrf.mxu0  ;;  %v887_v36 = vpop.f32.mrf.mxu1 }
 0x11f   : > { %v1606_v37 = vpack.c.bf16 %v982_v33, %v982_v33  ;;  %v1638_v38 = vpack.c.bf16 %v1014_v34, %v1014_v34 }
 0x120   : > { %v760_v39 = vpop.f32.mrf.mxu0  ;;  %v888_v40 = vpop.f32.mrf.mxu1 }
 0x121   : > { %1303 = vst.msk [vmem:[%s1967_s12 + $0x28] sm:$0xf] %vm1292_vm3, %v1606_v37  ;;  %1335 = vst.msk [vmem:[%s1967_s12 + $0xa8] sm:$0xf] %vm1292_vm3, %v1638_v38  ;;  %v983_v41 = vmax.f32 %v760_v39, 0.0  ;;  %v1015_v42 = vmax.f32 %v888_v40, 0.0 }
 0x122   : > { %v762_v43 = vpop.f32.mrf.mxu0  ;;  %v890_v44 = vpop.f32.mrf.mxu1 }
 0x123   : > { %v1607_v45 = vpack.c.bf16 %v983_v41, %v983_v41  ;;  %v1639_v46 = vpack.c.bf16 %v1015_v42, %v1015_v42 }
 0x124   : > { %v765_v47 = vpop.f32.mrf.mxu0  ;;  %v893_v48 = vpop.f32.mrf.mxu1 }
 0x125   : > { %1304 = vst.msk [vmem:[%s1967_s12 + $0x2c] sm:$0xf] %vm1292_vm3, %v1607_v45  ;;  %1336 = vst.msk [vmem:[%s1967_s12 + $0xac] sm:$0xf] %vm1292_vm3, %v1639_v46  ;;  %v984_v49 = vmax.f32 %v765_v47, 0.0  ;;  %v1016_v50 = vmax.f32 %v893_v48, 0.0 }
 0x126   : > { %v767_v51 = vpop.f32.mrf.mxu0  ;;  %v895_v52 = vpop.f32.mrf.mxu1 }
 0x127   : > { %v1608_v53 = vpack.c.bf16 %v984_v49, %v984_v49  ;;  %v1640_v54 = vpack.c.bf16 %v1016_v50, %v1016_v50 }
 0x128   : > { %v768_v55 = vpop.f32.mrf.mxu0  ;;  %v896_v56 = vpop.f32.mrf.mxu1 }
 0x129   : > { %1305 = vst.msk [vmem:[%s1967_s12 + $0x30] sm:$0xf] %vm1292_vm3, %v1608_v53  ;;  %1337 = vst.msk [vmem:[%s1967_s12 + $0xb0] sm:$0xf] %vm1292_vm3, %v1640_v54  ;;  %v985_v57 = vmax.f32 %v768_v55, 0.0  ;;  %v1017_v58 = vmax.f32 %v896_v56, 0.0 }
 0x12a   : > { %v770_v59 = vpop.f32.mrf.mxu0  ;;  %v898_v60 = vpop.f32.mrf.mxu1 }
 0x12b   : > { %v1609_v61 = vpack.c.bf16 %v985_v57, %v985_v57  ;;  %v1641_v62 = vpack.c.bf16 %v1017_v58, %v1017_v58 }
 0x12c   : > { %v773_v63 = vpop.f32.mrf.mxu0  ;;  %v901_v0 = vpop.f32.mrf.mxu1 }
 0x12d   : > { %1306 = vst.msk [vmem:[%s1967_s12 + $0x34] sm:$0xf] %vm1292_vm3, %v1609_v61  ;;  %1338 = vst.msk [vmem:[%s1967_s12 + $0xb4] sm:$0xf] %vm1292_vm3, %v1641_v62  ;;  %v986_v1 = vmax.f32 %v773_v63, 0.0  ;;  %v1018_v2 = vmax.f32 %v901_v0, 0.0 }
 0x12e   : > { %v775_v3 = vpop.f32.mrf.mxu0  ;;  %v903_v4 = vpop.f32.mrf.mxu1 }
 0x12f   : > { %v1610_v5 = vpack.c.bf16 %v986_v1, %v986_v1  ;;  %v1642_v6 = vpack.c.bf16 %v1018_v2, %v1018_v2 }
 0x130   : > { %v776_v7 = vpop.f32.mrf.mxu0  ;;  %v904_v8 = vpop.f32.mrf.mxu1 }
 0x131   : > { %1307 = vst.msk [vmem:[%s1967_s12 + $0x38] sm:$0xf] %vm1292_vm3, %v1610_v5  ;;  %1339 = vst.msk [vmem:[%s1967_s12 + $0xb8] sm:$0xf] %vm1292_vm3, %v1642_v6  ;;  %v987_v9 = vmax.f32 %v776_v7, 0.0  ;;  %v1019_v10 = vmax.f32 %v904_v8, 0.0 }
 0x132   : > { %v778_v11 = vpop.f32.mrf.mxu0  ;;  %v906_v12 = vpop.f32.mrf.mxu1 }
 0x133   : > { %v1611_v13 = vpack.c.bf16 %v987_v9, %v987_v9  ;;  %v1643_v14 = vpack.c.bf16 %v1019_v10, %v1019_v10 }
 0x134   : > { %v781_v15 = vpop.f32.mrf.mxu0  ;;  %v909_v16 = vpop.f32.mrf.mxu1 }
 0x135   : > { %1308 = vst.msk [vmem:[%s1967_s12 + $0x3c] sm:$0xf] %vm1292_vm3, %v1611_v13  ;;  %1340 = vst.msk [vmem:[%s1967_s12 + $0xbc] sm:$0xf] %vm1292_vm3, %v1643_v14  ;;  %v988_v17 = vmax.f32 %v781_v15, 0.0  ;;  %v1020_v18 = vmax.f32 %v909_v16, 0.0 }
 0x136   : > { %v783_v19 = vpop.f32.mrf.mxu0  ;;  %v911_v20 = vpop.f32.mrf.mxu1 }
 0x137   : > { %v1612_v21 = vpack.c.bf16 %v988_v17, %v988_v17  ;;  %v1644_v22 = vpack.c.bf16 %v1020_v18, %v1020_v18 }
 0x138   : > { %v784_v23 = vpop.f32.mrf.mxu0  ;;  %v912_v24 = vpop.f32.mrf.mxu1 }
 0x139   : > { %1309 = vst.msk [vmem:[%s1967_s12 + $0x40] sm:$0xf] %vm1292_vm3, %v1612_v21  ;;  %1341 = vst.msk [vmem:[%s1967_s12 + $0xc0] sm:$0xf] %vm1292_vm3, %v1644_v22  ;;  %v989_v25 = vmax.f32 %v784_v23, 0.0  ;;  %v1021_v26 = vmax.f32 %v912_v24, 0.0 }
 0x13a   : > { %v786_v27 = vpop.f32.mrf.mxu0  ;;  %v914_v28 = vpop.f32.mrf.mxu1 }
 0x13b   : > { %v1613_v29 = vpack.c.bf16 %v989_v25, %v989_v25  ;;  %v1645_v30 = vpack.c.bf16 %v1021_v26, %v1021_v26 }
 0x13c   : > { %v789_v31 = vpop.f32.mrf.mxu0  ;;  %v917_v32 = vpop.f32.mrf.mxu1 }
 0x13d   : > { %1310 = vst.msk [vmem:[%s1967_s12 + $0x44] sm:$0xf] %vm1292_vm3, %v1613_v29  ;;  %1342 = vst.msk [vmem:[%s1967_s12 + $0xc4] sm:$0xf] %vm1292_vm3, %v1645_v30  ;;  %v990_v33 = vmax.f32 %v789_v31, 0.0  ;;  %v1022_v34 = vmax.f32 %v917_v32, 0.0 }
 0x13e   : > { %v791_v35 = vpop.f32.mrf.mxu0  ;;  %v919_v36 = vpop.f32.mrf.mxu1 }
 0x13f   : > { %v1614_v37 = vpack.c.bf16 %v990_v33, %v990_v33  ;;  %v1646_v38 = vpack.c.bf16 %v1022_v34, %v1022_v34 }
 0x140   : > { %v792_v39 = vpop.f32.mrf.mxu0  ;;  %v920_v40 = vpop.f32.mrf.mxu1 }
 0x141   : > { %1311 = vst.msk [vmem:[%s1967_s12 + $0x48] sm:$0xf] %vm1292_vm3, %v1614_v37  ;;  %1343 = vst.msk [vmem:[%s1967_s12 + $0xc8] sm:$0xf] %vm1292_vm3, %v1646_v38  ;;  %v991_v41 = vmax.f32 %v792_v39, 0.0  ;;  %v1023_v42 = vmax.f32 %v920_v40, 0.0 }
 0x142   : > { %v794_v43 = vpop.f32.mrf.mxu0  ;;  %v922_v44 = vpop.f32.mrf.mxu1 }
 0x143   : > { %v1615_v45 = vpack.c.bf16 %v991_v41, %v991_v41  ;;  %v1647_v46 = vpack.c.bf16 %v1023_v42, %v1023_v42 }
 0x144   : > { %v797_v47 = vpop.f32.mrf.mxu0  ;;  %v925_v48 = vpop.f32.mrf.mxu1 }
 0x145   : > { %1312 = vst.msk [vmem:[%s1967_s12 + $0x4c] sm:$0xf] %vm1292_vm3, %v1615_v45  ;;  %1344 = vst.msk [vmem:[%s1967_s12 + $0xcc] sm:$0xf] %vm1292_vm3, %v1647_v46  ;;  %v992_v49 = vmax.f32 %v797_v47, 0.0  ;;  %v1024_v50 = vmax.f32 %v925_v48, 0.0 }
 0x146   : > { %v799_v51 = vpop.f32.mrf.mxu0  ;;  %v927_v52 = vpop.f32.mrf.mxu1 }
 0x147   : > { %v1616_v53 = vpack.c.bf16 %v992_v49, %v992_v49  ;;  %v1648_v54 = vpack.c.bf16 %v1024_v50, %v1024_v50 }
 0x148   : > { %v800_v55 = vpop.f32.mrf.mxu0  ;;  %v928_v56 = vpop.f32.mrf.mxu1 }
 0x149   : > { %1313 = vst.msk [vmem:[%s1967_s12 + $0x50] sm:$0xf] %vm1292_vm3, %v1616_v53  ;;  %1345 = vst.msk [vmem:[%s1967_s12 + $0xd0] sm:$0xf] %vm1292_vm3, %v1648_v54  ;;  %v993_v57 = vmax.f32 %v800_v55, 0.0  ;;  %v1025_v58 = vmax.f32 %v928_v56, 0.0 }
 0x14a   : > { %v802_v59 = vpop.f32.mrf.mxu0  ;;  %v930_v60 = vpop.f32.mrf.mxu1 }
 0x14b   : > { %v1617_v61 = vpack.c.bf16 %v993_v57, %v993_v57  ;;  %v1649_v62 = vpack.c.bf16 %v1025_v58, %v1025_v58 }
 0x14c   : > { %v805_v63 = vpop.f32.mrf.mxu0  ;;  %v933_v0 = vpop.f32.mrf.mxu1 }
 0x14d   : > { %1314 = vst.msk [vmem:[%s1967_s12 + $0x54] sm:$0xf] %vm1292_vm3, %v1617_v61  ;;  %1346 = vst.msk [vmem:[%s1967_s12 + $0xd4] sm:$0xf] %vm1292_vm3, %v1649_v62  ;;  %v994_v1 = vmax.f32 %v805_v63, 0.0  ;;  %v1026_v2 = vmax.f32 %v933_v0, 0.0 }
 0x14e   : > { %v807_v3 = vpop.f32.mrf.mxu0  ;;  %v935_v4 = vpop.f32.mrf.mxu1 }
 0x14f   : > { %v1618_v5 = vpack.c.bf16 %v994_v1, %v994_v1  ;;  %v1650_v6 = vpack.c.bf16 %v1026_v2, %v1026_v2 }
 0x150   : > { %v808_v7 = vpop.f32.mrf.mxu0  ;;  %v936_v8 = vpop.f32.mrf.mxu1 }
 0x151   : > { %1315 = vst.msk [vmem:[%s1967_s12 + $0x58] sm:$0xf] %vm1292_vm3, %v1618_v5  ;;  %1347 = vst.msk [vmem:[%s1967_s12 + $0xd8] sm:$0xf] %vm1292_vm3, %v1650_v6  ;;  %v995_v9 = vmax.f32 %v808_v7, 0.0  ;;  %v1027_v10 = vmax.f32 %v936_v8, 0.0 }
 0x152   : > { %v810_v11 = vpop.f32.mrf.mxu0  ;;  %v938_v12 = vpop.f32.mrf.mxu1 }
 0x153   : > { %v1619_v13 = vpack.c.bf16 %v995_v9, %v995_v9  ;;  %v1651_v14 = vpack.c.bf16 %v1027_v10, %v1027_v10 }
 0x154   : > { %v813_v15 = vpop.f32.mrf.mxu0  ;;  %v941_v16 = vpop.f32.mrf.mxu1 }
 0x155   : > { %1316 = vst.msk [vmem:[%s1967_s12 + $0x5c] sm:$0xf] %vm1292_vm3, %v1619_v13  ;;  %1348 = vst.msk [vmem:[%s1967_s12 + $0xdc] sm:$0xf] %vm1292_vm3, %v1651_v14  ;;  %v996_v17 = vmax.f32 %v813_v15, 0.0  ;;  %v1028_v18 = vmax.f32 %v941_v16, 0.0 }
 0x156   : > { %v815_v19 = vpop.f32.mrf.mxu0  ;;  %v943_v20 = vpop.f32.mrf.mxu1 }
 0x157   : > { %v1620_v21 = vpack.c.bf16 %v996_v17, %v996_v17  ;;  %v1652_v22 = vpack.c.bf16 %v1028_v18, %v1028_v18 }
 0x158   : > { %v816_v23 = vpop.f32.mrf.mxu0  ;;  %v944_v24 = vpop.f32.mrf.mxu1 }
 0x159   : > { %1317 = vst.msk [vmem:[%s1967_s12 + $0x60] sm:$0xf] %vm1292_vm3, %v1620_v21  ;;  %1349 = vst.msk [vmem:[%s1967_s12 + $0xe0] sm:$0xf] %vm1292_vm3, %v1652_v22  ;;  %v997_v25 = vmax.f32 %v816_v23, 0.0  ;;  %v1029_v26 = vmax.f32 %v944_v24, 0.0 }
 0x15a   : > { %v818_v27 = vpop.f32.mrf.mxu0  ;;  %v946_v28 = vpop.f32.mrf.mxu1 }
 0x15b   : > { %v1621_v29 = vpack.c.bf16 %v997_v25, %v997_v25  ;;  %v1653_v30 = vpack.c.bf16 %v1029_v26, %v1029_v26 }
 0x15c   : > { %v821_v31 = vpop.f32.mrf.mxu0  ;;  %v949_v32 = vpop.f32.mrf.mxu1 }
 0x15d   : > { %1318 = vst.msk [vmem:[%s1967_s12 + $0x64] sm:$0xf] %vm1292_vm3, %v1621_v29  ;;  %1350 = vst.msk [vmem:[%s1967_s12 + $0xe4] sm:$0xf] %vm1292_vm3, %v1653_v30  ;;  %v998_v33 = vmax.f32 %v821_v31, 0.0  ;;  %v1030_v34 = vmax.f32 %v949_v32, 0.0 }
 0x15e   : > { %v823_v35 = vpop.f32.mrf.mxu0  ;;  %v951_v36 = vpop.f32.mrf.mxu1 }
 0x15f   : > { %v1622_v37 = vpack.c.bf16 %v998_v33, %v998_v33  ;;  %v1654_v38 = vpack.c.bf16 %v1030_v34, %v1030_v34 }
 0x160   : > { %v824_v39 = vpop.f32.mrf.mxu0  ;;  %v952_v40 = vpop.f32.mrf.mxu1 }
 0x161   : > { %1319 = vst.msk [vmem:[%s1967_s12 + $0x68] sm:$0xf] %vm1292_vm3, %v1622_v37  ;;  %1351 = vst.msk [vmem:[%s1967_s12 + $0xe8] sm:$0xf] %vm1292_vm3, %v1654_v38  ;;  %v999_v41 = vmax.f32 %v824_v39, 0.0  ;;  %v1031_v42 = vmax.f32 %v952_v40, 0.0 }
 0x162   : > { %v826_v43 = vpop.f32.mrf.mxu0  ;;  %v954_v44 = vpop.f32.mrf.mxu1 }
 0x163   : > { %v1623_v45 = vpack.c.bf16 %v999_v41, %v999_v41  ;;  %v1655_v46 = vpack.c.bf16 %v1031_v42, %v1031_v42 }
 0x164   : > { %v829_v47 = vpop.f32.mrf.mxu0  ;;  %v957_v48 = vpop.f32.mrf.mxu1 }
 0x165   : > { %1320 = vst.msk [vmem:[%s1967_s12 + $0x6c] sm:$0xf] %vm1292_vm3, %v1623_v45  ;;  %1352 = vst.msk [vmem:[%s1967_s12 + $0xec] sm:$0xf] %vm1292_vm3, %v1655_v46  ;;  %v1000_v49 = vmax.f32 %v829_v47, 0.0  ;;  %v1032_v50 = vmax.f32 %v957_v48, 0.0 }
 0x166   : > { %v831_v51 = vpop.f32.mrf.mxu0  ;;  %v959_v52 = vpop.f32.mrf.mxu1 }
 0x167   : > { %v1624_v53 = vpack.c.bf16 %v1000_v49, %v1000_v49  ;;  %v1656_v54 = vpack.c.bf16 %v1032_v50, %v1032_v50 }
 0x168   : > { %v832_v55 = vpop.f32.mrf.mxu0  ;;  %v960_v56 = vpop.f32.mrf.mxu1 }
 0x169   : > { %1321 = vst.msk [vmem:[%s1967_s12 + $0x70] sm:$0xf] %vm1292_vm3, %v1624_v53  ;;  %1353 = vst.msk [vmem:[%s1967_s12 + $0xf0] sm:$0xf] %vm1292_vm3, %v1656_v54  ;;  %v1001_v57 = vmax.f32 %v832_v55, 0.0  ;;  %v1033_v58 = vmax.f32 %v960_v56, 0.0 }
 0x16a   : > { %v834_v59 = vpop.f32.mrf.mxu0  ;;  %v962_v60 = vpop.f32.mrf.mxu1 }
 0x16b   : > { %v1625_v61 = vpack.c.bf16 %v1001_v57, %v1001_v57  ;;  %v1657_v62 = vpack.c.bf16 %v1033_v58, %v1033_v58 }
 0x16c   : > { %v837_v63 = vpop.f32.mrf.mxu0  ;;  %v965_v0 = vpop.f32.mrf.mxu1 }
 0x16d   : > { %1322 = vst.msk [vmem:[%s1967_s12 + $0x74] sm:$0xf] %vm1292_vm3, %v1625_v61  ;;  %1354 = vst.msk [vmem:[%s1967_s12 + $0xf4] sm:$0xf] %vm1292_vm3, %v1657_v62  ;;  %v1002_v1 = vmax.f32 %v837_v63, 0.0  ;;  %v1034_v2 = vmax.f32 %v965_v0, 0.0 }
 0x16e   : > { %v839_v3 = vpop.f32.mrf.mxu0  ;;  %v967_v4 = vpop.f32.mrf.mxu1 }
 0x16f   : > { %v1626_v5 = vpack.c.bf16 %v1002_v1, %v1002_v1  ;;  %v1658_v6 = vpack.c.bf16 %v1034_v2, %v1034_v2 }
 0x170   : > { %v840_v7 = vpop.f32.mrf.mxu0  ;;  %v968_v8 = vpop.f32.mrf.mxu1 }
 0x171   : > { %1323 = vst.msk [vmem:[%s1967_s12 + $0x78] sm:$0xf] %vm1292_vm3, %v1626_v5  ;;  %1355 = vst.msk [vmem:[%s1967_s12 + $0xf8] sm:$0xf] %vm1292_vm3, %v1658_v6  ;;  %v1003_v9 = vmax.f32 %v840_v7, 0.0  ;;  %v1035_v10 = vmax.f32 %v968_v8, 0.0 }
 0x172   : > { %v842_v11 = vpop.f32.mrf.mxu0  ;;  %v970_v12 = vpop.f32.mrf.mxu1 }
 0x173   : > { %v1627_v13 = vpack.c.bf16 %v1003_v9, %v1003_v9  ;;  %v1659_v14 = vpack.c.bf16 %v1035_v10, %v1035_v10 }
 0x175   : > { %1324 = vst.msk [vmem:[%s1967_s12 + $0x7c] sm:$0xf] %vm1292_vm3, %v1627_v13  ;;  %1356 = vst.msk [vmem:[%s1967_s12 + $0xfc] sm:$0xf] %vm1292_vm3, %v1659_v14 }
 0x176 PF: > { %s12_s9 = sadd.s32 1, %s1802_s9  }
 0x177   : > { %p9_p4 = scmp.ge.s32.totalorder %s12_s9, 5  }
 0x179   :  { %11 = sbr.rel (!%p9_p4) target bundleno = 1 (0x1), region = 58 }

// kernel: vae_forward.9
= control target key start
LH: loop header
LB: loop body
LE: loop exit
PB: predicated region body
PF: predicated region fallthrough
CT: control target
= control target key end

     0   :  { %vm1085_vm0 = vcmask 261120   ;;  %vm1930_vm1 = vcmask 257024   ;;  %s3706_s1 = inlined_call_operand.vmem [shape: bf16[1,800,32], index: 1, kind: input, shape index: {}]   ;;  %s3707_s0 = inlined_call_operand.vmem [shape: bf16[248,800], index: 0, kind: input, shape index: {}]   ;;  %s3708_s2 = inlined_call_operand.vmem [shape: bf16[248,32], index: 2, kind: output, shape index: {}]  }
   0x1   :  { %v2612_v0 = vld [vmem:[%s3706_s1 + $0x78] sm:$0xff]   ;;  %v2614_v2 = vld [vmem:[%s3706_s1 + $0x70] sm:$0xff]   ;;  %v2616_v4 = vld [vmem:[%s3706_s1 + $0x68] sm:$0xff]  }
   0x2   :  { %v2613_v1 = vld [vmem:[%s3706_s1 + $0x38] sm:$0xff]   ;;  %2206 = vmatprep.subr.bf16.mxu0 %v2612_v0  ;;  %2596 = vmatprep.subr.bf16.mxu1 %v2612_v0  ;;  %v2615_v3 = vld [vmem:[%s3706_s1 + $0x30] sm:$0xff]   ;;  %v2617_v5 = vld [vmem:[%s3706_s1 + $0x28] sm:$0xff]  }
   0x3   :  { %2207 = vmatpush3.bf16.msra.mxu0 %v2613_v1  ;;  %2604 = vmatpush3.bf16.msra.mxu1 %v2613_v1  ;;  %v2618_v6 = vld [vmem:[%s3706_s1 + $0x60] sm:$0xff]   ;;  %v2620_v8 = vld [vmem:[%s3706_s1 + $0x58] sm:$0xff]   ;;  %v2622_v10 = vld [vmem:[%s3706_s1 + $0x50] sm:$0xff]  }
   0x4   :  { %2208 = vmatprep.subr.bf16.mxu0 %v2614_v2  ;;  %2597 = vmatprep.subr.bf16.mxu1 %v2614_v2  ;;  %v2619_v7 = vld [vmem:[%s3706_s1 + $0x20] sm:$0xff]   ;;  %v2621_v9 = vld [vmem:[%s3706_s1 + $0x18] sm:$0xff]   ;;  %v2623_v13 = vld [vmem:[%s3706_s1 + $0x10] sm:$0xff]  }
   0x5   :  { %v2630_v11 = vld [vmem:[%s3707_s0 + $0x4] ss:$28 sps:$4 sm:$0xff]   ;;  %v2624_v14 = vld [vmem:[%s3706_s1 + $0x48] sm:$0xff]   ;;  %v2634_v18 = vld [vmem:[%s3706_s1 + $0xf8] sm:$0xff]  }
   0x6   :  { %v2633_v12 = vld [vmem:[%s3707_s0 + $0x2a4] ss:$28 sps:$4 sm:$0xff]   ;;  %1166 = vmatprep.mubr.bf16.mxu0 %v2630_v11  ;;  %v2625_v15 = vld [vmem:[%s3706_s1 + $0x8] sm:$0xff]   ;;  %v2635_v21 = vld [vmem:[%s3706_s1 + $0x178] sm:$0xff]  }
   0x7   :  { %2209 = vmatpush3.bf16.msra.mxu0 %v2615_v3  ;;  %2605 = vmatpush3.bf16.msra.mxu1 %v2615_v3  ;;  %v2626_v16 = vld [vmem:[%s3706_s1 + $0x40] sm:$0xff]   ;;  %v2636_v22 = vld [vmem:[%s3706_s1 + $0xb8] sm:$0xff]   ;;  %v2638_v24 = vld [vmem:[%s3706_s1 + $0xf0] sm:$0xff]  }
   0x8   :  { %2210 = vmatprep.subr.bf16.mxu0 %v2616_v4  ;;  %2598 = vmatprep.subr.bf16.mxu1 %v2616_v4  ;;  %v2627_v17 = vld [vmem:[%s3706_s1] sm:$0xff]   ;;  %v2637_v23 = vld [vmem:[%s3706_s1 + $0x138] sm:$0xff]   ;;  %v2649_v27 = vld [vmem:[%s3706_s1 + $0x170] sm:$0xff]  }
   0x9   :  { %1262 = vmatprep.mubr.bf16.mxu1 %v2633_v12  ;;  %v2628_v19 = vld [vmem:[%s3707_s0] ss:$28 sps:$4 sm:$0xff]   ;;  %v2639_v28 = vld [vmem:[%s3706_s1 + $0xb0] sm:$0xff]   ;;  %v2646_v32 = vld [vmem:[%s3706_s1 + $0xe8] sm:$0xff]  }
   0xa   :  { %v2631_v20 = vld [vmem:[%s3707_s0 + $0x2a0] ss:$28 sps:$4 sm:$0xff]   ;;  %v2651_v29 = vld [vmem:[%s3706_s1 + $0x130] sm:$0xff]   ;;  %v2647_v33 = vld [vmem:[%s3706_s1 + $0xa8] sm:$0xff]  }
   0xb   :  { %2211 = vmatpush3.bf16.msra.mxu0 %v2617_v5  ;;  %2606 = vmatpush3.bf16.msra.mxu1 %v2617_v5  ;;  %v2640_v25 = vld [vmem:[%s3707_s0 + $0x3c] ss:$28 sps:$4 sm:$0xff]   ;;  %v2648_v34 = vld [vmem:[%s3706_s1 + $0xe0] sm:$0xff]   ;;  %v2652_v35 = vld [vmem:[%s3707_s0 + $0x74] ss:$28 sps:$4 sm:$0xff]  }
   0xc   :  { %2212 = vmatprep.subr.bf16.mxu0 %v2618_v6  ;;  %2599 = vmatprep.subr.bf16.mxu1 %v2618_v6  ;;  %v2642_v26 = vld [vmem:[%s3707_s0 + $0x2dc] ss:$28 sps:$4 sm:$0xff]   ;;  %v2654_v36 = vld [vmem:[%s3707_s0 + $0x314] ss:$28 sps:$4 sm:$0xff]   ;;  %v2650_v37 = vld [vmem:[%s3706_s1 + $0xa0] sm:$0xff]  }
   0xd   :  { %v2644_v30 = vld [vmem:[%s3707_s0 + $0x38] ss:$28 sps:$4 sm:$0xff]   ;;  %v2668_v39 = vld [vmem:[%s3706_s1 + $0x168] sm:$0xff]   ;;  %v2680_v50 = vld [vmem:[%s3706_s1 + $0x160] sm:$0xff]  }
   0xe   :  { %v2645_v31 = vld [vmem:[%s3707_s0 + $0x2d8] ss:$28 sps:$4 sm:$0xff]   ;;  %v2656_v40 = vld [vmem:[%s3707_s0 + $0x70] ss:$28 sps:$4 sm:$0xff]   ;;  %v2681_v51 = vld [vmem:[%s3706_s1 + $0x120] sm:$0xff]  }
   0xf   :  { %2213 = vmatpush3.bf16.msra.mxu0 %v2619_v7  ;;  %2607 = vmatpush3.bf16.msra.mxu1 %v2619_v7  ;;  %v2658_v38 = vld [vmem:[%s3706_s1 + $0xd8] sm:$0xff]   ;;  %v2657_v41 = vld [vmem:[%s3707_s0 + $0x310] ss:$28 sps:$4 sm:$0xff]   ;;  %v2665_v52 = vld [vmem:[%s3707_s0 + $0xa8] ss:$28 sps:$4 sm:$0xff]  }
  0x10   :  { %2214 = vmatprep.subr.bf16.mxu0 %v2620_v8  ;;  %2600 = vmatprep.subr.bf16.mxu1 %v2620_v8  ;;  %v132_v42 = vld [vmem:[%s3707_s0 + $0x348] sm:$0xff]  ;;  %v2659_v44 = vld [vmem:[%s3706_s1 + $0x98] sm:$0xff]   ;;  %v2660_v46 = vld [vmem:[%s3706_s1 + $0xd0] sm:$0xff]  }
  0x11   :  { %v2670_v43 = vld [vmem:[%s3706_s1 + $0x128] sm:$0xff]   ;;  %v2072_v47 = vcombine.high %v132_v42, %v132_v42  ;;  %v2661_v48 = vld [vmem:[%s3706_s1 + $0x90] sm:$0xff]   ;;  %v2071_v53 = vcombine.low %v132_v42, %v132_v42  ;;  %v2671_v55 = vld [vmem:[%s3706_s1 + $0xc0] sm:$0xff]  }
  0x12   :  { %v2662_v45 = vld [vmem:[%s3707_s0 + $0xac] ss:$28 sps:$4 sm:$0xff]   ;;  %v2673_v56 = vld [vmem:[%s3707_s0 + $0xe4] ss:$28 sps:$4 sm:$0xff]   ;;  %v2694_v60 = vld [vmem:[%s3706_s1 + $0x158] sm:$0xff]  }
  0x13   :  { %2215 = vmatpush3.bf16.msra.mxu0 %v2621_v9  ;;  %2608 = vmatpush3.bf16.msra.mxu1 %v2621_v9  ;;  %v2667_v49 = vld [vmem:[%s3706_s1 + $0xc8] sm:$0xff]   ;;  %v2672_v58 = vld [vmem:[%s3706_s1 + $0x80] sm:$0xff]   ;;  %v2695_v61 = vld [vmem:[%s3706_s1 + $0x118] sm:$0xff]  }
  0x14   :  { %2216 = vmatprep.subr.bf16.mxu0 %v2622_v10  ;;  %2601 = vmatprep.subr.bf16.mxu1 %v2622_v10  ;;  %v2669_v54 = vld [vmem:[%s3706_s1 + $0x88] sm:$0xff]   ;;  %v2678_v63 = vld [vmem:[%s3707_s0 + $0xe0] ss:$28 sps:$4 sm:$0xff]   ;;  %v2702_v2 = vld [vmem:[%s3706_s1 + $0x150] sm:$0xff]  }
  0x15   :  { %v2677_v57 = vld [vmem:[%s3707_s0 + $0xc] ss:$28 sps:$4 sm:$0xff]   ;;  %v2682_v0 = vld [vmem:[%s3707_s0 + $0x11c] ss:$28 sps:$4 sm:$0xff]   ;;  %v2684_v1 = vld [vmem:[%s3707_s0 + $0x44] ss:$28 sps:$4 sm:$0xff]  }
  0x16   :  { %v2679_v59 = vld [vmem:[%s3706_s1 + $0x188] sm:$0xff]   ;;  %v2703_v3 = vld [vmem:[%s3706_s1 + $0x110] sm:$0xff]   ;;  %v2687_v5 = vld [vmem:[%s3707_s0 + $0x40] ss:$28 sps:$4 sm:$0xff]  }
  0x17   :  { %2217 = vmatpush3.bf16.msra.mxu0 %v2623_v13  ;;  %2609 = vmatpush3.bf16.msra.mxu1 %v2623_v13  ;;  %v2675_v62 = vld [vmem:[%s3707_s0 + $0x8] ss:$28 sps:$4 sm:$0xff]   ;;  %v2686_v4 = vld [vmem:[%s3707_s0 + $0x118] ss:$28 sps:$4 sm:$0xff]   ;;  %v2692_v10 = vld [vmem:[%s3707_s0 + $0x150] ss:$28 sps:$4 sm:$0xff]  }
  0x18   :  { %2218 = vmatprep.subr.bf16.mxu0 %v2624_v14  ;;  %2602 = vmatprep.subr.bf16.mxu1 %v2624_v14  ;;  %v2688_v6 = vld [vmem:[%s3707_s0 + $0x154] ss:$28 sps:$4 sm:$0xff]   ;;  %v2690_v7 = vld [vmem:[%s3707_s0 + $0x7c] ss:$28 sps:$4 sm:$0xff]   ;;  %v2716_v8 = vld [vmem:[%s3706_s1 + $0x148] sm:$0xff]  }
  0x19   :  { %v2717_v9 = vld [vmem:[%s3706_s1 + $0x108] sm:$0xff]   ;;  %v2724_v11 = vld [vmem:[%s3706_s1 + $0x140] sm:$0xff]   ;;  %v2693_v13 = vld [vmem:[%s3707_s0 + $0x78] ss:$28 sps:$4 sm:$0xff]  }
  0x1a   :  { %v2725_v12 = vld [vmem:[%s3706_s1 + $0x100] sm:$0xff]   ;;  %v2696_v14 = vld [vmem:[%s3707_s0 + $0x18c] ss:$28 sps:$4 sm:$0xff]  }
  0x1b   :  { %2219 = vmatpush3.bf16.msra.mxu0 %v2625_v15  ;;  %2610 = vmatpush3.bf16.msra.mxu1 %v2625_v15  ;;  %v2698_v15 = vld [vmem:[%s3707_s0 + $0xb4] ss:$28 sps:$4 sm:$0xff]   ;;  %v2744_v42 = vld [vmem:[%s3707_s0 + $0x48] ss:$28 sps:$4 sm:$0xff]  }
  0x1c   :  { %2220 = vmatprep.subr.bf16.mxu0 %v2626_v16  ;;  %2603 = vmatprep.subr.bf16.mxu1 %v2626_v16  ;;  %v2738_v16 = vld [vmem:[%s3706_s1 + $0x180] sm:$0xff]  }
  0x1f   :  { %2221 = vmatpush3.bf16.msra.mxu0 %v2627_v17  ;;  %2611 = vmatpush3.bf16.msra.mxu1 %v2627_v17  ;;  %v2700_v17 = vld [vmem:[%s3707_s0 + $0x188] ss:$28 sps:$4 sm:$0xff]  }
  0x20   :  { %2318 = vmatprep.subr.bf16.mxu1 %v2634_v18  ;;  %2430 = vmatprep.subr.bf16.mxu0 %v2635_v21  ;;  %v2701_v18 = vld [vmem:[%s3707_s0 + $0xb0] ss:$28 sps:$4 sm:$0xff]   ;;  %v2708_v21 = vld [vmem:[%s3707_s0 + $0x1c0] ss:$28 sps:$4 sm:$0xff]  }
  0x22   :  { %1167 = vmatmul.mubr.bf16.vlgmr.msra.gmra.mxu0 %v2628_v19  ;;  %1263 = vmatmul.mubr.bf16.vlgmr.msra.gmra.mxu1 %v2631_v20  ;;  %v2704_v19 = vld [vmem:[%s3707_s0 + $0x1c4] ss:$28 sps:$4 sm:$0xff]   ;;  %v2706_v20 = vld [vmem:[%s3707_s0 + $0xec] ss:$28 sps:$4 sm:$0xff]  }
  0x23   :  { %2319 = vmatpush3.bf16.msra.mxu1 %v2636_v22  ;;  %2431 = vmatpush3.bf16.msra.mxu0 %v2637_v23  ;;  %v2709_v22 = vld [vmem:[%s3707_s0 + $0xe8] ss:$28 sps:$4 sm:$0xff]   ;;  %v2710_v23 = vld [vmem:[%s3707_s0 + $0x1fc] ss:$28 sps:$4 sm:$0xff]  }
  0x24   :  { %2320 = vmatprep.subr.bf16.mxu1 %v2638_v24  ;;  %1174 = vmatprep.mubr.bf16.mxu0 %v2640_v25  ;;  %v2712_v24 = vld [vmem:[%s3707_s0 + $0x124] ss:$28 sps:$4 sm:$0xff]   ;;  %v2714_v25 = vld [vmem:[%s3707_s0 + $0x1f8] ss:$28 sps:$4 sm:$0xff]  }
  0x25   :  { %1270 = vmatprep.mubr.bf16.mxu1 %v2642_v26  ;;  %2432 = vmatprep.subr.bf16.mxu0 %v2649_v27  ;;  %v2715_v26 = vld [vmem:[%s3707_s0 + $0x120] ss:$28 sps:$4 sm:$0xff]   ;;  %v2718_v27 = vld [vmem:[%s3707_s0 + $0x234] ss:$28 sps:$4 sm:$0xff]  }
  0x27   :  { %2321 = vmatpush3.bf16.msra.mxu1 %v2639_v28  ;;  %2433 = vmatpush3.bf16.msra.mxu0 %v2651_v29  ;;  %v2720_v28 = vld [vmem:[%s3707_s0 + $0x15c] ss:$28 sps:$4 sm:$0xff]   ;;  %v2722_v29 = vld [vmem:[%s3707_s0 + $0x230] ss:$28 sps:$4 sm:$0xff]  }
  0x28   :  { %2322 = vmatprep.subr.bf16.mxu1 %v2646_v32  ;;  %2434 = vmatprep.subr.bf16.mxu0 %v2668_v39  ;;  %v2728_v32 = vld [vmem:[%s3707_s0 + $0x194] ss:$28 sps:$4 sm:$0xff]   ;;  %v2739_v39 = vld [vmem:[%s3707_s0 + $0x204] ss:$28 sps:$4 sm:$0xff]  }
  0x2a   :  { %1175 = vmatmul.mubr.bf16.gmra.mxu0 %v2644_v30  ;;  %1271 = vmatmul.mubr.bf16.gmra.mxu1 %v2645_v31  ;;  %v2723_v30 = vld [vmem:[%s3707_s0 + $0x158] ss:$28 sps:$4 sm:$0xff]   ;;  %v2726_v31 = vld [vmem:[%s3707_s0 + $0x26c] ss:$28 sps:$4 sm:$0xff]  }
  0x2b   :  { %2323 = vmatpush3.bf16.msra.mxu1 %v2647_v33  ;;  %1182 = vmatprep.mubr.bf16.mxu0 %v2652_v35  ;;  %v2730_v33 = vld [vmem:[%s3707_s0 + $0x268] ss:$28 sps:$4 sm:$0xff]  }
  0x2c   :  { %2324 = vmatprep.subr.bf16.mxu1 %v2648_v34  ;;  %1278 = vmatprep.mubr.bf16.mxu1 %v2654_v36  ;;  %v2731_v34 = vld [vmem:[%s3707_s0 + $0x190] ss:$28 sps:$4 sm:$0xff]  }
  0x2d   :  { %2435 = vmatpush3.bf16.msra.mxu0 %v2670_v43  ;;  %v2732_v35 = vld [vmem:[%s3707_s0 + $0x1cc] ss:$28 sps:$4 sm:$0xff]   ;;  %v2736_v36 = vld [vmem:[%s3707_s0 + $0x14] ss:$28 sps:$4 sm:$0xff]   ;;  %v2745_v43 = vld [vmem:[%s3707_s0 + $0x23c] ss:$28 sps:$4 sm:$0xff]  }
  0x2e   :  { %2436 = vmatprep.subr.bf16.mxu0 %v2680_v50  ;;  %v2756_v50 = vld [vmem:[%s3707_s0 + $0xb8] ss:$28 sps:$4 sm:$0xff]  }
  0x2f   :  { %2325 = vmatpush3.bf16.msra.mxu1 %v2650_v37  ;;  %v2734_v37 = vld [vmem:[%s3707_s0 + $0x10] ss:$28 sps:$4 sm:$0xff]  }
  0x30   :  { %2326 = vmatprep.subr.bf16.mxu1 %v2658_v38  ;;  %v2737_v38 = vld [vmem:[%s3707_s0 + $0x1c8] ss:$28 sps:$4 sm:$0xff]  }
  0x31   :  { %2437 = vmatpush3.bf16.msra.mxu0 %v2681_v51  ;;  %v2757_v51 = vld [vmem:[%s3707_s0 + $0x2ac] ss:$28 sps:$4 sm:$0xff]  }
  0x32   :  { %1183 = vmatmul.mubr.bf16.gmra.mxu0 %v2656_v40  ;;  %1279 = vmatmul.mubr.bf16.gmra.mxu1 %v2657_v41  ;;  %v2741_v40 = vld [vmem:[%s3707_s0 + $0x4c] ss:$28 sps:$4 sm:$0xff]   ;;  %v2743_v41 = vld [vmem:[%s3707_s0 + $0x200] ss:$28 sps:$4 sm:$0xff]  }
  0x33   :  { %2327 = vmatpush3.bf16.msra.mxu1 %v2659_v44  ;;  %1190 = vmatprep.mubr.bf16.mxu0 %v2662_v45  ;;  %v2747_v44 = vld [vmem:[%s3707_s0 + $0x84] ss:$28 sps:$4 sm:$0xff]   ;;  %v2749_v45 = vld [vmem:[%s3707_s0 + $0x238] ss:$28 sps:$4 sm:$0xff]  }
  0x34   :  { %2328 = vmatprep.subr.bf16.mxu1 %v2660_v46  ;;  %1286 = vmatprep.mubr.bf16.mxu1 %v2072_v47  ;;  %v2750_v46 = vld [vmem:[%s3707_s0 + $0x80] ss:$28 sps:$4 sm:$0xff]   ;;  %v2751_v47 = vld [vmem:[%s3707_s0 + $0x274] ss:$28 sps:$4 sm:$0xff]  }
  0x35   :  { %2438 = vmatprep.subr.bf16.mxu0 %v2694_v60  ;;  %v2771_v60 = vld [vmem:[%s3707_s0 + $0x164] ss:$28 sps:$4 sm:$0xff]  }
  0x36   :  { %2439 = vmatpush3.bf16.msra.mxu0 %v2695_v61  ;;  %v133_v61 = vld [vmem:[%s3707_s0 + $0x350] sm:$0xff] }
  0x37   :  { %2329 = vmatpush3.bf16.msra.mxu1 %v2661_v48  ;;  %2440 = vmatprep.subr.bf16.mxu0 %v2702_v2  ;;  %v2753_v48 = vld [vmem:[%s3707_s0 + $0xbc] ss:$28 sps:$4 sm:$0xff]   ;;  %v2073_v2 = vcombine.low %v133_v61, %v133_v61 }
  0x38   :  { %2330 = vmatprep.subr.bf16.mxu1 %v2667_v49  ;;  %v2755_v49 = vld [vmem:[%s3707_s0 + $0x270] ss:$28 sps:$4 sm:$0xff]  }
  0x3a   :  { %1191 = vmatmul.mubr.bf16.gmra.mxu0 %v2665_v52  ;;  %1287 = vmatmul.mubr.bf16.gmra.mxu1 %v2071_v53  ;;  %v2759_v52 = vld [vmem:[%s3707_s0 + $0xf4] ss:$28 sps:$4 sm:$0xff]   ;;  %v2761_v53 = vld [vmem:[%s3707_s0 + $0x2a8] ss:$28 sps:$4 sm:$0xff]  }
  0x3b   :  { %2331 = vmatpush3.bf16.msra.mxu1 %v2669_v54  ;;  %1198 = vmatprep.mubr.bf16.mxu0 %v2673_v56  ;;  %v2762_v54 = vld [vmem:[%s3707_s0 + $0xf0] ss:$28 sps:$4 sm:$0xff]  }
  0x3c   :  { %2332 = vmatprep.subr.bf16.mxu1 %v2671_v55  ;;  %1326 = vmatprep.mubr.bf16.mxu1 %v2677_v57  ;;  %v2763_v55 = vld [vmem:[%s3707_s0 + $0x2e4] ss:$28 sps:$4 sm:$0xff]   ;;  %v2765_v56 = vld [vmem:[%s3707_s0 + $0x12c] ss:$28 sps:$4 sm:$0xff]  }
  0x3d   :  { %2441 = vmatpush3.bf16.msra.mxu0 %v2703_v3  ;;  %v2767_v57 = vld [vmem:[%s3707_s0 + $0x2e0] ss:$28 sps:$4 sm:$0xff]   ;;  %v2779_v3 = vld [vmem:[%s3707_s0 + $0x198] ss:$28 sps:$4 sm:$0xff]  }
  0x3e   :  { %2442 = vmatprep.subr.bf16.mxu0 %v2716_v8  ;;  %v2785_v8 = vld [vmem:[%s3707_s0 + $0x20c] ss:$28 sps:$4 sm:$0xff]  }
  0x3f   :  { %2333 = vmatpush3.bf16.msra.mxu1 %v2672_v58  ;;  %v2768_v58 = vld [vmem:[%s3707_s0 + $0x128] ss:$28 sps:$4 sm:$0xff]  }
  0x40   :  { %2560 = vmatprep.subr.bf16.mxu1 %v2679_v59 }
  0x41   :  { %2443 = vmatpush3.bf16.msra.mxu0 %v2717_v9  ;;  %v2787_v9 = vld [vmem:[%s3707_s0 + $0x88] ss:$28 sps:$4 sm:$0xff]  }
  0x42   :  { %1199 = vmatmul.mubr.bf16.gmra.mxu0 %v2678_v63  ;;  %1327 = vmatmul.mubr.bf16.vlgmr.msra.gmra.mxu1 %v2675_v62  ;;  %v2773_v62 = vld [vmem:[%s3707_s0 + $0x318] ss:$28 sps:$4 sm:$0xff]   ;;  %v2774_v63 = vld [vmem:[%s3707_s0 + $0x160] ss:$28 sps:$4 sm:$0xff]  }
  0x43   :  { %2561 = vmatpush3.bf16.msra.mxu1 %v2679_v59  ;;  %1206 = vmatprep.mubr.bf16.mxu0 %v2682_v0  ;;  %v2769_v59 = vld [vmem:[%s3707_s0 + $0x31c] ss:$28 sps:$4 sm:$0xff]   ;;  %v2074_v0 = vcombine.high %v133_v61, %v133_v61 }
  0x44   :  { %1334 = vmatprep.mubr.bf16.mxu1 %v2684_v1  ;;  %2444 = vmatprep.subr.bf16.mxu0 %v2724_v11  ;;  %v2776_v1 = vld [vmem:[%s3707_s0 + $0x19c] ss:$28 sps:$4 sm:$0xff]  }
  0x45   :  { %2445 = vmatpush3.bf16.msra.mxu0 %v2725_v12  ;;  %2562 = vmatprep.subr.bf16.mxu1 %v2738_v16  ;;  %v2789_v11 = vld [vmem:[%s3707_s0 + $0xc0] ss:$28 sps:$4 sm:$0xff]  }
  0x46   :  { %v2790_v12 = vld [vmem:[%s3707_s0 + $0x244] ss:$28 sps:$4 sm:$0xff]  }
  0x47   :  { %2563 = vmatpush3.bf16.msra.mxu1 %v2738_v16  ;;  %v2795_v16 = vld [vmem:[%s3707_s0 + $0x27c] ss:$28 sps:$4 sm:$0xff]  }
  0x4a   :  { %1207 = vmatmul.mubr.bf16.gmra.mxu0 %v2686_v4  ;;  %1335 = vmatmul.mubr.bf16.gmra.mxu1 %v2687_v5  ;;  %v2780_v4 = vld [vmem:[%s3707_s0 + $0x1d4] ss:$28 sps:$4 sm:$0xff]  }
  0x4b   :  { %1214 = vmatprep.mubr.bf16.mxu0 %v2688_v6  ;;  %1342 = vmatprep.mubr.bf16.mxu1 %v2690_v7  ;;  %v2782_v5 = vld [vmem:[%s3707_s0 + $0x18] ss:$28 sps:$4 sm:$0xff]   ;;  %v2783_v6 = vld [vmem:[%s3707_s0 + $0x1d0] ss:$28 sps:$4 sm:$0xff]  }
  0x4c   :  { %v2784_v7 = vld [vmem:[%s3707_s0 + $0x50] ss:$28 sps:$4 sm:$0xff]  }
  0x52   :  { %1215 = vmatmul.mubr.bf16.gmra.mxu0 %v2692_v10  ;;  %1343 = vmatmul.mubr.bf16.gmra.mxu1 %v2693_v13  ;;  %v2788_v10 = vld [vmem:[%s3707_s0 + $0x208] ss:$28 sps:$4 sm:$0xff]   ;;  %v2792_v13 = vld [vmem:[%s3707_s0 + $0xf8] ss:$28 sps:$4 sm:$0xff]  }
  0x53   :  { %1222 = vmatprep.mubr.bf16.mxu0 %v2696_v14  ;;  %1350 = vmatprep.mubr.bf16.mxu1 %v2698_v15  ;;  %v2793_v14 = vld [vmem:[%s3707_s0 + $0x240] ss:$28 sps:$4 sm:$0xff]   ;;  %v2794_v15 = vld [vmem:[%s3707_s0 + $0x130] ss:$28 sps:$4 sm:$0xff]  }
  0x5a   :  { %1223 = vmatmul.mubr.bf16.gmra.mxu0 %v2700_v17  ;;  %1351 = vmatmul.mubr.bf16.gmra.mxu1 %v2701_v18  ;;  %v2797_v17 = vld [vmem:[%s3707_s0 + $0x168] ss:$28 sps:$4 sm:$0xff]   ;;  %v2798_v18 = vld [vmem:[%s3707_s0 + $0x278] ss:$28 sps:$4 sm:$0xff]  }
  0x5b   :  { %1230 = vmatprep.mubr.bf16.mxu0 %v2704_v19  ;;  %1358 = vmatprep.mubr.bf16.mxu1 %v2706_v20  ;;  %v2799_v19 = vld [vmem:[%s3707_s0 + $0x1a0] ss:$28 sps:$4 sm:$0xff]   ;;  %v2800_v20 = vld [vmem:[%s3707_s0 + $0x2b4] ss:$28 sps:$4 sm:$0xff]  }
  0x62   :  { %1231 = vmatmul.mubr.bf16.gmra.mxu0 %v2708_v21  ;;  %1359 = vmatmul.mubr.bf16.gmra.mxu1 %v2709_v22  ;;  %v2802_v21 = vld [vmem:[%s3707_s0 + $0x1d8] ss:$28 sps:$4 sm:$0xff]   ;;  %v2803_v22 = vld [vmem:[%s3707_s0 + $0x2b0] ss:$28 sps:$4 sm:$0xff]  }
  0x63   :  { %1238 = vmatprep.mubr.bf16.mxu0 %v2710_v23  ;;  %1366 = vmatprep.mubr.bf16.mxu1 %v2712_v24  ;;  %v2804_v23 = vld [vmem:[%s3707_s0 + $0x210] ss:$28 sps:$4 sm:$0xff]  }
  0x64   :  { %v2805_v24 = vld [vmem:[%s3707_s0 + $0x2ec] ss:$28 sps:$4 sm:$0xff]  }
  0x6a   :  { %1239 = vmatmul.mubr.bf16.gmra.mxu0 %v2714_v25  ;;  %1367 = vmatmul.mubr.bf16.gmra.mxu1 %v2715_v26  ;;  %v2807_v25 = vld [vmem:[%s3707_s0 + $0x248] ss:$28 sps:$4 sm:$0xff]  }
  0x6b   :  { %1246 = vmatprep.mubr.bf16.mxu0 %v2718_v27  ;;  %1374 = vmatprep.mubr.bf16.mxu1 %v2720_v28 }
  0x72   :  { %1247 = vmatmul.mubr.bf16.gmra.mxu0 %v2722_v29  ;;  %1375 = vmatmul.mubr.bf16.gmra.mxu1 %v2723_v30 }
  0x73   :  { %1254 = vmatprep.mubr.bf16.mxu0 %v2726_v31  ;;  %1382 = vmatprep.mubr.bf16.mxu1 %v2728_v32 }
  0x7a   :  { %1255 = vmatmul.mubr.bf16.gmra.mxu0 %v2730_v33  ;;  %1383 = vmatmul.mubr.bf16.gmra.mxu1 %v2731_v34  ;;  %v2808_v34 = vld [vmem:[%s3707_s0 + $0x2e8] ss:$28 sps:$4 sm:$0xff]  }
  0x7b   :  { %1390 = vmatprep.mubr.bf16.mxu1 %v2732_v35  ;;  %1486 = vmatprep.mubr.bf16.mxu0 %v2736_v36  ;;  %v2809_v35 = vld [vmem:[%s3707_s0 + $0x280] ss:$28 sps:$4 sm:$0xff]  }
  0x7c   :  { %v2810_v36 = vld [vmem:[%s3707_s0 + $0x324] ss:$28 sps:$4 sm:$0xff]  }
  0x82   :  { %1391 = vmatmul.mubr.bf16.gmra.mxu1 %v2737_v38  ;;  %1487 = vmatmul.mubr.bf16.vlgmr.msra.gmra.mxu0 %v2734_v37  ;;  %v2812_v37 = vld [vmem:[%s3707_s0 + $0x2b8] ss:$28 sps:$4 sm:$0xff]  }
  0x83   :  { %1398 = vmatprep.mubr.bf16.mxu1 %v2739_v39  ;;  %1494 = vmatprep.mubr.bf16.mxu0 %v2741_v40 }
  0x8a   :  { %1399 = vmatmul.mubr.bf16.gmra.mxu1 %v2743_v41  ;;  %1495 = vmatmul.mubr.bf16.gmra.mxu0 %v2744_v42 }
  0x8b   :  { %1406 = vmatprep.mubr.bf16.mxu1 %v2745_v43  ;;  %1502 = vmatprep.mubr.bf16.mxu0 %v2747_v44 }
  0x92   :  { %1407 = vmatmul.mubr.bf16.gmra.mxu1 %v2749_v45  ;;  %1503 = vmatmul.mubr.bf16.gmra.mxu0 %v2750_v46  ;;  %v134_v46 = vld [vmem:[%s3707_s0 + $0x358] sm:$0xff] }
  0x93   :  { %1414 = vmatprep.mubr.bf16.mxu1 %v2751_v47  ;;  %1510 = vmatprep.mubr.bf16.mxu0 %v2753_v48 }
  0x9a   :  { %1415 = vmatmul.mubr.bf16.gmra.mxu1 %v2755_v49  ;;  %1511 = vmatmul.mubr.bf16.gmra.mxu0 %v2756_v50 }
  0x9b   :  { %1422 = vmatprep.mubr.bf16.mxu1 %v2757_v51  ;;  %1518 = vmatprep.mubr.bf16.mxu0 %v2759_v52  ;;  %v2813_v51 = vld [vmem:[%s3707_s0 + $0x320] ss:$28 sps:$4 sm:$0xff]   ;;  %v2814_v52 = vld [vmem:[%s3707_s0 + $0x2f0] ss:$28 sps:$4 sm:$0xff]  }
  0xa2   :  { %1423 = vmatmul.mubr.bf16.gmra.mxu1 %v2761_v53  ;;  %1519 = vmatmul.mubr.bf16.gmra.mxu0 %v2762_v54  ;;  %v2076_v53 = vcombine.high %v134_v46, %v134_v46  ;;  %v2816_v54 = vld [vmem:[%s3707_s0 + $0x328] ss:$28 sps:$4 sm:$0xff]  }
  0xa3   :  { %1430 = vmatprep.mubr.bf16.mxu1 %v2763_v55  ;;  %1526 = vmatprep.mubr.bf16.mxu0 %v2765_v56 }
  0xaa   :  { %1431 = vmatmul.mubr.bf16.gmra.mxu1 %v2767_v57  ;;  %1527 = vmatmul.mubr.bf16.gmra.mxu0 %v2768_v58 }
  0xab   :  { %1438 = vmatprep.mubr.bf16.mxu1 %v2769_v59  ;;  %1534 = vmatprep.mubr.bf16.mxu0 %v2771_v60 }
  0xb2   :  { %1439 = vmatmul.mubr.bf16.gmra.mxu1 %v2773_v62  ;;  %1535 = vmatmul.mubr.bf16.gmra.mxu0 %v2774_v63 }
  0xb3   :  { %1446 = vmatprep.mubr.bf16.mxu1 %v2074_v0  ;;  %1542 = vmatprep.mubr.bf16.mxu0 %v2776_v1 }
  0xba   :  { %1447 = vmatmul.mubr.bf16.gmra.mxu1 %v2073_v2  ;;  %1543 = vmatmul.mubr.bf16.gmra.mxu0 %v2779_v3  ;;  %v2075_v3 = vcombine.low %v134_v46, %v134_v46 }
  0xbb   :  { %1550 = vmatprep.mubr.bf16.mxu0 %v2780_v4  ;;  %2564 = vmatprep.mubr.msk.bf16.mxu1 %vm1085_vm0, %v2782_v5  ;;  %v2818_v4 = vld [vmem:[%s3707_s0 + $0x360] ss:$0 sps:$4 sm:$0xff]  }
  0xc2   :  { %1551 = vmatmul.mubr.bf16.gmra.mxu0 %v2783_v6  ;;  %2565 = vmatmul.mubr.msk.bf16.vlgmr.msra.gmra.mxu1 %vm1085_vm0, %v2784_v7 }
  0xc3   :  { %1558 = vmatprep.mubr.bf16.mxu0 %v2785_v8  ;;  %2568 = vmatprep.mubr.msk.bf16.mxu1 %vm1085_vm0, %v2787_v9 }
  0xca   :  { %1559 = vmatmul.mubr.bf16.gmra.mxu0 %v2788_v10  ;;  %2569 = vmatmul.mubr.msk.bf16.gmra.mxu1 %vm1085_vm0, %v2789_v11 }
  0xcb   :  { %1566 = vmatprep.mubr.bf16.mxu0 %v2790_v12  ;;  %2572 = vmatprep.mubr.msk.bf16.mxu1 %vm1085_vm0, %v2792_v13 }
  0xd2   :  { %1567 = vmatmul.mubr.bf16.gmra.mxu0 %v2793_v14  ;;  %2573 = vmatmul.mubr.msk.bf16.gmra.mxu1 %vm1085_vm0, %v2794_v15 }
  0xd3   :  { %1574 = vmatprep.mubr.bf16.mxu0 %v2795_v16  ;;  %2576 = vmatprep.mubr.msk.bf16.mxu1 %vm1085_vm0, %v2797_v17 }
  0xda   :  { %1575 = vmatmul.mubr.bf16.gmra.mxu0 %v2798_v18  ;;  %2577 = vmatmul.mubr.msk.bf16.gmra.mxu1 %vm1085_vm0, %v2799_v19 }
  0xdb   :  { %1582 = vmatprep.mubr.bf16.mxu0 %v2800_v20  ;;  %2580 = vmatprep.mubr.msk.bf16.mxu1 %vm1085_vm0, %v2802_v21 }
  0xe2   :  { %v2222_v26 = vpop.f32.mrf.mxu0  ;;  %v2294_v27 = vpop.f32.mrf.mxu1  ;;  %1583 = vmatmul.mubr.bf16.gmra.mxu0 %v2803_v22  ;;  %2581 = vmatmul.mubr.msk.bf16.gmra.mxu1 %vm1085_vm0, %v2804_v23 }
  0xe3   :  { %1590 = vmatprep.mubr.bf16.mxu0 %v2805_v24  ;;  %2584 = vmatprep.mubr.msk.bf16.mxu1 %vm1085_vm0, %v2807_v25 }
  0xe4   :  { %v2223_v28 = vpop.f32.mrf.mxu0  ;;  %v2295_v29 = vpop.f32.mrf.mxu1 }
  0xe5   :  { %v3295_v30 = vadd.f32 %v2223_v28, %v2222_v26  ;;  %v3297_v31 = vadd.f32 %v2295_v29, %v2294_v27 }
  0xe6   :  { %v2225_v32 = vpop.f32.mrf.mxu0  ;;  %v2297_v33 = vpop.f32.mrf.mxu1 }
  0xe8   :  { %v2226_v38 = vpop.f32.mrf.mxu0  ;;  %v2298_v39 = vpop.f32.mrf.mxu1 }
  0xe9   :  { %v3311_v40 = vadd.f32 %v2226_v38, %v2225_v32  ;;  %v3313_v41 = vadd.f32 %v2298_v39, %v2297_v33 }
  0xea   :  { %v2228_v42 = vpop.f32.mrf.mxu0  ;;  %v2300_v43 = vpop.f32.mrf.mxu1  ;;  %1591 = vmatmul.mubr.bf16.gmra.mxu0 %v2808_v34  ;;  %2585 = vmatmul.mubr.msk.bf16.gmra.mxu1 %vm1085_vm0, %v2809_v35 }
  0xeb   :  { %1598 = vmatprep.mubr.bf16.mxu0 %v2810_v36  ;;  %2588 = vmatprep.mubr.msk.bf16.mxu1 %vm1085_vm0, %v2812_v37 }
  0xec   :  { %v2229_v44 = vpop.f32.mrf.mxu0  ;;  %v2301_v45 = vpop.f32.mrf.mxu1 }
  0xed   :  { %v3320_v47 = vadd.f32 %v2229_v44, %v2228_v42  ;;  %v3322_v48 = vadd.f32 %v2301_v45, %v2300_v43 }
  0xee   :  { %v2231_v49 = vpop.f32.mrf.mxu0  ;;  %v2303_v50 = vpop.f32.mrf.mxu1 }
  0xf0   :  { %v2232_v55 = vpop.f32.mrf.mxu0  ;;  %v2304_v56 = vpop.f32.mrf.mxu1 }
  0xf1   :  { %v2233_v57 = vadd.f32 %v2232_v55, %v2231_v49  ;;  %v3333_v58 = vadd.f32 %v2304_v56, %v2303_v50 }
  0xf2   :  { %v2234_v59 = vpop.f32.mrf.mxu0  ;;  %v2306_v60 = vpop.f32.mrf.mxu1  ;;  %1599 = vmatmul.mubr.bf16.gmra.mxu0 %v2813_v51  ;;  %2589 = vmatmul.mubr.msk.bf16.gmra.mxu1 %vm1085_vm0, %v2814_v52 }
  0xf3   :  { %1606 = vmatprep.mubr.bf16.mxu0 %v2076_v53  ;;  %2592 = vmatprep.mubr.msk.bf16.mxu1 %vm1085_vm0, %v2816_v54 }
  0xf4   :  { %v2235_v61 = vpop.f32.mrf.mxu0  ;;  %v2307_v62 = vpop.f32.mrf.mxu1 }
  0xf5   :  { %v2236_v63 = vadd.f32 %v2235_v61, %v2234_v59  ;;  %v3337_v0 = vadd.f32 %v2307_v62, %v2306_v60 }
  0xf6   :  { %v2237_v1 = vpop.f32.mrf.mxu0  ;;  %v2309_v2 = vpop.f32.mrf.mxu1 }
  0xf8   :  { %v2238_v5 = vpop.f32.mrf.mxu0  ;;  %v2310_v6 = vpop.f32.mrf.mxu1 }
  0xf9   :  { %v2239_v7 = vadd.f32 %v2238_v5, %v2237_v1  ;;  %v3342_v8 = vadd.f32 %v2310_v6, %v2309_v2 }
  0xfa   :  { %v2240_v9 = vpop.f32.mrf.mxu0  ;;  %v2312_v10 = vpop.f32.mrf.mxu1  ;;  %1607 = vmatmul.mubr.bf16.gmra.mxu0 %v2075_v3  ;;  %2593 = vmatmul.mubr.msk.bf16.gmra.mxu1 %vm1085_vm0, %v2818_v4 }
  0xfc   :  { %v2241_v11 = vpop.f32.mrf.mxu0  ;;  %v2313_v12 = vpop.f32.mrf.mxu1 }
  0xfd   :  { %v2242_v13 = vadd.f32 %v2241_v11, %v2240_v9  ;;  %v3345_v14 = vadd.f32 %v2313_v12, %v2312_v10 }
  0xfe   :  { %v2243_v15 = vpop.f32.mrf.mxu0  ;;  %v2315_v16 = vpop.f32.mrf.mxu1 }
 0x100   :  { %v2244_v17 = vpop.f32.mrf.mxu0  ;;  %v2316_v18 = vpop.f32.mrf.mxu1 }
 0x101   :  { %v2245_v19 = vadd.f32 %v2244_v17, %v2243_v15 }
 0x102   :  { %v2246_v20 = vpop.f32.mrf.mxu0  ;;  %v2334_v21 = vpop.f32.mrf.mxu1 }
 0x104   :  { %v2247_v22 = vpop.f32.mrf.mxu0  ;;  %v2335_v23 = vpop.f32.mrf.mxu1 }
 0x105   :  { %v2248_v24 = vadd.f32 %v2247_v22, %v2246_v20  ;;  %v2336_v25 = vadd.f32 %v2335_v23, %v2334_v21 }
 0x106   :  { %v2249_v26 = vpop.f32.mrf.mxu0  ;;  %v2337_v27 = vpop.f32.mrf.mxu1 }
 0x107   :  { %v3348_v28 = vadd.f32 %v2336_v25, %v3295_v30 }
 0x108   :  { %v2250_v29 = vpop.f32.mrf.mxu0  ;;  %v2338_v32 = vpop.f32.mrf.mxu1 }
 0x109   :  { %v2251_v33 = vadd.f32 %v2250_v29, %v2249_v26  ;;  %v2339_v34 = vadd.f32 %v2338_v32, %v2337_v27 }
 0x10a   :  { %v2252_v35 = vpop.f32.mrf.mxu0  ;;  %v2340_v36 = vpop.f32.mrf.mxu1 }
 0x10b   :  { %v3351_v37 = vadd.f32 %v2339_v34, %v3311_v40 }
 0x10c   :  { %v2253_v38 = vpop.f32.mrf.mxu0  ;;  %v2341_v39 = vpop.f32.mrf.mxu1 }
 0x10d   :  { %v2254_v42 = vadd.f32 %v2253_v38, %v2252_v35  ;;  %v2342_v43 = vadd.f32 %v2341_v39, %v2340_v36 }
 0x10e   :  { %v2255_v44 = vpop.f32.mrf.mxu0  ;;  %v2343_v45 = vpop.f32.mrf.mxu1 }
 0x10f   :  { %v3354_v46 = vadd.f32 %v2342_v43, %v3320_v47 }
 0x110   :  { %v2256_v30 = vpop.f32.mrf.mxu0  ;;  %v2344_v49 = vpop.f32.mrf.mxu1 }
 0x111   :  { %v2257_v50 = vadd.f32 %v2256_v30, %v2255_v44  ;;  %v2345_v51 = vadd.f32 %v2344_v49, %v2343_v45 }
 0x112   :  { %v2258_v52 = vpop.f32.mrf.mxu0  ;;  %v2346_v53 = vpop.f32.mrf.mxu1 }
 0x113   :  { %v3356_v54 = vadd.f32 %v2345_v51, %v2233_v57 }
 0x114   :  { %v2259_v55 = vpop.f32.mrf.mxu0  ;;  %v2347_v40 = vpop.f32.mrf.mxu1 }
 0x115   :  { %v2260_v56 = vadd.f32 %v2259_v55, %v2258_v52  ;;  %v2348_v59 = vadd.f32 %v2347_v40, %v2346_v53 }
 0x116   :  { %v2261_v60 = vpop.f32.mrf.mxu0  ;;  %v2349_v61 = vpop.f32.mrf.mxu1 }
 0x117   :  { %v3358_v62 = vadd.f32 %v2348_v59, %v2236_v63 }
 0x118   :  { %v2262_v1 = vpop.f32.mrf.mxu0  ;;  %v2350_v2 = vpop.f32.mrf.mxu1 }
 0x119   :  { %v2263_v47 = vadd.f32 %v2262_v1, %v2261_v60  ;;  %v2351_v3 = vadd.f32 %v2350_v2, %v2349_v61 }
 0x11a   :  { %v2264_v4 = vpop.f32.mrf.mxu0  ;;  %v2352_v5 = vpop.f32.mrf.mxu1 }
 0x11b   :  { %v3360_v6 = vadd.f32 %v2351_v3, %v2239_v7 }
 0x11c   :  { %v2265_v9 = vpop.f32.mrf.mxu0  ;;  %v2353_v10 = vpop.f32.mrf.mxu1 }
 0x11d   :  { %v2266_v57 = vadd.f32 %v2265_v9, %v2264_v4  ;;  %v2354_v11 = vadd.f32 %v2353_v10, %v2352_v5 }
 0x11e   :  { %v2267_v12 = vpop.f32.mrf.mxu0  ;;  %v2355_v15 = vpop.f32.mrf.mxu1 }
 0x11f   :  { %v3362_v16 = vadd.f32 %v2354_v11, %v2242_v13 }
 0x120   :  { %v2268_v17 = vpop.f32.mrf.mxu0  ;;  %v2356_v18 = vpop.f32.mrf.mxu1 }
 0x121   :  { %v2269_v63 = vadd.f32 %v2268_v17, %v2267_v12  ;;  %v2357_v20 = vadd.f32 %v2356_v18, %v2355_v15 }
 0x122   :  { %v2270_v21 = vpop.f32.mrf.mxu0  ;;  %v2358_v22 = vpop.f32.mrf.mxu1 }
 0x123   :  { %v3364_v23 = vadd.f32 %v2357_v20, %v2245_v19 }
 0x124   :  { %v2271_v25 = vpop.f32.mrf.mxu0  ;;  %v2359_v26 = vpop.f32.mrf.mxu1 }
 0x125   :  { %v2272_v7 = vadd.f32 %v2271_v25, %v2270_v21  ;;  %v2360_v27 = vadd.f32 %v2359_v26, %v2358_v22 }
 0x126   :  { %v2273_v29 = vpop.f32.mrf.mxu0  ;;  %v2361_v32 = vpop.f32.mrf.mxu1 }
 0x127   :  { %v3366_v34 = vadd.f32 %v2360_v27, %v2248_v24 }
 0x128   :  { %v2274_v35 = vpop.f32.mrf.mxu0  ;;  %v2362_v36 = vpop.f32.mrf.mxu1 }
 0x129   :  { %v2275_v13 = vadd.f32 %v2274_v35, %v2273_v29  ;;  %v2363_v38 = vadd.f32 %v2362_v36, %v2361_v32 }
 0x12a   :  { %v2276_v39 = vpop.f32.mrf.mxu0  ;;  %v2364_v43 = vpop.f32.mrf.mxu1 }
 0x12b   :  { %v3368_v44 = vadd.f32 %v2363_v38, %v2251_v33 }
 0x12c   :  { %v2277_v45 = vpop.f32.mrf.mxu0  ;;  %v2365_v30 = vpop.f32.mrf.mxu1 }
 0x12d   :  { %v2278_v19 = vadd.f32 %v2277_v45, %v2276_v39  ;;  %v2366_v49 = vadd.f32 %v2365_v30, %v2364_v43 }
 0x12e   :  { %v2279_v51 = vpop.f32.mrf.mxu0  ;;  %v2367_v52 = vpop.f32.mrf.mxu1 }
 0x12f   :  { %v3370_v53 = vadd.f32 %v2366_v49, %v2254_v42 }
 0x130   :  { %v2280_v55 = vpop.f32.mrf.mxu0  ;;  %v2368_v40 = vpop.f32.mrf.mxu1 }
 0x131   :  { %v2281_v24 = vadd.f32 %v2280_v55, %v2279_v51  ;;  %v2369_v59 = vadd.f32 %v2368_v40, %v2367_v52 }
 0x132   :  { %v2282_v60 = vpop.f32.mrf.mxu0  ;;  %v2370_v61 = vpop.f32.mrf.mxu1 }
 0x133   :  { %v3372_v1 = vadd.f32 %v2369_v59, %v2257_v50 }
 0x134   :  { %v2283_v2 = vpop.f32.mrf.mxu0  ;;  %v2371_v3 = vpop.f32.mrf.mxu1 }
 0x135   :  { %v2284_v33 = vadd.f32 %v2283_v2, %v2282_v60  ;;  %v2372_v4 = vadd.f32 %v2371_v3, %v2370_v61 }
 0x136   :  { %v2285_v5 = vpop.f32.mrf.mxu0  ;;  %v2373_v9 = vpop.f32.mrf.mxu1 }
 0x137   :  { %v3374_v10 = vadd.f32 %v2372_v4, %v2260_v56 }
 0x138   :  { %v2286_v11 = vpop.f32.mrf.mxu0  ;;  %v2374_v12 = vpop.f32.mrf.mxu1 }
 0x139   :  { %v2287_v42 = vadd.f32 %v2286_v11, %v2285_v5  ;;  %v2375_v15 = vadd.f32 %v2374_v12, %v2373_v9 }
 0x13a   :  { %v2288_v17 = vpop.f32.mrf.mxu0  ;;  %v2376_v18 = vpop.f32.mrf.mxu1 }
 0x13b   :  { %v3376_v20 = vadd.f32 %v2375_v15, %v2263_v47 }
 0x13c   :  { %v2289_v21 = vpop.f32.mrf.mxu0  ;;  %v2377_v22 = vpop.f32.mrf.mxu1 }
 0x13d   :  { %v2290_v50 = vadd.f32 %v2289_v21, %v2288_v17  ;;  %v2378_v25 = vadd.f32 %v2377_v22, %v2376_v18 }
 0x13e   :  { %v2291_v26 = vpop.f32.mrf.mxu0  ;;  %v2379_v27 = vpop.f32.mrf.mxu1 }
 0x13f   :  { %v3378_v29 = vadd.f32 %v2378_v25, %v2266_v57 }
 0x140   :  { %v2292_v32 = vpop.f32.mrf.mxu0  ;;  %v2380_v35 = vpop.f32.mrf.mxu1 }
 0x141   :  { %v2293_v56 = vadd.f32 %v2292_v32, %v2291_v26  ;;  %v2381_v36 = vadd.f32 %v2380_v35, %v2379_v27 }
 0x142   :  { %v2382_v38 = vpop.f32.mrf.mxu1  ;;  %v3380_v39 = vpop.f32.mrf.mxu0 }
 0x143   :  { %v3382_v43 = vadd.f32 %v2381_v36, %v2269_v63 }
 0x144   :  { %v2383_v45 = vpop.f32.mrf.mxu1  ;;  %v3384_v47 = vpop.f32.mrf.mxu0 }
 0x145   :  { %v2384_v30 = vadd.f32 %v2383_v45, %v2382_v38 }
 0x146   :  { %v2385_v49 = vpop.f32.mrf.mxu1  ;;  %v3386_v51 = vpop.f32.mrf.mxu0 }
 0x147   :  { %v3388_v52 = vadd.f32 %v2384_v30, %v2272_v7 }
 0x148   :  { %v2386_v57 = vpop.f32.mrf.mxu1  ;;  %v3390_v55 = vpop.f32.mrf.mxu0 }
 0x149   :  { %v2387_v40 = vadd.f32 %v2386_v57, %v2385_v49 }
 0x14a   :  { %v2388_v59 = vpop.f32.mrf.mxu1  ;;  %v3392_v60 = vpop.f32.mrf.mxu0 }
 0x14b   :  { %v3394_v61 = vadd.f32 %v2387_v40, %v2275_v13 }
 0x14c   :  { %v2389_v63 = vpop.f32.mrf.mxu1  ;;  %v3396_v2 = vpop.f32.mrf.mxu0 }
 0x14d   :  { %v2390_v3 = vadd.f32 %v2389_v63, %v2388_v59 }
 0x14e   :  { %v2391_v4 = vpop.f32.mrf.mxu1  ;;  %v3398_v5 = vpop.f32.mrf.mxu0 }
 0x14f   :  { %v3400_v9 = vadd.f32 %v2390_v3, %v2278_v19 }
 0x150   :  { %v2392_v7 = vpop.f32.mrf.mxu1  ;;  %v3402_v11 = vpop.f32.mrf.mxu0 }
 0x151   :  { %v2393_v12 = vadd.f32 %v2392_v7, %v2391_v4 }
 0x152   :  { %v2394_v15 = vpop.f32.mrf.mxu1  ;;  %v3404_v17 = vpop.f32.mrf.mxu0 }
 0x153   :  { %v3406_v18 = vadd.f32 %v2393_v12, %v2281_v24 }
 0x154   :  { %v2395_v13 = vpop.f32.mrf.mxu1  ;;  %v3408_v21 = vpop.f32.mrf.mxu0 }
 0x155   :  { %v2396_v22 = vadd.f32 %v2395_v13, %v2394_v15 }
 0x156   :  { %v2397_v25 = vpop.f32.mrf.mxu1  ;;  %v3410_v26 = vpop.f32.mrf.mxu0 }
 0x157   :  { %v3412_v27 = vadd.f32 %v2396_v22, %v2284_v33 }
 0x158   :  { %v2398_v19 = vpop.f32.mrf.mxu1  ;;  %v3414_v32 = vpop.f32.mrf.mxu0 }
 0x159   :  { %3709 = vst [vmem:[#allocation2_spill] sm:$0xff] %v3412_v27  ;;  %v2399_v35 = vadd.f32 %v2398_v19, %v2397_v25 }
 0x15a   :  { %v2400_v36 = vpop.f32.mrf.mxu1  ;;  %v3416_v38 = vpop.f32.mrf.mxu0 }
 0x15b   :  { %v3418_v45 = vadd.f32 %v2399_v35, %v2287_v42 }
 0x15c   :  { %v2401_v24 = vpop.f32.mrf.mxu1  ;;  %v3420_v30 = vpop.f32.mrf.mxu0 }
 0x15d   :  { %3710 = vst [vmem:[#allocation3_spill] sm:$0xff] %v3418_v45  ;;  %v2402_v49 = vadd.f32 %v2401_v24, %v2400_v36 }
 0x15e   :  { %v2403_v57 = vpop.f32.mrf.mxu1  ;;  %v3422_v40 = vpop.f32.mrf.mxu0 }
 0x15f   :  { %v3424_v59 = vadd.f32 %v2402_v49, %v2290_v50 }
 0x160   :  { %v2404_v33 = vpop.f32.mrf.mxu1  ;;  %v3426_v63 = vpop.f32.mrf.mxu0 }
 0x161   :  { %3711 = vst [vmem:[#allocation4_spill] sm:$0xff] %v3424_v59  ;;  %v2405_v3 = vadd.f32 %v2404_v33, %v2403_v57 }
 0x162   :  { %v2406_v4 = vpop.f32.mrf.mxu1  ;;  %v3428_v7 = vpop.f32.mrf.mxu0 }
 0x163   :  { %v3430_v12 = vadd.f32 %v2405_v3, %v2293_v56 }
 0x164   :  { %v2407_v42 = vpop.f32.mrf.mxu1  ;;  %v3432_v15 = vpop.f32.mrf.mxu0 }
 0x165   :  { %3712 = vst [vmem:[#allocation5_spill] sm:$0xff] %v3430_v12  ;;  %v2408_v13 = vadd.f32 %v2407_v42, %v2406_v4 }
 0x166   :  { %v2409_v22 = vpop.f32.mrf.mxu1  ;;  %v3434_v25 = vpop.f32.mrf.mxu0 }
 0x167   :  { %v3437_v19 = vadd.f32 %v2408_v13, %v3297_v31 }
 0x168   :  { %v2410_v50 = vpop.f32.mrf.mxu1  ;;  %v3439_v35 = vpop.f32.mrf.mxu0 }
 0x169   :  { %3713 = vst [vmem:[#allocation6_spill] sm:$0xff] %v3437_v19  ;;  %v2411_v36 = vadd.f32 %v2410_v50, %v2409_v22 }
 0x16a   :  { %v2412_v24 = vpop.f32.mrf.mxu1  ;;  %v3441_v49 = vpop.f32.mrf.mxu0 }
 0x16b   :  { %v3444_v56 = vadd.f32 %v2411_v36, %v3313_v41 }
 0x16c   :  { %v2413_v57 = vpop.f32.mrf.mxu1  ;;  %v3446_v33 = vpop.f32.mrf.mxu0 }
 0x16d   :  { %3714 = vst [vmem:[#allocation7_spill] sm:$0xff] %v3444_v56  ;;  %v2414_v3 = vadd.f32 %v2413_v57, %v2412_v24 }
 0x16e   :  { %v2415_v4 = vpop.f32.mrf.mxu1  ;;  %v3448_v42 = vpop.f32.mrf.mxu0 }
 0x16f   :  { %v3451_v31 = vadd.f32 %v2414_v3, %v3322_v48 }
 0x170   :  { %v2416_v13 = vpop.f32.mrf.mxu1  ;;  %v3453_v19 = vpop.f32.mrf.mxu0 }
 0x171   :  { %3715 = vst [vmem:[#allocation8_spill] sm:$0xff] %v3451_v31  ;;  %v2417_v22 = vadd.f32 %v2416_v13, %v2415_v4 }
 0x172   :  { %v2418_v50 = vpop.f32.mrf.mxu1  ;;  %v3455_v45 = vpop.f32.mrf.mxu0 }
 0x173   :  { %v3458_v41 = vadd.f32 %v2417_v22, %v3333_v58 }
 0x174   :  { %v2419_v36 = vpop.f32.mrf.mxu1  ;;  %v3460_v56 = vpop.f32.mrf.mxu0 }
 0x175   :  { %3716 = vst [vmem:[#allocation9_spill] sm:$0xff] %v3458_v41  ;;  %v2420_v24 = vadd.f32 %v2419_v36, %v2418_v50  ;;  %v2454_v50 = vadd.f32 %v3396_v2, %v3392_v60  ;;  %v2451_v60 = vadd.f32 %v3390_v55, %v3386_v51 }
 0x176   :  { %v2421_v57 = vpop.f32.mrf.mxu1  ;;  %v3462_v12 = vpop.f32.mrf.mxu0 }
 0x177   :  { %v3465_v48 = vadd.f32 %v2420_v24, %v3337_v0  ;;  %v2448_v24 = vadd.f32 %v3384_v47, %v3380_v39  ;;  %v1492_v55 = vadd.f32 %v2451_v60, %v3351_v37 }
 0x178   :  { %v2422_v3 = vpop.f32.mrf.mxu1  ;;  %v3467_v31 = vpop.f32.mrf.mxu0 }
 0x179   :  { %3717 = vst [vmem:[#allocation10_spill] sm:$0xff] %v3465_v48  ;;  %v2423_v4 = vadd.f32 %v2422_v3, %v2421_v57  ;;  %v1489_v39 = vadd.f32 %v2448_v24, %v3348_v28 }
 0x17a   :  { %v2424_v13 = vpop.f32.mrf.mxu1  ;;  %v3469_v27 = vpop.f32.mrf.mxu0 }
 0x17b   :  { %v3472_v58 = vadd.f32 %v2423_v4, %v3342_v8  ;;  %v2457_v8 = vadd.f32 %v3402_v11, %v3398_v5  ;;  %v1497_v4 = vadd.f32 %v2454_v50, %v3354_v46  ;;  %v2460_v11 = vadd.f32 %v3408_v21, %v3404_v17 }
 0x17c   :  { %v2425_v22 = vpop.f32.mrf.mxu1  ;;  %v3474_v41 = vpop.f32.mrf.mxu0  ;;  %v2463_v17 = vadd.f32 %v3414_v32, %v3410_v26  ;;  %v2478_v26 = vadd.f32 %v3446_v33, %v3441_v49 }
 0x17d   :  { %v2426_v36 = vadd.f32 %v2425_v22, %v2424_v13  ;;  %v2466_v22 = vadd.f32 %v3420_v30, %v3416_v38  ;;  %v1500_v5 = vadd.f32 %v2457_v8, %v3356_v54 }
 0x17e   :  { %v2427_v59 = vpop.f32.mrf.mxu1  ;;  %v3478_v0 = vpop.f32.mrf.mxu0 }
 0x17f   :  { %v3483_v57 = vadd.f32 %v2426_v36, %v3345_v14  ;;  %v1513_v60 = vadd.f32 %v2466_v22, %v3362_v16 }
 0x180   :  { %v2428_v3 = vpop.f32.mrf.mxu1  ;;  %v3485_v48 = vpop.f32.mrf.mxu0 }
 0x182   :  { %v3492_v2 = vpop.f32.mrf.mxu0  ;;  %v2566_v59 = vpop.f32.mrf.mxu1 }
 0x183   :  { %v1657_v13 = vadd.f32 %v2566_v59, %v1497_v4  ;;  %v2469_v4 = vadd.f32 %v3426_v63, %v3422_v40 }
 0x184   :  { %v3495_v47 = vpop.f32.mrf.mxu0  ;;  %v1648_v14 = vpop.f32.mrf.mxu1 }
 0x185   :  { %v1776_v36 = vmax.f32 %v1657_v13, 0.0  ;;  %v1649_v3 = vadd.f32 %v1648_v14, %v1489_v39  ;;  %v1505_v39 = vadd.f32 %v2460_v11, %v3358_v62  ;;  %v1516_v16 = vadd.f32 %v2469_v4, %v3364_v23 }
 0x186   :  { %v3500_v46 = vpop.f32.mrf.mxu0  ;;  %v2567_v51 = vpop.f32.mrf.mxu1  ;;  %v1508_v62 = vadd.f32 %v2463_v17, %v3360_v6  ;;  %v2481_v11 = vadd.f32 %v3453_v19, %v3448_v42  ;;  %v2475_v4 = vadd.f32 %v3439_v35, %v3434_v25  ;;  %v2490_v25 = vadd.f32 %v3474_v41, %v3469_v27 }
 0x187   :  { %v2177_v28 = vpack.c.bf16 %v1776_v36, %v1776_v36  ;;  %v1774_v50 = vmax.f32 %v1649_v3, 0.0  ;;  %v1660_v24 = vadd.f32 %v2567_v51, %v1500_v5 }
 0x188   :  { %v3507_v38 = vpop.f32.mrf.mxu0  ;;  %v1651_v30 = vpop.f32.mrf.mxu1 }
 0x189   :  { %1933 = vst.msk [vmem:[%s3708_s2 + $0x8] sm:$0xf] %vm1930_vm1, %v2177_v28  ;;  %v2175_v54 = vpack.c.bf16 %v1774_v50, %v1774_v50  ;;  %v1777_v8 = vmax.f32 %v1660_v24, 0.0  ;;  %v1652_v37 = vadd.f32 %v1651_v30, %v1492_v55  ;;  %v2472_v55 = vadd.f32 %v3432_v15, %v3428_v7 }
 0x18a   :  { %v3516_v21 = vpop.f32.mrf.mxu0  ;;  %v2570_v59 = vpop.f32.mrf.mxu1  ;;  %v1529_v24 = vadd.f32 %v2478_v26, %v3370_v53  ;;  %v1532_v53 = vadd.f32 %v2481_v11, %v3372_v1 }
 0x18b   :  { %1931 = vst.msk [vmem:[%s3708_s2] sm:$0xf] %vm1930_vm1, %v2175_v54  ;;  %v2178_v40 = vpack.c.bf16 %v1777_v8, %v1777_v8  ;;  %v1775_v63 = vmax.f32 %v1652_v37, 0.0  ;;  %v1673_v13 = vadd.f32 %v2570_v59, %v1513_v60  ;;  %v1521_v37 = vadd.f32 %v2472_v55, %v3366_v34 }
 0x18c   :  { %v3523_v14 = vpop.f32.mrf.mxu0  ;;  %v1664_v36 = vpop.f32.mrf.mxu1  ;;  %v1524_v34 = vadd.f32 %v2475_v4, %v3368_v44 }
 0x18d   :  { %1934 = vst.msk [vmem:[%s3708_s2 + $0xc] sm:$0xf] %vm1930_vm1, %v2178_v40  ;;  %v2176_v32 = vpack.c.bf16 %v1775_v63, %v1775_v63  ;;  %v1780_v22 = vmax.f32 %v1673_v13, 0.0  ;;  %v1665_v3 = vadd.f32 %v1664_v36, %v1505_v39  ;;  %v2484_v39 = vadd.f32 %v3460_v56, %v3455_v45 }
 0x18e   :  { %v3532_v5 = vpop.f32.mrf.mxu0  ;;  %v2571_v51 = vpop.f32.mrf.mxu1  ;;  %v2493_v36 = vadd.f32 %v3485_v48, %v3478_v0 }
 0x18f   :  { %1932 = vst.msk [vmem:[%s3708_s2 + $0x4] sm:$0xf] %vm1930_vm1, %v2176_v32  ;;  %v2181_v23 = vpack.c.bf16 %v1780_v22, %v1780_v22  ;;  %v1778_v49 = vmax.f32 %v1665_v3, 0.0  ;;  %v1676_v33 = vadd.f32 %v2571_v51, %v1516_v16  ;;  %v1545_v32 = vadd.f32 %v2490_v25, %v3378_v29 }
 0x190   :  { %v3543_v28 = vpop.f32.mrf.mxu0  ;;  %v1667_v50 = vpop.f32.mrf.mxu1  ;;  %v2487_v22 = vadd.f32 %v3467_v31, %v3462_v12  ;;  %v1537_v55 = vadd.f32 %v2484_v39, %v3374_v10  ;;  %v2502_v29 = vadd.f32 %v3523_v14, %v3516_v21  ;;  %v2496_v10 = vadd.f32 %v3495_v47, %v3492_v2 }
 0x191   :  { %1937 = vst.msk [vmem:[%s3708_s2 + $0x18] sm:$0xf] %vm1930_vm1, %v2181_v23  ;;  %v2179_v6 = vpack.c.bf16 %v1778_v49, %v1778_v49  ;;  %v1781_v7 = vmax.f32 %v1676_v33, 0.0  ;;  %v1668_v15 = vadd.f32 %v1667_v50, %v1508_v62  ;;  %v1548_v33 = vadd.f32 %v2493_v36, %v3382_v43 }
 0x192   :  { %v3552_v30 = vpop.f32.mrf.mxu0  ;;  %v2574_v54 = vpop.f32.mrf.mxu1 }
 0x193   :  { %1935 = vst.msk [vmem:[%s3708_s2 + $0x10] sm:$0xf] %vm1930_vm1, %v2179_v6  ;;  %v2182_v19 = vpack.c.bf16 %v1781_v7, %v1781_v7  ;;  %v1779_v42 = vmax.f32 %v1668_v15, 0.0  ;;  %v1689_v8 = vadd.f32 %v2574_v54, %v1529_v24  ;;  %v1540_v7 = vadd.f32 %v2487_v22, %v3376_v20 }
 0x194   :  { %v3559_v60 = vpop.f32.mrf.mxu0  ;;  %v1680_v17 = vpop.f32.mrf.mxu1  ;;  %v2505_v15 = vadd.f32 %v3543_v28, %v3532_v5  ;;  %v1561_v54 = vadd.f32 %v2502_v29, %v3400_v9 }
 0x195   :  { %1938 = vst.msk [vmem:[%s3708_s2 + $0x1c] sm:$0xf] %vm1930_vm1, %v2182_v19  ;;  %v2180_v35 = vpack.c.bf16 %v1779_v42, %v1779_v42  ;;  %v1784_v59 = vmax.f32 %v1689_v8, 0.0  ;;  %v1681_v40 = vadd.f32 %v1680_v17, %v1521_v37  ;;  %v2499_v19 = vadd.f32 %v3507_v38, %v3500_v46 }
 0x196   :  { %v3568_v63 = vpop.f32.mrf.mxu0  ;;  %v2575_v13 = vpop.f32.mrf.mxu1  ;;  %v1553_v17 = vadd.f32 %v2496_v10, %v3388_v52  ;;  %v2508_v52 = vadd.f32 %v3559_v60, %v3552_v30  ;;  %v3718_v30 = vld [vmem:[#allocation4_spill] sm:$0xff] }
 0x197   :  { %1936 = vst.msk [vmem:[%s3708_s2 + $0x14] sm:$0xf] %vm1930_vm1, %v2180_v35  ;;  %v2185_v1 = vpack.c.bf16 %v1784_v59, %v1784_v59  ;;  %v1782_v27 = vmax.f32 %v1681_v40, 0.0  ;;  %v1692_v41 = vadd.f32 %v2575_v13, %v1532_v53  ;;  %v1564_v35 = vadd.f32 %v2505_v15, %v3406_v18  ;;  %v3722_v15 = vld [vmem:[#allocation8_spill] sm:$0xff] }
 0x198   :  { %v3579_v16 = vpop.f32.mrf.mxu0  ;;  %v1683_v26 = vpop.f32.mrf.mxu1 }
 0x199   :  { %1941 = vst.msk [vmem:[%s3708_s2 + $0x28] sm:$0xf] %vm1930_vm1, %v2185_v1  ;;  %v2183_v44 = vpack.c.bf16 %v1782_v27, %v1782_v27  ;;  %v1785_v45 = vmax.f32 %v1692_v41, 0.0  ;;  %v1684_v56 = vadd.f32 %v1683_v26, %v1524_v34  ;;  %v1556_v34 = vadd.f32 %v2499_v19, %v3394_v61 }
 0x19a   :  { %v2512_v3 = vpop.f32.mrf.mxu0  ;;  %v2578_v51 = vpop.f32.mrf.mxu1 }
 0x19b   :  { %1939 = vst.msk [vmem:[%s3708_s2 + $0x20] sm:$0xf] %vm1930_vm1, %v2183_v44  ;;  %v2186_v48 = vpack.c.bf16 %v1785_v45, %v1785_v45  ;;  %v1783_v0 = vmax.f32 %v1684_v56, 0.0  ;;  %v1705_v62 = vadd.f32 %v2578_v51, %v1545_v32  ;;  %v2511_v45 = vadd.f32 %v3579_v16, %v3568_v63 }
 0x19c   :  { %v2513_v23 = vpop.f32.mrf.mxu0  ;;  %v1696_v49 = vpop.f32.mrf.mxu1 }
 0x19d   :  { %1942 = vst.msk [vmem:[%s3708_s2 + $0x2c] sm:$0xf] %vm1930_vm1, %v2186_v48  ;;  %v2184_v12 = vpack.c.bf16 %v1783_v0, %v1783_v0  ;;  %v1788_v31 = vmax.f32 %v1705_v62, 0.0  ;;  %v1697_v11 = vadd.f32 %v1696_v49, %v1537_v55  ;;  %v2514_v9 = vadd.f32 %v2513_v23, %v2512_v3  ;;  %v3719_v48 = vld [vmem:[#allocation2_spill] sm:$0xff]  ;;  %v3720_v23 = vld [vmem:[#allocation5_spill] sm:$0xff] }
 0x19e   :  { %v2515_v50 = vpop.f32.mrf.mxu0  ;;  %v2579_v6 = vpop.f32.mrf.mxu1  ;;  %v1569_v0 = vadd.f32 %v2508_v52, %v3719_v48 }
 0x19f   :  { %1940 = vst.msk [vmem:[%s3708_s2 + $0x24] sm:$0xf] %vm1930_vm1, %v2184_v12  ;;  %v2189_v43 = vpack.c.bf16 %v1788_v31, %v1788_v31  ;;  %v1786_v21 = vmax.f32 %v1697_v11, 0.0  ;;  %v1708_v14 = vadd.f32 %v2579_v6, %v1548_v33  ;;  %v1577_v60 = vadd.f32 %v2514_v9, %v3718_v30  ;;  %v3721_v11 = vld [vmem:[#allocation3_spill] sm:$0xff] }
 0x1a0   :  { %v2516_v24 = vpop.f32.mrf.mxu0  ;;  %v1699_v4 = vpop.f32.mrf.mxu1 }
 0x1a1   :  { %1945 = vst.msk [vmem:[%s3708_s2 + $0x38] sm:$0xf] %vm1930_vm1, %v2189_v43  ;;  %v2187_v20 = vpack.c.bf16 %v1786_v21, %v1786_v21  ;;  %v1789_v2 = vmax.f32 %v1708_v14, 0.0  ;;  %v1700_v47 = vadd.f32 %v1699_v4, %v1540_v7  ;;  %v2517_v27 = vadd.f32 %v2516_v24, %v2515_v50 }
 0x1a2   :  { %v2518_v42 = vpop.f32.mrf.mxu0  ;;  %v2582_v8 = vpop.f32.mrf.mxu1  ;;  %v1572_v50 = vadd.f32 %v2511_v45, %v3721_v11 }
 0x1a3   :  { %1943 = vst.msk [vmem:[%s3708_s2 + $0x30] sm:$0xf] %vm1930_vm1, %v2187_v20  ;;  %v2190_v5 = vpack.c.bf16 %v1789_v2, %v1789_v2  ;;  %v1787_v28 = vmax.f32 %v1700_v47, 0.0  ;;  %v1721_v37 = vadd.f32 %v2582_v8, %v1561_v54  ;;  %v1580_v49 = vadd.f32 %v2517_v27, %v3720_v23 }
 0x1a4   :  { %v2519_v53 = vpop.f32.mrf.mxu0  ;;  %v1712_v25 = vpop.f32.mrf.mxu1 }
 0x1a5   :  { %1946 = vst.msk [vmem:[%s3708_s2 + $0x3c] sm:$0xf] %vm1930_vm1, %v2190_v5  ;;  %v2188_v46 = vpack.c.bf16 %v1787_v28, %v1787_v28  ;;  %v1792_v38 = vmax.f32 %v1721_v37, 0.0  ;;  %v1713_v59 = vadd.f32 %v1712_v25, %v1553_v17  ;;  %v2520_v6 = vadd.f32 %v2519_v53, %v2518_v42  ;;  %v3723_v37 = vld [vmem:[#allocation6_spill] sm:$0xff] }
 0x1a6   :  { %v2521_v40 = vpop.f32.mrf.mxu0  ;;  %v2583_v13 = vpop.f32.mrf.mxu1 }
 0x1a7   :  { %1944 = vst.msk [vmem:[%s3708_s2 + $0x34] sm:$0xf] %vm1930_vm1, %v2188_v46  ;;  %v2193_v18 = vpack.c.bf16 %v1792_v38, %v1792_v38  ;;  %v1790_v39 = vmax.f32 %v1713_v59, 0.0  ;;  %v1724_v1 = vadd.f32 %v2583_v13, %v1564_v35  ;;  %v1585_v17 = vadd.f32 %v2520_v6, %v3723_v37  ;;  %v3724_v38 = vld [vmem:[#allocation9_spill] sm:$0xff] }
 0x1a8   :  { %v2522_v41 = vpop.f32.mrf.mxu0  ;;  %v1715_v36 = vpop.f32.mrf.mxu1 }
 0x1a9   :  { %1949 = vst.msk [vmem:[%s3708_s2 + $0x48] sm:$0xf] %vm1930_vm1, %v2193_v18  ;;  %v2191_v61 = vpack.c.bf16 %v1790_v39, %v1790_v39  ;;  %v1793_v26 = vmax.f32 %v1724_v1, 0.0  ;;  %v1716_v44 = vadd.f32 %v1715_v36, %v1556_v34  ;;  %v2523_v54 = vadd.f32 %v2522_v41, %v2521_v40  ;;  %v3725_v34 = vld [vmem:[#allocation7_spill] sm:$0xff] }
 0x1aa   :  { %v2524_v56 = vpop.f32.mrf.mxu0  ;;  %v2586_v32 = vpop.f32.mrf.mxu1 }
 0x1ab   :  { %1947 = vst.msk [vmem:[%s3708_s2 + $0x40] sm:$0xf] %vm1930_vm1, %v2191_v61  ;;  %v2194_v22 = vpack.c.bf16 %v1793_v26, %v1793_v26  ;;  %v1791_v3 = vmax.f32 %v1716_v44, 0.0  ;;  %v1737_v51 = vadd.f32 %v2586_v32, %v1577_v60  ;;  %v1588_v52 = vadd.f32 %v2523_v54, %v3725_v34 }
 0x1ac   :  { %v2525_v62 = vpop.f32.mrf.mxu0  ;;  %v1728_v55 = vpop.f32.mrf.mxu1 }
 0x1ad   :  { %1950 = vst.msk [vmem:[%s3708_s2 + $0x4c] sm:$0xf] %vm1930_vm1, %v2194_v22  ;;  %v2192_v63 = vpack.c.bf16 %v1791_v3, %v1791_v3  ;;  %v1796_v16 = vmax.f32 %v1737_v51, 0.0  ;;  %v2526_v33 = vadd.f32 %v2525_v62, %v2524_v56  ;;  %v1729_v29 = vadd.f32 %v1728_v55, %v1569_v0  ;;  %v3726_v22 = vld [vmem:[#allocation10_spill] sm:$0xff] }
 0x1ae   :  { %v2527_v12 = vpop.f32.mrf.mxu0  ;;  %v2587_v31 = vpop.f32.mrf.mxu1 }
 0x1af   :  { %1948 = vst.msk [vmem:[%s3708_s2 + $0x44] sm:$0xf] %vm1930_vm1, %v2192_v63  ;;  %v2197_v7 = vpack.c.bf16 %v1796_v16, %v1796_v16  ;;  %v1794_v10 = vmax.f32 %v1729_v29, 0.0  ;;  %v1740_v43 = vadd.f32 %v2587_v31, %v1580_v49  ;;  %v1593_v24 = vadd.f32 %v2526_v33, %v3722_v15 }
 0x1b0   :  { %v2528_v21 = vpop.f32.mrf.mxu0  ;;  %v1731_v14 = vpop.f32.mrf.mxu1 }
 0x1b1   :  { %1953 = vst.msk [vmem:[%s3708_s2 + $0x58] sm:$0xf] %vm1930_vm1, %v2197_v7  ;;  %v2195_v4 = vpack.c.bf16 %v1794_v10, %v1794_v10  ;;  %v1797_v20 = vmax.f32 %v1740_v43, 0.0  ;;  %v2529_v2 = vadd.f32 %v2528_v21, %v2527_v12  ;;  %v1732_v47 = vadd.f32 %v1731_v14, %v1572_v50 }
 0x1b2   :  { %v2530_v19 = vpop.f32.mrf.mxu0  ;;  %v2590_v42 = vpop.f32.mrf.mxu1 }
 0x1b3   :  { %1951 = vst.msk [vmem:[%s3708_s2 + $0x50] sm:$0xf] %vm1930_vm1, %v2195_v4  ;;  %v2198_v8 = vpack.c.bf16 %v1797_v20, %v1797_v20  ;;  %v1795_v5 = vmax.f32 %v1732_v47, 0.0  ;;  %v1753_v28 = vadd.f32 %v2590_v42, %v1593_v24  ;;  %v1596_v59 = vadd.f32 %v2529_v2, %v3724_v38 }
 0x1b4   :  { %v2531_v53 = vpop.f32.mrf.mxu0  ;;  %v1744_v25 = vpop.f32.mrf.mxu1 }
 0x1b5   :  { %1954 = vst.msk [vmem:[%s3708_s2 + $0x5c] sm:$0xf] %vm1930_vm1, %v2198_v8  ;;  %v2196_v35 = vpack.c.bf16 %v1795_v5, %v1795_v5  ;;  %v1800_v9 = vmax.f32 %v1753_v28, 0.0  ;;  %v1745_v46 = vadd.f32 %v1744_v25, %v1585_v17  ;;  %v2532_v39 = vadd.f32 %v2531_v53, %v2530_v19 }
 0x1b6   :  { %v2533_v40 = vpop.f32.mrf.mxu0  ;;  %v2591_v13 = vpop.f32.mrf.mxu1 }
 0x1b7   :  { %1952 = vst.msk [vmem:[%s3708_s2 + $0x54] sm:$0xf] %vm1930_vm1, %v2196_v35  ;;  %v2201_v18 = vpack.c.bf16 %v1800_v9, %v1800_v9  ;;  %v1798_v1 = vmax.f32 %v1745_v46, 0.0  ;;  %v1756_v27 = vadd.f32 %v2591_v13, %v1596_v59  ;;  %v1601_v3 = vadd.f32 %v2532_v39, %v3726_v22 }
 0x1b8   :  { %v2534_v41 = vpop.f32.mrf.mxu0  ;;  %v1747_v36 = vpop.f32.mrf.mxu1 }
 0x1b9   :  { %1957 = vst.msk [vmem:[%s3708_s2 + $0x68] sm:$0xf] %vm1930_vm1, %v2201_v18  ;;  %v2199_v61 = vpack.c.bf16 %v1798_v1, %v1798_v1  ;;  %v1801_v26 = vmax.f32 %v1756_v27, 0.0  ;;  %v1748_v44 = vadd.f32 %v1747_v36, %v1588_v52  ;;  %v2535_v56 = vadd.f32 %v2534_v41, %v2533_v40 }
 0x1ba   :  { %v2536_v30 = vpop.f32.mrf.mxu0  ;;  %v2594_v60 = vpop.f32.mrf.mxu1 }
 0x1bb   :  { %1955 = vst.msk [vmem:[%s3708_s2 + $0x60] sm:$0xf] %vm1930_vm1, %v2199_v61  ;;  %v2202_v45 = vpack.c.bf16 %v1801_v26, %v1801_v26  ;;  %v1799_v32 = vmax.f32 %v1748_v44, 0.0  ;;  %v1604_v33 = vadd.f32 %v2535_v56, %v3472_v58 }
 0x1bc   :  { %v2537_v51 = vpop.f32.mrf.mxu0  ;;  %v1760_v48 = vpop.f32.mrf.mxu1 }
 0x1bd   :  { %1958 = vst.msk [vmem:[%s3708_s2 + $0x6c] sm:$0xf] %vm1930_vm1, %v2202_v45  ;;  %v2200_v0 = vpack.c.bf16 %v1799_v32, %v1799_v32  ;;  %v2538_v62 = vadd.f32 %v2537_v51, %v2536_v30  ;;  %v1761_v55 = vadd.f32 %v1760_v48, %v1601_v3 }
 0x1be   :  { %v2539_v23 = vpop.f32.mrf.mxu0  ;;  %v2595_v49 = vpop.f32.mrf.mxu1 }
 0x1bf   :  { %1956 = vst.msk [vmem:[%s3708_s2 + $0x64] sm:$0xf] %vm1930_vm1, %v2200_v0  ;;  %v1609_v63 = vadd.f32 %v2538_v62, %v3483_v57  ;;  %v1802_v16 = vmax.f32 %v1761_v55, 0.0 }
 0x1c0   :  { %v2540_v29 = vpop.f32.mrf.mxu0  ;;  %v1763_v12 = vpop.f32.mrf.mxu1 }
 0x1c1   :  { %v1769_v31 = vadd.f32 %v2594_v60, %v1609_v63  ;;  %v2203_v11 = vpack.c.bf16 %v1802_v16, %v1802_v16  ;;  %v1764_v50 = vadd.f32 %v1763_v12, %v1604_v33 }
 0x1c3   :  { %v1804_v6 = vmax.f32 %v1769_v31, 0.0  ;;  %1959 = vst.msk [vmem:[%s3708_s2 + $0x70] sm:$0xf] %vm1930_vm1, %v2203_v11  ;;  %v1803_v7 = vmax.f32 %v1764_v50, 0.0 }
 0x1c5   :  { %v2205_v10 = vpack.c.bf16 %v1804_v6, %v1804_v6  ;;  %v2204_v43 = vpack.c.bf16 %v1803_v7, %v1803_v7 }
 0x1c7   :  { %1961 = vst.msk [vmem:[%s3708_s2 + $0x78] sm:$0xf] %vm1930_vm1, %v2205_v10  ;;  %1960 = vst.msk [vmem:[%s3708_s2 + $0x74] sm:$0xf] %vm1930_vm1, %v2204_v43 }

// kernel: vae_forward.10
= control target key start
LH: loop header
LB: loop body
LE: loop exit
PB: predicated region body
PF: predicated region fallthrough
CT: control target
= control target key end

     0   :  { %vm498_vm0 = vcmask 261120   ;;  %vm721_vm1 = vcmask 257024   ;;  %s1193_s1 = inlined_call_operand.vmem [shape: bf16[1,800,32], index: 1, kind: input, shape index: {}]   ;;  %s1194_s0 = inlined_call_operand.vmem [shape: bf16[32,800], index: 0, kind: input, shape index: {}]   ;;  %s1195_s2 = inlined_call_operand.vmem [shape: bf16[32,32], index: 2, kind: output, shape index: {}]  }
   0x1   :  { %v900_v0 = vld [vmem:[%s1193_s1 + $0x78] sm:$0xff]   ;;  %v904_v4 = vld [vmem:[%s1193_s1 + $0x70] sm:$0xff]   ;;  %v908_v8 = vld [vmem:[%s1193_s1 + $0x68] sm:$0xff]  }
   0x2   :  { %v901_v1 = vld [vmem:[%s1193_s1 + $0xf8] sm:$0xff]   ;;  %804 = vmatprep.subr.bf16.mxu0 %v900_v0  ;;  %v905_v5 = vld [vmem:[%s1193_s1 + $0xf0] sm:$0xff]   ;;  %v909_v9 = vld [vmem:[%s1193_s1 + $0xe8] sm:$0xff]  }
   0x3   :  { %v902_v2 = vld [vmem:[%s1193_s1 + $0x38] sm:$0xff]   ;;  %832 = vmatprep.subr.bf16.mxu1 %v901_v1  ;;  %v906_v6 = vld [vmem:[%s1193_s1 + $0x30] sm:$0xff]   ;;  %v910_v10 = vld [vmem:[%s1193_s1 + $0x28] sm:$0xff]  }
   0x4   :  { %v903_v3 = vld [vmem:[%s1193_s1 + $0xb8] sm:$0xff]   ;;  %805 = vmatpush3.bf16.msra.mxu0 %v902_v2  ;;  %v907_v7 = vld [vmem:[%s1193_s1 + $0xb0] sm:$0xff]   ;;  %v911_v11 = vld [vmem:[%s1193_s1 + $0xa8] sm:$0xff]  }
   0x5   :  { %833 = vmatpush3.bf16.msra.mxu1 %v903_v3  ;;  %806 = vmatprep.subr.bf16.mxu0 %v904_v4  ;;  %v912_v12 = vld [vmem:[%s1193_s1 + $0x60] sm:$0xff]   ;;  %v916_v16 = vld [vmem:[%s1193_s1 + $0x58] sm:$0xff]   ;;  %v920_v20 = vld [vmem:[%s1193_s1 + $0x50] sm:$0xff]  }
   0x6   :  { %834 = vmatprep.subr.bf16.mxu1 %v905_v5  ;;  %v913_v13 = vld [vmem:[%s1193_s1 + $0xe0] sm:$0xff]   ;;  %v917_v17 = vld [vmem:[%s1193_s1 + $0xd8] sm:$0xff]   ;;  %v921_v21 = vld [vmem:[%s1193_s1 + $0xd0] sm:$0xff]  }
   0x7   :  { %v914_v14 = vld [vmem:[%s1193_s1 + $0x20] sm:$0xff]   ;;  %v918_v18 = vld [vmem:[%s1193_s1 + $0x18] sm:$0xff]   ;;  %v922_v22 = vld [vmem:[%s1193_s1 + $0x10] sm:$0xff]  }
   0x8   :  { %807 = vmatpush3.bf16.msra.mxu0 %v906_v6  ;;  %v915_v15 = vld [vmem:[%s1193_s1 + $0xa0] sm:$0xff]   ;;  %v919_v19 = vld [vmem:[%s1193_s1 + $0x98] sm:$0xff]   ;;  %v923_v23 = vld [vmem:[%s1193_s1 + $0x90] sm:$0xff]  }
   0x9   :  { %835 = vmatpush3.bf16.msra.mxu1 %v907_v7  ;;  %808 = vmatprep.subr.bf16.mxu0 %v908_v8  ;;  %v924_v24 = vld [vmem:[%s1193_s1 + $0x48] sm:$0xff]   ;;  %v928_v28 = vld [vmem:[%s1193_s1 + $0x40] sm:$0xff]   ;;  %v938_v36 = vld [vmem:[%s1193_s1 + $0x178] sm:$0xff]  }
   0xa   :  { %836 = vmatprep.subr.bf16.mxu1 %v909_v9  ;;  %v925_v25 = vld [vmem:[%s1193_s1 + $0xc8] sm:$0xff]   ;;  %v929_v29 = vld [vmem:[%s1193_s1 + $0xc0] sm:$0xff]   ;;  %v939_v37 = vld [vmem:[%s1193_s1 + $0x138] sm:$0xff]  }
   0xb   :  { %v926_v26 = vld [vmem:[%s1193_s1 + $0x8] sm:$0xff]   ;;  %v930_v30 = vld [vmem:[%s1193_s1] sm:$0xff]   ;;  %v940_v38 = vld [vmem:[%s1193_s1 + $0x170] sm:$0xff]  }
   0xc   :  { %809 = vmatpush3.bf16.msra.mxu0 %v910_v10  ;;  %v927_v27 = vld [vmem:[%s1193_s1 + $0x88] sm:$0xff]   ;;  %v931_v31 = vld [vmem:[%s1193_s1 + $0x80] sm:$0xff]   ;;  %v941_v39 = vld [vmem:[%s1193_s1 + $0x130] sm:$0xff]  }
   0xd   :  { %837 = vmatpush3.bf16.msra.mxu1 %v911_v11  ;;  %810 = vmatprep.subr.bf16.mxu0 %v912_v12  ;;  %v932_v32 = vld [vmem:[%s1194_s0] ss:$28 sps:$4 sm:$0xff]   ;;  %v935_v34 = vld [vmem:[%s1194_s0 + $0x8] ss:$28 sps:$4 sm:$0xff]   ;;  %v952_v47 = vld [vmem:[%s1194_s0 + $0x38] ss:$28 sps:$4 sm:$0xff]  }
   0xe   :  { %838 = vmatprep.subr.bf16.mxu1 %v913_v13  ;;  %v934_v33 = vld [vmem:[%s1194_s0 + $0x4] ss:$28 sps:$4 sm:$0xff]   ;;  %v937_v35 = vld [vmem:[%s1194_s0 + $0xc] ss:$28 sps:$4 sm:$0xff]   ;;  %v947_v44 = vld [vmem:[%s1194_s0 + $0x3c] ss:$28 sps:$4 sm:$0xff]  }
   0xf   :  { %537 = vmatprep.mubr.bf16.mxu0 %v934_v33  ;;  %586 = vmatprep.mubr.bf16.mxu1 %v937_v35  ;;  %v942_v40 = vld [vmem:[%s1193_s1 + $0x168] sm:$0xff]   ;;  %v944_v42 = vld [vmem:[%s1193_s1 + $0x160] sm:$0xff]   ;;  %v946_v46 = vld [vmem:[%s1193_s1 + $0x158] sm:$0xff]  }
  0x10   :  { %811 = vmatpush3.bf16.msra.mxu0 %v914_v14  ;;  %v943_v41 = vld [vmem:[%s1193_s1 + $0x128] sm:$0xff]   ;;  %v945_v43 = vld [vmem:[%s1193_s1 + $0x120] sm:$0xff]   ;;  %v951_v49 = vld [vmem:[%s1193_s1 + $0x118] sm:$0xff]  }
  0x11   :  { %839 = vmatpush3.bf16.msra.mxu1 %v915_v15  ;;  %812 = vmatprep.subr.bf16.mxu0 %v916_v16  ;;  %v949_v45 = vld [vmem:[%s1194_s0 + $0x44] ss:$28 sps:$4 sm:$0xff]   ;;  %v954_v50 = vld [vmem:[%s1193_s1 + $0x150] sm:$0xff]   ;;  %v958_v51 = vld [vmem:[%s1193_s1 + $0x188] sm:$0xff]  }
  0x12   :  { %840 = vmatprep.subr.bf16.mxu1 %v917_v17  ;;  %v953_v48 = vld [vmem:[%s1194_s0 + $0x40] ss:$28 sps:$4 sm:$0xff]   ;;  %v955_v52 = vld [vmem:[%s1193_s1 + $0x110] sm:$0xff]   ;;  %v956_v53 = vld [vmem:[%s1193_s1 + $0x148] sm:$0xff]  }
  0x13   :  { %v963_v54 = vld [vmem:[%s1194_s0 + $0x14] ss:$28 sps:$4 sm:$0xff]   ;;  %v957_v55 = vld [vmem:[%s1193_s1 + $0x108] sm:$0xff]   ;;  %v964_v56 = vld [vmem:[%s1193_s1 + $0x180] sm:$0xff]  }
  0x14   :  { %813 = vmatpush3.bf16.msra.mxu0 %v918_v18  ;;  %v965_v57 = vld [vmem:[%s1194_s0 + $0x18] ss:$28 sps:$4 sm:$0xff]   ;;  %v966_v58 = vld [vmem:[%s1194_s0 + $0x50] ss:$28 sps:$4 sm:$0xff]   ;;  %v959_v59 = vld [vmem:[%s1193_s1 + $0x140] sm:$0xff]  }
  0x15   :  { %841 = vmatpush3.bf16.msra.mxu1 %v919_v19  ;;  %814 = vmatprep.subr.bf16.mxu0 %v920_v20  ;;  %v960_v60 = vld [vmem:[%s1193_s1 + $0x100] sm:$0xff]   ;;  %v961_v61 = vld [vmem:[%s1194_s0 + $0x10] ss:$28 sps:$4 sm:$0xff]  }
  0x16   :  { %842 = vmatprep.subr.bf16.mxu1 %v921_v21  ;;  %v967_v62 = vld [vmem:[%s1194_s0 + $0x4c] ss:$28 sps:$4 sm:$0xff]  }
  0x17   :  { %v969_v63 = vld [vmem:[%s1194_s0 + $0x48] ss:$28 sps:$4 sm:$0xff]  }
  0x18   :  { %815 = vmatpush3.bf16.msra.mxu0 %v922_v22 }
  0x19   :  { %843 = vmatpush3.bf16.msra.mxu1 %v923_v23  ;;  %816 = vmatprep.subr.bf16.mxu0 %v924_v24 }
  0x1a   :  { %844 = vmatprep.subr.bf16.mxu1 %v925_v25 }
  0x1c   :  { %817 = vmatpush3.bf16.msra.mxu0 %v926_v26 }
  0x1d   :  { %845 = vmatpush3.bf16.msra.mxu1 %v927_v27  ;;  %818 = vmatprep.subr.bf16.mxu0 %v928_v28 }
  0x1e   :  { %846 = vmatprep.subr.bf16.mxu1 %v929_v29 }
  0x20   :  { %819 = vmatpush3.bf16.msra.mxu0 %v930_v30 }
  0x21   :  { %847 = vmatpush3.bf16.msra.mxu1 %v931_v31  ;;  %860 = vmatprep.subr.bf16.mxu0 %v938_v36 }
  0x22   :  { %892 = vmatprep.subr.bf16.mxu1 %v958_v51 }
  0x23   :  { %538 = vmatmul.mubr.bf16.vlgmr.msra.gmra.mxu0 %v932_v32 }
  0x24   :  { %587 = vmatmul.mubr.bf16.vlgmr.msra.gmra.mxu1 %v935_v34  ;;  %861 = vmatpush3.bf16.msra.mxu0 %v939_v37 }
  0x25   :  { %862 = vmatprep.subr.bf16.mxu0 %v940_v38  ;;  %545 = vmatprep.mubr.bf16.mxu0 %v947_v44 }
  0x26   :  { %594 = vmatprep.mubr.bf16.mxu1 %v949_v45  ;;  %893 = vmatpush3.bf16.msra.mxu1 %v958_v51 }
  0x27   :  { %894 = vmatprep.subr.bf16.mxu1 %v964_v56 }
  0x28   :  { %863 = vmatpush3.bf16.msra.mxu0 %v941_v39 }
  0x29   :  { %864 = vmatprep.subr.bf16.mxu0 %v942_v40 }
  0x2a   :  { %895 = vmatpush3.bf16.msra.mxu1 %v964_v56 }
  0x2b   :  { %546 = vmatmul.mubr.bf16.gmra.mxu0 %v952_v47 }
  0x2c   :  { %865 = vmatpush3.bf16.msra.mxu0 %v943_v41  ;;  %595 = vmatmul.mubr.bf16.gmra.mxu1 %v953_v48 }
  0x2d   :  { %866 = vmatprep.subr.bf16.mxu0 %v944_v42  ;;  %635 = vmatprep.mubr.bf16.mxu0 %v963_v54 }
  0x2e   :  { %896 = vmatprep.mubr.msk.bf16.mxu1 %vm498_vm0, %v965_v57 }
  0x30   :  { %867 = vmatpush3.bf16.msra.mxu0 %v945_v43 }
  0x31   :  { %868 = vmatprep.subr.bf16.mxu0 %v946_v46 }
  0x34   :  { %869 = vmatpush3.bf16.msra.mxu0 %v951_v49  ;;  %897 = vmatmul.mubr.msk.bf16.vlgmr.msra.gmra.mxu1 %vm498_vm0, %v966_v58 }
  0x35   :  { %870 = vmatprep.subr.bf16.mxu0 %v954_v50 }
  0x38   :  { %871 = vmatpush3.bf16.msra.mxu0 %v955_v52 }
  0x39   :  { %872 = vmatprep.subr.bf16.mxu0 %v956_v53 }
  0x3c   :  { %873 = vmatpush3.bf16.msra.mxu0 %v957_v55 }
  0x3d   :  { %874 = vmatprep.subr.bf16.mxu0 %v959_v59 }
  0x40   :  { %875 = vmatpush3.bf16.msra.mxu0 %v960_v60 }
  0x43   :  { %636 = vmatmul.mubr.bf16.vlgmr.msra.gmra.mxu0 %v961_v61 }
  0x44   :  { %643 = vmatprep.mubr.bf16.mxu0 %v967_v62 }
  0x4b   :  { %644 = vmatmul.mubr.bf16.gmra.mxu0 %v969_v63 }
  0xe3   :  { %v820_v1 = vpop.f32.mrf.mxu0 }
  0xe4   :  { %v848_v0 = vpop.f32.mrf.mxu1 }
  0xe5   :  { %v821_v3 = vpop.f32.mrf.mxu0 }
  0xe6   :  { %v849_v2 = vpop.f32.mrf.mxu1  ;;  %v822_v17 = vadd.f32 %v821_v3, %v820_v1 }
  0xe7   :  { %v823_v5 = vpop.f32.mrf.mxu0  ;;  %v850_v18 = vadd.f32 %v849_v2, %v848_v0 }
  0xe8   :  { %v851_v4 = vpop.f32.mrf.mxu1 }
  0xe9   :  { %v824_v8 = vpop.f32.mrf.mxu0  ;;  %v589_v22 = vadd.f32 %v850_v18, %v822_v17 }
  0xea   :  { %v852_v6 = vpop.f32.mrf.mxu1  ;;  %v825_v23 = vadd.f32 %v824_v8, %v823_v5 }
  0xeb   :  { %v826_v9 = vpop.f32.mrf.mxu0  ;;  %v853_v24 = vadd.f32 %v852_v6, %v851_v4 }
  0xec   :  { %v854_v7 = vpop.f32.mrf.mxu1 }
  0xed   :  { %v827_v11 = vpop.f32.mrf.mxu0  ;;  %v592_v32 = vadd.f32 %v853_v24, %v825_v23 }
  0xee   :  { %v855_v10 = vpop.f32.mrf.mxu1  ;;  %v828_v29 = vadd.f32 %v827_v11, %v826_v9 }
  0xef   :  { %v829_v13 = vpop.f32.mrf.mxu0  ;;  %v856_v30 = vadd.f32 %v855_v10, %v854_v7 }
  0xf0   :  { %v857_v12 = vpop.f32.mrf.mxu1 }
  0xf1   :  { %v830_v16 = vpop.f32.mrf.mxu0  ;;  %v597_v39 = vadd.f32 %v856_v30, %v828_v29 }
  0xf2   :  { %v858_v14 = vpop.f32.mrf.mxu1  ;;  %v831_v40 = vadd.f32 %v830_v16, %v829_v13 }
  0xf3   :  { %v859_v42 = vadd.f32 %v858_v14, %v857_v12 }
  0xf4   :  { %v898_v15 = vpop.f32.mrf.mxu1 }
  0xf5   :  { %v600_v50 = vadd.f32 %v859_v42, %v831_v40 }
  0xf6   :  { %v686_v20 = vpop.f32.mrf.mxu1 }
  0xf8   :  { %v899_v27 = vpop.f32.mrf.mxu1 }
  0xfa   :  { %v689_v36 = vpop.f32.mrf.mxu1 }
 0x103   :  { %v876_v19 = vpop.f32.mrf.mxu0 }
 0x105   :  { %v877_v21 = vpop.f32.mrf.mxu0 }
 0x106   :  { %v878_v25 = vadd.f32 %v877_v21, %v876_v19 }
 0x107   :  { %v879_v26 = vpop.f32.mrf.mxu0 }
 0x108   :  { %v638_v28 = vadd.f32 %v878_v25, %v589_v22 }
 0x109   :  { %v880_v31 = vpop.f32.mrf.mxu0 }
 0x10a   :  { %v881_v33 = vadd.f32 %v880_v31, %v879_v26  ;;  %v687_v34 = vadd.f32 %v686_v20, %v638_v28 }
 0x10b   :  { %v882_v35 = vpop.f32.mrf.mxu0 }
 0x10c   :  { %v701_v37 = vmax.f32 %v687_v34, 0.0  ;;  %v641_v38 = vadd.f32 %v881_v33, %v592_v32 }
 0x10d   :  { %v883_v41 = vpop.f32.mrf.mxu0 }
 0x10e   :  { %v800_v43 = vpack.c.bf16 %v701_v37, %v701_v37  ;;  %v884_v44 = vadd.f32 %v883_v41, %v882_v35  ;;  %v690_v45 = vadd.f32 %v689_v36, %v641_v38 }
 0x10f   :  { %v885_v46 = vpop.f32.mrf.mxu0 }
 0x110   :  { %722 = vst.msk [vmem:[%s1195_s2] sm:$0xf] %vm721_vm1, %v800_v43  ;;  %v646_v47 = vadd.f32 %v884_v44, %v597_v39  ;;  %v702_v48 = vmax.f32 %v690_v45, 0.0 }
 0x111   :  { %v886_v49 = vpop.f32.mrf.mxu0 }
 0x112   :  { %v695_v51 = vadd.f32 %v898_v15, %v646_v47  ;;  %v801_v52 = vpack.c.bf16 %v702_v48, %v702_v48  ;;  %v887_v53 = vadd.f32 %v886_v49, %v885_v46 }
 0x114   :  { %v703_v54 = vmax.f32 %v695_v51, 0.0  ;;  %723 = vst.msk [vmem:[%s1195_s2 + $0x4] sm:$0xf] %vm721_vm1, %v801_v52  ;;  %v649_v55 = vadd.f32 %v887_v53, %v600_v50 }
 0x116   :  { %v802_v56 = vpack.c.bf16 %v703_v54, %v703_v54  ;;  %v698_v57 = vadd.f32 %v899_v27, %v649_v55 }
 0x118   :  { %724 = vst.msk [vmem:[%s1195_s2 + $0x8] sm:$0xf] %vm721_vm1, %v802_v56  ;;  %v704_v58 = vmax.f32 %v698_v57, 0.0 }
 0x11a   :  { %v803_v59 = vpack.c.bf16 %v704_v58, %v704_v58 }
 0x11c   :  { %725 = vst.msk [vmem:[%s1195_s2 + $0xc] sm:$0xf] %vm721_vm1, %v803_v59 }

// kernel: vae_forward.11
= control target key start
LH: loop header
LB: loop body
LE: loop exit
PB: predicated region body
PF: predicated region fallthrough
CT: control target
= control target key end

     0   :  { %18 = vsyncpa [#allocation3], 0  ;;  %v48_v1 = vlaneseq  ;;  %v1435_v3 = vmov 1983009808   ;;  %vm65_vm0 = vcmask 1041408   ;;  %s1816_s0 = inlined_call_operand.vmem [shape: bf16[2,512], index: 0, kind: input, shape index: {}]   ;;  %s1817_s1 = inlined_call_operand.vmem [shape: f32[1,512], index: 1, kind: input, shape index: {}]   ;;  %s1818_s2 = inlined_call_operand.vmem [shape: f32[1,512], index: 2, kind: input, shape index: {}]   ;;  %s1819_s3 = inlined_call_operand.vmem [shape: bf16[512,32], index: 3, kind: input, shape index: {}]   ;;  %s1820_s4 = inlined_call_operand.vmem [shape: f32[1,32], index: 4, kind: input, shape index: {}]   ;;  %s1821_s5 = inlined_call_operand.vmem [shape: bf16[512,32], index: 5, kind: input, shape index: {}]   ;;  %s1822_s6 = inlined_call_operand.vmem [shape: f32[1,32], index: 6, kind: input, shape index: {}]   ;;  %s1823_s7 = inlined_call_operand.vmem [shape: bf16[32,512], index: 7, kind: input, shape index: {}]   ;;  %s1824_s8 = inlined_call_operand.vmem [shape: f32[1,512], index: 8, kind: input, shape index: {}]   ;;  %s1825_s9 = inlined_call_operand.vmem [shape: f32[2,32], index: 9, kind: input, shape index: {}]   ;;  %s1826_s10 = inlined_call_operand.hbm [shape: f32[2,32], index: 10, kind: output, shape index: {0}]   ;;  %s1827_s11 = inlined_call_operand.hbm [shape: f32[2,32], index: 11, kind: output, shape index: {1}]   ;;  %s1828_s12 = inlined_call_operand.vmem [shape: f32[2,512], index: 12, kind: output, shape index: {2}]  }
   0x1   :  { %v41_v0 = vld [vmem:[%s1816_s0] sm:$0xf]  ;;  %v46_v4 = vunpack.c.l.s4 %v1435_v3 }
   0x2   :  { %v42_v2 = vunpack.c.l.bf16 %v41_v0  ;;  %v1508_v5 = vshrl.u32 %v48_v1, 7 }
   0x3   :  { %v47_v7 = vunpack.c.0.s8 %v46_v4 }
   0x4   :  { %v44_v6 = vcombine.high %v42_v2, %v42_v2 }
   0x5   :  { %v1511_v8 = vsub.s32 %v47_v7, %v1508_v5 }
   0x7   :  { %v51_v9 = vrot.slane %v42_v2, %v1511_v8  ;;  %v58_v10 = vrot.slane %v44_v6, %v1511_v8 }
   0x9   :  { %v59_v11 = vcombine.high %v51_v9, %v51_v9  ;;  %v60_v12 = vcombine.high %v58_v10, %v58_v10  ;;  %v66_v13 = vsel %vm65_vm0, %v51_v9, 0.0  ;;  %v69_v14 = vsel %vm65_vm0, %v58_v10, 0.0 }
   0xb   :  { %v67_v15 = vsel %vm65_vm0, %v59_v11, 0.0  ;;  %v71_v16 = vsel %vm65_vm0, %v60_v12, 0.0 }
   0xc   :  { %v68_v17 = vadd.f32 %v67_v15, %v66_v13 }
   0xe   :  { %v70_v18 = vadd.f32 %v69_v14, %v68_v17 }
  0x10   :  { %v72_v19 = vadd.f32 %v71_v16, %v70_v18 }
  0x12   :  { %73 = vadd.xlane.f32.xlu0 %v72_v19 }
  0x13   :  { %19 = vsyncpa [#allocation5], 0  ;;  %v1436_v20 = vmov 269488144   ;;  %v1309_v41 = vld [vmem:[%s1819_s3 + $0x78] sm:$0xff]   ;;  %v1313_v45 = vld [vmem:[%s1819_s3 + $0x70] sm:$0xff]  }
  0x14   :  { %v79_v21 = vunpack.c.l.s4 %v1436_v20  ;;  %v1310_v42 = vld [vmem:[%s1819_s3 + $0x38] sm:$0xff]   ;;  %1216 = vmatprep.subr.bf16.mxu0 %v1309_v41  ;;  %v1314_v46 = vld [vmem:[%s1819_s3 + $0x30] sm:$0xff]   ;;  %v1317_v49 = vld [vmem:[%s1819_s3 + $0x68] sm:$0xff]   ;;  %v1636_v15 = vsub.s32 0, %v1508_v5  ;;  %v1639_v17 = vsub.s32 1, %v1508_v5  ;;  %v1642_v18 = vsub.s32 2, %v1508_v5 }
  0x15   :  { %v1311_v43 = vld [vmem:[%s1819_s3 + $0xf8] sm:$0xff]   ;;  %1217 = vmatpush3.bf16.msra.mxu0 %v1310_v42  ;;  %v1315_v47 = vld [vmem:[%s1819_s3 + $0xf0] sm:$0xff]   ;;  %v1318_v50 = vld [vmem:[%s1819_s3 + $0x28] sm:$0xff]   ;;  %v1645_v19 = vsub.s32 3, %v1508_v5  ;;  %vm1082_vm1 = vcmask 254976   ;;  %vm996_vm2 = vcmask 261120  }
  0x16   :  { %v80_v22 = vunpack.c.0.s8 %v79_v21  ;;  %v1312_v44 = vld [vmem:[%s1819_s3 + $0xb8] sm:$0xff]   ;;  %1238 = vmatprep.subr.bf16.mxu1 %v1311_v43  ;;  %1218 = vmatprep.subr.bf16.mxu0 %v1313_v45  ;;  %v1316_v48 = vld [vmem:[%s1819_s3 + $0xb0] sm:$0xff]   ;;  %v1319_v51 = vld [vmem:[%s1819_s3 + $0xe8] sm:$0xff]   ;;  %s1439_s29 = smov [#allocation4]  }
  0x17   :  { %1239 = vmatpush3.bf16.msra.mxu1 %v1312_v44  ;;  %v1321_v52 = vld [vmem:[%s1819_s3 + $0x60] sm:$0xff]   ;;  %v1320_v53 = vld [vmem:[%s1819_s3 + $0xa8] sm:$0xff]   ;;  %v1325_v56 = vld [vmem:[%s1819_s3 + $0x58] sm:$0xff]   ;;  %s1124_s30 = sshll.u32 %s1439_s29, 4  ;;  %s1125_s30 = int_to_ptr.vmem [resolvable:$true] %s1124_s30 }
  0x18   :  { %v1520_v23 = vsub.s32 %v80_v22, %v1508_v5  ;;  %1240 = vmatprep.subr.bf16.mxu1 %v1315_v47  ;;  %v1323_v54 = vld [vmem:[%s1819_s3 + $0xe0] sm:$0xff]   ;;  %v1327_v58 = vld [vmem:[%s1819_s3 + $0xd8] sm:$0xff]   ;;  %v1329_v60 = vld [vmem:[%s1819_s3 + $0x50] sm:$0xff]  }
  0x19   :  { %1219 = vmatpush3.bf16.msra.mxu0 %v1314_v46  ;;  %v1322_v55 = vld [vmem:[%s1819_s3 + $0x20] sm:$0xff]   ;;  %v1326_v59 = vld [vmem:[%s1819_s3 + $0x18] sm:$0xff]   ;;  %v1331_v62 = vld [vmem:[%s1819_s3 + $0xd0] sm:$0xff]  }
  0x1a   :  { %1220 = vmatprep.subr.bf16.mxu0 %v1317_v49  ;;  %v1324_v57 = vld [vmem:[%s1819_s3 + $0xa0] sm:$0xff]   ;;  %v1328_v61 = vld [vmem:[%s1819_s3 + $0x98] sm:$0xff]   ;;  %v1330_v63 = vld [vmem:[%s1819_s3 + $0x10] sm:$0xff]  }
  0x1b   :  { %1241 = vmatpush3.bf16.msra.mxu1 %v1316_v48  ;;  %v1333_v0 = vld [vmem:[%s1819_s3 + $0x48] sm:$0xff]   ;;  %v1332_v1 = vld [vmem:[%s1819_s3 + $0x90] sm:$0xff]   ;;  %v1337_v4 = vld [vmem:[%s1819_s3 + $0x40] sm:$0xff]  }
  0x1c   :  { %1242 = vmatprep.subr.bf16.mxu1 %v1319_v51  ;;  %v1334_v3 = vld [vmem:[%s1819_s3 + $0x8] sm:$0xff]   ;;  %v1339_v7 = vld [vmem:[%s1819_s3 + $0xc0] sm:$0xff]   ;;  %v1341_v11 = vld [vmem:[%s1821_s5 + $0x78] sm:$0xff]  }
  0x1d   :  { %1221 = vmatpush3.bf16.msra.mxu0 %v1318_v50  ;;  %v1336_v6 = vld [vmem:[%s1819_s3 + $0x88] sm:$0xff]   ;;  %v1338_v9 = vld [vmem:[%s1819_s3] sm:$0xff]   ;;  %v1343_v12 = vld [vmem:[%s1821_s5 + $0xf8] sm:$0xff]  }
  0x1e   :  { %1222 = vmatprep.subr.bf16.mxu0 %v1321_v52  ;;  %v1340_v10 = vld [vmem:[%s1819_s3 + $0x80] sm:$0xff]   ;;  %v1342_v51 = vld [vmem:[%s1821_s5 + $0x38] sm:$0xff]  }
  0x1f   :  { %1243 = vmatpush3.bf16.msra.mxu1 %v1320_v53  ;;  %v132_v20 = vld [vmem:[%s1817_s1] sm:$0xf] }
  0x20   :  { %1244 = vmatprep.subr.bf16.mxu1 %v1323_v54  ;;  %v169_v21 = vld [vmem:[%s1818_s2] sm:$0xf]  ;;  %v137_v22 = vrot.slane %v132_v20, %v1636_v15  ;;  %v1345_v54 = vld [vmem:[%s1821_s5 + $0x70] sm:$0xff]  }
  0x21   :  { %1223 = vmatpush3.bf16.msra.mxu0 %v1322_v55  ;;  %v174_v5 = vrot.slane %v169_v21, %v1636_v15 }
  0x22   :  { %1224 = vmatprep.subr.bf16.mxu0 %v1325_v56  ;;  %v1347_v56 = vld [vmem:[%s1821_s5 + $0xf0] sm:$0xff]  }
  0x23   :  { %1245 = vmatpush3.bf16.msra.mxu1 %v1324_v57  ;;  %v1346_v57 = vld [vmem:[%s1821_s5 + $0x30] sm:$0xff]  }
  0x24   :  { %1246 = vmatprep.subr.bf16.mxu1 %v1327_v58  ;;  %v1349_v58 = vld [vmem:[%s1821_s5 + $0x68] sm:$0xff]  }
  0x25   :  { %1225 = vmatpush3.bf16.msra.mxu0 %v1326_v59  ;;  %v1348_v59 = vld [vmem:[%s1821_s5 + $0xb0] sm:$0xff]  }
  0x26   :  { %1226 = vmatprep.subr.bf16.mxu0 %v1329_v60  ;;  %v1351_v60 = vld [vmem:[%s1821_s5 + $0xe8] sm:$0xff]  }
  0x27   :  { %1247 = vmatpush3.bf16.msra.mxu1 %v1328_v61  ;;  %v1350_v61 = vld [vmem:[%s1821_s5 + $0x28] sm:$0xff]  }
  0x28   :  { %1248 = vmatprep.subr.bf16.mxu1 %v1331_v62  ;;  %v1353_v62 = vld [vmem:[%s1821_s5 + $0x60] sm:$0xff]  }
  0x29   :  { %1227 = vmatpush3.bf16.msra.mxu0 %v1330_v63  ;;  %v1352_v63 = vld [vmem:[%s1821_s5 + $0xa8] sm:$0xff]  }
  0x2a   :  { %1228 = vmatprep.subr.bf16.mxu0 %v1333_v0  ;;  %v1355_v0 = vld [vmem:[%s1821_s5 + $0xe0] sm:$0xff]  }
  0x2b   :  { %1249 = vmatpush3.bf16.msra.mxu1 %v1332_v1  ;;  %v1354_v1 = vld [vmem:[%s1821_s5 + $0x20] sm:$0xff]  }
  0x2d   :  { %1229 = vmatpush3.bf16.msra.mxu0 %v1334_v3  ;;  %v1356_v3 = vld [vmem:[%s1821_s5 + $0xa0] sm:$0xff]  }
  0x2e   :  { %1230 = vmatprep.subr.bf16.mxu0 %v1337_v4  ;;  %v1359_v4 = vld [vmem:[%s1821_s5 + $0xd8] sm:$0xff]  }
  0x31   :  { %1231 = vmatpush3.bf16.msra.mxu0 %v1338_v9  ;;  %v1360_v9 = vld [vmem:[%s1821_s5 + $0x98] sm:$0xff]  }
  0x32   :  { %1260 = vmatprep.subr.bf16.mxu0 %v1341_v11  ;;  %v1362_v11 = vld [vmem:[%s1821_s5 + $0x10] sm:$0xff]  }
  0x9b   :  { %v74_v24 = vpop.xlane.xlu0 %73 }
  0x9c   :  { %v76_v25 = vmul.f32 0.001953125, %v74_v24  ;;  %v141_v24 = vrot.slane %v132_v20, %v1639_v17 }
  0x9e   :  { %v84_v26 = vrot.slane %v76_v25, %v1520_v23  ;;  %v145_v25 = vrot.slane %v132_v20, %v1642_v18 }
  0xa0   :  { %v1523_v27 = vsub.f32 %v42_v2, %v84_v26  ;;  %v1335_v2 = vld [vmem:[%s1819_s3 + $0xc8] sm:$0xff]   ;;  %v149_v26 = vrot.slane %v132_v20, %v1645_v19  ;;  %v1369_v20 = vld [vmem:[%s1821_s5 + $0x40] sm:$0xff]  }
  0xa1   :  { %1250 = vmatprep.subr.bf16.mxu1 %v1335_v2  ;;  %v1357_v2 = vld [vmem:[%s1821_s5 + $0x58] sm:$0xff]  }
  0xa2   :  { %v87_v28 = vmul.f32 %v1523_v27, %v1523_v27  ;;  %1251 = vmatpush3.bf16.msra.mxu1 %v1336_v6  ;;  %v1358_v6 = vld [vmem:[%s1821_s5 + $0x18] sm:$0xff]  }
  0xa3   :  { %1252 = vmatprep.subr.bf16.mxu1 %v1339_v7  ;;  %v1361_v7 = vld [vmem:[%s1821_s5 + $0x50] sm:$0xff]  }
  0xa4   :  { %v89_v29 = vcombine.high %v87_v28, %v87_v28  ;;  %v96_v30 = vrot.slane %v87_v28, %v1511_v8  ;;  %v178_v28 = vrot.slane %v169_v21, %v1639_v17 }
  0xa6   :  { %v103_v31 = vrot.slane %v89_v29, %v1511_v8  ;;  %v104_v32 = vcombine.high %v96_v30, %v96_v30  ;;  %v110_v34 = vsel %vm65_vm0, %v96_v30, 0.0  ;;  %1253 = vmatpush3.bf16.msra.mxu1 %v1340_v10  ;;  %v182_v29 = vrot.slane %v169_v21, %v1642_v18  ;;  %v1363_v10 = vld [vmem:[%s1821_s5 + $0xd0] sm:$0xff]  }
  0xa7   :  { %1282 = vmatprep.subr.bf16.mxu1 %v1343_v12  ;;  %v186_v30 = vrot.slane %v169_v21, %v1645_v19  ;;  %v1365_v12 = vld [vmem:[%s1821_s5 + $0x48] sm:$0xff]  }
  0xa8   :  { %v105_v33 = vcombine.high %v103_v31, %v103_v31  ;;  %v111_v35 = vsel %vm65_vm0, %v104_v32, 0.0  ;;  %v113_v37 = vsel %vm65_vm0, %v103_v31, 0.0  ;;  %v150_v31 = vcombine.low %v137_v22, %v141_v24  ;;  %v1368_v21 = vld [vmem:[%s1821_s5 + $0x88] sm:$0xff]   ;;  %v1371_v22 = vld [vmem:[%s1821_s5 + $0xc0] sm:$0xff]  }
  0xa9   :  { %v112_v36 = vadd.f32 %v111_v35, %v110_v34  ;;  %v151_v32 = vcombine.low %v145_v25, %v149_v26  ;;  %v188_v34 = vcombine.low %v182_v29, %v186_v30  ;;  %v1370_v24 = vld [vmem:[%s1821_s5] sm:$0xff]   ;;  %v1378_v29 = vld [vmem:[%s1823_s7 + $0x2c] ss:$16 sps:$4 sm:$0xff]  }
  0xaa   :  { %v115_v39 = vsel %vm65_vm0, %v105_v33, 0.0  ;;  %v187_v33 = vcombine.low %v174_v5, %v178_v28  ;;  %v158_v35 = vrot.slane %v150_v31, %v1511_v8  ;;  %v1372_v25 = vld [vmem:[%s1821_s5 + $0x80] sm:$0xff]   ;;  %v1376_v28 = vld [vmem:[%s1823_s7 + $0x28] ss:$16 sps:$4 sm:$0xff]   ;;  %v1384_v31 = vld [vmem:[%s1823_s7 + $0xc] ss:$16 sps:$4 sm:$0xff]  }
  0xab   :  { %v114_v38 = vadd.f32 %v113_v37, %v112_v36  ;;  %v165_v36 = vrot.slane %v151_v32, %v1511_v8  ;;  %v1373_v26 = vld [vmem:[%s1823_s7 + $0x20] ss:$16 sps:$4 sm:$0xff]   ;;  %v1375_v5 = vld [vmem:[%s1823_s7 + $0x24] ss:$16 sps:$4 sm:$0xff]  }
  0xac   :  { %v195_v37 = vrot.slane %v187_v33, %v1511_v8  ;;  %v1381_v30 = vld [vmem:[%s1823_s7 + $0x4] ss:$16 sps:$4 sm:$0xff]   ;;  %v1379_v32 = vld [vmem:[%s1823_s7] ss:$16 sps:$4 sm:$0xff]   ;;  %v1382_v33 = vld [vmem:[%s1823_s7 + $0x8] ss:$16 sps:$4 sm:$0xff]  }
  0xad   :  { %v116_v40 = vadd.f32 %v115_v39, %v114_v38  ;;  %v202_v38 = vrot.slane %v188_v34, %v1511_v8  ;;  %v166_v41 = vcombine.low %v158_v35, %v165_v36  ;;  %v1437_v34 = vmov 0   ;;  %v1140_v36 = vld [vmem:[%s1820_s4] ss:$0 sm:$0xff] }
  0xaf   :  { %117 = vadd.xlane.f32.xlu0 %v116_v40  ;;  %v203_v43 = vcombine.low %v195_v37, %v202_v38 }
 0x138   :  { %v118_v13 = vpop.xlane.xlu0 %117 }
 0x139   :  { %v119_v14 = vmul.f32 0.001953125, %v118_v13  ;;  %v1364_v13 = vld [vmem:[%s1821_s5 + $0x90] sm:$0xff]  }
 0x13b   :  { %v120_v16 = vadd.f32 1e-05, %v119_v14  ;;  %v1367_v14 = vld [vmem:[%s1821_s5 + $0xc8] sm:$0xff]  }
 0x13d   :  { %1385 = vrsqrt.f32 %v120_v16  ;;  %v1366_v16 = vld [vmem:[%s1821_s5 + $0x8] sm:$0xff]  }
 0x14a   :  { %v1386_v39 = vpop.eup %1385 }
 0x14b   :  { %v129_v40 = vrot.slane %v1386_v39, %v1520_v23 }
 0x14d   :  { %v131_v42 = vmul.f32 %v129_v40, %v1523_v27  ;;  %v1344_v27 = vld [vmem:[%s1821_s5 + $0xb8] sm:$0xff]  }
 0x14f   :  { %v168_v44 = vmul.f32 %v166_v41, %v131_v42 }
 0x151   :  { %v205_v45 = vadd.f32 %v203_v43, %v168_v44 }
 0x153   :  { %v214_v46 = vrot.slane %v205_v45, %v1511_v8  ;;  %v207_v47 = vcombine.high %v205_v45, %v205_v45 }
 0x155   :  { %v222_v48 = vcombine.high %v214_v46, %v214_v46  ;;  %v221_v49 = vrot.slane %v207_v47, %v1511_v8  ;;  %v1672_v53 = vpack.c.bf16 %v214_v46, %v214_v46 }
 0x157   :  { %v229_v50 = vpack.c.bf16 %v222_v48, %v222_v48  ;;  %v223_v52 = vcombine.high %v221_v49, %v221_v49  ;;  %v230_v55 = vpack.c.bf16 %v221_v49, %v221_v49  ;;  %v1173_v49 = vld [vmem:[%s1822_s6] ss:$0 sm:$0xff]  ;;  %s1438_s6 = smov [#allocation2]  }
 0x158   :  { %s1114_s28 = sshll.u32 %s1438_s6, 4  ;;  %s1115_s28 = int_to_ptr.vmem [resolvable:$true] %s1114_s28 }
 0x159   :  { %527 = vmatprep.mubr.bf16.mxu0 %v229_v50  ;;  %v231_v23 = vpack.c.bf16 %v223_v52, %v223_v52  ;;  %s1391_s13 = scalar_lea.vmem %s1115_s28, 32  ;;  %p1396_p1 = scmp.lt.s32.totalorder %s1115_s28, %s1115_s28 }
 0x15a   :  { %528 = vmatmul.mubr.bf16.vlgmr.msra.gmra.mxu0 %v1672_v53  ;;  %p1392_p0 = scmp.ne.s32.totalorder %s1115_s28, %s1391_s13  ;;  %p1397_p2 = scmp.lt.s32.totalorder %s1391_s13, %s1391_s13 }
 0x15b   :  { %1261 = vmatpush3.bf16.msra.mxu0 %v1342_v51  ;;  %567 = vmatprep.mubr.bf16.mxu1 %v231_v23 }
 0x15c   :  { %870 = vmatprep.mubr.bf16.mxu0 %v229_v50  ;;  %568 = vmatmul.mubr.bf16.vlgmr.msra.gmra.mxu1 %v230_v55  ;;  %p1398_p3 = por %p1397_p2, %p1396_p1 }
 0x15d   :  { %1283 = vmatpush3.bf16.msra.mxu1 %v1344_v27  ;;  %1262 = vmatprep.subr.bf16.mxu0 %v1345_v54 }
 0x15e   :  { %910 = vmatprep.mubr.bf16.mxu1 %v231_v23  ;;  %1284 = vmatprep.subr.bf16.mxu1 %v1347_v56  ;;  %p1399_p4 = pnand %p1398_p3, %p1392_p0 }
 0x15f   :  { %1263 = vmatpush3.bf16.msra.mxu0 %v1346_v57 }
 0x160   :  { %1264 = vmatprep.subr.bf16.mxu0 %v1349_v58 }
 0x161   :  { %1285 = vmatpush3.bf16.msra.mxu1 %v1348_v59 }
 0x162   :  { %1286 = vmatprep.subr.bf16.mxu1 %v1351_v60 }
 0x163   :  { %1265 = vmatpush3.bf16.msra.mxu0 %v1350_v61  ;;  %v918_v61 = vld [vmem:[%s1825_s9] sm:$0x3] }
 0x164   :  { %1266 = vmatprep.subr.bf16.mxu0 %v1353_v62 }
 0x165   :  { %1287 = vmatpush3.bf16.msra.mxu1 %v1352_v63 }
 0x166   :  { %1288 = vmatprep.subr.bf16.mxu1 %v1355_v0 }
 0x167   :  { %1267 = vmatpush3.bf16.msra.mxu0 %v1354_v1 }
 0x168   :  { %1268 = vmatprep.subr.bf16.mxu0 %v1357_v2 }
 0x169   :  { %1289 = vmatpush3.bf16.msra.mxu1 %v1356_v3 }
 0x16a   :  { %1290 = vmatprep.subr.bf16.mxu1 %v1359_v4 }
 0x16b   :  { %1269 = vmatpush3.bf16.msra.mxu0 %v1358_v6 }
 0x16c   :  { %1270 = vmatprep.subr.bf16.mxu0 %v1361_v7 }
 0x16d   :  { %1291 = vmatpush3.bf16.msra.mxu1 %v1360_v9 }
 0x16e   :  { %1292 = vmatprep.subr.bf16.mxu1 %v1363_v10 }
 0x16f   :  { %1271 = vmatpush3.bf16.msra.mxu0 %v1362_v11 }
 0x170   :  { %1272 = vmatprep.subr.bf16.mxu0 %v1365_v12 }
 0x171   :  { %1293 = vmatpush3.bf16.msra.mxu1 %v1364_v13 }
 0x172   :  { %1294 = vmatprep.subr.bf16.mxu1 %v1367_v14 }
 0x173   :  { %1273 = vmatpush3.bf16.msra.mxu0 %v1366_v16 }
 0x174   :  { %1274 = vmatprep.subr.bf16.mxu0 %v1369_v20 }
 0x175   :  { %1295 = vmatpush3.bf16.msra.mxu1 %v1368_v21 }
 0x176   :  { %1296 = vmatprep.subr.bf16.mxu1 %v1371_v22 }
 0x177   :  { %1275 = vmatpush3.bf16.msra.mxu0 %v1370_v24 }
 0x178   :  { %1012 = vmatprep.subr.bf16.mxu0 %v1375_v5 }
 0x179   :  { %1297 = vmatpush3.bf16.msra.mxu1 %v1372_v25 }
 0x17a   :  { %871 = vmatmul.mubr.bf16.vlgmr.msra.gmra.mxu0 %v1672_v53  ;;  %1053 = vmatprep.subr.bf16.mxu1 %v1378_v29 }
 0x17b   :  { %1013 = vmatpush1.bf16.msra.mxu0 %v1373_v26  ;;  %1032 = vmatprep.mubr.bf16.mxu0 %v1437_v34 }
 0x17c   :  { %911 = vmatmul.mubr.bf16.vlgmr.msra.gmra.mxu1 %v230_v55  ;;  %1014 = vmatprep.subr.bf16.mxu0 %v1381_v30 }
 0x17d   :  { %1054 = vmatpush1.bf16.msra.mxu1 %v1376_v28  ;;  %1073 = vmatprep.mubr.bf16.mxu1 %v1437_v34 }
 0x17e   :  { %1055 = vmatprep.subr.bf16.mxu1 %v1384_v31 }
 0x17f   :  { %1015 = vmatpush1.bf16.msra.mxu0 %v1379_v32 }
 0x181   :  { %1056 = vmatpush1.bf16.msra.mxu1 %v1382_v33 }
 0x21a   :  { %v1232_v35 = vpop.f32.mrf.mxu0 }
 0x21c   :  { %v1233_v37 = vpop.f32.mrf.mxu0  ;;  %v1254_v38 = vpop.f32.mrf.mxu1 }
 0x21d   :  { %v1234_v39 = vadd.f32 %v1233_v37, %v1232_v35 }
 0x21e   :  { %v1235_v40 = vpop.f32.mrf.mxu0  ;;  %v1255_v41 = vpop.f32.mrf.mxu1 }
 0x21f   :  { %v530_v42 = vadd.f32 %v1234_v39, %v1140_v36  ;;  %v1256_v43 = vadd.f32 %v1255_v41, %v1254_v38 }
 0x220   :  { %v1236_v44 = vpop.f32.mrf.mxu0  ;;  %v1257_v45 = vpop.f32.mrf.mxu1 }
 0x221   :  { %v570_v46 = vadd.f32 %v1256_v43, %v530_v42 }
 0x222   :  { %v1258_v47 = vpop.f32.mrf.mxu1 }
 0x223   :  { %1083 = vst.msk [vmem:[#allocation2] sm:$0x3] %vm1082_vm1, %v570_v46 }
 0x23a   :  { %v1276_v48 = vpop.f32.mrf.mxu0 }
 0x23c   :  { %v1277_v50 = vpop.f32.mrf.mxu0  ;;  %v1298_v51 = vpop.f32.mrf.mxu1 }
 0x23d   :  { %v1278_v52 = vadd.f32 %v1277_v50, %v1276_v48 }
 0x23e   :  { %v1279_v53 = vpop.f32.mrf.mxu0  ;;  %v1299_v23 = vpop.f32.mrf.mxu1 }
 0x23f   :  { %v873_v27 = vadd.f32 %v1278_v52, %v1173_v49  ;;  %v1300_v54 = vadd.f32 %v1299_v23, %v1298_v51 }
 0x240   :  { %v1280_v55 = vpop.f32.mrf.mxu0  ;;  %v1301_v56 = vpop.f32.mrf.mxu1 }
 0x241   :  { %v913_v57 = vadd.f32 %v1300_v54, %v873_v27 }
 0x242   :  { %v1302_v58 = vpop.f32.mrf.mxu1 }
 0x243   :  { %v919_v59 = vmul.f32 0.5, %v913_v57  ;;  %1084 = vst.msk [vmem:[#allocation4] sm:$0x3] %vm1082_vm1, %v913_v57 }
 0x245   :  { %v920_v60 = vmul.f32 1.442695, %v919_v59 }
 0x247   :  { %1387 = vpow2.f32 %v920_v60 }
 0x254   :  { %v1388_v62 = vpop.eup %1387 }
 0x255   :  { %v922_v63 = vmul.f32 %v1388_v62, %v918_v61 }
 0x257   :  { %v923_v0 = vadd.f32 %v922_v63, %v570_v46 }
 0x259   :  { %1389 = vtanh.f32 %v923_v0 }
 0x266   :  { %v1390_v1 = vpop.eup %1389 }
 0x267   :  { %v925_v2 = vpack.c.bf16 %v1390_v1, %v1390_v1 }
 0x269   :  { %1214 = vmatmul.mubr.msk.bf16.vlgmr.msra.gmra.mxu0 %vm996_vm2, %v925_v2  ;;  %1215 = vmatmul.mubr.msk.bf16.vlgmr.msra.gmra.mxu1 %vm996_vm2, %v925_v2 }
 0x26a   :  { %1402 = shalt.err (!%p1399_p4)
}
 0x26b   :  { %1117 = dma.vmem_to_hbm [thread:$0]  %s1115_s28, 32, %s1826_s10, [#allocation3]  }
 0x26c   :  { %s1411_s3 = scalar_lea.vmem %s1125_s30, 32  ;;  %p1416_p6 = scmp.lt.s32.totalorder %s1125_s30, %s1125_s30 }
 0x26d   :  { %p1412_p5 = scmp.ne.s32.totalorder %s1125_s30, %s1411_s3  ;;  %p1417_p7 = scmp.lt.s32.totalorder %s1411_s3, %s1411_s3 }
 0x26f   :  { %p1418_p8 = por %p1417_p7, %p1416_p6 }
 0x271   :  { %p1419_p9 = pnand %p1418_p8, %p1412_p5 }
 0x273   :  { %1422 = shalt.err (!%p1419_p9)
}
 0x274   :  { %1127 = dma.vmem_to_hbm [thread:$0]  %s1125_s30, 32, %s1827_s11, [#allocation5]   ;;  %v934_v3 = vld [vmem:[%s1824_s8] sm:$0xf] }
 0x275   :  { %v939_v4 = vrot.slane %v934_v3, %v1636_v15  ;;  %v947_v6 = vrot.slane %v934_v3, %v1642_v18  ;;  %v943_v7 = vrot.slane %v934_v3, %v1639_v17  ;;  %v951_v9 = vrot.slane %v934_v3, %v1645_v19 }
 0x329   :  { %v1034_v10 = vpop.f32.mrf.mxu0  ;;  %v1075_v11 = vpop.f32.mrf.mxu1 }
 0x32a   :  { %v1035_v14 = vadd.f32 %v1034_v10, %v939_v4  ;;  %v1076_v16 = vadd.f32 %v1075_v11, %v947_v6 }
 0x32b   :  { %v1036_v12 = vpop.f32.mrf.mxu0  ;;  %v1077_v13 = vpop.f32.mrf.mxu1 }
 0x32c   :  { %v1037_v20 = vadd.f32 %v1036_v12, %v943_v7  ;;  %v1078_v21 = vadd.f32 %v1077_v13, %v951_v9 }
 0x32d   :  { %v1038_v22 = vpop.f32.mrf.mxu0  ;;  %v1079_v24 = vpop.f32.mrf.mxu1 }
 0x32e   :  { %v1089_v25 = vcombine.low %v1035_v14, %v1037_v20  ;;  %v1090_v26 = vcombine.low %v1076_v16, %v1078_v21 }
 0x32f   :  { %v1039_v5 = vpop.f32.mrf.mxu0  ;;  %v1080_v15 = vpop.f32.mrf.mxu1 }
 0x330   :  { %v1097_v18 = vrot.slane %v1089_v25, %v1511_v8  ;;  %v1104_v17 = vrot.slane %v1090_v26, %v1511_v8 }
 0x332   :  { %v1105_v28 = vcombine.low %v1097_v18, %v1104_v17 }
 0x334   :  { %1107 = vst [vmem:[%s1828_s12] sm:$0xff] %v1105_v28 }
 0x335   :  { %1431 = dma.done.wait [#allocation3], 32  }
 0x336   :  { %1432 = vsyncadd [#allocation3], 4294967264 }
 0x337   :  { %1433 = dma.done.wait [#allocation5], 32  }
 0x338   :  { %1434 = vsyncadd [#allocation5], 4294967264 }
 0x339   :  { %1138 = vsyncpa [#allocation3], 1 }
 0x33a   :  { %1139 = vsyncpa [#allocation5], 1 }

// kernel: vae_forward.12
= control target key start
LH: loop header
LB: loop body
LE: loop exit
PB: predicated region body
PF: predicated region fallthrough
CT: control target
= control target key end

     0   :  { %v658_v1 = vmov 0.0   ;;  %vm659_vm0 = vmmov 0   ;;  %vm244_vm1 = vcmask 261120   ;;  %s803_s1 = inlined_call_operand.vmem [shape: bf16[1,288,128], index: 1, kind: input, shape index: {}]   ;;  %s804_s0 = inlined_call_operand.vmem [shape: bf16[72,288], index: 0, kind: input, shape index: {}]   ;;  %s805_s2 = inlined_call_operand.vmem [shape: bf16[72,128], index: 2, kind: output, shape index: {}]  }
   0x1   :  { %v621_v0 = vld [vmem:[%s803_s1 + $0x78] sm:$0xff]   ;;  %595 = vmatprep.subr.bf16.mxu1 %v658_v1  ;;  %599 = vmatprep.mubr.msk.bf16.mxu1 %vm659_vm0, %v658_v1  ;;  %v623_v3 = vld [vmem:[%s803_s1 + $0x70] sm:$0xff]   ;;  %v625_v5 = vld [vmem:[%s803_s1 + $0x68] sm:$0xff]  }
   0x2   :  { %v622_v2 = vld [vmem:[%s803_s1 + $0x38] sm:$0xff]   ;;  %542 = vmatprep.subr.bf16.mxu0 %v621_v0  ;;  %v624_v4 = vld [vmem:[%s803_s1 + $0x30] sm:$0xff]   ;;  %v626_v6 = vld [vmem:[%s803_s1 + $0x28] sm:$0xff]  }
   0x3   :  { %543 = vmatpush3.bf16.msra.mxu0 %v622_v2  ;;  %v627_v7 = vld [vmem:[%s803_s1 + $0x60] sm:$0xff]   ;;  %v629_v9 = vld [vmem:[%s803_s1 + $0x58] sm:$0xff]   ;;  %v633_v10 = vld [vmem:[%s803_s1 + $0x88] sm:$0xff]  }
   0x4   :  { %544 = vmatprep.subr.bf16.mxu0 %v623_v3  ;;  %v628_v8 = vld [vmem:[%s803_s1 + $0x20] sm:$0xff]   ;;  %v630_v11 = vld [vmem:[%s803_s1 + $0x18] sm:$0xff]   ;;  %596 = vmatpush3.bf16.msra.mxu1 %v633_v10  ;;  %v631_v13 = vld [vmem:[%s803_s1 + $0x50] sm:$0xff]  }
   0x5   :  { %597 = vmatprep.subr.bf16.mxu1 %v658_v1  ;;  %v636_v12 = vld [vmem:[%s803_s1 + $0x80] sm:$0xff]   ;;  %v632_v14 = vld [vmem:[%s803_s1 + $0x10] sm:$0xff]   ;;  %v634_v16 = vld [vmem:[%s803_s1 + $0x48] sm:$0xff]  }
   0x6   :  { %v639_v15 = vld [vmem:[%s804_s0 + $0x8] ss:$12 sps:$4 sm:$0xff]   ;;  %v642_v17 = vld [vmem:[%s804_s0 + $0x4] ss:$12 sps:$4 sm:$0xff]   ;;  %v643_v20 = vld [vmem:[%s804_s0 + $0x20] ss:$12 sps:$4 sm:$0xff]  }
   0x7   :  { %545 = vmatpush3.bf16.msra.mxu0 %v624_v4  ;;  %292 = vmatprep.mubr.bf16.mxu0 %v642_v17  ;;  %v635_v18 = vld [vmem:[%s803_s1 + $0x8] sm:$0xff]   ;;  %v637_v19 = vld [vmem:[%s803_s1 + $0x40] sm:$0xff]   ;;  %v651_v27 = vld [vmem:[%s804_s0 + $0x50] ss:$12 sps:$4 sm:$0xff]  }
   0x8   :  { %546 = vmatprep.subr.bf16.mxu0 %v625_v5  ;;  %598 = vmatpush3.bf16.msra.mxu1 %v636_v12  ;;  %v638_v21 = vld [vmem:[%s803_s1] sm:$0xff]   ;;  %v644_v23 = vld [vmem:[%s804_s0 + $0x1c] ss:$12 sps:$4 sm:$0xff]   ;;  %v652_v29 = vld [vmem:[%s804_s0 + $0x4c] ss:$12 sps:$4 sm:$0xff]  }
   0x9   :  { %v640_v22 = vld [vmem:[%s804_s0] ss:$12 sps:$4 sm:$0xff]   ;;  %v647_v24 = vld [vmem:[%s804_s0 + $0x38] ss:$12 sps:$4 sm:$0xff]   ;;  %v650_v28 = vld [vmem:[%s804_s0 + $0x30] ss:$12 sps:$4 sm:$0xff]  }
   0xa   :  { %v646_v25 = vld [vmem:[%s804_s0 + $0x18] ss:$12 sps:$4 sm:$0xff]   ;;  %v648_v26 = vld [vmem:[%s804_s0 + $0x34] ss:$12 sps:$4 sm:$0xff]   ;;  %v655_v30 = vld [vmem:[%s804_s0 + $0x68] ss:$0 sps:$4 sm:$0xff]  }
   0xb   :  { %547 = vmatpush3.bf16.msra.mxu0 %v626_v6  ;;  %600 = vmatmul.mubr.msk.bf16.vlgmr.msra.gmra.mxu1 %vm244_vm1, %v639_v15  ;;  %v28_v31 = vld [vmem:[%s804_s0 + $0x60] sm:$0xff]  ;;  %v654_v32 = vld [vmem:[%s804_s0 + $0x48] ss:$12 sps:$4 sm:$0xff]  }
   0xc   :  { %548 = vmatprep.subr.bf16.mxu0 %v627_v7  ;;  %603 = vmatprep.mubr.msk.bf16.mxu1 %vm659_vm0, %v658_v1  ;;  %v476_v33 = vcombine.high %v28_v31, %v28_v31  ;;  %v475_v34 = vcombine.low %v28_v31, %v28_v31 }
   0xf   :  { %549 = vmatpush3.bf16.msra.mxu0 %v628_v8 }
  0x10   :  { %550 = vmatprep.subr.bf16.mxu0 %v629_v9 }
  0x13   :  { %551 = vmatpush3.bf16.msra.mxu0 %v630_v11  ;;  %604 = vmatmul.mubr.msk.bf16.gmra.mxu1 %vm244_vm1, %v643_v20 }
  0x14   :  { %552 = vmatprep.subr.bf16.mxu0 %v631_v13  ;;  %607 = vmatprep.mubr.msk.bf16.mxu1 %vm659_vm0, %v658_v1 }
  0x17   :  { %553 = vmatpush3.bf16.msra.mxu0 %v632_v14 }
  0x18   :  { %554 = vmatprep.subr.bf16.mxu0 %v634_v16 }
  0x1b   :  { %555 = vmatpush3.bf16.msra.mxu0 %v635_v18  ;;  %608 = vmatmul.mubr.msk.bf16.gmra.mxu1 %vm244_vm1, %v647_v24 }
  0x1c   :  { %556 = vmatprep.subr.bf16.mxu0 %v637_v19  ;;  %611 = vmatprep.mubr.msk.bf16.mxu1 %vm659_vm0, %v658_v1 }
  0x1f   :  { %557 = vmatpush3.bf16.msra.mxu0 %v638_v21 }
  0x22   :  { %293 = vmatmul.mubr.bf16.vlgmr.msra.gmra.mxu0 %v640_v22 }
  0x23   :  { %300 = vmatprep.mubr.bf16.mxu0 %v644_v23  ;;  %612 = vmatmul.mubr.msk.bf16.gmra.mxu1 %vm244_vm1, %v651_v27 }
  0x24   :  { %615 = vmatprep.mubr.msk.bf16.mxu1 %vm659_vm0, %v658_v1 }
  0x2a   :  { %301 = vmatmul.mubr.bf16.gmra.mxu0 %v646_v25 }
  0x2b   :  { %308 = vmatprep.mubr.bf16.mxu0 %v648_v26  ;;  %616 = vmatmul.mubr.msk.bf16.gmra.mxu1 %vm244_vm1, %v655_v30 }
  0x32   :  { %309 = vmatmul.mubr.bf16.gmra.mxu0 %v650_v28 }
  0x33   :  { %316 = vmatprep.mubr.bf16.mxu0 %v652_v29 }
  0x3a   :  { %317 = vmatmul.mubr.bf16.gmra.mxu0 %v654_v32 }
  0x3b   :  { %324 = vmatprep.mubr.bf16.mxu0 %v476_v33 }
  0x42   :  { %325 = vmatmul.mubr.bf16.gmra.mxu0 %v475_v34 }
  0xcb   :  { %v366_v35 = vpop.f32.mrf.mxu1 }
  0xcd   :  { %v601_v36 = vpop.f32.mrf.mxu1 }
  0xcf   :  { %v369_v37 = vpop.f32.mrf.mxu1 }
  0xd1   :  { %v602_v38 = vpop.f32.mrf.mxu1 }
  0xd3   :  { %v374_v39 = vpop.f32.mrf.mxu1 }
  0xd5   :  { %v605_v40 = vpop.f32.mrf.mxu1 }
  0xd7   :  { %v377_v41 = vpop.f32.mrf.mxu1 }
  0xd9   :  { %v606_v43 = vpop.f32.mrf.mxu1 }
  0xdb   :  { %v382_v46 = vpop.f32.mrf.mxu1 }
  0xdd   :  { %v609_v48 = vpop.f32.mrf.mxu1 }
  0xdf   :  { %v385_v52 = vpop.f32.mrf.mxu1 }
  0xe1   :  { %v610_v55 = vpop.f32.mrf.mxu1 }
  0xe2   :  { %v558_v42 = vpop.f32.mrf.mxu0 }
  0xe3   :  { %v390_v60 = vpop.f32.mrf.mxu1 }
  0xe4   :  { %v559_v44 = vpop.f32.mrf.mxu0 }
  0xe5   :  { %v560_v45 = vadd.f32 %v559_v44, %v558_v42  ;;  %v613_v63 = vpop.f32.mrf.mxu1 }
  0xe6   :  { %v561_v47 = vpop.f32.mrf.mxu0 }
  0xe7   :  { %v367_v50 = vadd.f32 %v560_v45, %v366_v35  ;;  %v393_v3 = vpop.f32.mrf.mxu1 }
  0xe8   :  { %v562_v49 = vpop.f32.mrf.mxu0 }
  0xe9   :  { %v563_v51 = vadd.f32 %v562_v49, %v561_v47  ;;  %v404_v57 = vmax.f32 %v367_v50, 0.0  ;;  %v614_v6 = vpop.f32.mrf.mxu1 }
  0xea   :  { %v564_v53 = vpop.f32.mrf.mxu0 }
  0xeb   :  { %v370_v54 = vadd.f32 %v563_v51, %v369_v37  ;;  %v398_v11 = vpop.f32.mrf.mxu1 }
  0xec   :  { %v565_v56 = vpop.f32.mrf.mxu0 }
  0xed   :  { %v405_v58 = vmax.f32 %v370_v54, 0.0  ;;  %v566_v59 = vadd.f32 %v565_v56, %v564_v53  ;;  %v617_v14 = vpop.f32.mrf.mxu1 }
  0xee   :  { %v567_v61 = vpop.f32.mrf.mxu0 }
  0xef   :  { %v522_v62 = vpack.c.bf16 %v405_v58, %v404_v57  ;;  %v375_v1 = vadd.f32 %v566_v59, %v374_v39  ;;  %v401_v18 = vpop.f32.mrf.mxu1 }
  0xf0   :  { %v568_v0 = vpop.f32.mrf.mxu0 }
  0xf1   :  { %523 = vst [vmem:[%s805_s2] sm:$0xff] %v522_v62   ;;  %v569_v2 = vadd.f32 %v568_v0, %v567_v61  ;;  %v406_v8 = vmax.f32 %v375_v1, 0.0  ;;  %v618_v21 = vpop.f32.mrf.mxu1 }
  0xf2   :  { %v570_v4 = vpop.f32.mrf.mxu0 }
  0xf3   :  { %v378_v5 = vadd.f32 %v569_v2, %v377_v41 }
  0xf4   :  { %v571_v7 = vpop.f32.mrf.mxu0 }
  0xf5   :  { %v407_v9 = vmax.f32 %v378_v5, 0.0  ;;  %v572_v10 = vadd.f32 %v571_v7, %v570_v4 }
  0xf6   :  { %v573_v12 = vpop.f32.mrf.mxu0 }
  0xf7   :  { %v527_v13 = vpack.c.bf16 %v407_v9, %v406_v8  ;;  %v383_v16 = vadd.f32 %v572_v10, %v382_v46 }
  0xf8   :  { %v574_v15 = vpop.f32.mrf.mxu0 }
  0xf9   :  { %539 = vst [vmem:[%s805_s2 + $0x8] sm:$0xff] %v527_v13   ;;  %v575_v17 = vadd.f32 %v574_v15, %v573_v12  ;;  %v408_v23 = vmax.f32 %v383_v16, 0.0 }
  0xfa   :  { %v576_v19 = vpop.f32.mrf.mxu0 }
  0xfb   :  { %v386_v20 = vadd.f32 %v575_v17, %v385_v52 }
  0xfc   :  { %v577_v22 = vpop.f32.mrf.mxu0 }
  0xfd   :  { %v409_v24 = vmax.f32 %v386_v20, 0.0  ;;  %v578_v25 = vadd.f32 %v577_v22, %v576_v19 }
  0xfe   :  { %v579_v26 = vpop.f32.mrf.mxu0 }
  0xff   :  { %v532_v27 = vpack.c.bf16 %v409_v24, %v408_v23  ;;  %v391_v29 = vadd.f32 %v578_v25, %v390_v60 }
 0x100   :  { %v580_v28 = vpop.f32.mrf.mxu0 }
 0x101   :  { %540 = vst [vmem:[%s805_s2 + $0x10] sm:$0xff] %v532_v27   ;;  %v581_v30 = vadd.f32 %v580_v28, %v579_v26  ;;  %v410_v34 = vmax.f32 %v391_v29, 0.0 }
 0x102   :  { %v582_v31 = vpop.f32.mrf.mxu0 }
 0x103   :  { %v394_v32 = vadd.f32 %v581_v30, %v393_v3 }
 0x104   :  { %v583_v33 = vpop.f32.mrf.mxu0 }
 0x105   :  { %v411_v35 = vmax.f32 %v394_v32, 0.0  ;;  %v584_v36 = vadd.f32 %v583_v33, %v582_v31 }
 0x106   :  { %v585_v37 = vpop.f32.mrf.mxu0 }
 0x107   :  { %v537_v38 = vpack.c.bf16 %v411_v35, %v410_v34  ;;  %v399_v39 = vadd.f32 %v584_v36, %v398_v11 }
 0x108   :  { %v586_v40 = vpop.f32.mrf.mxu0 }
 0x109   :  { %541 = vst [vmem:[%s805_s2 + $0x18] sm:$0xff] %v537_v38   ;;  %v412_v41 = vmax.f32 %v399_v39, 0.0 }
 0x10b   :  { %v518_v42 = vpack.c.bf16 %v412_v41, %v412_v41 }
 0x10d   :  { %458 = vst [vmem:[%s805_s2 + $0x20] sm:$0xf] %v518_v42 }

// kernel: vae_forward.13
= control target key start
LH: loop header
LB: loop body
LE: loop exit
PB: predicated region body
PF: predicated region fallthrough
CT: control target
= control target key end

     0   :  { %v1840_v0 = vmov 0   ;;  %vm567_vm0 = vcmask 261120   ;;  %s2264_s1 = inlined_call_operand.vmem [shape: bf16[1,288,128], index: 1, kind: input, shape index: {}]   ;;  %s2265_s0 = inlined_call_operand.vmem [shape: bf16[344,288], index: 0, kind: input, shape index: {}]   ;;  %s2266_s2 = inlined_call_operand.vmem [shape: bf16[344,128], index: 2, kind: output, shape index: {}]  }
   0x1   :  { %634 = vmatprep.subr.bf16.mxu0 %v1840_v0  ;;  %1702 = vmatprep.subr.bf16.mxu1 %v1840_v0  ;;  %v1735_v1 = vld [vmem:[%s2264_s1 + $0x38] sm:$0xff]   ;;  %v1736_v2 = vld [vmem:[%s2264_s1 + $0x30] sm:$0xff]   ;;  %v1737_v3 = vld [vmem:[%s2264_s1 + $0x28] sm:$0xff]  }
   0x2   :  { %635 = vmatpush1.bf16.msra.mxu0 %v1735_v1  ;;  %1718 = vmatpush1.bf16.msra.mxu1 %v1735_v1  ;;  %v1738_v4 = vld [vmem:[%s2264_s1 + $0x20] sm:$0xff]   ;;  %v1739_v5 = vld [vmem:[%s2264_s1 + $0x18] sm:$0xff]   ;;  %v1740_v7 = vld [vmem:[%s2264_s1 + $0x10] sm:$0xff]  }
   0x3   :  { %636 = vmatprep.subr.bf16.mxu0 %v1840_v0  ;;  %1703 = vmatprep.subr.bf16.mxu1 %v1840_v0  ;;  %v1753_v6 = vld [vmem:[%s2265_s0 + $0x4] ss:$12 sps:$4 sm:$0xff]   ;;  %v1756_v8 = vld [vmem:[%s2265_s0 + $0x19c] ss:$12 sps:$4 sm:$0xff]   ;;  %v1751_v20 = vld [vmem:[%s2265_s0] ss:$12 sps:$4 sm:$0xff]  }
   0x4   :  { %666 = vmatprep.mubr.bf16.mxu0 %v1753_v6  ;;  %802 = vmatprep.mubr.bf16.mxu1 %v1756_v8  ;;  %v1741_v9 = vld [vmem:[%s2264_s1 + $0x8] sm:$0xff]   ;;  %v1742_v10 = vld [vmem:[%s2264_s1] sm:$0xff]   ;;  %v1743_v11 = vld [vmem:[%s2264_s1 + $0x78] sm:$0xff]  }
   0x5   :  { %v1744_v12 = vld [vmem:[%s2264_s1 + $0x70] sm:$0xff]   ;;  %v1745_v13 = vld [vmem:[%s2264_s1 + $0x68] sm:$0xff]   ;;  %v1746_v14 = vld [vmem:[%s2264_s1 + $0x60] sm:$0xff]  }
   0x6   :  { %637 = vmatpush1.bf16.msra.mxu0 %v1736_v2  ;;  %1719 = vmatpush1.bf16.msra.mxu1 %v1736_v2  ;;  %v1747_v15 = vld [vmem:[%s2264_s1 + $0x58] sm:$0xff]   ;;  %v1748_v16 = vld [vmem:[%s2264_s1 + $0x50] sm:$0xff]   ;;  %v1749_v17 = vld [vmem:[%s2264_s1 + $0x48] sm:$0xff]  }
   0x7   :  { %638 = vmatprep.subr.bf16.mxu0 %v1840_v0  ;;  %1704 = vmatprep.subr.bf16.mxu1 %v1840_v0  ;;  %v1750_v18 = vld [vmem:[%s2264_s1 + $0x40] sm:$0xff]   ;;  %v1757_v19 = vld [vmem:[%s2264_s1 + $0x88] sm:$0xff]   ;;  %v1763_v26 = vld [vmem:[%s2265_s0 + $0x1b0] ss:$12 sps:$4 sm:$0xff]  }
   0x8   :  { %v1754_v21 = vld [vmem:[%s2265_s0 + $0x198] ss:$12 sps:$4 sm:$0xff]   ;;  %v1758_v22 = vld [vmem:[%s2265_s0 + $0x1c] ss:$12 sps:$4 sm:$0xff]   ;;  %v1760_v23 = vld [vmem:[%s2265_s0 + $0x1b4] ss:$12 sps:$4 sm:$0xff]  }
   0x9   :  { %v1776_v24 = vld [vmem:[%s2264_s1 + $0x80] sm:$0xff]   ;;  %v1766_v28 = vld [vmem:[%s2265_s0 + $0x1cc] ss:$12 sps:$4 sm:$0xff]   ;;  %v1768_v29 = vld [vmem:[%s2265_s0 + $0x30] ss:$12 sps:$4 sm:$0xff]  }
   0xa   :  { %639 = vmatpush1.bf16.msra.mxu0 %v1737_v3  ;;  %1720 = vmatpush1.bf16.msra.mxu1 %v1737_v3  ;;  %v1762_v25 = vld [vmem:[%s2265_s0 + $0x18] ss:$12 sps:$4 sm:$0xff]   ;;  %v1764_v27 = vld [vmem:[%s2265_s0 + $0x34] ss:$12 sps:$4 sm:$0xff]   ;;  %v1782_v40 = vld [vmem:[%s2265_s0 + $0x7c] ss:$12 sps:$4 sm:$0xff]  }
   0xb   :  { %640 = vmatprep.subr.bf16.mxu0 %v1840_v0  ;;  %1705 = vmatprep.subr.bf16.mxu1 %v1840_v0  ;;  %v1769_v30 = vld [vmem:[%s2265_s0 + $0x1c8] ss:$12 sps:$4 sm:$0xff]   ;;  %v1770_v31 = vld [vmem:[%s2265_s0 + $0x4c] ss:$12 sps:$4 sm:$0xff]   ;;  %v1772_v32 = vld [vmem:[%s2265_s0 + $0x1e4] ss:$12 sps:$4 sm:$0xff]  }
   0xc   :  { %v96_v33 = vld [vmem:[%s2265_s0 + $0x1f8] sm:$0xff]  ;;  %v1774_v34 = vld [vmem:[%s2265_s0 + $0x48] ss:$12 sps:$4 sm:$0xff]   ;;  %v1775_v35 = vld [vmem:[%s2265_s0 + $0x1e0] ss:$12 sps:$4 sm:$0xff]  }
   0xd   :  { %v1777_v36 = vld [vmem:[%s2265_s0 + $0x64] ss:$12 sps:$4 sm:$0xff]   ;;  %v1377_v37 = vcombine.high %v96_v33, %v96_v33  ;;  %v1780_v38 = vld [vmem:[%s2265_s0 + $0x60] ss:$12 sps:$4 sm:$0xff]   ;;  %v1376_v39 = vcombine.low %v96_v33, %v96_v33  ;;  %v1784_v41 = vld [vmem:[%s2265_s0 + $0x8] ss:$12 sps:$4 sm:$0xff]  }
   0xe   :  { %641 = vmatpush1.bf16.msra.mxu0 %v1738_v4  ;;  %1721 = vmatpush1.bf16.msra.mxu1 %v1738_v4  ;;  %v1785_v42 = vld [vmem:[%s2265_s0 + $0x78] ss:$12 sps:$4 sm:$0xff]   ;;  %v1786_v43 = vld [vmem:[%s2265_s0 + $0x20] ss:$12 sps:$4 sm:$0xff]   ;;  %v1790_v46 = vld [vmem:[%s2265_s0 + $0x90] ss:$12 sps:$4 sm:$0xff]  }
   0xf   :  { %642 = vmatprep.subr.bf16.mxu0 %v1840_v0  ;;  %1706 = vmatprep.subr.bf16.mxu1 %v1840_v0  ;;  %v1787_v44 = vld [vmem:[%s2265_s0 + $0x94] ss:$12 sps:$4 sm:$0xff]   ;;  %v1789_v45 = vld [vmem:[%s2265_s0 + $0x38] ss:$12 sps:$4 sm:$0xff]   ;;  %v1791_v47 = vld [vmem:[%s2265_s0 + $0x50] ss:$12 sps:$4 sm:$0xff]  }
  0x10   :  { %v1792_v48 = vld [vmem:[%s2265_s0 + $0xac] ss:$12 sps:$4 sm:$0xff]   ;;  %v1794_v49 = vld [vmem:[%s2265_s0 + $0x68] ss:$12 sps:$4 sm:$0xff]   ;;  %v1797_v52 = vld [vmem:[%s2265_s0 + $0xc4] ss:$12 sps:$4 sm:$0xff]  }
  0x11   :  { %v1795_v50 = vld [vmem:[%s2265_s0 + $0xa8] ss:$12 sps:$4 sm:$0xff]   ;;  %v1796_v51 = vld [vmem:[%s2265_s0 + $0x80] ss:$12 sps:$4 sm:$0xff]   ;;  %v1799_v53 = vld [vmem:[%s2265_s0 + $0x98] ss:$12 sps:$4 sm:$0xff]  }
  0x12   :  { %643 = vmatpush1.bf16.msra.mxu0 %v1739_v5  ;;  %1722 = vmatpush1.bf16.msra.mxu1 %v1739_v5  ;;  %v1800_v54 = vld [vmem:[%s2265_s0 + $0xc0] ss:$12 sps:$4 sm:$0xff]   ;;  %v1801_v55 = vld [vmem:[%s2265_s0 + $0xb0] ss:$12 sps:$4 sm:$0xff]   ;;  %v1804_v57 = vld [vmem:[%s2265_s0 + $0xc8] ss:$12 sps:$4 sm:$0xff]  }
  0x13   :  { %644 = vmatprep.subr.bf16.mxu0 %v1840_v0  ;;  %1707 = vmatprep.subr.bf16.mxu1 %v1840_v0  ;;  %v1802_v56 = vld [vmem:[%s2265_s0 + $0xdc] ss:$12 sps:$4 sm:$0xff]   ;;  %v1805_v58 = vld [vmem:[%s2265_s0 + $0xd8] ss:$12 sps:$4 sm:$0xff]   ;;  %v1806_v59 = vld [vmem:[%s2265_s0 + $0xe0] ss:$12 sps:$4 sm:$0xff]  }
  0x14   :  { %v1807_v60 = vld [vmem:[%s2265_s0 + $0xf4] ss:$12 sps:$4 sm:$0xff]   ;;  %v1809_v61 = vld [vmem:[%s2265_s0 + $0xf8] ss:$12 sps:$4 sm:$0xff]   ;;  %v1810_v62 = vld [vmem:[%s2265_s0 + $0xf0] ss:$12 sps:$4 sm:$0xff]  }
  0x15   :  { %v1811_v63 = vld [vmem:[%s2265_s0 + $0x110] ss:$12 sps:$4 sm:$0xff]   ;;  %v1814_v1 = vld [vmem:[%s2265_s0 + $0x128] ss:$12 sps:$4 sm:$0xff]   ;;  %v1816_v3 = vld [vmem:[%s2265_s0 + $0x140] ss:$12 sps:$4 sm:$0xff]  }
  0x16   :  { %645 = vmatpush1.bf16.msra.mxu0 %v1740_v7  ;;  %1723 = vmatpush1.bf16.msra.mxu1 %v1740_v7  ;;  %v1815_v2 = vld [vmem:[%s2265_s0 + $0x108] ss:$12 sps:$4 sm:$0xff]   ;;  %v1817_v4 = vld [vmem:[%s2265_s0 + $0x124] ss:$12 sps:$4 sm:$0xff]   ;;  %v1820_v6 = vld [vmem:[%s2265_s0 + $0x120] ss:$12 sps:$4 sm:$0xff]  }
  0x17   :  { %646 = vmatprep.subr.bf16.mxu0 %v1840_v0  ;;  %1708 = vmatprep.subr.bf16.mxu1 %v1840_v0  ;;  %v1819_v5 = vld [vmem:[%s2265_s0 + $0x158] ss:$12 sps:$4 sm:$0xff]   ;;  %v1821_v7 = vld [vmem:[%s2265_s0 + $0x170] ss:$12 sps:$4 sm:$0xff]  }
  0x18   :  { %v1822_v8 = vld [vmem:[%s2265_s0 + $0x13c] ss:$12 sps:$4 sm:$0xff]  }
  0x1a   :  { %647 = vmatpush1.bf16.msra.mxu0 %v1741_v9  ;;  %1724 = vmatpush1.bf16.msra.mxu1 %v1741_v9  ;;  %v1824_v9 = vld [vmem:[%s2265_s0 + $0x188] ss:$12 sps:$4 sm:$0xff]  }
  0x1b   :  { %648 = vmatprep.subr.bf16.mxu0 %v1840_v0  ;;  %1709 = vmatprep.subr.bf16.mxu1 %v1840_v0 }
  0x1e   :  { %649 = vmatpush1.bf16.msra.mxu0 %v1742_v10  ;;  %1725 = vmatpush1.bf16.msra.mxu1 %v1742_v10  ;;  %v1825_v10 = vld [vmem:[%s2265_s0 + $0x138] ss:$12 sps:$4 sm:$0xff]  }
  0x1f   :  { %650 = vmatprep.subr.bf16.mxu0 %v1840_v0  ;;  %1710 = vmatprep.subr.bf16.mxu1 %v1840_v0 }
  0x22   :  { %651 = vmatpush2.bf16.msra.mxu0 %v1743_v11  ;;  %1726 = vmatpush2.bf16.msra.mxu1 %v1743_v11  ;;  %v1826_v11 = vld [vmem:[%s2265_s0 + $0x1a0] ss:$12 sps:$4 sm:$0xff]  }
  0x23   :  { %652 = vmatprep.subr.bf16.mxu0 %v1840_v0  ;;  %1711 = vmatprep.subr.bf16.mxu1 %v1840_v0 }
  0x26   :  { %653 = vmatpush2.bf16.msra.mxu0 %v1744_v12  ;;  %1727 = vmatpush2.bf16.msra.mxu1 %v1744_v12  ;;  %v1827_v12 = vld [vmem:[%s2265_s0 + $0x154] ss:$12 sps:$4 sm:$0xff]  }
  0x27   :  { %654 = vmatprep.subr.bf16.mxu0 %v1840_v0  ;;  %1712 = vmatprep.subr.bf16.mxu1 %v1840_v0 }
  0x2a   :  { %655 = vmatpush2.bf16.msra.mxu0 %v1745_v13  ;;  %1728 = vmatpush2.bf16.msra.mxu1 %v1745_v13  ;;  %v1829_v13 = vld [vmem:[%s2265_s0 + $0x1b8] ss:$12 sps:$4 sm:$0xff]  }
  0x2b   :  { %656 = vmatprep.subr.bf16.mxu0 %v1840_v0  ;;  %1713 = vmatprep.subr.bf16.mxu1 %v1840_v0 }
  0x2e   :  { %657 = vmatpush2.bf16.msra.mxu0 %v1746_v14  ;;  %1729 = vmatpush2.bf16.msra.mxu1 %v1746_v14  ;;  %v1830_v14 = vld [vmem:[%s2265_s0 + $0x150] ss:$12 sps:$4 sm:$0xff]  }
  0x2f   :  { %658 = vmatprep.subr.bf16.mxu0 %v1840_v0  ;;  %1714 = vmatprep.subr.bf16.mxu1 %v1840_v0 }
  0x32   :  { %659 = vmatpush2.bf16.msra.mxu0 %v1747_v15  ;;  %1730 = vmatpush2.bf16.msra.mxu1 %v1747_v15  ;;  %v1831_v15 = vld [vmem:[%s2265_s0 + $0x1d0] ss:$12 sps:$4 sm:$0xff]  }
  0x33   :  { %660 = vmatprep.subr.bf16.mxu0 %v1840_v0  ;;  %1715 = vmatprep.subr.bf16.mxu1 %v1840_v0 }
  0x36   :  { %661 = vmatpush2.bf16.msra.mxu0 %v1748_v16  ;;  %1731 = vmatpush2.bf16.msra.mxu1 %v1748_v16  ;;  %v1832_v16 = vld [vmem:[%s2265_s0 + $0x16c] ss:$12 sps:$4 sm:$0xff]  }
  0x37   :  { %662 = vmatprep.subr.bf16.mxu0 %v1840_v0  ;;  %1716 = vmatprep.subr.bf16.mxu1 %v1840_v0 }
  0x3a   :  { %663 = vmatpush2.bf16.msra.mxu0 %v1749_v17  ;;  %1732 = vmatpush2.bf16.msra.mxu1 %v1749_v17  ;;  %v1834_v17 = vld [vmem:[%s2265_s0 + $0x1e8] ss:$12 sps:$4 sm:$0xff]  }
  0x3b   :  { %664 = vmatprep.subr.bf16.mxu0 %v1840_v0  ;;  %1717 = vmatprep.subr.bf16.mxu1 %v1840_v0  ;;  %v1812_v0 = vld [vmem:[%s2265_s0 + $0x10c] ss:$12 sps:$4 sm:$0xff]  }
  0x3e   :  { %665 = vmatpush2.bf16.msra.mxu0 %v1750_v18  ;;  %1733 = vmatpush2.bf16.msra.mxu1 %v1750_v18  ;;  %v1835_v18 = vld [vmem:[%s2265_s0 + $0x168] ss:$12 sps:$4 sm:$0xff]  }
  0x3f   :  { %1654 = vmatprep.subr.bf16.mxu1 %v1757_v19 }
  0x41   :  { %667 = vmatmul.mubr.bf16.vlgmr.msra.gmra.mxu0 %v1751_v20  ;;  %803 = vmatmul.mubr.bf16.vlgmr.msra.gmra.mxu1 %v1754_v21  ;;  %v1837_v20 = vld [vmem:[%s2265_s0 + $0x184] ss:$12 sps:$4 sm:$0xff]   ;;  %v1839_v21 = vld [vmem:[%s2265_s0 + $0x180] ss:$12 sps:$4 sm:$0xff]  }
  0x42   :  { %1655 = vmatpush3.bf16.msra.mxu1 %v1757_v19  ;;  %674 = vmatprep.mubr.bf16.mxu0 %v1758_v22  ;;  %v1836_v19 = vld [vmem:[%s2265_s0 + $0x200] ss:$0 sps:$4 sm:$0xff]  }
  0x43   :  { %810 = vmatprep.mubr.bf16.mxu1 %v1760_v23  ;;  %1656 = vmatprep.subr.bf16.mxu1 %v1776_v24 }
  0x46   :  { %1657 = vmatpush3.bf16.msra.mxu1 %v1776_v24 }
  0x49   :  { %675 = vmatmul.mubr.bf16.gmra.mxu0 %v1762_v25  ;;  %811 = vmatmul.mubr.bf16.gmra.mxu1 %v1763_v26 }
  0x4a   :  { %682 = vmatprep.mubr.bf16.mxu0 %v1764_v27  ;;  %818 = vmatprep.mubr.bf16.mxu1 %v1766_v28 }
  0x51   :  { %683 = vmatmul.mubr.bf16.gmra.mxu0 %v1768_v29  ;;  %819 = vmatmul.mubr.bf16.gmra.mxu1 %v1769_v30 }
  0x52   :  { %690 = vmatprep.mubr.bf16.mxu0 %v1770_v31  ;;  %826 = vmatprep.mubr.bf16.mxu1 %v1772_v32 }
  0x59   :  { %691 = vmatmul.mubr.bf16.gmra.mxu0 %v1774_v34  ;;  %827 = vmatmul.mubr.bf16.gmra.mxu1 %v1775_v35 }
  0x5a   :  { %698 = vmatprep.mubr.bf16.mxu0 %v1777_v36  ;;  %834 = vmatprep.mubr.bf16.mxu1 %v1377_v37 }
  0x61   :  { %699 = vmatmul.mubr.bf16.gmra.mxu0 %v1780_v38  ;;  %835 = vmatmul.mubr.bf16.gmra.mxu1 %v1376_v39 }
  0x62   :  { %706 = vmatprep.mubr.bf16.mxu0 %v1782_v40  ;;  %1658 = vmatprep.mubr.msk.bf16.mxu1 %vm567_vm0, %v1784_v41 }
  0x69   :  { %707 = vmatmul.mubr.bf16.gmra.mxu0 %v1785_v42  ;;  %1659 = vmatmul.mubr.msk.bf16.vlgmr.msra.gmra.mxu1 %vm567_vm0, %v1786_v43 }
  0x6a   :  { %714 = vmatprep.mubr.bf16.mxu0 %v1787_v44  ;;  %1662 = vmatprep.mubr.msk.bf16.mxu1 %vm567_vm0, %v1789_v45 }
  0x71   :  { %715 = vmatmul.mubr.bf16.gmra.mxu0 %v1790_v46  ;;  %1663 = vmatmul.mubr.msk.bf16.gmra.mxu1 %vm567_vm0, %v1791_v47 }
  0x72   :  { %722 = vmatprep.mubr.bf16.mxu0 %v1792_v48  ;;  %1666 = vmatprep.mubr.msk.bf16.mxu1 %vm567_vm0, %v1794_v49 }
  0x79   :  { %723 = vmatmul.mubr.bf16.gmra.mxu0 %v1795_v50  ;;  %1667 = vmatmul.mubr.msk.bf16.gmra.mxu1 %vm567_vm0, %v1796_v51 }
  0x7a   :  { %730 = vmatprep.mubr.bf16.mxu0 %v1797_v52  ;;  %1670 = vmatprep.mubr.msk.bf16.mxu1 %vm567_vm0, %v1799_v53 }
  0x81   :  { %731 = vmatmul.mubr.bf16.gmra.mxu0 %v1800_v54  ;;  %1671 = vmatmul.mubr.msk.bf16.gmra.mxu1 %vm567_vm0, %v1801_v55 }
  0x82   :  { %738 = vmatprep.mubr.bf16.mxu0 %v1802_v56  ;;  %1674 = vmatprep.mubr.msk.bf16.mxu1 %vm567_vm0, %v1804_v57 }
  0x89   :  { %739 = vmatmul.mubr.bf16.gmra.mxu0 %v1805_v58  ;;  %1675 = vmatmul.mubr.msk.bf16.gmra.mxu1 %vm567_vm0, %v1806_v59 }
  0x8a   :  { %746 = vmatprep.mubr.bf16.mxu0 %v1807_v60  ;;  %1678 = vmatprep.mubr.msk.bf16.mxu1 %vm567_vm0, %v1809_v61 }
  0x91   :  { %747 = vmatmul.mubr.bf16.gmra.mxu0 %v1810_v62  ;;  %1679 = vmatmul.mubr.msk.bf16.gmra.mxu1 %vm567_vm0, %v1811_v63 }
  0x92   :  { %754 = vmatprep.mubr.bf16.mxu0 %v1812_v0  ;;  %1682 = vmatprep.mubr.msk.bf16.mxu1 %vm567_vm0, %v1814_v1 }
  0x99   :  { %755 = vmatmul.mubr.bf16.gmra.mxu0 %v1815_v2  ;;  %1683 = vmatmul.mubr.msk.bf16.gmra.mxu1 %vm567_vm0, %v1816_v3 }
  0x9a   :  { %762 = vmatprep.mubr.bf16.mxu0 %v1817_v4  ;;  %1686 = vmatprep.mubr.msk.bf16.mxu1 %vm567_vm0, %v1819_v5 }
  0xa1   :  { %763 = vmatmul.mubr.bf16.gmra.mxu0 %v1820_v6  ;;  %1687 = vmatmul.mubr.msk.bf16.gmra.mxu1 %vm567_vm0, %v1821_v7 }
  0xa2   :  { %770 = vmatprep.mubr.bf16.mxu0 %v1822_v8  ;;  %1690 = vmatprep.mubr.msk.bf16.mxu1 %vm567_vm0, %v1824_v9 }
  0xa9   :  { %771 = vmatmul.mubr.bf16.gmra.mxu0 %v1825_v10  ;;  %1691 = vmatmul.mubr.msk.bf16.gmra.mxu1 %vm567_vm0, %v1826_v11 }
  0xaa   :  { %778 = vmatprep.mubr.bf16.mxu0 %v1827_v12  ;;  %1694 = vmatprep.mubr.msk.bf16.mxu1 %vm567_vm0, %v1829_v13 }
  0xb1   :  { %779 = vmatmul.mubr.bf16.gmra.mxu0 %v1830_v14  ;;  %1695 = vmatmul.mubr.msk.bf16.gmra.mxu1 %vm567_vm0, %v1831_v15 }
  0xb2   :  { %786 = vmatprep.mubr.bf16.mxu0 %v1832_v16  ;;  %1698 = vmatprep.mubr.msk.bf16.mxu1 %vm567_vm0, %v1834_v17 }
  0xb9   :  { %787 = vmatmul.mubr.bf16.gmra.mxu0 %v1835_v18  ;;  %1699 = vmatmul.mubr.msk.bf16.gmra.mxu1 %vm567_vm0, %v1836_v19 }
  0xba   :  { %794 = vmatprep.mubr.bf16.mxu0 %v1837_v20 }
  0xc1   :  { %795 = vmatmul.mubr.bf16.gmra.mxu0 %v1839_v21 }
 0x101   :  { %v668_v22 = vpop.f32.mrf.mxu0  ;;  %v2159_v23 = vpop.f32.mrf.mxu1 }
 0x103   :  { %v670_v24 = vpop.f32.mrf.mxu0  ;;  %v806_v25 = vpop.f32.mrf.mxu1 }
 0x105   :  { %v671_v26 = vpop.f32.mrf.mxu0  ;;  %v2161_v27 = vpop.f32.mrf.mxu1 }
 0x107   :  { %v673_v28 = vpop.f32.mrf.mxu0  ;;  %v809_v29 = vpop.f32.mrf.mxu1 }
 0x109   :  { %v676_v30 = vpop.f32.mrf.mxu0  ;;  %v2163_v31 = vpop.f32.mrf.mxu1 }
 0x10b   :  { %v678_v32 = vpop.f32.mrf.mxu0  ;;  %v814_v33 = vpop.f32.mrf.mxu1 }
 0x10d   :  { %v679_v34 = vpop.f32.mrf.mxu0  ;;  %v2165_v35 = vpop.f32.mrf.mxu1 }
 0x10f   :  { %v681_v36 = vpop.f32.mrf.mxu0  ;;  %v817_v37 = vpop.f32.mrf.mxu1 }
 0x111   :  { %v684_v38 = vpop.f32.mrf.mxu0  ;;  %v2167_v39 = vpop.f32.mrf.mxu1 }
 0x113   :  { %v686_v40 = vpop.f32.mrf.mxu0  ;;  %v822_v41 = vpop.f32.mrf.mxu1 }
 0x115   :  { %v687_v42 = vpop.f32.mrf.mxu0  ;;  %v2169_v43 = vpop.f32.mrf.mxu1 }
 0x117   :  { %v689_v44 = vpop.f32.mrf.mxu0  ;;  %v825_v45 = vpop.f32.mrf.mxu1 }
 0x119   :  { %v692_v46 = vpop.f32.mrf.mxu0  ;;  %v2171_v47 = vpop.f32.mrf.mxu1 }
 0x11b   :  { %v694_v48 = vpop.f32.mrf.mxu0  ;;  %v830_v49 = vpop.f32.mrf.mxu1 }
 0x11d   :  { %v695_v50 = vpop.f32.mrf.mxu0  ;;  %v2173_v51 = vpop.f32.mrf.mxu1 }
 0x11f   :  { %v697_v52 = vpop.f32.mrf.mxu0  ;;  %v833_v53 = vpop.f32.mrf.mxu1 }
 0x121   :  { %v700_v54 = vpop.f32.mrf.mxu0  ;;  %v2175_v55 = vpop.f32.mrf.mxu1 }
 0x123   :  { %v702_v56 = vpop.f32.mrf.mxu0  ;;  %v838_v57 = vpop.f32.mrf.mxu1 }
 0x125   :  { %v703_v58 = vpop.f32.mrf.mxu0  ;;  %v839_v59 = vpop.f32.mrf.mxu1 }
 0x127   :  { %v705_v60 = vpop.f32.mrf.mxu0  ;;  %v840_v61 = vpop.f32.mrf.mxu1 }
 0x129   :  { %v708_v62 = vpop.f32.mrf.mxu0  ;;  %v1660_v63 = vpop.f32.mrf.mxu1 }
 0x12a   :  { %v885_v2 = vadd.f32 %v1660_v63, %v676_v30 }
 0x12b   :  { %v710_v0 = vpop.f32.mrf.mxu0  ;;  %v876_v1 = vpop.f32.mrf.mxu1 }
 0x12c   :  { %v877_v5 = vadd.f32 %v876_v1, %v668_v22  ;;  %v1052_v9 = vmax.f32 %v885_v2, 0.0 }
 0x12d   :  { %v711_v3 = vpop.f32.mrf.mxu0  ;;  %v1661_v4 = vpop.f32.mrf.mxu1 }
 0x12e   :  { %v888_v6 = vadd.f32 %v1661_v4, %v679_v34  ;;  %v1050_v14 = vmax.f32 %v877_v5, 0.0 }
 0x12f   :  { %v713_v7 = vpop.f32.mrf.mxu0  ;;  %v879_v8 = vpop.f32.mrf.mxu1 }
 0x130   :  { %v1053_v10 = vmax.f32 %v888_v6, 0.0  ;;  %v880_v11 = vadd.f32 %v879_v8, %v671_v26 }
 0x131   :  { %v716_v12 = vpop.f32.mrf.mxu0  ;;  %v1664_v13 = vpop.f32.mrf.mxu1 }
 0x132   :  { %v1513_v15 = vpack.c.bf16 %v1053_v10, %v1052_v9  ;;  %v1051_v16 = vmax.f32 %v880_v11, 0.0  ;;  %v901_v20 = vadd.f32 %v1664_v13, %v692_v46 }
 0x133   :  { %v718_v17 = vpop.f32.mrf.mxu0  ;;  %v892_v18 = vpop.f32.mrf.mxu1 }
 0x134   :  { %1610 = vst [vmem:[%s2266_s2 + $0x8] sm:$0xff] %v1513_v15   ;;  %v1508_v19 = vpack.c.bf16 %v1051_v16, %v1050_v14  ;;  %v893_v24 = vadd.f32 %v892_v18, %v684_v38  ;;  %v1056_v29 = vmax.f32 %v901_v20, 0.0 }
 0x135   :  { %v719_v21 = vpop.f32.mrf.mxu0  ;;  %v1665_v22 = vpop.f32.mrf.mxu1 }
 0x136   :  { %1509 = vst [vmem:[%s2266_s2] sm:$0xff] %v1508_v19   ;;  %v904_v25 = vadd.f32 %v1665_v22, %v695_v50  ;;  %v1054_v36 = vmax.f32 %v893_v24, 0.0 }
 0x137   :  { %v721_v26 = vpop.f32.mrf.mxu0  ;;  %v895_v28 = vpop.f32.mrf.mxu1 }
 0x138   :  { %v1057_v30 = vmax.f32 %v904_v25, 0.0  ;;  %v896_v32 = vadd.f32 %v895_v28, %v687_v42 }
 0x139   :  { %v724_v33 = vpop.f32.mrf.mxu0  ;;  %v1668_v34 = vpop.f32.mrf.mxu1 }
 0x13a   :  { %v1523_v37 = vpack.c.bf16 %v1057_v30, %v1056_v29  ;;  %v1055_v40 = vmax.f32 %v896_v32, 0.0  ;;  %v917_v46 = vadd.f32 %v1668_v34, %v708_v62 }
 0x13b   :  { %v726_v41 = vpop.f32.mrf.mxu0  ;;  %v908_v44 = vpop.f32.mrf.mxu1 }
 0x13c   :  { %1612 = vst [vmem:[%s2266_s2 + $0x18] sm:$0xff] %v1523_v37   ;;  %v1518_v45 = vpack.c.bf16 %v1055_v40, %v1054_v36  ;;  %v909_v42 = vadd.f32 %v908_v44, %v700_v54  ;;  %v1060_v53 = vmax.f32 %v917_v46, 0.0 }
 0x13d   :  { %v727_v38 = vpop.f32.mrf.mxu0  ;;  %v1669_v48 = vpop.f32.mrf.mxu1 }
 0x13e   :  { %1611 = vst [vmem:[%s2266_s2 + $0x10] sm:$0xff] %v1518_v45   ;;  %v920_v49 = vadd.f32 %v1669_v48, %v711_v3  ;;  %v1058_v61 = vmax.f32 %v909_v42, 0.0 }
 0x13f   :  { %v729_v50 = vpop.f32.mrf.mxu0  ;;  %v911_v52 = vpop.f32.mrf.mxu1 }
 0x140   :  { %v1061_v56 = vmax.f32 %v920_v49, 0.0  ;;  %v912_v57 = vadd.f32 %v911_v52, %v703_v58 }
 0x141   :  { %v732_v59 = vpop.f32.mrf.mxu0  ;;  %v1672_v60 = vpop.f32.mrf.mxu1 }
 0x142   :  { %v1533_v63 = vpack.c.bf16 %v1061_v56, %v1060_v53  ;;  %v1059_v0 = vmax.f32 %v912_v57, 0.0  ;;  %v933_v4 = vadd.f32 %v1672_v60, %v724_v33 }
 0x143   :  { %v734_v1 = vpop.f32.mrf.mxu0  ;;  %v924_v62 = vpop.f32.mrf.mxu1 }
 0x144   :  { %1614 = vst [vmem:[%s2266_s2 + $0x28] sm:$0xff] %v1533_v63   ;;  %v1528_v2 = vpack.c.bf16 %v1059_v0, %v1058_v61  ;;  %v925_v58 = vadd.f32 %v924_v62, %v716_v12  ;;  %v1064_v8 = vmax.f32 %v933_v4, 0.0 }
 0x145   :  { %v735_v54 = vpop.f32.mrf.mxu0  ;;  %v1673_v3 = vpop.f32.mrf.mxu1 }
 0x146   :  { %1613 = vst [vmem:[%s2266_s2 + $0x20] sm:$0xff] %v1528_v2   ;;  %v936_v5 = vadd.f32 %v1673_v3, %v727_v38  ;;  %v1062_v14 = vmax.f32 %v925_v58, 0.0 }
 0x147   :  { %v737_v6 = vpop.f32.mrf.mxu0  ;;  %v927_v7 = vpop.f32.mrf.mxu1 }
 0x148   :  { %v1065_v9 = vmax.f32 %v936_v5, 0.0  ;;  %v928_v10 = vadd.f32 %v927_v7, %v719_v21 }
 0x149   :  { %v740_v11 = vpop.f32.mrf.mxu0  ;;  %v1676_v13 = vpop.f32.mrf.mxu1 }
 0x14a   :  { %v1543_v15 = vpack.c.bf16 %v1065_v9, %v1064_v8  ;;  %v1063_v16 = vmax.f32 %v928_v10, 0.0  ;;  %v949_v20 = vadd.f32 %v1676_v13, %v740_v11 }
 0x14b   :  { %v742_v17 = vpop.f32.mrf.mxu0  ;;  %v940_v18 = vpop.f32.mrf.mxu1 }
 0x14c   :  { %1616 = vst [vmem:[%s2266_s2 + $0x38] sm:$0xff] %v1543_v15   ;;  %v1538_v19 = vpack.c.bf16 %v1063_v16, %v1062_v14  ;;  %v941_v21 = vadd.f32 %v940_v18, %v732_v59  ;;  %v1068_v28 = vmax.f32 %v949_v20, 0.0 }
 0x14d   :  { %v743_v12 = vpop.f32.mrf.mxu0  ;;  %v1677_v22 = vpop.f32.mrf.mxu1 }
 0x14e   :  { %1615 = vst [vmem:[%s2266_s2 + $0x30] sm:$0xff] %v1538_v19   ;;  %v952_v24 = vadd.f32 %v1677_v22, %v743_v12  ;;  %v1066_v34 = vmax.f32 %v941_v21, 0.0 }
 0x14f   :  { %v745_v25 = vpop.f32.mrf.mxu0  ;;  %v943_v26 = vpop.f32.mrf.mxu1 }
 0x150   :  { %v1069_v29 = vmax.f32 %v952_v24, 0.0  ;;  %v944_v30 = vadd.f32 %v943_v26, %v735_v54 }
 0x151   :  { %v748_v32 = vpop.f32.mrf.mxu0  ;;  %v1680_v33 = vpop.f32.mrf.mxu1 }
 0x152   :  { %v1553_v36 = vpack.c.bf16 %v1069_v29, %v1068_v28  ;;  %v1067_v37 = vmax.f32 %v944_v30, 0.0 }
 0x153   :  { %v750_v40 = vpop.f32.mrf.mxu0  ;;  %v956_v41 = vpop.f32.mrf.mxu1 }
 0x154   :  { %1618 = vst [vmem:[%s2266_s2 + $0x48] sm:$0xff] %v1553_v36   ;;  %v1548_v44 = vpack.c.bf16 %v1067_v37, %v1066_v34  ;;  %v957_v38 = vadd.f32 %v956_v41, %v748_v32 }
 0x155   :  { %v751_v45 = vpop.f32.mrf.mxu0  ;;  %v1681_v46 = vpop.f32.mrf.mxu1 }
 0x156   :  { %1617 = vst [vmem:[%s2266_s2 + $0x40] sm:$0xff] %v1548_v44   ;;  %v1070_v53 = vmax.f32 %v957_v38, 0.0 }
 0x157   :  { %v753_v48 = vpop.f32.mrf.mxu0  ;;  %v959_v42 = vpop.f32.mrf.mxu1 }
 0x158   :  { %v960_v49 = vadd.f32 %v959_v42, %v751_v45 }
 0x159   :  { %v756_v50 = vpop.f32.mrf.mxu0  ;;  %v1684_v52 = vpop.f32.mrf.mxu1 }
 0x15a   :  { %v1071_v56 = vmax.f32 %v960_v49, 0.0  ;;  %v965_v61 = vadd.f32 %v1680_v33, %v756_v50 }
 0x15b   :  { %v758_v57 = vpop.f32.mrf.mxu0  ;;  %v972_v59 = vpop.f32.mrf.mxu1 }
 0x15c   :  { %v1558_v60 = vpack.c.bf16 %v1071_v56, %v1070_v53  ;;  %v1072_v4 = vmax.f32 %v965_v61, 0.0 }
 0x15d   :  { %v759_v63 = vpop.f32.mrf.mxu0  ;;  %v1685_v0 = vpop.f32.mrf.mxu1 }
 0x15e   :  { %1619 = vst [vmem:[%s2266_s2 + $0x50] sm:$0xff] %v1558_v60   ;;  %v968_v1 = vadd.f32 %v1681_v46, %v759_v63 }
 0x15f   :  { %v761_v62 = vpop.f32.mrf.mxu0  ;;  %v975_v2 = vpop.f32.mrf.mxu1 }
 0x160   :  { %v1073_v54 = vmax.f32 %v968_v1, 0.0 }
 0x161   :  { %v764_v3 = vpop.f32.mrf.mxu0  ;;  %v2210_v58 = vpop.f32.mrf.mxu1 }
 0x162   :  { %v1563_v5 = vpack.c.bf16 %v1073_v54, %v1072_v4  ;;  %v973_v8 = vadd.f32 %v972_v59, %v764_v3 }
 0x163   :  { %v766_v6 = vpop.f32.mrf.mxu0  ;;  %v988_v7 = vpop.f32.mrf.mxu1 }
 0x164   :  { %1620 = vst [vmem:[%s2266_s2 + $0x58] sm:$0xff] %v1563_v5   ;;  %v1074_v15 = vmax.f32 %v973_v8, 0.0 }
 0x165   :  { %v767_v9 = vpop.f32.mrf.mxu0  ;;  %v2215_v10 = vpop.f32.mrf.mxu1 }
 0x166   :  { %v976_v11 = vadd.f32 %v975_v2, %v767_v9 }
 0x167   :  { %v769_v13 = vpop.f32.mrf.mxu0  ;;  %v991_v14 = vpop.f32.mrf.mxu1 }
 0x168   :  { %v1075_v16 = vmax.f32 %v976_v11, 0.0 }
 0x169   :  { %v772_v17 = vpop.f32.mrf.mxu0  ;;  %v1692_v18 = vpop.f32.mrf.mxu1 }
 0x16a   :  { %v1568_v19 = vpack.c.bf16 %v1075_v16, %v1074_v15  ;;  %v981_v22 = vadd.f32 %v1684_v52, %v772_v17  ;;  %v1013_v21 = vadd.f32 %v1692_v18, %v2159_v23 }
 0x16b   :  { %v774_v20 = vpop.f32.mrf.mxu0  ;;  %v2217_v12 = vpop.f32.mrf.mxu1 }
 0x16c   :  { %1621 = vst [vmem:[%s2266_s2 + $0x60] sm:$0xff] %v1568_v19   ;;  %v1076_v32 = vmax.f32 %v981_v22, 0.0  ;;  %v1084_v33 = vmax.f32 %v1013_v21, 0.0 }
 0x16d   :  { %v775_v24 = vpop.f32.mrf.mxu0  ;;  %v1693_v25 = vpop.f32.mrf.mxu1 }
 0x16e   :  { %v984_v26 = vadd.f32 %v1685_v0, %v775_v24  ;;  %v1016_v28 = vadd.f32 %v1693_v25, %v2161_v27 }
 0x16f   :  { %v777_v29 = vpop.f32.mrf.mxu0  ;;  %v2224_v30 = vpop.f32.mrf.mxu1 }
 0x170   :  { %v1077_v34 = vmax.f32 %v984_v26, 0.0  ;;  %v1085_v36 = vmax.f32 %v1016_v28, 0.0 }
 0x171   :  { %v780_v37 = vpop.f32.mrf.mxu0  ;;  %v1696_v40 = vpop.f32.mrf.mxu1 }
 0x172   :  { %v1573_v41 = vpack.c.bf16 %v1077_v34, %v1076_v32  ;;  %v1593_v44 = vpack.c.bf16 %v1085_v36, %v1084_v33  ;;  %v989_v45 = vadd.f32 %v988_v7, %v780_v37  ;;  %v1029_v23 = vadd.f32 %v1696_v40, %v2167_v39 }
 0x173   :  { %v782_v46 = vpop.f32.mrf.mxu0  ;;  %v1020_v38 = vpop.f32.mrf.mxu1 }
 0x174   :  { %1622 = vst [vmem:[%s2266_s2 + $0x68] sm:$0xff] %v1573_v41   ;;  %1626 = vst [vmem:[%s2266_s2 + $0x88] sm:$0xff] %v1593_v44   ;;  %v1021_v42 = vadd.f32 %v1020_v38, %v2163_v31  ;;  %v1078_v52 = vmax.f32 %v989_v45, 0.0  ;;  %v1088_v57 = vmax.f32 %v1029_v23, 0.0 }
 0x175   :  { %v783_v27 = vpop.f32.mrf.mxu0  ;;  %v1697_v48 = vpop.f32.mrf.mxu1 }
 0x176   :  { %v992_v49 = vadd.f32 %v991_v14, %v783_v27  ;;  %v1032_v50 = vadd.f32 %v1697_v48, %v2169_v43  ;;  %v1086_v1 = vmax.f32 %v1021_v42, 0.0 }
 0x177   :  { %v785_v53 = vpop.f32.mrf.mxu0  ;;  %v1023_v56 = vpop.f32.mrf.mxu1 }
 0x178   :  { %v1079_v59 = vmax.f32 %v992_v49, 0.0  ;;  %v1089_v60 = vmax.f32 %v1032_v50, 0.0  ;;  %v1024_v61 = vadd.f32 %v1023_v56, %v2165_v35 }
 0x179   :  { %v788_v63 = vpop.f32.mrf.mxu0  ;;  %v1700_v0 = vpop.f32.mrf.mxu1 }
 0x17a   :  { %v1578_v62 = vpack.c.bf16 %v1079_v59, %v1078_v52  ;;  %v1603_v39 = vpack.c.bf16 %v1089_v60, %v1088_v57  ;;  %v1087_v2 = vmax.f32 %v1024_v61, 0.0  ;;  %v1045_v4 = vadd.f32 %v1700_v0, %v2175_v55 }
 0x17b   :  { %v790_v31 = vpop.f32.mrf.mxu0  ;;  %v1036_v54 = vpop.f32.mrf.mxu1  ;;  %v997_v35 = vadd.f32 %v2210_v58, %v788_v63 }
 0x17c   :  { %1623 = vst [vmem:[%s2266_s2 + $0x70] sm:$0xff] %v1578_v62   ;;  %1628 = vst [vmem:[%s2266_s2 + $0x98] sm:$0xff] %v1603_v39   ;;  %v1598_v43 = vpack.c.bf16 %v1087_v2, %v1086_v1  ;;  %v1092_v3 = vmax.f32 %v1045_v4, 0.0  ;;  %v1037_v55 = vadd.f32 %v1036_v54, %v2171_v47 }
 0x17d   :  { %v791_v5 = vpop.f32.mrf.mxu0  ;;  %v1701_v6 = vpop.f32.mrf.mxu1  ;;  %v1080_v13 = vmax.f32 %v997_v35, 0.0 }
 0x17e   :  { %1627 = vst [vmem:[%s2266_s2 + $0x90] sm:$0xff] %v1598_v43   ;;  %v1000_v7 = vadd.f32 %v2215_v10, %v791_v5  ;;  %v1504_v8 = vpack.c.bf16 %v1092_v3, %v1092_v3  ;;  %v1090_v16 = vmax.f32 %v1037_v55, 0.0 }
 0x17f   :  { %v793_v9 = vpop.f32.mrf.mxu0  ;;  %v1039_v11 = vpop.f32.mrf.mxu1 }
 0x180   :  { %v1081_v14 = vmax.f32 %v1000_v7, 0.0  ;;  %v1040_v15 = vadd.f32 %v1039_v11, %v2173_v51  ;;  %1308 = vst [vmem:[%s2266_s2 + $0xa8] sm:$0xf] %v1504_v8 }
 0x181   :  { %v796_v58 = vpop.f32.mrf.mxu0 }
 0x182   :  { %v1583_v17 = vpack.c.bf16 %v1081_v14, %v1080_v13  ;;  %v1091_v18 = vmax.f32 %v1040_v15, 0.0  ;;  %v1005_v10 = vadd.f32 %v2217_v12, %v796_v58 }
 0x183   :  { %v798_v19 = vpop.f32.mrf.mxu0 }
 0x184   :  { %1624 = vst [vmem:[%s2266_s2 + $0x78] sm:$0xff] %v1583_v17   ;;  %v1608_v47 = vpack.c.bf16 %v1091_v18, %v1090_v16  ;;  %v1082_v21 = vmax.f32 %v1005_v10, 0.0 }
 0x185   :  { %v799_v20 = vpop.f32.mrf.mxu0 }
 0x186   :  { %1629 = vst [vmem:[%s2266_s2 + $0xa0] sm:$0xff] %v1608_v47   ;;  %v1008_v51 = vadd.f32 %v2224_v30, %v799_v20 }
 0x187   :  { %v801_v22 = vpop.f32.mrf.mxu0 }
 0x188   :  { %v1083_v24 = vmax.f32 %v1008_v51, 0.0 }
 0x18a   :  { %v1588_v25 = vpack.c.bf16 %v1083_v24, %v1082_v21 }
 0x18c   :  { %1625 = vst [vmem:[%s2266_s2 + $0x80] sm:$0xff] %v1588_v25  }

// kernel: vae_forward.14
= control target key start
LH: loop header
LB: loop body
LE: loop exit
PB: predicated region body
PF: predicated region fallthrough
CT: control target
= control target key end

     0   :  { %s2784_s9 = smov 0   ;;  %s3173_s0 = inlined_call_operand.vmem [shape: bf16[1536,128], index: 0, kind: input, shape index: {}]   ;;  %s3174_s1 = inlined_call_operand.vmem [shape: bf16[1,128,288], index: 1, kind: input, shape index: {}]   ;;  %s3175_s2 = inlined_call_operand.vmem [shape: bf16[1536,288], index: 2, kind: output, shape index: {}]  }
   0x1 LB: > { %s2227_s10 = sadd.s32 4294967295, %s2766_s9   ;;  %p2231_p0 = scmp.ge.s32.totalorder %s2766_s9, 1  ;;  %s2766_s9 = sphi %s2784_s9, %s12_s9  }
   0x2   : > { %p113_p1 = scmp.lt.s32.totalorder %s2766_s9, 4 }
   0x4   : > { %p114_p2 = pnand %p2231_p0, %p113_p1 }
   0x5   : > { %s2232_s13 = sshll.u32 (!%p114_p2), %s2227_s10, 6 }
   0x6   : > { %117 = sbr.rel (%p114_p2) target bundleno = 433 (0x1b1), region = 28  ;;  %p137_p3 = scmp.lt.s32.totalorder (!%p114_p2), %s2232_s13, 191 }
   0xb   : > { %v2696_v0 = vld [vmem:[%s3174_s1 + $0xac] ss:$12 sps:$4 sm:$0xff]   ;;  %v2698_v1 = vld [vmem:[%s3174_s1 + $0xa8] ss:$12 sps:$4 sm:$0xff]   ;;  %v2768_v2 = vmov 0   ;;  %s3177_s13 = smov (!%p137_p3, %s2232_s13), 191 }
   0xc   : > { %598 = vmatprep.mubr.bf16.mxu0 %v2768_v2  ;;  %838 = vmatprep.mubr.bf16.mxu1 %v2768_v2  ;;  %v2699_v3 = vld [vmem:[%s3174_s1 + $0x94] ss:$12 sps:$4 sm:$0xff]   ;;  %v2701_v4 = vld [vmem:[%s3174_s1 + $0x90] ss:$12 sps:$4 sm:$0xff]   ;;  %s2233_s22 = sshll.u32 %s3177_s13, 2  ;;  %vm2041_vm0 = vcmask 257024  }
   0xd   : > { %566 = vmatprep.subr.bf16.mxu0 %v2696_v0  ;;  %2670 = vmatprep.subr.bf16.mxu1 %v2696_v0  ;;  %v2702_v5 = vld [vmem:[%s3174_s1 + $0x7c] ss:$12 sps:$4 sm:$0xff]   ;;  %v2704_v6 = vld [vmem:[%s3174_s1 + $0x78] ss:$12 sps:$4 sm:$0xff]   ;;  %s2821_s29 = scalar_lea.vmem %s3173_s0, %s2233_s22  ;;  %v2707_v8 = vld [vmem:[%s3174_s1 + $0x60] ss:$12 sps:$4 sm:$0xff]  }
   0xe   : > { %567 = vmatpush1.bf16.msra.mxu0 %v2698_v1  ;;  %2678 = vmatpush1.bf16.msra.mxu1 %v2698_v1  ;;  %v2705_v7 = vld [vmem:[%s3174_s1 + $0x64] ss:$12 sps:$4 sm:$0xff]   ;;  %v2708_v9 = vld [vmem:[%s3174_s1 + $0x4c] ss:$12 sps:$4 sm:$0xff]   ;;  %v2710_v10 = vld [vmem:[%s3174_s1 + $0x48] ss:$12 sps:$4 sm:$0xff]  }
   0xf   : > { %568 = vmatprep.subr.bf16.mxu0 %v2699_v3  ;;  %2671 = vmatprep.subr.bf16.mxu1 %v2699_v3  ;;  %v2711_v11 = vld [vmem:[%s3174_s1 + $0x34] ss:$12 sps:$4 sm:$0xff]   ;;  %v2713_v12 = vld [vmem:[%s3174_s1 + $0x30] ss:$12 sps:$4 sm:$0xff]   ;;  %v2716_v14 = vld [vmem:[%s3174_s1 + $0x18] ss:$12 sps:$4 sm:$0xff]  }
  0x10   : > { %v2714_v13 = vld [vmem:[%s3174_s1 + $0x1c] ss:$12 sps:$4 sm:$0xff]   ;;  %v2717_v15 = vld [vmem:[%s3174_s1 + $0x4] ss:$12 sps:$4 sm:$0xff]   ;;  %v2719_v16 = vld [vmem:[%s3174_s1] ss:$12 sps:$4 sm:$0xff]  }
  0x11   : > { %v2722_v17 = vld [vmem:[%s3174_s1 + $0xb0] ss:$12 sps:$4 sm:$0xff]   ;;  %v2854_v18 = vld [vmem:[%s2821_s29] sm:$0xff]   ;;  %v2723_v22 = vld [vmem:[%s2821_s29 + $0x8] sm:$0xff]  }
  0x12   : > { %569 = vmatpush1.bf16.msra.mxu0 %v2701_v4  ;;  %2679 = vmatpush1.bf16.msra.mxu1 %v2701_v4  ;;  %v2857_v19 = vld [vmem:[%s2821_s29 + $0xc0] sm:$0xff]   ;;  %v2871_v23 = vld [vmem:[%s2821_s29 + $0xc8] sm:$0xff]   ;;  %v2726_v25 = vld [vmem:[%s2821_s29 + $0x10] sm:$0xff]  }
  0x13   : > { %570 = vmatprep.subr.bf16.mxu0 %v2702_v5  ;;  %2672 = vmatprep.subr.bf16.mxu1 %v2702_v5  ;;  %v2725_v20 = vld [vmem:[%s3174_s1 + $0x98] ss:$12 sps:$4 sm:$0xff]   ;;  %v2728_v21 = vld [vmem:[%s3174_s1 + $0x80] ss:$12 sps:$4 sm:$0xff]   ;;  %v2731_v24 = vld [vmem:[%s3174_s1 + $0x68] ss:$12 sps:$4 sm:$0xff]  }
  0x14   : > { %v2734_v26 = vld [vmem:[%s3174_s1 + $0x50] ss:$12 sps:$4 sm:$0xff]   ;;  %v2737_v28 = vld [vmem:[%s3174_s1 + $0x38] ss:$12 sps:$4 sm:$0xff]   ;;  %v2740_v29 = vld [vmem:[%s3174_s1 + $0x20] ss:$12 sps:$4 sm:$0xff]  }
  0x15   : > { %v2884_v27 = vld [vmem:[%s2821_s29 + $0xd0] sm:$0xff]   ;;  %v2729_v30 = vld [vmem:[%s2821_s29 + $0x18] sm:$0xff]   ;;  %v2732_v33 = vld [vmem:[%s2821_s29 + $0x20] sm:$0xff]  }
  0x16   : > { %571 = vmatpush1.bf16.msra.mxu0 %v2704_v6  ;;  %2680 = vmatpush1.bf16.msra.mxu1 %v2704_v6  ;;  %v2897_v31 = vld [vmem:[%s2821_s29 + $0xd8] sm:$0xff]   ;;  %v2743_v32 = vld [vmem:[%s3174_s1 + $0x8] ss:$12 sps:$4 sm:$0xff]   ;;  %v2907_v34 = vld [vmem:[%s2821_s29 + $0xe0] sm:$0xff]  }
  0x17   : > { %572 = vmatprep.subr.bf16.mxu0 %v2705_v7  ;;  %2673 = vmatprep.subr.bf16.mxu1 %v2705_v7  ;;  %v2735_v35 = vld [vmem:[%s2821_s29 + $0x28] sm:$0xff]   ;;  %v2738_v37 = vld [vmem:[%s2821_s29 + $0x30] sm:$0xff]   ;;  %v2741_v39 = vld [vmem:[%s2821_s29 + $0x38] sm:$0xff]  }
  0x18   : > { %v2914_v36 = vld [vmem:[%s2821_s29 + $0xe8] sm:$0xff]   ;;  %v2921_v38 = vld [vmem:[%s2821_s29 + $0xf0] sm:$0xff]   ;;  %v2928_v40 = vld [vmem:[%s2821_s29 + $0xf8] sm:$0xff]  }
  0x19   : > { %v2744_v41 = vld [vmem:[%s2821_s29 + $0x40] sm:$0xff]   ;;  %v2745_v42 = vld [vmem:[%s2821_s29 + $0x48] sm:$0xff]   ;;  %v2746_v43 = vld [vmem:[%s2821_s29 + $0x50] sm:$0xff]  }
  0x1a   : > { %573 = vmatpush1.bf16.msra.mxu0 %v2707_v8  ;;  %2681 = vmatpush1.bf16.msra.mxu1 %v2707_v8  ;;  %v2747_v44 = vld [vmem:[%s2821_s29 + $0x58] sm:$0xff]   ;;  %v2748_v45 = vld [vmem:[%s2821_s29 + $0x60] sm:$0xff]   ;;  %v2749_v46 = vld [vmem:[%s2821_s29 + $0x68] sm:$0xff]  }
  0x1b   : > { %574 = vmatprep.subr.bf16.mxu0 %v2708_v9  ;;  %2674 = vmatprep.subr.bf16.mxu1 %v2708_v9  ;;  %v2750_v47 = vld [vmem:[%s2821_s29 + $0x70] sm:$0xff]   ;;  %v2751_v48 = vld [vmem:[%s2821_s29 + $0x78] sm:$0xff]   ;;  %v2752_v49 = vld [vmem:[%s2821_s29 + $0x80] sm:$0xff]  }
  0x1c   : > { %v2753_v50 = vld [vmem:[%s2821_s29 + $0x88] sm:$0xff]   ;;  %v2754_v51 = vld [vmem:[%s2821_s29 + $0x90] sm:$0xff]   ;;  %v2755_v52 = vld [vmem:[%s2821_s29 + $0x98] sm:$0xff]  }
  0x1d   : > { %v2756_v53 = vld [vmem:[%s2821_s29 + $0xa0] sm:$0xff]   ;;  %v2757_v54 = vld [vmem:[%s2821_s29 + $0xa8] sm:$0xff]   ;;  %v2758_v55 = vld [vmem:[%s2821_s29 + $0xb0] sm:$0xff]  }
  0x1e   : > { %575 = vmatpush1.bf16.msra.mxu0 %v2710_v10  ;;  %2682 = vmatpush1.bf16.msra.mxu1 %v2710_v10  ;;  %v2759_v56 = vld [vmem:[%s2821_s29 + $0xb8] sm:$0xff]   ;;  %s2686_s29 = smul.u32 12, %s3177_s13 }
  0x1f   : > { %576 = vmatprep.subr.bf16.mxu0 %v2711_v11  ;;  %2675 = vmatprep.subr.bf16.mxu1 %v2711_v11 }
  0x20   : > { %s2976_s15 = scalar_lea.vmem %s3175_s2, %s2686_s29 }
  0x22   : > { %577 = vmatpush1.bf16.msra.mxu0 %v2713_v12  ;;  %2683 = vmatpush1.bf16.msra.mxu1 %v2713_v12 }
  0x23   : > { %578 = vmatprep.subr.bf16.mxu0 %v2714_v13  ;;  %2676 = vmatprep.subr.bf16.mxu1 %v2714_v13 }
  0x26   : > { %579 = vmatpush1.bf16.msra.mxu0 %v2716_v14  ;;  %2684 = vmatpush1.bf16.msra.mxu1 %v2716_v14 }
  0x27   : > { %580 = vmatprep.subr.bf16.mxu0 %v2717_v15  ;;  %2677 = vmatprep.subr.bf16.mxu1 %v2717_v15 }
  0x2a   : > { %581 = vmatpush1.bf16.msra.mxu0 %v2719_v16  ;;  %2685 = vmatpush1.bf16.msra.mxu1 %v2719_v16 }
  0x2b   : > { %2590 = vmatprep.subr.bf16.mxu1 %v2722_v17 }
  0x2d   : > { %599 = vmatmul.mubr.bf16.vlgmr.msra.gmra.mxu0 %v2854_v18  ;;  %839 = vmatmul.mubr.bf16.vlgmr.msra.gmra.mxu1 %v2857_v19 }
  0x2e   : > { %2591 = vmatpush3.bf16.msra.mxu1 %v2722_v17  ;;  %608 = vmatprep.mubr.bf16.mxu0 %v2768_v2 }
  0x2f   : > { %848 = vmatprep.mubr.bf16.mxu1 %v2768_v2  ;;  %2592 = vmatprep.subr.bf16.mxu1 %v2725_v20 }
  0x32   : > { %2593 = vmatpush3.bf16.msra.mxu1 %v2725_v20 }
  0x33   : > { %2594 = vmatprep.subr.bf16.mxu1 %v2728_v21 }
  0x35   : > { %609 = vmatmul.mubr.bf16.gmra.mxu0 %v2723_v22  ;;  %849 = vmatmul.mubr.bf16.gmra.mxu1 %v2871_v23 }
  0x36   : > { %618 = vmatprep.mubr.bf16.mxu0 %v2768_v2  ;;  %858 = vmatprep.mubr.bf16.mxu1 %v2768_v2 }
  0x37   : > { %2595 = vmatpush3.bf16.msra.mxu1 %v2728_v21 }
  0x38   : > { %2596 = vmatprep.subr.bf16.mxu1 %v2731_v24 }
  0x3b   : > { %2597 = vmatpush3.bf16.msra.mxu1 %v2731_v24 }
  0x3c   : > { %2598 = vmatprep.subr.bf16.mxu1 %v2734_v26 }
  0x3d   : > { %619 = vmatmul.mubr.bf16.gmra.mxu0 %v2726_v25  ;;  %859 = vmatmul.mubr.bf16.gmra.mxu1 %v2884_v27 }
  0x3e   : > { %628 = vmatprep.mubr.bf16.mxu0 %v2768_v2  ;;  %868 = vmatprep.mubr.bf16.mxu1 %v2768_v2 }
  0x3f   : > { %2599 = vmatpush3.bf16.msra.mxu1 %v2734_v26 }
  0x40   : > { %2600 = vmatprep.subr.bf16.mxu1 %v2737_v28 }
  0x43   : > { %2601 = vmatpush3.bf16.msra.mxu1 %v2737_v28 }
  0x44   : > { %2602 = vmatprep.subr.bf16.mxu1 %v2740_v29 }
  0x45   : > { %629 = vmatmul.mubr.bf16.gmra.mxu0 %v2729_v30  ;;  %869 = vmatmul.mubr.bf16.gmra.mxu1 %v2897_v31 }
  0x46   : > { %638 = vmatprep.mubr.bf16.mxu0 %v2768_v2  ;;  %878 = vmatprep.mubr.bf16.mxu1 %v2768_v2 }
  0x47   : > { %2603 = vmatpush3.bf16.msra.mxu1 %v2740_v29 }
  0x48   : > { %2604 = vmatprep.subr.bf16.mxu1 %v2743_v32 }
  0x4b   : > { %2605 = vmatpush3.bf16.msra.mxu1 %v2743_v32 }
  0x4d   : > { %639 = vmatmul.mubr.bf16.gmra.mxu0 %v2732_v33  ;;  %879 = vmatmul.mubr.bf16.gmra.mxu1 %v2907_v34 }
  0x4e   : > { %648 = vmatprep.mubr.bf16.mxu0 %v2768_v2  ;;  %888 = vmatprep.mubr.bf16.mxu1 %v2768_v2 }
  0x55   : > { %649 = vmatmul.mubr.bf16.gmra.mxu0 %v2735_v35  ;;  %889 = vmatmul.mubr.bf16.gmra.mxu1 %v2914_v36 }
  0x56   : > { %658 = vmatprep.mubr.bf16.mxu0 %v2768_v2  ;;  %898 = vmatprep.mubr.bf16.mxu1 %v2768_v2 }
  0x5d   : > { %659 = vmatmul.mubr.bf16.gmra.mxu0 %v2738_v37  ;;  %899 = vmatmul.mubr.bf16.gmra.mxu1 %v2921_v38 }
  0x5e   : > { %668 = vmatprep.mubr.bf16.mxu0 %v2768_v2  ;;  %908 = vmatprep.mubr.bf16.mxu1 %v2768_v2 }
  0x65   : > { %669 = vmatmul.mubr.bf16.gmra.mxu0 %v2741_v39  ;;  %909 = vmatmul.mubr.bf16.gmra.mxu1 %v2928_v40 }
  0x66   : > { %678 = vmatprep.mubr.bf16.mxu0 %v2768_v2  ;;  %2606 = vmatprep.mubr.bf16.mxu1 %v2854_v18 }
  0x6d   : > { %679 = vmatmul.mubr.bf16.gmra.mxu0 %v2744_v41  ;;  %2607 = vmatmul.mubr.bf16.vlgmr.msra.gmra.mxu1 %v2723_v22 }
  0x6e   : > { %688 = vmatprep.mubr.bf16.mxu0 %v2768_v2  ;;  %2610 = vmatprep.mubr.bf16.mxu1 %v2726_v25 }
  0x75   : > { %689 = vmatmul.mubr.bf16.gmra.mxu0 %v2745_v42  ;;  %2611 = vmatmul.mubr.bf16.gmra.mxu1 %v2729_v30 }
  0x76   : > { %698 = vmatprep.mubr.bf16.mxu0 %v2768_v2  ;;  %2614 = vmatprep.mubr.bf16.mxu1 %v2732_v33 }
  0x7d   : > { %699 = vmatmul.mubr.bf16.gmra.mxu0 %v2746_v43  ;;  %2615 = vmatmul.mubr.bf16.gmra.mxu1 %v2735_v35 }
  0x7e   : > { %708 = vmatprep.mubr.bf16.mxu0 %v2768_v2  ;;  %2618 = vmatprep.mubr.bf16.mxu1 %v2738_v37 }
  0x85   : > { %709 = vmatmul.mubr.bf16.gmra.mxu0 %v2747_v44  ;;  %2619 = vmatmul.mubr.bf16.gmra.mxu1 %v2741_v39 }
  0x86   : > { %718 = vmatprep.mubr.bf16.mxu0 %v2768_v2  ;;  %2622 = vmatprep.mubr.bf16.mxu1 %v2744_v41 }
  0x8d   : > { %719 = vmatmul.mubr.bf16.gmra.mxu0 %v2748_v45  ;;  %2623 = vmatmul.mubr.bf16.gmra.mxu1 %v2745_v42 }
  0x8e   : > { %728 = vmatprep.mubr.bf16.mxu0 %v2768_v2  ;;  %2626 = vmatprep.mubr.bf16.mxu1 %v2746_v43 }
  0x95   : > { %729 = vmatmul.mubr.bf16.gmra.mxu0 %v2749_v46  ;;  %2627 = vmatmul.mubr.bf16.gmra.mxu1 %v2747_v44 }
  0x96   : > { %738 = vmatprep.mubr.bf16.mxu0 %v2768_v2  ;;  %2630 = vmatprep.mubr.bf16.mxu1 %v2748_v45 }
  0x9d   : > { %739 = vmatmul.mubr.bf16.gmra.mxu0 %v2750_v47  ;;  %2631 = vmatmul.mubr.bf16.gmra.mxu1 %v2749_v46 }
  0x9e   : > { %748 = vmatprep.mubr.bf16.mxu0 %v2768_v2  ;;  %2634 = vmatprep.mubr.bf16.mxu1 %v2750_v47 }
  0xa5   : > { %749 = vmatmul.mubr.bf16.gmra.mxu0 %v2751_v48  ;;  %2635 = vmatmul.mubr.bf16.gmra.mxu1 %v2751_v48 }
  0xa6   : > { %758 = vmatprep.mubr.bf16.mxu0 %v2768_v2  ;;  %2638 = vmatprep.mubr.bf16.mxu1 %v2752_v49 }
  0xad   : > { %759 = vmatmul.mubr.bf16.gmra.mxu0 %v2752_v49  ;;  %2639 = vmatmul.mubr.bf16.gmra.mxu1 %v2753_v50 }
  0xae   : > { %768 = vmatprep.mubr.bf16.mxu0 %v2768_v2  ;;  %2642 = vmatprep.mubr.bf16.mxu1 %v2754_v51 }
  0xb5   : > { %769 = vmatmul.mubr.bf16.gmra.mxu0 %v2753_v50  ;;  %2643 = vmatmul.mubr.bf16.gmra.mxu1 %v2755_v52 }
  0xb6   : > { %778 = vmatprep.mubr.bf16.mxu0 %v2768_v2  ;;  %2646 = vmatprep.mubr.bf16.mxu1 %v2756_v53 }
  0xbd   : > { %779 = vmatmul.mubr.bf16.gmra.mxu0 %v2754_v51  ;;  %2647 = vmatmul.mubr.bf16.gmra.mxu1 %v2757_v54 }
  0xbe   : > { %788 = vmatprep.mubr.bf16.mxu0 %v2768_v2  ;;  %2650 = vmatprep.mubr.bf16.mxu1 %v2758_v55 }
  0xc5   : > { %789 = vmatmul.mubr.bf16.gmra.mxu0 %v2755_v52  ;;  %2651 = vmatmul.mubr.bf16.gmra.mxu1 %v2759_v56 }
  0xc6   : > { %798 = vmatprep.mubr.bf16.mxu0 %v2768_v2  ;;  %2654 = vmatprep.mubr.bf16.mxu1 %v2857_v19 }
  0xcd   : > { %799 = vmatmul.mubr.bf16.gmra.mxu0 %v2756_v53  ;;  %2655 = vmatmul.mubr.bf16.gmra.mxu1 %v2871_v23 }
  0xce   : > { %808 = vmatprep.mubr.bf16.mxu0 %v2768_v2  ;;  %2658 = vmatprep.mubr.bf16.mxu1 %v2884_v27 }
  0xd5   : > { %809 = vmatmul.mubr.bf16.gmra.mxu0 %v2757_v54  ;;  %2659 = vmatmul.mubr.bf16.gmra.mxu1 %v2897_v31 }
  0xd6   : > { %818 = vmatprep.mubr.bf16.mxu0 %v2768_v2  ;;  %2662 = vmatprep.mubr.bf16.mxu1 %v2907_v34 }
  0xdd   : > { %819 = vmatmul.mubr.bf16.gmra.mxu0 %v2758_v55  ;;  %2663 = vmatmul.mubr.bf16.gmra.mxu1 %v2914_v36 }
  0xde   : > { %828 = vmatprep.mubr.bf16.mxu0 %v2768_v2  ;;  %2666 = vmatprep.mubr.bf16.mxu1 %v2921_v38 }
  0xe5   : > { %829 = vmatmul.mubr.bf16.gmra.mxu0 %v2759_v56  ;;  %2667 = vmatmul.mubr.bf16.gmra.mxu1 %v2928_v40 }
  0xed   : > { %v600_v57 = vpop.f32.mrf.mxu0  ;;  %v840_v58 = vpop.f32.mrf.mxu1 }
  0xee   : > { %v1208_v61 = vmax.f32 %v600_v57, 0.0  ;;  %v1352_v62 = vmax.f32 %v840_v58, 0.0 }
  0xef   : > { %v602_v59 = vpop.f32.mrf.mxu0  ;;  %v842_v60 = vpop.f32.mrf.mxu1 }
  0xf0   : > { %v1209_v63 = vmax.f32 %v602_v59, 0.0  ;;  %v1353_v0 = vmax.f32 %v842_v60, 0.0 }
  0xf1   : > { %v604_v1 = vpop.f32.mrf.mxu0  ;;  %v844_v2 = vpop.f32.mrf.mxu1 }
  0xf2   : > { %v2422_v3 = vpack.c.bf16 %v1209_v63, %v1208_v61  ;;  %v2518_v4 = vpack.c.bf16 %v1353_v0, %v1352_v62  ;;  %v1211_v7 = vmax.f32 %v604_v1, 0.0  ;;  %v1355_v8 = vmax.f32 %v844_v2, 0.0 }
  0xf3   : > { %v606_v5 = vpop.f32.mrf.mxu0  ;;  %v846_v6 = vpop.f32.mrf.mxu1 }
  0xf4   : > { %2040 = vst [vmem:[%s2976_s15] sm:$0xff] %v2422_v3  ;;  %2137 = vst [vmem:[%s2976_s15 + $0x240] sm:$0xff] %v2518_v4  ;;  %v1212_v9 = vmax.f32 %v606_v5, 0.0  ;;  %v1356_v10 = vmax.f32 %v846_v6, 0.0 }
  0xf5   : > { %v610_v11 = vpop.f32.mrf.mxu0  ;;  %v850_v12 = vpop.f32.mrf.mxu1 }
  0xf6   : > { %v2424_v13 = vpack.c.bf16 %v1212_v9, %v1211_v7  ;;  %v2520_v14 = vpack.c.bf16 %v1356_v10, %v1355_v8  ;;  %v1214_v17 = vmax.f32 %v610_v11, 0.0  ;;  %v1358_v18 = vmax.f32 %v850_v12, 0.0 }
  0xf7   : > { %v612_v15 = vpop.f32.mrf.mxu0  ;;  %v852_v16 = vpop.f32.mrf.mxu1 }
  0xf8   : > { %2043 = vst [vmem:[%s2976_s15 + $0xc] sm:$0xff] %v2424_v13  ;;  %2139 = vst [vmem:[%s2976_s15 + $0x24c] sm:$0xff] %v2520_v14  ;;  %v1215_v19 = vmax.f32 %v612_v15, 0.0  ;;  %v1359_v20 = vmax.f32 %v852_v16, 0.0 }
  0xf9   : > { %v614_v21 = vpop.f32.mrf.mxu0  ;;  %v854_v22 = vpop.f32.mrf.mxu1 }
  0xfa   : > { %v2426_v23 = vpack.c.bf16 %v1215_v19, %v1214_v17  ;;  %v2522_v24 = vpack.c.bf16 %v1359_v20, %v1358_v18  ;;  %v1217_v27 = vmax.f32 %v614_v21, 0.0  ;;  %v1361_v28 = vmax.f32 %v854_v22, 0.0 }
  0xfb   : > { %v616_v25 = vpop.f32.mrf.mxu0  ;;  %v856_v26 = vpop.f32.mrf.mxu1 }
  0xfc   : > { %2045 = vst [vmem:[%s2976_s15 + $0x18] sm:$0xff] %v2426_v23  ;;  %2141 = vst [vmem:[%s2976_s15 + $0x258] sm:$0xff] %v2522_v24  ;;  %v1218_v29 = vmax.f32 %v616_v25, 0.0  ;;  %v1362_v30 = vmax.f32 %v856_v26, 0.0 }
  0xfd   : > { %v620_v31 = vpop.f32.mrf.mxu0  ;;  %v860_v32 = vpop.f32.mrf.mxu1 }
  0xfe   : > { %v2428_v33 = vpack.c.bf16 %v1218_v29, %v1217_v27  ;;  %v2524_v34 = vpack.c.bf16 %v1362_v30, %v1361_v28  ;;  %v1220_v37 = vmax.f32 %v620_v31, 0.0  ;;  %v1364_v38 = vmax.f32 %v860_v32, 0.0 }
  0xff   : > { %v622_v35 = vpop.f32.mrf.mxu0  ;;  %v862_v36 = vpop.f32.mrf.mxu1 }
 0x100   : > { %2047 = vst [vmem:[%s2976_s15 + $0x24] sm:$0xff] %v2428_v33  ;;  %2143 = vst [vmem:[%s2976_s15 + $0x264] sm:$0xff] %v2524_v34  ;;  %v1221_v39 = vmax.f32 %v622_v35, 0.0  ;;  %v1365_v40 = vmax.f32 %v862_v36, 0.0 }
 0x101   : > { %v624_v41 = vpop.f32.mrf.mxu0  ;;  %v864_v42 = vpop.f32.mrf.mxu1 }
 0x102   : > { %v2430_v43 = vpack.c.bf16 %v1221_v39, %v1220_v37  ;;  %v2526_v44 = vpack.c.bf16 %v1365_v40, %v1364_v38  ;;  %v1223_v47 = vmax.f32 %v624_v41, 0.0  ;;  %v1367_v48 = vmax.f32 %v864_v42, 0.0 }
 0x103   : > { %v626_v45 = vpop.f32.mrf.mxu0  ;;  %v866_v46 = vpop.f32.mrf.mxu1 }
 0x104   : > { %2049 = vst [vmem:[%s2976_s15 + $0x30] sm:$0xff] %v2430_v43  ;;  %2145 = vst [vmem:[%s2976_s15 + $0x270] sm:$0xff] %v2526_v44  ;;  %v1224_v49 = vmax.f32 %v626_v45, 0.0  ;;  %v1368_v50 = vmax.f32 %v866_v46, 0.0 }
 0x105   : > { %v630_v51 = vpop.f32.mrf.mxu0  ;;  %v870_v52 = vpop.f32.mrf.mxu1 }
 0x106   : > { %v2432_v53 = vpack.c.bf16 %v1224_v49, %v1223_v47  ;;  %v2528_v54 = vpack.c.bf16 %v1368_v50, %v1367_v48  ;;  %v1226_v57 = vmax.f32 %v630_v51, 0.0  ;;  %v1370_v58 = vmax.f32 %v870_v52, 0.0 }
 0x107   : > { %v632_v55 = vpop.f32.mrf.mxu0  ;;  %v872_v56 = vpop.f32.mrf.mxu1 }
 0x108   : > { %2051 = vst [vmem:[%s2976_s15 + $0x3c] sm:$0xff] %v2432_v53  ;;  %2147 = vst [vmem:[%s2976_s15 + $0x27c] sm:$0xff] %v2528_v54  ;;  %v1227_v59 = vmax.f32 %v632_v55, 0.0  ;;  %v1371_v60 = vmax.f32 %v872_v56, 0.0 }
 0x109   : > { %v634_v61 = vpop.f32.mrf.mxu0  ;;  %v874_v62 = vpop.f32.mrf.mxu1 }
 0x10a   : > { %v2434_v63 = vpack.c.bf16 %v1227_v59, %v1226_v57  ;;  %v2530_v0 = vpack.c.bf16 %v1371_v60, %v1370_v58  ;;  %v1229_v3 = vmax.f32 %v634_v61, 0.0  ;;  %v1373_v4 = vmax.f32 %v874_v62, 0.0 }
 0x10b   : > { %v636_v1 = vpop.f32.mrf.mxu0  ;;  %v876_v2 = vpop.f32.mrf.mxu1 }
 0x10c   : > { %2053 = vst [vmem:[%s2976_s15 + $0x48] sm:$0xff] %v2434_v63  ;;  %2149 = vst [vmem:[%s2976_s15 + $0x288] sm:$0xff] %v2530_v0  ;;  %v1230_v5 = vmax.f32 %v636_v1, 0.0  ;;  %v1374_v6 = vmax.f32 %v876_v2, 0.0 }
 0x10d   : > { %v640_v7 = vpop.f32.mrf.mxu0  ;;  %v880_v8 = vpop.f32.mrf.mxu1 }
 0x10e   : > { %v2436_v9 = vpack.c.bf16 %v1230_v5, %v1229_v3  ;;  %v2532_v10 = vpack.c.bf16 %v1374_v6, %v1373_v4  ;;  %v1232_v13 = vmax.f32 %v640_v7, 0.0  ;;  %v1376_v14 = vmax.f32 %v880_v8, 0.0 }
 0x10f   : > { %v642_v11 = vpop.f32.mrf.mxu0  ;;  %v882_v12 = vpop.f32.mrf.mxu1 }
 0x110   : > { %2055 = vst [vmem:[%s2976_s15 + $0x54] sm:$0xff] %v2436_v9  ;;  %2151 = vst [vmem:[%s2976_s15 + $0x294] sm:$0xff] %v2532_v10  ;;  %v1233_v15 = vmax.f32 %v642_v11, 0.0  ;;  %v1377_v16 = vmax.f32 %v882_v12, 0.0 }
 0x111   : > { %v644_v17 = vpop.f32.mrf.mxu0  ;;  %v884_v18 = vpop.f32.mrf.mxu1 }
 0x112   : > { %v2438_v19 = vpack.c.bf16 %v1233_v15, %v1232_v13  ;;  %v2534_v20 = vpack.c.bf16 %v1377_v16, %v1376_v14  ;;  %v1235_v23 = vmax.f32 %v644_v17, 0.0  ;;  %v1379_v24 = vmax.f32 %v884_v18, 0.0 }
 0x113   : > { %v646_v21 = vpop.f32.mrf.mxu0  ;;  %v886_v22 = vpop.f32.mrf.mxu1 }
 0x114   : > { %2057 = vst [vmem:[%s2976_s15 + $0x60] sm:$0xff] %v2438_v19  ;;  %2153 = vst [vmem:[%s2976_s15 + $0x2a0] sm:$0xff] %v2534_v20  ;;  %v1236_v25 = vmax.f32 %v646_v21, 0.0  ;;  %v1380_v26 = vmax.f32 %v886_v22, 0.0 }
 0x115   : > { %v650_v27 = vpop.f32.mrf.mxu0  ;;  %v890_v28 = vpop.f32.mrf.mxu1 }
 0x116   : > { %v2440_v29 = vpack.c.bf16 %v1236_v25, %v1235_v23  ;;  %v2536_v30 = vpack.c.bf16 %v1380_v26, %v1379_v24  ;;  %v1238_v33 = vmax.f32 %v650_v27, 0.0  ;;  %v1382_v34 = vmax.f32 %v890_v28, 0.0 }
 0x117   : > { %v652_v31 = vpop.f32.mrf.mxu0  ;;  %v892_v32 = vpop.f32.mrf.mxu1 }
 0x118   : > { %2059 = vst [vmem:[%s2976_s15 + $0x6c] sm:$0xff] %v2440_v29  ;;  %2155 = vst [vmem:[%s2976_s15 + $0x2ac] sm:$0xff] %v2536_v30  ;;  %v1239_v35 = vmax.f32 %v652_v31, 0.0  ;;  %v1383_v36 = vmax.f32 %v892_v32, 0.0 }
 0x119   : > { %v654_v37 = vpop.f32.mrf.mxu0  ;;  %v894_v38 = vpop.f32.mrf.mxu1 }
 0x11a   : > { %v2442_v39 = vpack.c.bf16 %v1239_v35, %v1238_v33  ;;  %v2538_v40 = vpack.c.bf16 %v1383_v36, %v1382_v34  ;;  %v1241_v43 = vmax.f32 %v654_v37, 0.0  ;;  %v1385_v44 = vmax.f32 %v894_v38, 0.0 }
 0x11b   : > { %v656_v41 = vpop.f32.mrf.mxu0  ;;  %v896_v42 = vpop.f32.mrf.mxu1 }
 0x11c   : > { %2061 = vst [vmem:[%s2976_s15 + $0x78] sm:$0xff] %v2442_v39  ;;  %2157 = vst [vmem:[%s2976_s15 + $0x2b8] sm:$0xff] %v2538_v40  ;;  %v1242_v45 = vmax.f32 %v656_v41, 0.0  ;;  %v1386_v46 = vmax.f32 %v896_v42, 0.0 }
 0x11d   : > { %v660_v47 = vpop.f32.mrf.mxu0  ;;  %v900_v48 = vpop.f32.mrf.mxu1 }
 0x11e   : > { %v2444_v49 = vpack.c.bf16 %v1242_v45, %v1241_v43  ;;  %v2540_v50 = vpack.c.bf16 %v1386_v46, %v1385_v44  ;;  %v1244_v53 = vmax.f32 %v660_v47, 0.0  ;;  %v1388_v54 = vmax.f32 %v900_v48, 0.0 }
 0x11f   : > { %v662_v51 = vpop.f32.mrf.mxu0  ;;  %v902_v52 = vpop.f32.mrf.mxu1 }
 0x120   : > { %2063 = vst [vmem:[%s2976_s15 + $0x84] sm:$0xff] %v2444_v49  ;;  %2159 = vst [vmem:[%s2976_s15 + $0x2c4] sm:$0xff] %v2540_v50  ;;  %v1245_v55 = vmax.f32 %v662_v51, 0.0  ;;  %v1389_v56 = vmax.f32 %v902_v52, 0.0 }
 0x121   : > { %v664_v57 = vpop.f32.mrf.mxu0  ;;  %v904_v58 = vpop.f32.mrf.mxu1 }
 0x122   : > { %v2446_v59 = vpack.c.bf16 %v1245_v55, %v1244_v53  ;;  %v2542_v60 = vpack.c.bf16 %v1389_v56, %v1388_v54  ;;  %v1247_v63 = vmax.f32 %v664_v57, 0.0  ;;  %v1391_v0 = vmax.f32 %v904_v58, 0.0 }
 0x123   : > { %v666_v61 = vpop.f32.mrf.mxu0  ;;  %v906_v62 = vpop.f32.mrf.mxu1 }
 0x124   : > { %2065 = vst [vmem:[%s2976_s15 + $0x90] sm:$0xff] %v2446_v59  ;;  %2161 = vst [vmem:[%s2976_s15 + $0x2d0] sm:$0xff] %v2542_v60  ;;  %v1248_v1 = vmax.f32 %v666_v61, 0.0  ;;  %v1392_v2 = vmax.f32 %v906_v62, 0.0 }
 0x125   : > { %v670_v3 = vpop.f32.mrf.mxu0  ;;  %v910_v4 = vpop.f32.mrf.mxu1 }
 0x126   : > { %v2448_v5 = vpack.c.bf16 %v1248_v1, %v1247_v63  ;;  %v2544_v6 = vpack.c.bf16 %v1392_v2, %v1391_v0  ;;  %v1250_v9 = vmax.f32 %v670_v3, 0.0  ;;  %v1394_v10 = vmax.f32 %v910_v4, 0.0 }
 0x127   : > { %v672_v7 = vpop.f32.mrf.mxu0  ;;  %v912_v8 = vpop.f32.mrf.mxu1 }
 0x128   : > { %2067 = vst [vmem:[%s2976_s15 + $0x9c] sm:$0xff] %v2448_v5  ;;  %2163 = vst [vmem:[%s2976_s15 + $0x2dc] sm:$0xff] %v2544_v6  ;;  %v1251_v11 = vmax.f32 %v672_v7, 0.0  ;;  %v1395_v12 = vmax.f32 %v912_v8, 0.0 }
 0x129   : > { %v674_v13 = vpop.f32.mrf.mxu0  ;;  %v914_v14 = vpop.f32.mrf.mxu1 }
 0x12a   : > { %v2450_v15 = vpack.c.bf16 %v1251_v11, %v1250_v9  ;;  %v2546_v16 = vpack.c.bf16 %v1395_v12, %v1394_v10  ;;  %v1253_v19 = vmax.f32 %v674_v13, 0.0  ;;  %v1397_v20 = vmax.f32 %v914_v14, 0.0 }
 0x12b   : > { %v676_v17 = vpop.f32.mrf.mxu0  ;;  %v916_v18 = vpop.f32.mrf.mxu1 }
 0x12c   : > { %2069 = vst [vmem:[%s2976_s15 + $0xa8] sm:$0xff] %v2450_v15  ;;  %2165 = vst [vmem:[%s2976_s15 + $0x2e8] sm:$0xff] %v2546_v16  ;;  %v1254_v21 = vmax.f32 %v676_v17, 0.0  ;;  %v1398_v22 = vmax.f32 %v916_v18, 0.0 }
 0x12d   : > { %v680_v23 = vpop.f32.mrf.mxu0  ;;  %v2608_v24 = vpop.f32.mrf.mxu1 }
 0x12e   : > { %v2452_v25 = vpack.c.bf16 %v1254_v21, %v1253_v19  ;;  %v2548_v26 = vpack.c.bf16 %v1398_v22, %v1397_v20  ;;  %v1216_v27 = vmax.f32 %v2608_v24, 0.0  ;;  %v1256_v30 = vmax.f32 %v680_v23, 0.0 }
 0x12f   : > { %v682_v28 = vpop.f32.mrf.mxu0  ;;  %v953_v29 = vpop.f32.mrf.mxu1 }
 0x130   : > { %2071 = vst [vmem:[%s2976_s15 + $0xb4] sm:$0xff] %v2452_v25  ;;  %2167 = vst [vmem:[%s2976_s15 + $0x2f4] sm:$0xff] %v2548_v26  ;;  %v2427_v31 = vpack.c.bf16 %v1216_v27, %v1216_v27  ;;  %v1257_v32 = vmax.f32 %v682_v28, 0.0  ;;  %v1210_v33 = vmax.f32 %v953_v29, 0.0 }
 0x131   : > { %v684_v34 = vpop.f32.mrf.mxu0  ;;  %v2609_v35 = vpop.f32.mrf.mxu1 }
 0x132   : > { %2046 = vst.msk [vmem:[%s2976_s15 + $0x20] sm:$0xf] %vm2041_vm0, %v2427_v31  ;;  %v2454_v36 = vpack.c.bf16 %v1257_v32, %v1256_v30  ;;  %v2423_v37 = vpack.c.bf16 %v1210_v33, %v1210_v33  ;;  %v1219_v38 = vmax.f32 %v2609_v35, 0.0  ;;  %v1259_v41 = vmax.f32 %v684_v34, 0.0 }
 0x133   : > { %v686_v39 = vpop.f32.mrf.mxu0  ;;  %v956_v40 = vpop.f32.mrf.mxu1 }
 0x134   : > { %2073 = vst [vmem:[%s2976_s15 + $0xc0] sm:$0xff] %v2454_v36  ;;  %2042 = vst.msk [vmem:[%s2976_s15 + $0x8] sm:$0xf] %vm2041_vm0, %v2423_v37  ;;  %v2429_v42 = vpack.c.bf16 %v1219_v38, %v1219_v38  ;;  %v1260_v43 = vmax.f32 %v686_v39, 0.0  ;;  %v1213_v44 = vmax.f32 %v956_v40, 0.0 }
 0x135   : > { %v690_v45 = vpop.f32.mrf.mxu0  ;;  %v2612_v46 = vpop.f32.mrf.mxu1 }
 0x136   : > { %2048 = vst.msk [vmem:[%s2976_s15 + $0x2c] sm:$0xf] %vm2041_vm0, %v2429_v42  ;;  %v2456_v47 = vpack.c.bf16 %v1260_v43, %v1259_v41  ;;  %v2425_v48 = vpack.c.bf16 %v1213_v44, %v1213_v44  ;;  %v1228_v49 = vmax.f32 %v2612_v46, 0.0  ;;  %v1262_v52 = vmax.f32 %v690_v45, 0.0 }
 0x137   : > { %v692_v50 = vpop.f32.mrf.mxu0  ;;  %v969_v51 = vpop.f32.mrf.mxu1 }
 0x138   : > { %2075 = vst [vmem:[%s2976_s15 + $0xcc] sm:$0xff] %v2456_v47  ;;  %2044 = vst.msk [vmem:[%s2976_s15 + $0x14] sm:$0xf] %vm2041_vm0, %v2425_v48  ;;  %v2435_v53 = vpack.c.bf16 %v1228_v49, %v1228_v49  ;;  %v1263_v54 = vmax.f32 %v692_v50, 0.0  ;;  %v1222_v55 = vmax.f32 %v969_v51, 0.0 }
 0x139   : > { %v694_v56 = vpop.f32.mrf.mxu0  ;;  %v2613_v57 = vpop.f32.mrf.mxu1 }
 0x13a   : > { %2054 = vst.msk [vmem:[%s2976_s15 + $0x50] sm:$0xf] %vm2041_vm0, %v2435_v53  ;;  %v2458_v58 = vpack.c.bf16 %v1263_v54, %v1262_v52  ;;  %v2431_v59 = vpack.c.bf16 %v1222_v55, %v1222_v55  ;;  %v1231_v60 = vmax.f32 %v2613_v57, 0.0  ;;  %v1265_v63 = vmax.f32 %v694_v56, 0.0 }
 0x13b   : > { %v696_v61 = vpop.f32.mrf.mxu0  ;;  %v972_v62 = vpop.f32.mrf.mxu1 }
 0x13c   : > { %2077 = vst [vmem:[%s2976_s15 + $0xd8] sm:$0xff] %v2458_v58  ;;  %2050 = vst.msk [vmem:[%s2976_s15 + $0x38] sm:$0xf] %vm2041_vm0, %v2431_v59  ;;  %v2437_v0 = vpack.c.bf16 %v1231_v60, %v1231_v60  ;;  %v1266_v1 = vmax.f32 %v696_v61, 0.0  ;;  %v1225_v2 = vmax.f32 %v972_v62, 0.0 }
 0x13d   : > { %v700_v3 = vpop.f32.mrf.mxu0  ;;  %v2616_v4 = vpop.f32.mrf.mxu1 }
 0x13e   : > { %2056 = vst.msk [vmem:[%s2976_s15 + $0x5c] sm:$0xf] %vm2041_vm0, %v2437_v0  ;;  %v2460_v5 = vpack.c.bf16 %v1266_v1, %v1265_v63  ;;  %v2433_v6 = vpack.c.bf16 %v1225_v2, %v1225_v2  ;;  %v1240_v7 = vmax.f32 %v2616_v4, 0.0  ;;  %v1268_v10 = vmax.f32 %v700_v3, 0.0 }
 0x13f   : > { %v702_v8 = vpop.f32.mrf.mxu0  ;;  %v985_v9 = vpop.f32.mrf.mxu1 }
 0x140   : > { %2079 = vst [vmem:[%s2976_s15 + $0xe4] sm:$0xff] %v2460_v5  ;;  %2052 = vst.msk [vmem:[%s2976_s15 + $0x44] sm:$0xf] %vm2041_vm0, %v2433_v6  ;;  %v2443_v11 = vpack.c.bf16 %v1240_v7, %v1240_v7  ;;  %v1269_v12 = vmax.f32 %v702_v8, 0.0  ;;  %v1234_v13 = vmax.f32 %v985_v9, 0.0 }
 0x141   : > { %v704_v14 = vpop.f32.mrf.mxu0  ;;  %v2617_v15 = vpop.f32.mrf.mxu1 }
 0x142   : > { %2062 = vst.msk [vmem:[%s2976_s15 + $0x80] sm:$0xf] %vm2041_vm0, %v2443_v11  ;;  %v2462_v16 = vpack.c.bf16 %v1269_v12, %v1268_v10  ;;  %v2439_v17 = vpack.c.bf16 %v1234_v13, %v1234_v13  ;;  %v1243_v18 = vmax.f32 %v2617_v15, 0.0  ;;  %v1271_v21 = vmax.f32 %v704_v14, 0.0 }
 0x143   : > { %v706_v19 = vpop.f32.mrf.mxu0  ;;  %v988_v20 = vpop.f32.mrf.mxu1 }
 0x144   : > { %2081 = vst [vmem:[%s2976_s15 + $0xf0] sm:$0xff] %v2462_v16  ;;  %2058 = vst.msk [vmem:[%s2976_s15 + $0x68] sm:$0xf] %vm2041_vm0, %v2439_v17  ;;  %v2445_v22 = vpack.c.bf16 %v1243_v18, %v1243_v18  ;;  %v1272_v23 = vmax.f32 %v706_v19, 0.0  ;;  %v1237_v24 = vmax.f32 %v988_v20, 0.0 }
 0x145   : > { %v710_v25 = vpop.f32.mrf.mxu0  ;;  %v2620_v26 = vpop.f32.mrf.mxu1 }
 0x146   : > { %2064 = vst.msk [vmem:[%s2976_s15 + $0x8c] sm:$0xf] %vm2041_vm0, %v2445_v22  ;;  %v2464_v27 = vpack.c.bf16 %v1272_v23, %v1271_v21  ;;  %v2441_v28 = vpack.c.bf16 %v1237_v24, %v1237_v24  ;;  %v1252_v29 = vmax.f32 %v2620_v26, 0.0  ;;  %v1274_v32 = vmax.f32 %v710_v25, 0.0 }
 0x147   : > { %v712_v30 = vpop.f32.mrf.mxu0  ;;  %v1001_v31 = vpop.f32.mrf.mxu1 }
 0x148   : > { %2083 = vst [vmem:[%s2976_s15 + $0xfc] sm:$0xff] %v2464_v27  ;;  %2060 = vst.msk [vmem:[%s2976_s15 + $0x74] sm:$0xf] %vm2041_vm0, %v2441_v28  ;;  %v2451_v33 = vpack.c.bf16 %v1252_v29, %v1252_v29  ;;  %v1275_v34 = vmax.f32 %v712_v30, 0.0  ;;  %v1246_v35 = vmax.f32 %v1001_v31, 0.0 }
 0x149   : > { %v714_v36 = vpop.f32.mrf.mxu0  ;;  %v2621_v37 = vpop.f32.mrf.mxu1 }
 0x14a   : > { %2070 = vst.msk [vmem:[%s2976_s15 + $0xb0] sm:$0xf] %vm2041_vm0, %v2451_v33  ;;  %v2466_v38 = vpack.c.bf16 %v1275_v34, %v1274_v32  ;;  %v2447_v39 = vpack.c.bf16 %v1246_v35, %v1246_v35  ;;  %v1255_v40 = vmax.f32 %v2621_v37, 0.0  ;;  %v1277_v43 = vmax.f32 %v714_v36, 0.0 }
 0x14b   : > { %v716_v41 = vpop.f32.mrf.mxu0  ;;  %v1004_v42 = vpop.f32.mrf.mxu1 }
 0x14c   : > { %2085 = vst [vmem:[%s2976_s15 + $0x108] sm:$0xff] %v2466_v38  ;;  %2066 = vst.msk [vmem:[%s2976_s15 + $0x98] sm:$0xf] %vm2041_vm0, %v2447_v39  ;;  %v2453_v44 = vpack.c.bf16 %v1255_v40, %v1255_v40  ;;  %v1278_v45 = vmax.f32 %v716_v41, 0.0  ;;  %v1249_v46 = vmax.f32 %v1004_v42, 0.0 }
 0x14d   : > { %v720_v47 = vpop.f32.mrf.mxu0  ;;  %v2624_v48 = vpop.f32.mrf.mxu1 }
 0x14e   : > { %2072 = vst.msk [vmem:[%s2976_s15 + $0xbc] sm:$0xf] %vm2041_vm0, %v2453_v44  ;;  %v2468_v49 = vpack.c.bf16 %v1278_v45, %v1277_v43  ;;  %v2449_v50 = vpack.c.bf16 %v1249_v46, %v1249_v46  ;;  %v1264_v51 = vmax.f32 %v2624_v48, 0.0  ;;  %v1280_v54 = vmax.f32 %v720_v47, 0.0 }
 0x14f   : > { %v722_v52 = vpop.f32.mrf.mxu0  ;;  %v1017_v53 = vpop.f32.mrf.mxu1 }
 0x150   : > { %2087 = vst [vmem:[%s2976_s15 + $0x114] sm:$0xff] %v2468_v49  ;;  %2068 = vst.msk [vmem:[%s2976_s15 + $0xa4] sm:$0xf] %vm2041_vm0, %v2449_v50  ;;  %v2459_v55 = vpack.c.bf16 %v1264_v51, %v1264_v51  ;;  %v1281_v56 = vmax.f32 %v722_v52, 0.0  ;;  %v1258_v57 = vmax.f32 %v1017_v53, 0.0 }
 0x151   : > { %v724_v58 = vpop.f32.mrf.mxu0  ;;  %v2625_v59 = vpop.f32.mrf.mxu1 }
 0x152   : > { %2078 = vst.msk [vmem:[%s2976_s15 + $0xe0] sm:$0xf] %vm2041_vm0, %v2459_v55  ;;  %v2470_v60 = vpack.c.bf16 %v1281_v56, %v1280_v54  ;;  %v2455_v61 = vpack.c.bf16 %v1258_v57, %v1258_v57  ;;  %v1267_v62 = vmax.f32 %v2625_v59, 0.0  ;;  %v1283_v1 = vmax.f32 %v724_v58, 0.0 }
 0x153   : > { %v726_v63 = vpop.f32.mrf.mxu0  ;;  %v1020_v0 = vpop.f32.mrf.mxu1 }
 0x154   : > { %2089 = vst [vmem:[%s2976_s15 + $0x120] sm:$0xff] %v2470_v60  ;;  %2074 = vst.msk [vmem:[%s2976_s15 + $0xc8] sm:$0xf] %vm2041_vm0, %v2455_v61  ;;  %v2461_v2 = vpack.c.bf16 %v1267_v62, %v1267_v62  ;;  %v1284_v3 = vmax.f32 %v726_v63, 0.0  ;;  %v1261_v4 = vmax.f32 %v1020_v0, 0.0 }
 0x155   : > { %v730_v5 = vpop.f32.mrf.mxu0  ;;  %v2628_v6 = vpop.f32.mrf.mxu1 }
 0x156   : > { %2080 = vst.msk [vmem:[%s2976_s15 + $0xec] sm:$0xf] %vm2041_vm0, %v2461_v2  ;;  %v2472_v7 = vpack.c.bf16 %v1284_v3, %v1283_v1  ;;  %v2457_v8 = vpack.c.bf16 %v1261_v4, %v1261_v4  ;;  %v1276_v9 = vmax.f32 %v2628_v6, 0.0  ;;  %v1286_v12 = vmax.f32 %v730_v5, 0.0 }
 0x157   : > { %v732_v10 = vpop.f32.mrf.mxu0  ;;  %v1033_v11 = vpop.f32.mrf.mxu1 }
 0x158   : > { %2091 = vst [vmem:[%s2976_s15 + $0x12c] sm:$0xff] %v2472_v7  ;;  %2076 = vst.msk [vmem:[%s2976_s15 + $0xd4] sm:$0xf] %vm2041_vm0, %v2457_v8  ;;  %v2467_v13 = vpack.c.bf16 %v1276_v9, %v1276_v9  ;;  %v1287_v14 = vmax.f32 %v732_v10, 0.0  ;;  %v1270_v15 = vmax.f32 %v1033_v11, 0.0 }
 0x159   : > { %v734_v16 = vpop.f32.mrf.mxu0  ;;  %v2629_v17 = vpop.f32.mrf.mxu1 }
 0x15a   : > { %2086 = vst.msk [vmem:[%s2976_s15 + $0x110] sm:$0xf] %vm2041_vm0, %v2467_v13  ;;  %v2474_v18 = vpack.c.bf16 %v1287_v14, %v1286_v12  ;;  %v2463_v19 = vpack.c.bf16 %v1270_v15, %v1270_v15  ;;  %v1279_v20 = vmax.f32 %v2629_v17, 0.0  ;;  %v1289_v23 = vmax.f32 %v734_v16, 0.0 }
 0x15b   : > { %v736_v21 = vpop.f32.mrf.mxu0  ;;  %v1036_v22 = vpop.f32.mrf.mxu1 }
 0x15c   : > { %2093 = vst [vmem:[%s2976_s15 + $0x138] sm:$0xff] %v2474_v18  ;;  %2082 = vst.msk [vmem:[%s2976_s15 + $0xf8] sm:$0xf] %vm2041_vm0, %v2463_v19  ;;  %v2469_v24 = vpack.c.bf16 %v1279_v20, %v1279_v20  ;;  %v1290_v25 = vmax.f32 %v736_v21, 0.0  ;;  %v1273_v26 = vmax.f32 %v1036_v22, 0.0 }
 0x15d   : > { %v740_v27 = vpop.f32.mrf.mxu0  ;;  %v2632_v28 = vpop.f32.mrf.mxu1 }
 0x15e   : > { %2088 = vst.msk [vmem:[%s2976_s15 + $0x11c] sm:$0xf] %vm2041_vm0, %v2469_v24  ;;  %v2476_v29 = vpack.c.bf16 %v1290_v25, %v1289_v23  ;;  %v2465_v30 = vpack.c.bf16 %v1273_v26, %v1273_v26  ;;  %v1288_v31 = vmax.f32 %v2632_v28, 0.0  ;;  %v1292_v34 = vmax.f32 %v740_v27, 0.0 }
 0x15f   : > { %v742_v32 = vpop.f32.mrf.mxu0  ;;  %v1049_v33 = vpop.f32.mrf.mxu1 }
 0x160   : > { %2095 = vst [vmem:[%s2976_s15 + $0x144] sm:$0xff] %v2476_v29  ;;  %2084 = vst.msk [vmem:[%s2976_s15 + $0x104] sm:$0xf] %vm2041_vm0, %v2465_v30  ;;  %v2475_v35 = vpack.c.bf16 %v1288_v31, %v1288_v31  ;;  %v1293_v36 = vmax.f32 %v742_v32, 0.0  ;;  %v1282_v37 = vmax.f32 %v1049_v33, 0.0 }
 0x161   : > { %v744_v38 = vpop.f32.mrf.mxu0  ;;  %v2633_v39 = vpop.f32.mrf.mxu1 }
 0x162   : > { %2094 = vst.msk [vmem:[%s2976_s15 + $0x140] sm:$0xf] %vm2041_vm0, %v2475_v35  ;;  %v2478_v40 = vpack.c.bf16 %v1293_v36, %v1292_v34  ;;  %v2471_v41 = vpack.c.bf16 %v1282_v37, %v1282_v37  ;;  %v1291_v42 = vmax.f32 %v2633_v39, 0.0  ;;  %v1295_v45 = vmax.f32 %v744_v38, 0.0 }
 0x163   : > { %v746_v43 = vpop.f32.mrf.mxu0  ;;  %v1052_v44 = vpop.f32.mrf.mxu1 }
 0x164   : > { %2097 = vst [vmem:[%s2976_s15 + $0x150] sm:$0xff] %v2478_v40  ;;  %2090 = vst.msk [vmem:[%s2976_s15 + $0x128] sm:$0xf] %vm2041_vm0, %v2471_v41  ;;  %v2477_v46 = vpack.c.bf16 %v1291_v42, %v1291_v42  ;;  %v1296_v47 = vmax.f32 %v746_v43, 0.0  ;;  %v1285_v48 = vmax.f32 %v1052_v44, 0.0 }
 0x165   : > { %v750_v49 = vpop.f32.mrf.mxu0  ;;  %v2636_v50 = vpop.f32.mrf.mxu1 }
 0x166   : > { %2096 = vst.msk [vmem:[%s2976_s15 + $0x14c] sm:$0xf] %vm2041_vm0, %v2477_v46  ;;  %v2480_v51 = vpack.c.bf16 %v1296_v47, %v1295_v45  ;;  %v2473_v52 = vpack.c.bf16 %v1285_v48, %v1285_v48  ;;  %v1300_v53 = vmax.f32 %v2636_v50, 0.0  ;;  %v1298_v56 = vmax.f32 %v750_v49, 0.0 }
 0x167   : > { %v752_v54 = vpop.f32.mrf.mxu0  ;;  %v1065_v55 = vpop.f32.mrf.mxu1 }
 0x168   : > { %2099 = vst [vmem:[%s2976_s15 + $0x15c] sm:$0xff] %v2480_v51  ;;  %2092 = vst.msk [vmem:[%s2976_s15 + $0x134] sm:$0xf] %vm2041_vm0, %v2473_v52  ;;  %v2483_v57 = vpack.c.bf16 %v1300_v53, %v1300_v53  ;;  %v1299_v58 = vmax.f32 %v752_v54, 0.0  ;;  %v1294_v59 = vmax.f32 %v1065_v55, 0.0 }
 0x169   : > { %v754_v60 = vpop.f32.mrf.mxu0  ;;  %v2637_v61 = vpop.f32.mrf.mxu1 }
 0x16a   : > { %2102 = vst.msk [vmem:[%s2976_s15 + $0x170] sm:$0xf] %vm2041_vm0, %v2483_v57  ;;  %v2482_v62 = vpack.c.bf16 %v1299_v58, %v1298_v56  ;;  %v2479_v63 = vpack.c.bf16 %v1294_v59, %v1294_v59  ;;  %v1303_v0 = vmax.f32 %v2637_v61, 0.0  ;;  %v1301_v3 = vmax.f32 %v754_v60, 0.0 }
 0x16b   : > { %v756_v1 = vpop.f32.mrf.mxu0  ;;  %v1068_v2 = vpop.f32.mrf.mxu1 }
 0x16c   : > { %2101 = vst [vmem:[%s2976_s15 + $0x168] sm:$0xff] %v2482_v62  ;;  %2098 = vst.msk [vmem:[%s2976_s15 + $0x158] sm:$0xf] %vm2041_vm0, %v2479_v63  ;;  %v2485_v4 = vpack.c.bf16 %v1303_v0, %v1303_v0  ;;  %v1302_v5 = vmax.f32 %v756_v1, 0.0  ;;  %v1297_v6 = vmax.f32 %v1068_v2, 0.0 }
 0x16d   : > { %v760_v7 = vpop.f32.mrf.mxu0  ;;  %v2640_v8 = vpop.f32.mrf.mxu1 }
 0x16e   : > { %2104 = vst.msk [vmem:[%s2976_s15 + $0x17c] sm:$0xf] %vm2041_vm0, %v2485_v4  ;;  %v2484_v9 = vpack.c.bf16 %v1302_v5, %v1301_v3  ;;  %v2481_v10 = vpack.c.bf16 %v1297_v6, %v1297_v6  ;;  %v1312_v11 = vmax.f32 %v2640_v8, 0.0  ;;  %v1304_v14 = vmax.f32 %v760_v7, 0.0 }
 0x16f   : > { %v762_v12 = vpop.f32.mrf.mxu0  ;;  %v1081_v13 = vpop.f32.mrf.mxu1 }
 0x170   : > { %2103 = vst [vmem:[%s2976_s15 + $0x174] sm:$0xff] %v2484_v9  ;;  %2100 = vst.msk [vmem:[%s2976_s15 + $0x164] sm:$0xf] %vm2041_vm0, %v2481_v10  ;;  %v2491_v15 = vpack.c.bf16 %v1312_v11, %v1312_v11  ;;  %v1305_v16 = vmax.f32 %v762_v12, 0.0  ;;  %v1306_v17 = vmax.f32 %v1081_v13, 0.0 }
 0x171   : > { %v764_v18 = vpop.f32.mrf.mxu0  ;;  %v2641_v19 = vpop.f32.mrf.mxu1 }
 0x172   : > { %2110 = vst.msk [vmem:[%s2976_s15 + $0x1a0] sm:$0xf] %vm2041_vm0, %v2491_v15  ;;  %v2486_v20 = vpack.c.bf16 %v1305_v16, %v1304_v14  ;;  %v2487_v21 = vpack.c.bf16 %v1306_v17, %v1306_v17  ;;  %v1315_v22 = vmax.f32 %v2641_v19, 0.0  ;;  %v1307_v25 = vmax.f32 %v764_v18, 0.0 }
 0x173   : > { %v766_v23 = vpop.f32.mrf.mxu0  ;;  %v1084_v24 = vpop.f32.mrf.mxu1 }
 0x174   : > { %2105 = vst [vmem:[%s2976_s15 + $0x180] sm:$0xff] %v2486_v20  ;;  %2106 = vst.msk [vmem:[%s2976_s15 + $0x188] sm:$0xf] %vm2041_vm0, %v2487_v21  ;;  %v2493_v26 = vpack.c.bf16 %v1315_v22, %v1315_v22  ;;  %v1308_v27 = vmax.f32 %v766_v23, 0.0  ;;  %v1309_v28 = vmax.f32 %v1084_v24, 0.0 }
 0x175   : > { %v770_v29 = vpop.f32.mrf.mxu0  ;;  %v2644_v30 = vpop.f32.mrf.mxu1 }
 0x176   : > { %2112 = vst.msk [vmem:[%s2976_s15 + $0x1ac] sm:$0xf] %vm2041_vm0, %v2493_v26  ;;  %v2488_v31 = vpack.c.bf16 %v1308_v27, %v1307_v25  ;;  %v2489_v32 = vpack.c.bf16 %v1309_v28, %v1309_v28  ;;  %v1324_v33 = vmax.f32 %v2644_v30, 0.0  ;;  %v1310_v36 = vmax.f32 %v770_v29, 0.0 }
 0x177   : > { %v772_v34 = vpop.f32.mrf.mxu0  ;;  %v1097_v35 = vpop.f32.mrf.mxu1 }
 0x178   : > { %2107 = vst [vmem:[%s2976_s15 + $0x18c] sm:$0xff] %v2488_v31  ;;  %2108 = vst.msk [vmem:[%s2976_s15 + $0x194] sm:$0xf] %vm2041_vm0, %v2489_v32  ;;  %v2499_v37 = vpack.c.bf16 %v1324_v33, %v1324_v33  ;;  %v1311_v38 = vmax.f32 %v772_v34, 0.0  ;;  %v1318_v39 = vmax.f32 %v1097_v35, 0.0 }
 0x179   : > { %v774_v40 = vpop.f32.mrf.mxu0  ;;  %v2645_v41 = vpop.f32.mrf.mxu1 }
 0x17a   : > { %2118 = vst.msk [vmem:[%s2976_s15 + $0x1d0] sm:$0xf] %vm2041_vm0, %v2499_v37  ;;  %v2490_v42 = vpack.c.bf16 %v1311_v38, %v1310_v36  ;;  %v2495_v43 = vpack.c.bf16 %v1318_v39, %v1318_v39  ;;  %v1327_v44 = vmax.f32 %v2645_v41, 0.0  ;;  %v1313_v47 = vmax.f32 %v774_v40, 0.0 }
 0x17b   : > { %v776_v45 = vpop.f32.mrf.mxu0  ;;  %v1100_v46 = vpop.f32.mrf.mxu1 }
 0x17c   : > { %2109 = vst [vmem:[%s2976_s15 + $0x198] sm:$0xff] %v2490_v42  ;;  %2114 = vst.msk [vmem:[%s2976_s15 + $0x1b8] sm:$0xf] %vm2041_vm0, %v2495_v43  ;;  %v2501_v48 = vpack.c.bf16 %v1327_v44, %v1327_v44  ;;  %v1314_v49 = vmax.f32 %v776_v45, 0.0  ;;  %v1321_v50 = vmax.f32 %v1100_v46, 0.0 }
 0x17d   : > { %v780_v51 = vpop.f32.mrf.mxu0  ;;  %v2648_v52 = vpop.f32.mrf.mxu1 }
 0x17e   : > { %2120 = vst.msk [vmem:[%s2976_s15 + $0x1dc] sm:$0xf] %vm2041_vm0, %v2501_v48  ;;  %v2492_v53 = vpack.c.bf16 %v1314_v49, %v1313_v47  ;;  %v2497_v54 = vpack.c.bf16 %v1321_v50, %v1321_v50  ;;  %v1336_v55 = vmax.f32 %v2648_v52, 0.0  ;;  %v1316_v58 = vmax.f32 %v780_v51, 0.0 }
 0x17f   : > { %v782_v56 = vpop.f32.mrf.mxu0  ;;  %v1113_v57 = vpop.f32.mrf.mxu1 }
 0x180   : > { %2111 = vst [vmem:[%s2976_s15 + $0x1a4] sm:$0xff] %v2492_v53  ;;  %2116 = vst.msk [vmem:[%s2976_s15 + $0x1c4] sm:$0xf] %vm2041_vm0, %v2497_v54  ;;  %v2507_v59 = vpack.c.bf16 %v1336_v55, %v1336_v55  ;;  %v1317_v60 = vmax.f32 %v782_v56, 0.0  ;;  %v1330_v61 = vmax.f32 %v1113_v57, 0.0 }
 0x181   : > { %v784_v62 = vpop.f32.mrf.mxu0  ;;  %v2649_v63 = vpop.f32.mrf.mxu1 }
 0x182   : > { %2126 = vst.msk [vmem:[%s2976_s15 + $0x200] sm:$0xf] %vm2041_vm0, %v2507_v59  ;;  %v2494_v0 = vpack.c.bf16 %v1317_v60, %v1316_v58  ;;  %v2503_v1 = vpack.c.bf16 %v1330_v61, %v1330_v61  ;;  %v1339_v2 = vmax.f32 %v2649_v63, 0.0  ;;  %v1319_v5 = vmax.f32 %v784_v62, 0.0 }
 0x183   : > { %v786_v3 = vpop.f32.mrf.mxu0  ;;  %v1116_v4 = vpop.f32.mrf.mxu1 }
 0x184   : > { %2113 = vst [vmem:[%s2976_s15 + $0x1b0] sm:$0xff] %v2494_v0  ;;  %2122 = vst.msk [vmem:[%s2976_s15 + $0x1e8] sm:$0xf] %vm2041_vm0, %v2503_v1  ;;  %v2509_v6 = vpack.c.bf16 %v1339_v2, %v1339_v2  ;;  %v1320_v7 = vmax.f32 %v786_v3, 0.0  ;;  %v1333_v8 = vmax.f32 %v1116_v4, 0.0 }
 0x185   : > { %v790_v9 = vpop.f32.mrf.mxu0  ;;  %v2652_v10 = vpop.f32.mrf.mxu1 }
 0x186   : > { %2128 = vst.msk [vmem:[%s2976_s15 + $0x20c] sm:$0xf] %vm2041_vm0, %v2509_v6  ;;  %v2496_v11 = vpack.c.bf16 %v1320_v7, %v1319_v5  ;;  %v2505_v12 = vpack.c.bf16 %v1333_v8, %v1333_v8  ;;  %v1348_v13 = vmax.f32 %v2652_v10, 0.0  ;;  %v1322_v16 = vmax.f32 %v790_v9, 0.0 }
 0x187   : > { %v792_v14 = vpop.f32.mrf.mxu0  ;;  %v1129_v15 = vpop.f32.mrf.mxu1 }
 0x188   : > { %2115 = vst [vmem:[%s2976_s15 + $0x1bc] sm:$0xff] %v2496_v11  ;;  %2124 = vst.msk [vmem:[%s2976_s15 + $0x1f4] sm:$0xf] %vm2041_vm0, %v2505_v12  ;;  %v2515_v17 = vpack.c.bf16 %v1348_v13, %v1348_v13  ;;  %v1323_v18 = vmax.f32 %v792_v14, 0.0  ;;  %v1342_v19 = vmax.f32 %v1129_v15, 0.0 }
 0x189   : > { %v794_v20 = vpop.f32.mrf.mxu0  ;;  %v2653_v21 = vpop.f32.mrf.mxu1 }
 0x18a   : > { %2134 = vst.msk [vmem:[%s2976_s15 + $0x230] sm:$0xf] %vm2041_vm0, %v2515_v17  ;;  %v2498_v22 = vpack.c.bf16 %v1323_v18, %v1322_v16  ;;  %v2511_v23 = vpack.c.bf16 %v1342_v19, %v1342_v19  ;;  %v1351_v24 = vmax.f32 %v2653_v21, 0.0  ;;  %v1325_v27 = vmax.f32 %v794_v20, 0.0 }
 0x18b   : > { %v796_v25 = vpop.f32.mrf.mxu0  ;;  %v1132_v26 = vpop.f32.mrf.mxu1 }
 0x18c   : > { %2117 = vst [vmem:[%s2976_s15 + $0x1c8] sm:$0xff] %v2498_v22  ;;  %2130 = vst.msk [vmem:[%s2976_s15 + $0x218] sm:$0xf] %vm2041_vm0, %v2511_v23  ;;  %v2517_v28 = vpack.c.bf16 %v1351_v24, %v1351_v24  ;;  %v1326_v29 = vmax.f32 %v796_v25, 0.0  ;;  %v1345_v30 = vmax.f32 %v1132_v26, 0.0 }
 0x18d   : > { %v800_v31 = vpop.f32.mrf.mxu0  ;;  %v2656_v32 = vpop.f32.mrf.mxu1 }
 0x18e   : > { %2136 = vst.msk [vmem:[%s2976_s15 + $0x23c] sm:$0xf] %vm2041_vm0, %v2517_v28  ;;  %v2500_v33 = vpack.c.bf16 %v1326_v29, %v1325_v27  ;;  %v2513_v34 = vpack.c.bf16 %v1345_v30, %v1345_v30  ;;  %v1360_v35 = vmax.f32 %v2656_v32, 0.0  ;;  %v1328_v38 = vmax.f32 %v800_v31, 0.0 }
 0x18f   : > { %v802_v36 = vpop.f32.mrf.mxu0  ;;  %v1145_v37 = vpop.f32.mrf.mxu1 }
 0x190   : > { %2119 = vst [vmem:[%s2976_s15 + $0x1d4] sm:$0xff] %v2500_v33  ;;  %2132 = vst.msk [vmem:[%s2976_s15 + $0x224] sm:$0xf] %vm2041_vm0, %v2513_v34  ;;  %v2523_v39 = vpack.c.bf16 %v1360_v35, %v1360_v35  ;;  %v1329_v40 = vmax.f32 %v802_v36, 0.0  ;;  %v1354_v41 = vmax.f32 %v1145_v37, 0.0 }
 0x191   : > { %v804_v42 = vpop.f32.mrf.mxu0  ;;  %v2657_v43 = vpop.f32.mrf.mxu1 }
 0x192   : > { %2142 = vst.msk [vmem:[%s2976_s15 + $0x260] sm:$0xf] %vm2041_vm0, %v2523_v39  ;;  %v2502_v44 = vpack.c.bf16 %v1329_v40, %v1328_v38  ;;  %v2519_v45 = vpack.c.bf16 %v1354_v41, %v1354_v41  ;;  %v1363_v46 = vmax.f32 %v2657_v43, 0.0  ;;  %v1331_v49 = vmax.f32 %v804_v42, 0.0 }
 0x193   : > { %v806_v47 = vpop.f32.mrf.mxu0  ;;  %v1148_v48 = vpop.f32.mrf.mxu1 }
 0x194   : > { %2121 = vst [vmem:[%s2976_s15 + $0x1e0] sm:$0xff] %v2502_v44  ;;  %2138 = vst.msk [vmem:[%s2976_s15 + $0x248] sm:$0xf] %vm2041_vm0, %v2519_v45  ;;  %v2525_v50 = vpack.c.bf16 %v1363_v46, %v1363_v46  ;;  %v1332_v51 = vmax.f32 %v806_v47, 0.0  ;;  %v1357_v52 = vmax.f32 %v1148_v48, 0.0 }
 0x195   : > { %v810_v53 = vpop.f32.mrf.mxu0  ;;  %v2660_v54 = vpop.f32.mrf.mxu1 }
 0x196   : > { %2144 = vst.msk [vmem:[%s2976_s15 + $0x26c] sm:$0xf] %vm2041_vm0, %v2525_v50  ;;  %v2504_v55 = vpack.c.bf16 %v1332_v51, %v1331_v49  ;;  %v2521_v56 = vpack.c.bf16 %v1357_v52, %v1357_v52  ;;  %v1372_v57 = vmax.f32 %v2660_v54, 0.0  ;;  %v1334_v60 = vmax.f32 %v810_v53, 0.0 }
 0x197   : > { %v812_v58 = vpop.f32.mrf.mxu0  ;;  %v1161_v59 = vpop.f32.mrf.mxu1 }
 0x198   : > { %2123 = vst [vmem:[%s2976_s15 + $0x1ec] sm:$0xff] %v2504_v55  ;;  %2140 = vst.msk [vmem:[%s2976_s15 + $0x254] sm:$0xf] %vm2041_vm0, %v2521_v56  ;;  %v2531_v61 = vpack.c.bf16 %v1372_v57, %v1372_v57  ;;  %v1335_v62 = vmax.f32 %v812_v58, 0.0  ;;  %v1366_v63 = vmax.f32 %v1161_v59, 0.0 }
 0x199   : > { %v814_v0 = vpop.f32.mrf.mxu0  ;;  %v2661_v1 = vpop.f32.mrf.mxu1 }
 0x19a   : > { %2150 = vst.msk [vmem:[%s2976_s15 + $0x290] sm:$0xf] %vm2041_vm0, %v2531_v61  ;;  %v2506_v2 = vpack.c.bf16 %v1335_v62, %v1334_v60  ;;  %v2527_v3 = vpack.c.bf16 %v1366_v63, %v1366_v63  ;;  %v1375_v4 = vmax.f32 %v2661_v1, 0.0  ;;  %v1337_v7 = vmax.f32 %v814_v0, 0.0 }
 0x19b   : > { %v816_v5 = vpop.f32.mrf.mxu0  ;;  %v1164_v6 = vpop.f32.mrf.mxu1 }
 0x19c   : > { %2125 = vst [vmem:[%s2976_s15 + $0x1f8] sm:$0xff] %v2506_v2  ;;  %2146 = vst.msk [vmem:[%s2976_s15 + $0x278] sm:$0xf] %vm2041_vm0, %v2527_v3  ;;  %v2533_v8 = vpack.c.bf16 %v1375_v4, %v1375_v4  ;;  %v1338_v9 = vmax.f32 %v816_v5, 0.0  ;;  %v1369_v10 = vmax.f32 %v1164_v6, 0.0 }
 0x19d   : > { %v820_v11 = vpop.f32.mrf.mxu0  ;;  %v2664_v12 = vpop.f32.mrf.mxu1 }
 0x19e   : > { %2152 = vst.msk [vmem:[%s2976_s15 + $0x29c] sm:$0xf] %vm2041_vm0, %v2533_v8  ;;  %v2508_v13 = vpack.c.bf16 %v1338_v9, %v1337_v7  ;;  %v2529_v14 = vpack.c.bf16 %v1369_v10, %v1369_v10  ;;  %v1384_v15 = vmax.f32 %v2664_v12, 0.0  ;;  %v1340_v18 = vmax.f32 %v820_v11, 0.0 }
 0x19f   : > { %v822_v16 = vpop.f32.mrf.mxu0  ;;  %v1177_v17 = vpop.f32.mrf.mxu1 }
 0x1a0   : > { %2127 = vst [vmem:[%s2976_s15 + $0x204] sm:$0xff] %v2508_v13  ;;  %2148 = vst.msk [vmem:[%s2976_s15 + $0x284] sm:$0xf] %vm2041_vm0, %v2529_v14  ;;  %v2539_v19 = vpack.c.bf16 %v1384_v15, %v1384_v15  ;;  %v1341_v20 = vmax.f32 %v822_v16, 0.0  ;;  %v1378_v21 = vmax.f32 %v1177_v17, 0.0 }
 0x1a1   : > { %v824_v22 = vpop.f32.mrf.mxu0  ;;  %v2665_v23 = vpop.f32.mrf.mxu1 }
 0x1a2   : > { %2158 = vst.msk [vmem:[%s2976_s15 + $0x2c0] sm:$0xf] %vm2041_vm0, %v2539_v19  ;;  %v2510_v24 = vpack.c.bf16 %v1341_v20, %v1340_v18  ;;  %v2535_v25 = vpack.c.bf16 %v1378_v21, %v1378_v21  ;;  %v1387_v26 = vmax.f32 %v2665_v23, 0.0  ;;  %v1343_v29 = vmax.f32 %v824_v22, 0.0 }
 0x1a3   : > { %v826_v27 = vpop.f32.mrf.mxu0  ;;  %v1180_v28 = vpop.f32.mrf.mxu1 }
 0x1a4   : > { %2129 = vst [vmem:[%s2976_s15 + $0x210] sm:$0xff] %v2510_v24  ;;  %2154 = vst.msk [vmem:[%s2976_s15 + $0x2a8] sm:$0xf] %vm2041_vm0, %v2535_v25  ;;  %v2541_v30 = vpack.c.bf16 %v1387_v26, %v1387_v26  ;;  %v1344_v31 = vmax.f32 %v826_v27, 0.0  ;;  %v1381_v32 = vmax.f32 %v1180_v28, 0.0 }
 0x1a5   : > { %v830_v33 = vpop.f32.mrf.mxu0  ;;  %v2668_v34 = vpop.f32.mrf.mxu1 }
 0x1a6   : > { %2160 = vst.msk [vmem:[%s2976_s15 + $0x2cc] sm:$0xf] %vm2041_vm0, %v2541_v30  ;;  %v2512_v35 = vpack.c.bf16 %v1344_v31, %v1343_v29  ;;  %v2537_v36 = vpack.c.bf16 %v1381_v32, %v1381_v32  ;;  %v1396_v37 = vmax.f32 %v2668_v34, 0.0  ;;  %v1346_v40 = vmax.f32 %v830_v33, 0.0 }
 0x1a7   : > { %v832_v38 = vpop.f32.mrf.mxu0  ;;  %v1193_v39 = vpop.f32.mrf.mxu1 }
 0x1a8   : > { %2131 = vst [vmem:[%s2976_s15 + $0x21c] sm:$0xff] %v2512_v35  ;;  %2156 = vst.msk [vmem:[%s2976_s15 + $0x2b4] sm:$0xf] %vm2041_vm0, %v2537_v36  ;;  %v2547_v41 = vpack.c.bf16 %v1396_v37, %v1396_v37  ;;  %v1347_v42 = vmax.f32 %v832_v38, 0.0  ;;  %v1390_v43 = vmax.f32 %v1193_v39, 0.0 }
 0x1a9   : > { %v834_v44 = vpop.f32.mrf.mxu0  ;;  %v2669_v45 = vpop.f32.mrf.mxu1 }
 0x1aa   : > { %2166 = vst.msk [vmem:[%s2976_s15 + $0x2f0] sm:$0xf] %vm2041_vm0, %v2547_v41  ;;  %v2514_v46 = vpack.c.bf16 %v1347_v42, %v1346_v40  ;;  %v2543_v47 = vpack.c.bf16 %v1390_v43, %v1390_v43  ;;  %v1399_v48 = vmax.f32 %v2669_v45, 0.0  ;;  %v1349_v51 = vmax.f32 %v834_v44, 0.0 }
 0x1ab   : > { %v836_v49 = vpop.f32.mrf.mxu0  ;;  %v1196_v50 = vpop.f32.mrf.mxu1 }
 0x1ac   : > { %2133 = vst [vmem:[%s2976_s15 + $0x228] sm:$0xff] %v2514_v46  ;;  %2162 = vst.msk [vmem:[%s2976_s15 + $0x2d8] sm:$0xf] %vm2041_vm0, %v2543_v47  ;;  %v2549_v52 = vpack.c.bf16 %v1399_v48, %v1399_v48  ;;  %v1350_v53 = vmax.f32 %v836_v49, 0.0  ;;  %v1393_v54 = vmax.f32 %v1196_v50, 0.0 }
 0x1ae   : > { %2168 = vst.msk [vmem:[%s2976_s15 + $0x2fc] sm:$0xf] %vm2041_vm0, %v2549_v52  ;;  %v2516_v55 = vpack.c.bf16 %v1350_v53, %v1349_v51  ;;  %v2545_v56 = vpack.c.bf16 %v1393_v54, %v1393_v54 }
 0x1b0   : > { %2135 = vst [vmem:[%s2976_s15 + $0x234] sm:$0xff] %v2516_v55  ;;  %2164 = vst.msk [vmem:[%s2976_s15 + $0x2e4] sm:$0xf] %vm2041_vm0, %v2545_v56 }
 0x1b1 PF: > { %s12_s9 = sadd.s32 1, %s2766_s9  }
 0x1b2   : > { %p9_p4 = scmp.ge.s32.totalorder %s12_s9, 5  }
 0x1b4   :  { %11 = sbr.rel (!%p9_p4) target bundleno = 1 (0x1), region = 58 }

// kernel: vae_forward.15
= control target key start
LH: loop header
LB: loop body
LE: loop exit
PB: predicated region body
PF: predicated region fallthrough
CT: control target
= control target key end

     0   :  { %s9628_s9 = smov 0   ;;  %s11430_s0 = inlined_call_operand.vmem [shape: bf16[18592,256], index: 0, kind: input, shape index: {}]   ;;  %s11431_s1 = inlined_call_operand.vmem [shape: bf16[8,256,3], index: 1, kind: input, shape index: {}]   ;;  %s11432_s2 = inlined_call_operand.vmem [shape: f32[17920,3], index: 2, kind: output, shape index: {}]  }
   0x1 LB: > { %s7482_s10 = sadd.s32 4294967295, %s9610_s9   ;;  %p7485_p0 = scmp.ge.s32.totalorder %s9610_s9, 1  ;;  %s9610_s9 = sphi %s9628_s9, %s12_s9  }
   0x2   : > { %p102_p1 = scmp.lt.s32.totalorder %s9610_s9, 36 }
   0x4   : > { %p103_p2 = pnand %p7485_p0, %p102_p1 }
   0x6   : > { %106 = sbr.rel (%p103_p2) target bundleno = 1327 (0x52f), region = 28 }
   0xb   : > { %v8452_v0 = vld [vmem:[%s11431_s1 + $0xb8] sm:$0xff]   ;;  %v11433_v1 = vmov 0   ;;  %v8454_v3 = vld [vmem:[%s11431_s1 + $0xb0] sm:$0xff]   ;;  %v8456_v5 = vld [vmem:[%s11431_s1 + $0xa8] sm:$0xff]   ;;  %s9681_s5 = sshll.u32 %s7482_s10, 9  ;;  %vm7357_vm0 = vcmask 23552  }
   0xc   : > { %747 = vmatprep.subr.bf16.mxu0 %v11433_v1  ;;  %1452 = vmatprep.subr.bf16.mxu1 %v11433_v1  ;;  %v8453_v2 = vld [vmem:[%s11431_s1 + $0x38] sm:$0xff]   ;;  %v8455_v4 = vld [vmem:[%s11431_s1 + $0x30] sm:$0xff]   ;;  %v8457_v6 = vld [vmem:[%s11431_s1 + $0x28] sm:$0xff]   ;;  %s228_s8 = sadd.s32 96, %s9681_s5  ;;  %s9721_s30 = scalar_lea.vmem %s11430_s0, %s9681_s5 }
   0xd   : > { %748 = vmatpush1.bf16.msra.mxu0 %v8452_v0  ;;  %1453 = vmatpush1.bf16.msra.mxu1 %v8453_v2  ;;  %v8458_v7 = vld [vmem:[%s11431_s1 + $0xa0] sm:$0xff]   ;;  %v8460_v9 = vld [vmem:[%s11431_s1 + $0x98] sm:$0xff]   ;;  %v8462_v11 = vld [vmem:[%s11431_s1 + $0x90] sm:$0xff]   ;;  %s229_s15 = sshra.s32 %s228_s8, 3  ;;  %s1741_s3 = sadd.s32 192, %s9681_s5 }
   0xe   : > { %749 = vmatprep.subr.bf16.mxu0 %v11433_v1  ;;  %1454 = vmatprep.subr.bf16.mxu1 %v11433_v1  ;;  %v8459_v8 = vld [vmem:[%s11431_s1 + $0x20] sm:$0xff]   ;;  %v8461_v10 = vld [vmem:[%s11431_s1 + $0x18] sm:$0xff]   ;;  %v8463_v12 = vld [vmem:[%s11431_s1 + $0x10] sm:$0xff]   ;;  %s8436_s20 = sshll.u32 %s229_s15, 3  ;;  %s2613_s4 = sadd.s32 288, %s9681_s5 }
   0xf   : > { %v8464_v13 = vld [vmem:[%s11431_s1 + $0x88] sm:$0xff]   ;;  %v8466_v15 = vld [vmem:[%s11431_s1 + $0x80] sm:$0xff]   ;;  %v8468_v17 = vld [vmem:[%s11431_s1 + $0xf8] sm:$0xff]   ;;  %s9711_s25 = scalar_lea.vmem %s11430_s0, %s8436_s20  ;;  %s1742_s6 = sshra.s32 %s1741_s3, 3 }
  0x10   : > { %v8465_v14 = vld [vmem:[%s11431_s1 + $0x8] sm:$0xff]   ;;  %v8467_v16 = vld [vmem:[%s11431_s1] sm:$0xff]   ;;  %v8469_v18 = vld [vmem:[%s11431_s1 + $0x78] sm:$0xff]   ;;  %s2614_s7 = sshra.s32 %s2613_s4, 3  ;;  %s8437_s8 = sshll.u32 %s1742_s6, 3 }
  0x11   : > { %750 = vmatpush1.bf16.msra.mxu0 %v8454_v3  ;;  %1455 = vmatpush1.bf16.msra.mxu1 %v8455_v4  ;;  %v8486_v19 = vld [vmem:[%s9711_s25 + $0x4] ss:$8 sps:$4 sm:$0xff]   ;;  %v8470_v20 = vld [vmem:[%s11431_s1 + $0xf0] sm:$0xff]   ;;  %v8476_v27 = vld [vmem:[%s11431_s1 + $0xd8] sm:$0xff]   ;;  %s8438_s11 = sshll.u32 %s2614_s7, 3  ;;  %s9984_s14 = scalar_lea.vmem %s11430_s0, %s8437_s8 }
  0x12   : > { %751 = vmatprep.subr.bf16.mxu0 %v11433_v1  ;;  %1456 = vmatprep.subr.bf16.mxu1 %v11433_v1  ;;  %v8489_v21 = vld [vmem:[%s9721_s30 + $0x4] ss:$8 sps:$4 sm:$0xff]   ;;  %v8471_v22 = vld [vmem:[%s11431_s1 + $0x70] sm:$0xff]   ;;  %v8477_v28 = vld [vmem:[%s11431_s1 + $0x58] sm:$0xff]   ;;  %s9990_s17 = scalar_lea.vmem %s11430_s0, %s8438_s11  ;;  %s3485_s11 = sadd.s32 384, %s9681_s5 }
  0x13   : > { %779 = vmatprep.mubr.bf16.mxu0 %v8486_v19  ;;  %1484 = vmatprep.mubr.bf16.mxu1 %v8489_v21  ;;  %v8472_v23 = vld [vmem:[%s11431_s1 + $0xe8] sm:$0xff]   ;;  %v8474_v25 = vld [vmem:[%s11431_s1 + $0xe0] sm:$0xff]   ;;  %v8478_v29 = vld [vmem:[%s11431_s1 + $0xd0] sm:$0xff]   ;;  %s4357_s12 = sadd.s32 480, %s9681_s5  ;;  %s3486_s13 = sshra.s32 %s3485_s11, 3 }
  0x14   : > { %v8473_v24 = vld [vmem:[%s11431_s1 + $0x68] sm:$0xff]   ;;  %v8475_v26 = vld [vmem:[%s11431_s1 + $0x60] sm:$0xff]   ;;  %v8479_v30 = vld [vmem:[%s11431_s1 + $0x50] sm:$0xff]   ;;  %s4358_s15 = sshra.s32 %s4357_s12, 3  ;;  %s8439_s16 = sshll.u32 %s3486_s13, 3 }
  0x15   : > { %752 = vmatpush1.bf16.msra.mxu0 %v8456_v5  ;;  %1457 = vmatpush1.bf16.msra.mxu1 %v8457_v6  ;;  %v8480_v31 = vld [vmem:[%s11431_s1 + $0xc8] sm:$0xff]   ;;  %v8482_v33 = vld [vmem:[%s11431_s1 + $0xc0] sm:$0xff]   ;;  %v8490_v37 = vld [vmem:[%s11431_s1 + $0x138] sm:$0xff]   ;;  %s10346_s19 = scalar_lea.vmem %s11430_s0, %s8439_s16 }
  0x16   : > { %753 = vmatprep.subr.bf16.mxu0 %v11433_v1  ;;  %1458 = vmatprep.subr.bf16.mxu1 %v11433_v1  ;;  %v8481_v32 = vld [vmem:[%s11431_s1 + $0x48] sm:$0xff]   ;;  %v8483_v34 = vld [vmem:[%s11431_s1 + $0x40] sm:$0xff]   ;;  %v8491_v38 = vld [vmem:[%s11431_s1 + $0x1b8] sm:$0xff]  }
  0x17   : > { %v8484_v35 = vld [vmem:[%s9711_s25] ss:$8 sps:$4 sm:$0xff]   ;;  %v8492_v39 = vld [vmem:[%s9711_s25 + $0x14] ss:$8 sps:$4 sm:$0xff]   ;;  %v8496_v43 = vld [vmem:[%s9711_s25 + $0x10] ss:$8 sps:$4 sm:$0xff]  }
  0x18   : > { %v8487_v36 = vld [vmem:[%s9721_s30] ss:$8 sps:$4 sm:$0xff]   ;;  %v8494_v40 = vld [vmem:[%s9721_s30 + $0x14] ss:$8 sps:$4 sm:$0xff]   ;;  %v8497_v44 = vld [vmem:[%s9721_s30 + $0x10] ss:$8 sps:$4 sm:$0xff]  }
  0x19   : > { %754 = vmatpush1.bf16.msra.mxu0 %v8458_v7  ;;  %1459 = vmatpush1.bf16.msra.mxu1 %v8459_v8  ;;  %v8504_v41 = vld [vmem:[%s11431_s1 + $0x130] sm:$0xff]   ;;  %v8498_v45 = vld [vmem:[%s9711_s25 + $0x24] ss:$8 sps:$4 sm:$0xff]   ;;  %v8502_v49 = vld [vmem:[%s9711_s25 + $0x20] ss:$8 sps:$4 sm:$0xff]  }
  0x1a   : > { %755 = vmatprep.subr.bf16.mxu0 %v11433_v1  ;;  %1460 = vmatprep.subr.bf16.mxu1 %v11433_v1  ;;  %v8505_v42 = vld [vmem:[%s11431_s1 + $0x1b0] sm:$0xff]   ;;  %v8500_v46 = vld [vmem:[%s9721_s30 + $0x24] ss:$8 sps:$4 sm:$0xff]   ;;  %v8503_v52 = vld [vmem:[%s9721_s30 + $0x20] ss:$8 sps:$4 sm:$0xff]  }
  0x1b   : > { %v8518_v47 = vld [vmem:[%s11431_s1 + $0x128] sm:$0xff]   ;;  %v8532_v50 = vld [vmem:[%s11431_s1 + $0x120] sm:$0xff]   ;;  %v8506_v53 = vld [vmem:[%s9711_s25 + $0x34] ss:$8 sps:$4 sm:$0xff]  }
  0x1c   : > { %v8519_v48 = vld [vmem:[%s11431_s1 + $0x1a8] sm:$0xff]   ;;  %v8533_v51 = vld [vmem:[%s11431_s1 + $0x1a0] sm:$0xff]   ;;  %v8508_v54 = vld [vmem:[%s9721_s30 + $0x34] ss:$8 sps:$4 sm:$0xff]  }
  0x1d   : > { %756 = vmatpush1.bf16.msra.mxu0 %v8460_v9  ;;  %1461 = vmatpush1.bf16.msra.mxu1 %v8461_v10  ;;  %v8546_v55 = vld [vmem:[%s11431_s1 + $0x118] sm:$0xff]   ;;  %v8560_v57 = vld [vmem:[%s11431_s1 + $0x110] sm:$0xff]   ;;  %v8512_v61 = vld [vmem:[%s9711_s25 + $0x44] ss:$8 sps:$4 sm:$0xff]  }
  0x1e   : > { %757 = vmatprep.subr.bf16.mxu0 %v11433_v1  ;;  %1462 = vmatprep.subr.bf16.mxu1 %v11433_v1  ;;  %v8547_v56 = vld [vmem:[%s11431_s1 + $0x198] sm:$0xff]   ;;  %v8561_v58 = vld [vmem:[%s11431_s1 + $0x190] sm:$0xff]   ;;  %v8514_v62 = vld [vmem:[%s9721_s30 + $0x44] ss:$8 sps:$4 sm:$0xff]  }
  0x1f   : > { %v8510_v59 = vld [vmem:[%s9711_s25 + $0x30] ss:$8 sps:$4 sm:$0xff]   ;;  %v8574_v63 = vld [vmem:[%s11431_s1 + $0x108] sm:$0xff]   ;;  %v8588_v3 = vld [vmem:[%s11431_s1 + $0x100] sm:$0xff]  }
  0x20   : > { %v8511_v60 = vld [vmem:[%s9721_s30 + $0x30] ss:$8 sps:$4 sm:$0xff]   ;;  %v8575_v0 = vld [vmem:[%s11431_s1 + $0x188] sm:$0xff]   ;;  %v8589_v5 = vld [vmem:[%s11431_s1 + $0x180] sm:$0xff]  }
  0x21   : > { %758 = vmatpush1.bf16.msra.mxu0 %v8462_v11  ;;  %1463 = vmatpush1.bf16.msra.mxu1 %v8463_v12  ;;  %v8516_v2 = vld [vmem:[%s9711_s25 + $0x40] ss:$8 sps:$4 sm:$0xff]   ;;  %v8520_v6 = vld [vmem:[%s9711_s25 + $0x54] ss:$8 sps:$4 sm:$0xff]   ;;  %v8524_v10 = vld [vmem:[%s9711_s25 + $0x50] ss:$8 sps:$4 sm:$0xff]  }
  0x22   : > { %759 = vmatprep.subr.bf16.mxu0 %v11433_v1  ;;  %1464 = vmatprep.subr.bf16.mxu1 %v11433_v1  ;;  %v8517_v4 = vld [vmem:[%s9721_s30 + $0x40] ss:$8 sps:$4 sm:$0xff]   ;;  %v8522_v7 = vld [vmem:[%s9721_s30 + $0x54] ss:$8 sps:$4 sm:$0xff]   ;;  %v8525_v11 = vld [vmem:[%s9721_s30 + $0x50] ss:$8 sps:$4 sm:$0xff]  }
  0x23   : > { %v8602_v8 = vld [vmem:[%s11431_s1 + $0x178] sm:$0xff]   ;;  %v8526_v12 = vld [vmem:[%s9711_s25 + $0x64] ss:$8 sps:$4 sm:$0xff]  }
  0x24   : > { %v8603_v9 = vld [vmem:[%s11431_s1 + $0x1f8] sm:$0xff]   ;;  %v8631_v19 = vld [vmem:[%s11431_s1 + $0x1e8] sm:$0xff]  }
  0x25   : > { %760 = vmatpush1.bf16.msra.mxu0 %v8464_v13  ;;  %1465 = vmatpush1.bf16.msra.mxu1 %v8465_v14  ;;  %v8616_v13 = vld [vmem:[%s11431_s1 + $0x170] sm:$0xff]  }
  0x26   : > { %761 = vmatprep.subr.bf16.mxu0 %v11433_v1  ;;  %1466 = vmatprep.subr.bf16.mxu1 %v11433_v1  ;;  %v8617_v14 = vld [vmem:[%s11431_s1 + $0x1f0] sm:$0xff]  }
  0x27   : > { %v8536_v21 = vld [vmem:[%s9721_s30 + $0x74] ss:$8 sps:$4 sm:$0xff]  }
  0x29   : > { %762 = vmatpush1.bf16.msra.mxu0 %v8466_v15  ;;  %1467 = vmatpush1.bf16.msra.mxu1 %v8467_v16  ;;  %v8528_v15 = vld [vmem:[%s9721_s30 + $0x64] ss:$8 sps:$4 sm:$0xff]   ;;  %v8530_v16 = vld [vmem:[%s9711_s25 + $0x60] ss:$8 sps:$4 sm:$0xff]  }
  0x2a   : > { %763 = vmatprep.subr.bf16.mxu0 %v11433_v1  ;;  %1468 = vmatprep.subr.bf16.mxu1 %v11433_v1 }
  0x2d   : > { %764 = vmatpush2.bf16.msra.mxu0 %v8468_v17  ;;  %1469 = vmatpush2.bf16.msra.mxu1 %v8469_v18  ;;  %v8531_v17 = vld [vmem:[%s9721_s30 + $0x60] ss:$8 sps:$4 sm:$0xff]  }
  0x2e   : > { %765 = vmatprep.subr.bf16.mxu0 %v11433_v1  ;;  %1470 = vmatprep.subr.bf16.mxu1 %v11433_v1  ;;  %v8630_v18 = vld [vmem:[%s11431_s1 + $0x168] sm:$0xff]  }
  0x31   : > { %766 = vmatpush2.bf16.msra.mxu0 %v8470_v20  ;;  %1471 = vmatpush2.bf16.msra.mxu1 %v8471_v22  ;;  %v8534_v20 = vld [vmem:[%s9711_s25 + $0x74] ss:$8 sps:$4 sm:$0xff]   ;;  %v8538_v22 = vld [vmem:[%s9711_s25 + $0x70] ss:$8 sps:$4 sm:$0xff]  }
  0x32   : > { %767 = vmatprep.subr.bf16.mxu0 %v11433_v1  ;;  %1472 = vmatprep.subr.bf16.mxu1 %v11433_v1 }
  0x35   : > { %768 = vmatpush2.bf16.msra.mxu0 %v8472_v23  ;;  %1473 = vmatpush2.bf16.msra.mxu1 %v8473_v24  ;;  %v8539_v23 = vld [vmem:[%s9721_s30 + $0x70] ss:$8 sps:$4 sm:$0xff]   ;;  %v8644_v24 = vld [vmem:[%s11431_s1 + $0x160] sm:$0xff]  }
  0x36   : > { %769 = vmatprep.subr.bf16.mxu0 %v11433_v1  ;;  %1474 = vmatprep.subr.bf16.mxu1 %v11433_v1 }
  0x39   : > { %770 = vmatpush2.bf16.msra.mxu0 %v8474_v25  ;;  %1475 = vmatpush2.bf16.msra.mxu1 %v8475_v26  ;;  %v8645_v25 = vld [vmem:[%s11431_s1 + $0x1e0] sm:$0xff]  }
  0x3a   : > { %771 = vmatprep.subr.bf16.mxu0 %v11433_v1  ;;  %1476 = vmatprep.subr.bf16.mxu1 %v11433_v1  ;;  %v8540_v26 = vld [vmem:[%s9711_s25 + $0x84] ss:$8 sps:$4 sm:$0xff]  }
  0x3d   : > { %772 = vmatpush2.bf16.msra.mxu0 %v8476_v27  ;;  %1477 = vmatpush2.bf16.msra.mxu1 %v8477_v28  ;;  %v8542_v27 = vld [vmem:[%s9721_s30 + $0x84] ss:$8 sps:$4 sm:$0xff]   ;;  %v8544_v28 = vld [vmem:[%s9711_s25 + $0x80] ss:$8 sps:$4 sm:$0xff]  }
  0x3e   : > { %773 = vmatprep.subr.bf16.mxu0 %v11433_v1  ;;  %1478 = vmatprep.subr.bf16.mxu1 %v11433_v1 }
  0x41   : > { %774 = vmatpush2.bf16.msra.mxu0 %v8478_v29  ;;  %1479 = vmatpush2.bf16.msra.mxu1 %v8479_v30  ;;  %v8545_v29 = vld [vmem:[%s9721_s30 + $0x80] ss:$8 sps:$4 sm:$0xff]   ;;  %v8548_v30 = vld [vmem:[%s9711_s25 + $0x94] ss:$8 sps:$4 sm:$0xff]  }
  0x42   : > { %775 = vmatprep.subr.bf16.mxu0 %v11433_v1  ;;  %1480 = vmatprep.subr.bf16.mxu1 %v11433_v1 }
  0x45   : > { %776 = vmatpush2.bf16.msra.mxu0 %v8480_v31  ;;  %1481 = vmatpush2.bf16.msra.mxu1 %v8481_v32  ;;  %v8550_v31 = vld [vmem:[%s9721_s30 + $0x94] ss:$8 sps:$4 sm:$0xff]   ;;  %v8552_v32 = vld [vmem:[%s9711_s25 + $0x90] ss:$8 sps:$4 sm:$0xff]  }
  0x46   : > { %777 = vmatprep.subr.bf16.mxu0 %v11433_v1  ;;  %1482 = vmatprep.subr.bf16.mxu1 %v11433_v1 }
  0x49   : > { %778 = vmatpush2.bf16.msra.mxu0 %v8482_v33  ;;  %1483 = vmatpush2.bf16.msra.mxu1 %v8483_v34  ;;  %v8658_v33 = vld [vmem:[%s11431_s1 + $0x158] sm:$0xff]  }
  0x4a   : > { %2260 = vmatprep.subr.bf16.mxu0 %v11433_v1  ;;  %3132 = vmatprep.subr.bf16.mxu1 %v11433_v1  ;;  %v8553_v34 = vld [vmem:[%s9721_s30 + $0x90] ss:$8 sps:$4 sm:$0xff]  }
  0x4c   : > { %780 = vmatmul.mubr.bf16.vlgmr.msra.gmra.mxu0 %v8484_v35  ;;  %1485 = vmatmul.mubr.bf16.vlgmr.msra.gmra.mxu1 %v8487_v36  ;;  %v8554_v35 = vld [vmem:[%s9711_s25 + $0xa4] ss:$8 sps:$4 sm:$0xff]   ;;  %v8659_v36 = vld [vmem:[%s11431_s1 + $0x1d8] sm:$0xff]  }
  0x4d   : > { %2261 = vmatpush1.bf16.msra.mxu0 %v8490_v37  ;;  %3133 = vmatpush1.bf16.msra.mxu1 %v8491_v38  ;;  %v8556_v37 = vld [vmem:[%s9721_s30 + $0xa4] ss:$8 sps:$4 sm:$0xff]   ;;  %v8558_v38 = vld [vmem:[%s9711_s25 + $0xa0] ss:$8 sps:$4 sm:$0xff]  }
  0x4e   : > { %787 = vmatprep.mubr.bf16.mxu0 %v8492_v39  ;;  %1492 = vmatprep.mubr.bf16.mxu1 %v8494_v40  ;;  %v8559_v39 = vld [vmem:[%s9721_s30 + $0xa0] ss:$8 sps:$4 sm:$0xff]   ;;  %v8562_v40 = vld [vmem:[%s9711_s25 + $0xb4] ss:$8 sps:$4 sm:$0xff]  }
  0x4f   : > { %2262 = vmatprep.subr.bf16.mxu0 %v11433_v1  ;;  %3134 = vmatprep.subr.bf16.mxu1 %v11433_v1 }
  0x51   : > { %2263 = vmatpush1.bf16.msra.mxu0 %v8504_v41  ;;  %3135 = vmatpush1.bf16.msra.mxu1 %v8505_v42  ;;  %v8564_v41 = vld [vmem:[%s9721_s30 + $0xb4] ss:$8 sps:$4 sm:$0xff]   ;;  %v8566_v42 = vld [vmem:[%s9711_s25 + $0xb0] ss:$8 sps:$4 sm:$0xff]  }
  0x52   : > { %2264 = vmatprep.subr.bf16.mxu0 %v11433_v1  ;;  %3136 = vmatprep.subr.bf16.mxu1 %v11433_v1 }
  0x54   : > { %788 = vmatmul.mubr.bf16.gmra.mxu0 %v8496_v43  ;;  %1493 = vmatmul.mubr.bf16.gmra.mxu1 %v8497_v44  ;;  %v8672_v43 = vld [vmem:[%s11431_s1 + $0x150] sm:$0xff]  }
  0x55   : > { %795 = vmatprep.mubr.bf16.mxu0 %v8498_v45  ;;  %1500 = vmatprep.mubr.bf16.mxu1 %v8500_v46  ;;  %v8567_v44 = vld [vmem:[%s9721_s30 + $0xb0] ss:$8 sps:$4 sm:$0xff]   ;;  %v8568_v45 = vld [vmem:[%s9711_s25 + $0xc4] ss:$8 sps:$4 sm:$0xff]  }
  0x56   : > { %2265 = vmatpush1.bf16.msra.mxu0 %v8518_v47  ;;  %3137 = vmatpush1.bf16.msra.mxu1 %v8519_v48  ;;  %v8673_v46 = vld [vmem:[%s11431_s1 + $0x1d0] sm:$0xff]   ;;  %v8570_v47 = vld [vmem:[%s9721_s30 + $0xc4] ss:$8 sps:$4 sm:$0xff]   ;;  %v8572_v48 = vld [vmem:[%s9711_s25 + $0xc0] ss:$8 sps:$4 sm:$0xff]  }
  0x57   : > { %2266 = vmatprep.subr.bf16.mxu0 %v11433_v1  ;;  %3138 = vmatprep.subr.bf16.mxu1 %v11433_v1 }
  0x5a   : > { %2267 = vmatpush1.bf16.msra.mxu0 %v8532_v50  ;;  %3139 = vmatpush1.bf16.msra.mxu1 %v8533_v51  ;;  %v8576_v50 = vld [vmem:[%s9711_s25 + $0xd4] ss:$8 sps:$4 sm:$0xff]  }
  0x5b   : > { %2268 = vmatprep.subr.bf16.mxu0 %v11433_v1  ;;  %3140 = vmatprep.subr.bf16.mxu1 %v11433_v1  ;;  %v8578_v51 = vld [vmem:[%s9721_s30 + $0xd4] ss:$8 sps:$4 sm:$0xff]  }
  0x5c   : > { %796 = vmatmul.mubr.bf16.gmra.mxu0 %v8502_v49  ;;  %1501 = vmatmul.mubr.bf16.gmra.mxu1 %v8503_v52  ;;  %v8573_v49 = vld [vmem:[%s9721_s30 + $0xc0] ss:$8 sps:$4 sm:$0xff]   ;;  %v8580_v52 = vld [vmem:[%s9711_s25 + $0xd0] ss:$8 sps:$4 sm:$0xff]  }
  0x5d   : > { %803 = vmatprep.mubr.bf16.mxu0 %v8506_v53  ;;  %1508 = vmatprep.mubr.bf16.mxu1 %v8508_v54  ;;  %v8686_v53 = vld [vmem:[%s11431_s1 + $0x148] sm:$0xff]   ;;  %v8581_v54 = vld [vmem:[%s9721_s30 + $0xd0] ss:$8 sps:$4 sm:$0xff]  }
  0x5e   : > { %2269 = vmatpush1.bf16.msra.mxu0 %v8546_v55  ;;  %3141 = vmatpush1.bf16.msra.mxu1 %v8547_v56  ;;  %v8582_v55 = vld [vmem:[%s9711_s25 + $0xe4] ss:$8 sps:$4 sm:$0xff]  }
  0x5f   : > { %2270 = vmatprep.subr.bf16.mxu0 %v11433_v1  ;;  %3142 = vmatprep.subr.bf16.mxu1 %v11433_v1  ;;  %v8687_v56 = vld [vmem:[%s11431_s1 + $0x1c8] sm:$0xff]  }
  0x62   : > { %2271 = vmatpush1.bf16.msra.mxu0 %v8560_v57  ;;  %3143 = vmatpush1.bf16.msra.mxu1 %v8561_v58  ;;  %v8584_v57 = vld [vmem:[%s9721_s30 + $0xe4] ss:$8 sps:$4 sm:$0xff]   ;;  %v8586_v58 = vld [vmem:[%s9711_s25 + $0xe0] ss:$8 sps:$4 sm:$0xff]  }
  0x63   : > { %2272 = vmatprep.subr.bf16.mxu0 %v11433_v1  ;;  %3144 = vmatprep.subr.bf16.mxu1 %v11433_v1 }
  0x64   : > { %804 = vmatmul.mubr.bf16.gmra.mxu0 %v8510_v59  ;;  %1509 = vmatmul.mubr.bf16.gmra.mxu1 %v8511_v60  ;;  %v8587_v59 = vld [vmem:[%s9721_s30 + $0xe0] ss:$8 sps:$4 sm:$0xff]   ;;  %v8590_v60 = vld [vmem:[%s9711_s25 + $0xf4] ss:$8 sps:$4 sm:$0xff]  }
  0x65   : > { %811 = vmatprep.mubr.bf16.mxu0 %v8512_v61  ;;  %1516 = vmatprep.mubr.bf16.mxu1 %v8514_v62  ;;  %v8592_v61 = vld [vmem:[%s9721_s30 + $0xf4] ss:$8 sps:$4 sm:$0xff]   ;;  %v8594_v62 = vld [vmem:[%s9711_s25 + $0xf0] ss:$8 sps:$4 sm:$0xff]  }
  0x66   : > { %2273 = vmatpush1.bf16.msra.mxu0 %v8574_v63  ;;  %3145 = vmatpush1.bf16.msra.mxu1 %v8575_v0  ;;  %v8700_v63 = vld [vmem:[%s11431_s1 + $0x140] sm:$0xff]   ;;  %v8595_v0 = vld [vmem:[%s9721_s30 + $0xf0] ss:$8 sps:$4 sm:$0xff]  }
  0x67   : > { %2274 = vmatprep.subr.bf16.mxu0 %v11433_v1  ;;  %3146 = vmatprep.subr.bf16.mxu1 %v11433_v1 }
  0x6a   : > { %2275 = vmatpush1.bf16.msra.mxu0 %v8588_v3  ;;  %3147 = vmatpush1.bf16.msra.mxu1 %v8589_v5  ;;  %v8701_v3 = vld [vmem:[%s11431_s1 + $0x1c0] sm:$0xff]  }
  0x6b   : > { %2276 = vmatprep.subr.bf16.mxu0 %v11433_v1  ;;  %3148 = vmatprep.subr.bf16.mxu1 %v11433_v1  ;;  %v8600_v5 = vld [vmem:[%s9711_s25 + $0x100] ss:$8 sps:$4 sm:$0xff]  }
  0x6c   : > { %812 = vmatmul.mubr.bf16.gmra.mxu0 %v8516_v2  ;;  %1517 = vmatmul.mubr.bf16.gmra.mxu1 %v8517_v4  ;;  %v8596_v2 = vld [vmem:[%s9711_s25 + $0x104] ss:$8 sps:$4 sm:$0xff]  }
  0x6d   : > { %819 = vmatprep.mubr.bf16.mxu0 %v8520_v6  ;;  %1524 = vmatprep.mubr.bf16.mxu1 %v8522_v7  ;;  %v8598_v4 = vld [vmem:[%s9721_s30 + $0x104] ss:$8 sps:$4 sm:$0xff]   ;;  %v8601_v6 = vld [vmem:[%s9721_s30 + $0x100] ss:$8 sps:$4 sm:$0xff]   ;;  %v8604_v7 = vld [vmem:[%s9711_s25 + $0x114] ss:$8 sps:$4 sm:$0xff]  }
  0x6e   : > { %2277 = vmatpush2.bf16.msra.mxu0 %v8602_v8  ;;  %3149 = vmatpush2.bf16.msra.mxu1 %v8603_v9  ;;  %v8606_v8 = vld [vmem:[%s9721_s30 + $0x114] ss:$8 sps:$4 sm:$0xff]   ;;  %v8608_v9 = vld [vmem:[%s9711_s25 + $0x110] ss:$8 sps:$4 sm:$0xff]  }
  0x6f   : > { %2278 = vmatprep.subr.bf16.mxu0 %v11433_v1  ;;  %3150 = vmatprep.subr.bf16.mxu1 %v11433_v1 }
  0x72   : > { %2279 = vmatpush2.bf16.msra.mxu0 %v8616_v13  ;;  %3151 = vmatpush2.bf16.msra.mxu1 %v8617_v14  ;;  %v8614_v13 = vld [vmem:[%s9711_s25 + $0x120] ss:$8 sps:$4 sm:$0xff]  }
  0x73   : > { %2280 = vmatprep.subr.bf16.mxu0 %v11433_v1  ;;  %3152 = vmatprep.subr.bf16.mxu1 %v11433_v1  ;;  %v8615_v14 = vld [vmem:[%s9721_s30 + $0x120] ss:$8 sps:$4 sm:$0xff]  }
  0x74   : > { %820 = vmatmul.mubr.bf16.gmra.mxu0 %v8524_v10  ;;  %1525 = vmatmul.mubr.bf16.gmra.mxu1 %v8525_v11  ;;  %v8609_v10 = vld [vmem:[%s9721_s30 + $0x110] ss:$8 sps:$4 sm:$0xff]   ;;  %v8610_v11 = vld [vmem:[%s9711_s25 + $0x124] ss:$8 sps:$4 sm:$0xff]  }
  0x75   : > { %827 = vmatprep.mubr.bf16.mxu0 %v8526_v12  ;;  %1532 = vmatprep.mubr.bf16.mxu1 %v8528_v15  ;;  %v8612_v12 = vld [vmem:[%s9721_s30 + $0x124] ss:$8 sps:$4 sm:$0xff]   ;;  %v8618_v15 = vld [vmem:[%s9711_s25 + $0x134] ss:$8 sps:$4 sm:$0xff]  }
  0x76   : > { %2281 = vmatpush2.bf16.msra.mxu0 %v8630_v18  ;;  %3153 = vmatpush2.bf16.msra.mxu1 %v8631_v19  ;;  %v8623_v18 = vld [vmem:[%s9721_s30 + $0x130] ss:$8 sps:$4 sm:$0xff]   ;;  %v8624_v19 = vld [vmem:[%s9711_s25 + $0x144] ss:$8 sps:$4 sm:$0xff]  }
  0x77   : > { %2282 = vmatprep.subr.bf16.mxu0 %v11433_v1  ;;  %3154 = vmatprep.subr.bf16.mxu1 %v11433_v1 }
  0x7a   : > { %2283 = vmatpush2.bf16.msra.mxu0 %v8644_v24  ;;  %3155 = vmatpush2.bf16.msra.mxu1 %v8645_v25  ;;  %v8634_v24 = vld [vmem:[%s9721_s30 + $0x154] ss:$8 sps:$4 sm:$0xff]   ;;  %v8636_v25 = vld [vmem:[%s9711_s25 + $0x150] ss:$8 sps:$4 sm:$0xff]  }
  0x7b   : > { %2284 = vmatprep.subr.bf16.mxu0 %v11433_v1  ;;  %3156 = vmatprep.subr.bf16.mxu1 %v11433_v1 }
  0x7c   : > { %828 = vmatmul.mubr.bf16.gmra.mxu0 %v8530_v16  ;;  %1533 = vmatmul.mubr.bf16.gmra.mxu1 %v8531_v17  ;;  %v8620_v16 = vld [vmem:[%s9721_s30 + $0x134] ss:$8 sps:$4 sm:$0xff]   ;;  %v8622_v17 = vld [vmem:[%s9711_s25 + $0x130] ss:$8 sps:$4 sm:$0xff]  }
  0x7d   : > { %835 = vmatprep.mubr.bf16.mxu0 %v8534_v20  ;;  %1540 = vmatprep.mubr.bf16.mxu1 %v8536_v21  ;;  %v8626_v20 = vld [vmem:[%s9721_s30 + $0x144] ss:$8 sps:$4 sm:$0xff]   ;;  %v8628_v21 = vld [vmem:[%s9711_s25 + $0x140] ss:$8 sps:$4 sm:$0xff]  }
  0x7e   : > { %2285 = vmatpush2.bf16.msra.mxu0 %v8658_v33  ;;  %3157 = vmatpush2.bf16.msra.mxu1 %v8659_v36  ;;  %v8650_v33 = vld [vmem:[%s9711_s25 + $0x170] ss:$8 sps:$4 sm:$0xff]   ;;  %v8654_v36 = vld [vmem:[%s9721_s30 + $0x184] ss:$8 sps:$4 sm:$0xff]  }
  0x7f   : > { %2286 = vmatprep.subr.bf16.mxu0 %v11433_v1  ;;  %3158 = vmatprep.subr.bf16.mxu1 %v11433_v1 }
  0x82   : > { %2287 = vmatpush2.bf16.msra.mxu0 %v8672_v43  ;;  %3159 = vmatpush2.bf16.msra.mxu1 %v8673_v46 }
  0x83   : > { %2288 = vmatprep.subr.bf16.mxu0 %v11433_v1  ;;  %3160 = vmatprep.subr.bf16.mxu1 %v11433_v1 }
  0x84   : > { %836 = vmatmul.mubr.bf16.gmra.mxu0 %v8538_v22  ;;  %1541 = vmatmul.mubr.bf16.gmra.mxu1 %v8539_v23  ;;  %v8629_v22 = vld [vmem:[%s9721_s30 + $0x140] ss:$8 sps:$4 sm:$0xff]   ;;  %v8632_v23 = vld [vmem:[%s9711_s25 + $0x154] ss:$8 sps:$4 sm:$0xff]  }
  0x85   : > { %843 = vmatprep.mubr.bf16.mxu0 %v8540_v26  ;;  %1548 = vmatprep.mubr.bf16.mxu1 %v8542_v27  ;;  %v8637_v26 = vld [vmem:[%s9721_s30 + $0x150] ss:$8 sps:$4 sm:$0xff]   ;;  %v8638_v27 = vld [vmem:[%s9711_s25 + $0x164] ss:$8 sps:$4 sm:$0xff]  }
  0x86   : > { %2289 = vmatpush2.bf16.msra.mxu0 %v8686_v53  ;;  %3161 = vmatpush2.bf16.msra.mxu1 %v8687_v56  ;;  %v8668_v53 = vld [vmem:[%s9721_s30 + $0x1a4] ss:$8 sps:$4 sm:$0xff]  }
  0x87   : > { %2290 = vmatprep.subr.bf16.mxu0 %v11433_v1  ;;  %3162 = vmatprep.subr.bf16.mxu1 %v11433_v1 }
  0x8a   : > { %2291 = vmatpush2.bf16.msra.mxu0 %v8700_v63  ;;  %3163 = vmatpush2.bf16.msra.mxu1 %v8701_v3  ;;  %v8671_v63 = vld [vmem:[%s9721_s30 + $0x1a0] ss:$8 sps:$4 sm:$0xff]  }
  0x8b   : > { %4004 = vmatprep.subr.bf16.mxu0 %v11433_v1  ;;  %4876 = vmatprep.subr.bf16.mxu1 %v11433_v1 }
  0x8c   : > { %844 = vmatmul.mubr.bf16.gmra.mxu0 %v8544_v28  ;;  %1549 = vmatmul.mubr.bf16.gmra.mxu1 %v8545_v29  ;;  %v8640_v28 = vld [vmem:[%s9721_s30 + $0x164] ss:$8 sps:$4 sm:$0xff]   ;;  %v8642_v29 = vld [vmem:[%s9711_s25 + $0x160] ss:$8 sps:$4 sm:$0xff]  }
  0x8d   : > { %851 = vmatprep.mubr.bf16.mxu0 %v8548_v30  ;;  %1556 = vmatprep.mubr.bf16.mxu1 %v8550_v31  ;;  %v8643_v30 = vld [vmem:[%s9721_s30 + $0x160] ss:$8 sps:$4 sm:$0xff]   ;;  %v8646_v31 = vld [vmem:[%s9711_s25 + $0x174] ss:$8 sps:$4 sm:$0xff]  }
  0x94   : > { %852 = vmatmul.mubr.bf16.gmra.mxu0 %v8552_v32  ;;  %1557 = vmatmul.mubr.bf16.gmra.mxu1 %v8553_v34  ;;  %v8648_v32 = vld [vmem:[%s9721_s30 + $0x174] ss:$8 sps:$4 sm:$0xff]   ;;  %v8651_v34 = vld [vmem:[%s9721_s30 + $0x170] ss:$8 sps:$4 sm:$0xff]  }
  0x95   : > { %859 = vmatprep.mubr.bf16.mxu0 %v8554_v35  ;;  %1564 = vmatprep.mubr.bf16.mxu1 %v8556_v37  ;;  %v8652_v35 = vld [vmem:[%s9711_s25 + $0x184] ss:$8 sps:$4 sm:$0xff]   ;;  %v8656_v37 = vld [vmem:[%s9711_s25 + $0x180] ss:$8 sps:$4 sm:$0xff]  }
  0x9c   : > { %860 = vmatmul.mubr.bf16.gmra.mxu0 %v8558_v38  ;;  %1565 = vmatmul.mubr.bf16.gmra.mxu1 %v8559_v39  ;;  %v8657_v38 = vld [vmem:[%s9721_s30 + $0x180] ss:$8 sps:$4 sm:$0xff]   ;;  %v8660_v39 = vld [vmem:[%s9711_s25 + $0x194] ss:$8 sps:$4 sm:$0xff]  }
  0x9d   : > { %867 = vmatprep.mubr.bf16.mxu0 %v8562_v40  ;;  %1572 = vmatprep.mubr.bf16.mxu1 %v8564_v41  ;;  %v8662_v40 = vld [vmem:[%s9721_s30 + $0x194] ss:$8 sps:$4 sm:$0xff]  }
  0xa4   : > { %868 = vmatmul.mubr.bf16.gmra.mxu0 %v8566_v42  ;;  %1573 = vmatmul.mubr.bf16.gmra.mxu1 %v8567_v44 }
  0xa5   : > { %875 = vmatprep.mubr.bf16.mxu0 %v8568_v45  ;;  %1580 = vmatprep.mubr.bf16.mxu1 %v8570_v47  ;;  %v8664_v47 = vld [vmem:[%s9711_s25 + $0x190] ss:$8 sps:$4 sm:$0xff]  }
  0xac   : > { %876 = vmatmul.mubr.bf16.gmra.mxu0 %v8572_v48  ;;  %1581 = vmatmul.mubr.bf16.gmra.mxu1 %v8573_v49  ;;  %v8665_v49 = vld [vmem:[%s9721_s30 + $0x190] ss:$8 sps:$4 sm:$0xff]  }
  0xad   : > { %883 = vmatprep.mubr.bf16.mxu0 %v8576_v50  ;;  %1588 = vmatprep.mubr.bf16.mxu1 %v8578_v51  ;;  %v8666_v50 = vld [vmem:[%s9711_s25 + $0x1a4] ss:$8 sps:$4 sm:$0xff]  }
  0xb4   : > { %884 = vmatmul.mubr.bf16.gmra.mxu0 %v8580_v52  ;;  %1589 = vmatmul.mubr.bf16.gmra.mxu1 %v8581_v54 }
  0xb5   : > { %891 = vmatprep.mubr.bf16.mxu0 %v8582_v55  ;;  %1596 = vmatprep.mubr.bf16.mxu1 %v8584_v57 }
  0xbc   : > { %892 = vmatmul.mubr.bf16.gmra.mxu0 %v8586_v58  ;;  %1597 = vmatmul.mubr.bf16.gmra.mxu1 %v8587_v59 }
  0xbd   : > { %899 = vmatprep.mubr.bf16.mxu0 %v8590_v60  ;;  %1604 = vmatprep.mubr.bf16.mxu1 %v8592_v61  ;;  %v8670_v61 = vld [vmem:[%s9711_s25 + $0x1a0] ss:$8 sps:$4 sm:$0xff]  }
  0xc4   : > { %900 = vmatmul.mubr.bf16.gmra.mxu0 %v8594_v62  ;;  %1605 = vmatmul.mubr.bf16.gmra.mxu1 %v8595_v0  ;;  %v8674_v0 = vld [vmem:[%s9711_s25 + $0x1b4] ss:$8 sps:$4 sm:$0xff]  }
  0xc5   : > { %907 = vmatprep.mubr.bf16.mxu0 %v8596_v2  ;;  %1612 = vmatprep.mubr.bf16.mxu1 %v8598_v4  ;;  %v8676_v4 = vld [vmem:[%s9721_s30 + $0x1b4] ss:$8 sps:$4 sm:$0xff]  }
  0xcc   : > { %908 = vmatmul.mubr.bf16.gmra.mxu0 %v8600_v5  ;;  %1613 = vmatmul.mubr.bf16.gmra.mxu1 %v8601_v6 }
  0xcd   : > { %915 = vmatprep.mubr.bf16.mxu0 %v8604_v7  ;;  %1620 = vmatprep.mubr.bf16.mxu1 %v8606_v8 }
  0xd4   : > { %916 = vmatmul.mubr.bf16.gmra.mxu0 %v8608_v9  ;;  %1621 = vmatmul.mubr.bf16.gmra.mxu1 %v8609_v10 }
  0xd5   : > { %923 = vmatprep.mubr.bf16.mxu0 %v8610_v11  ;;  %1628 = vmatprep.mubr.bf16.mxu1 %v8612_v12  ;;  %v8678_v12 = vld [vmem:[%s9711_s25 + $0x1b0] ss:$8 sps:$4 sm:$0xff]  }
  0xdc   : > { %924 = vmatmul.mubr.bf16.gmra.mxu0 %v8614_v13  ;;  %1629 = vmatmul.mubr.bf16.gmra.mxu1 %v8615_v14  ;;  %v8679_v14 = vld [vmem:[%s9721_s30 + $0x1b0] ss:$8 sps:$4 sm:$0xff]  }
  0xdd   : > { %931 = vmatprep.mubr.bf16.mxu0 %v8618_v15  ;;  %1636 = vmatprep.mubr.bf16.mxu1 %v8620_v16  ;;  %v8682_v15 = vld [vmem:[%s9711_s25 + $0x1c4] ss:$8 sps:$4 sm:$0xff]  }
  0xe4   : > { %932 = vmatmul.mubr.bf16.gmra.mxu0 %v8622_v17  ;;  %1637 = vmatmul.mubr.bf16.gmra.mxu1 %v8623_v18  ;;  %v8685_v18 = vld [vmem:[%s9721_s30 + $0x1c4] ss:$8 sps:$4 sm:$0xff]  }
  0xe5   : > { %939 = vmatprep.mubr.bf16.mxu0 %v8624_v19  ;;  %1644 = vmatprep.mubr.bf16.mxu1 %v8626_v20 }
  0xec   : > { %940 = vmatmul.mubr.bf16.gmra.mxu0 %v8628_v21  ;;  %1645 = vmatmul.mubr.bf16.gmra.mxu1 %v8629_v22 }
  0xed   : > { %947 = vmatprep.mubr.bf16.mxu0 %v8632_v23  ;;  %1652 = vmatprep.mubr.bf16.mxu1 %v8634_v24 }
  0xf4   : > { %948 = vmatmul.mubr.bf16.gmra.mxu0 %v8636_v25  ;;  %1653 = vmatmul.mubr.bf16.gmra.mxu1 %v8637_v26  ;;  %v8680_v26 = vld [vmem:[%s9711_s25 + $0x1c0] ss:$8 sps:$4 sm:$0xff]  }
  0xf5   : > { %955 = vmatprep.mubr.bf16.mxu0 %v8638_v27  ;;  %1660 = vmatprep.mubr.bf16.mxu1 %v8640_v28  ;;  %v8683_v28 = vld [vmem:[%s9721_s30 + $0x1c0] ss:$8 sps:$4 sm:$0xff]  }
  0xfc   : > { %956 = vmatmul.mubr.bf16.gmra.mxu0 %v8642_v29  ;;  %1661 = vmatmul.mubr.bf16.gmra.mxu1 %v8643_v30  ;;  %v8690_v29 = vld [vmem:[%s9711_s25 + $0x1d4] ss:$8 sps:$4 sm:$0xff]  }
  0xfd   : > { %963 = vmatprep.mubr.bf16.mxu0 %v8646_v31  ;;  %1668 = vmatprep.mubr.bf16.mxu1 %v8648_v32  ;;  %v8693_v32 = vld [vmem:[%s9721_s30 + $0x1d4] ss:$8 sps:$4 sm:$0xff]  }
 0x104   : > { %964 = vmatmul.mubr.bf16.gmra.mxu0 %v8650_v33  ;;  %1669 = vmatmul.mubr.bf16.gmra.mxu1 %v8651_v34 }
 0x105   : > { %971 = vmatprep.mubr.bf16.mxu0 %v8652_v35  ;;  %1676 = vmatprep.mubr.bf16.mxu1 %v8654_v36 }
 0x10c   : > { %v781_v41 = vpop.f32.mrf.mxu0  ;;  %972 = vmatmul.mubr.bf16.gmra.mxu0 %v8656_v37  ;;  %v1486_v42 = vpop.f32.mrf.mxu1  ;;  %1677 = vmatmul.mubr.bf16.gmra.mxu1 %v8657_v38 }
 0x10d   : > { %979 = vmatprep.mubr.bf16.mxu0 %v8660_v39  ;;  %v10024_v43 = vadd.f32 %v1486_v42, %v781_v41  ;;  %1684 = vmatprep.mubr.bf16.mxu1 %v8662_v40  ;;  %v8688_v40 = vld [vmem:[%s9711_s25 + $0x1d0] ss:$8 sps:$4 sm:$0xff]  }
 0x10e   : > { %v783_v44 = vpop.f32.mrf.mxu0  ;;  %v1488_v45 = vpop.f32.mrf.mxu1  ;;  %v8691_v42 = vld [vmem:[%s9721_s30 + $0x1d0] ss:$8 sps:$4 sm:$0xff]  }
 0x10f   : > { %v8696_v44 = vld [vmem:[%s9711_s25 + $0x1e4] ss:$8 sps:$4 sm:$0xff]  }
 0x110   : > { %v784_v46 = vpop.f32.mrf.mxu0  ;;  %v1489_v48 = vpop.f32.mrf.mxu1 }
 0x111   : > { %v10029_v51 = vadd.f32 %v1489_v48, %v784_v46 }
 0x112   : > { %v786_v52 = vpop.f32.mrf.mxu0  ;;  %v1491_v54 = vpop.f32.mrf.mxu1 }
 0x114   : > { %v789_v55 = vpop.f32.mrf.mxu0  ;;  %980 = vmatmul.mubr.bf16.gmra.mxu0 %v8664_v47  ;;  %v1494_v56 = vpop.f32.mrf.mxu1  ;;  %1685 = vmatmul.mubr.bf16.gmra.mxu1 %v8665_v49  ;;  %v8699_v47 = vld [vmem:[%s9721_s30 + $0x1e4] ss:$8 sps:$4 sm:$0xff]  }
 0x115   : > { %987 = vmatprep.mubr.bf16.mxu0 %v8666_v50  ;;  %v10032_v57 = vadd.f32 %v1494_v56, %v789_v55  ;;  %1692 = vmatprep.mubr.bf16.mxu1 %v8668_v53  ;;  %v8694_v56 = vld [vmem:[%s9711_s25 + $0x1e0] ss:$8 sps:$4 sm:$0xff]  }
 0x116   : > { %v791_v58 = vpop.f32.mrf.mxu0  ;;  %v1496_v59 = vpop.f32.mrf.mxu1 }
 0x117   : > { %v8697_v59 = vld [vmem:[%s9721_s30 + $0x1e0] ss:$8 sps:$4 sm:$0xff]  }
 0x118   : > { %v792_v60 = vpop.f32.mrf.mxu0  ;;  %v1497_v62 = vpop.f32.mrf.mxu1 }
 0x119   : > { %v10037_v2 = vadd.f32 %v1497_v62, %v792_v60  ;;  %v8704_v60 = vld [vmem:[%s9711_s25 + $0x1f4] ss:$8 sps:$4 sm:$0xff]  }
 0x11a   : > { %v794_v3 = vpop.f32.mrf.mxu0  ;;  %v1499_v5 = vpop.f32.mrf.mxu1 }
 0x11c   : > { %v797_v6 = vpop.f32.mrf.mxu0  ;;  %988 = vmatmul.mubr.bf16.gmra.mxu0 %v8670_v61  ;;  %v1502_v7 = vpop.f32.mrf.mxu1  ;;  %1693 = vmatmul.mubr.bf16.gmra.mxu1 %v8671_v63  ;;  %v8707_v63 = vld [vmem:[%s9721_s30 + $0x1f4] ss:$8 sps:$4 sm:$0xff]  }
 0x11d   : > { %995 = vmatprep.mubr.bf16.mxu0 %v8674_v0  ;;  %v10040_v8 = vadd.f32 %v1502_v7, %v797_v6  ;;  %1700 = vmatprep.mubr.bf16.mxu1 %v8676_v4 }
 0x11e   : > { %v799_v9 = vpop.f32.mrf.mxu0  ;;  %v1504_v10 = vpop.f32.mrf.mxu1 }
 0x11f   : > { %v8702_v10 = vld [vmem:[%s9711_s25 + $0x1f0] ss:$8 sps:$4 sm:$0xff]   ;;  %s8440_s25 = sshll.u32 %s4358_s15, 3 }
 0x120   : > { %v800_v11 = vpop.f32.mrf.mxu0  ;;  %v1505_v13 = vpop.f32.mrf.mxu1  ;;  %s10354_s22 = scalar_lea.vmem %s11430_s0, %s8440_s25  ;;  %s5229_s25 = sadd.s32 576, %s9681_s5 }
 0x121   : > { %v10045_v16 = vadd.f32 %v1505_v13, %v800_v11  ;;  %v8710_v13 = vld [vmem:[%s9984_s14 + $0x4] ss:$8 sps:$4 sm:$0xff]   ;;  %s5230_s18 = sshra.s32 %s5229_s25, 3 }
 0x122   : > { %v802_v17 = vpop.f32.mrf.mxu0  ;;  %v1507_v19 = vpop.f32.mrf.mxu1  ;;  %s8441_s21 = sshll.u32 %s5230_s18, 3 }
 0x123   : > { %v8713_v17 = vld [vmem:[%s9990_s17 + $0x4] ss:$8 sps:$4 sm:$0xff]   ;;  %s10788_s24 = scalar_lea.vmem %s11430_s0, %s8441_s21 }
 0x124   : > { %v805_v20 = vpop.f32.mrf.mxu0  ;;  %996 = vmatmul.mubr.bf16.gmra.mxu0 %v8678_v12  ;;  %v1510_v21 = vpop.f32.mrf.mxu1  ;;  %1701 = vmatmul.mubr.bf16.gmra.mxu1 %v8679_v14  ;;  %v8705_v12 = vld [vmem:[%s9721_s30 + $0x1f0] ss:$8 sps:$4 sm:$0xff]   ;;  %s6101_s30 = sadd.s32 672, %s9681_s5 }
 0x125   : > { %1003 = vmatprep.mubr.bf16.mxu0 %v8682_v15  ;;  %v10048_v22 = vadd.f32 %v1510_v21, %v805_v20  ;;  %1708 = vmatprep.mubr.bf16.mxu1 %v8685_v18  ;;  %s6102_s20 = sshra.s32 %s6101_s30, 3 }
 0x126   : > { %v807_v23 = vpop.f32.mrf.mxu0  ;;  %v1512_v24 = vpop.f32.mrf.mxu1 }
 0x128   : > { %v808_v25 = vpop.f32.mrf.mxu0  ;;  %v1513_v27 = vpop.f32.mrf.mxu1 }
 0x129   : > { %v10053_v30 = vadd.f32 %v1513_v27, %v808_v25 }
 0x12a   : > { %v810_v31 = vpop.f32.mrf.mxu0  ;;  %v1515_v33 = vpop.f32.mrf.mxu1 }
 0x12b   : > { %v8715_v33 = vld [vmem:[%s11431_s1 + $0x2b8] sm:$0xff]  }
 0x12c   : > { %v813_v34 = vpop.f32.mrf.mxu0  ;;  %1004 = vmatmul.mubr.bf16.gmra.mxu0 %v8680_v26  ;;  %v1518_v35 = vpop.f32.mrf.mxu1  ;;  %1709 = vmatmul.mubr.bf16.gmra.mxu1 %v8683_v28  ;;  %v8708_v26 = vld [vmem:[%s9984_s14] ss:$8 sps:$4 sm:$0xff]  }
 0x12d   : > { %1011 = vmatprep.mubr.bf16.mxu0 %v8690_v29  ;;  %v10056_v36 = vadd.f32 %v1518_v35, %v813_v34  ;;  %1716 = vmatprep.mubr.bf16.mxu1 %v8693_v32  ;;  %v8711_v28 = vld [vmem:[%s9990_s17] ss:$8 sps:$4 sm:$0xff]   ;;  %v8714_v29 = vld [vmem:[%s11431_s1 + $0x238] sm:$0xff]  }
 0x12e   : > { %v815_v37 = vpop.f32.mrf.mxu0  ;;  %v1520_v38 = vpop.f32.mrf.mxu1  ;;  %v8718_v34 = vld [vmem:[%s9984_s14 + $0x14] ss:$8 sps:$4 sm:$0xff]  }
 0x12f   : > { %v8721_v37 = vld [vmem:[%s9990_s17 + $0x14] ss:$8 sps:$4 sm:$0xff]  }
 0x130   : > { %v816_v39 = vpop.f32.mrf.mxu0  ;;  %v1521_v41 = vpop.f32.mrf.mxu1 }
 0x131   : > { %v10061_v45 = vadd.f32 %v1521_v41, %v816_v39 }
 0x132   : > { %v818_v46 = vpop.f32.mrf.mxu0  ;;  %v1523_v48 = vpop.f32.mrf.mxu1 }
 0x133   : > { %v8716_v48 = vld [vmem:[%s9984_s14 + $0x10] ss:$8 sps:$4 sm:$0xff]  }
 0x134   : > { %v821_v49 = vpop.f32.mrf.mxu0  ;;  %1012 = vmatmul.mubr.bf16.gmra.mxu0 %v8688_v40  ;;  %v1526_v50 = vpop.f32.mrf.mxu1  ;;  %1717 = vmatmul.mubr.bf16.gmra.mxu1 %v8691_v42  ;;  %v8728_v40 = vld [vmem:[%s11431_s1 + $0x230] sm:$0xff]  }
 0x135   : > { %1019 = vmatprep.mubr.bf16.mxu0 %v8696_v44  ;;  %v10064_v52 = vadd.f32 %v1526_v50, %v821_v49  ;;  %1724 = vmatprep.mubr.bf16.mxu1 %v8699_v47  ;;  %v8729_v44 = vld [vmem:[%s11431_s1 + $0x2b0] sm:$0xff]  }
 0x136   : > { %v823_v53 = vpop.f32.mrf.mxu0  ;;  %v1528_v54 = vpop.f32.mrf.mxu1  ;;  %v8719_v50 = vld [vmem:[%s9990_s17 + $0x10] ss:$8 sps:$4 sm:$0xff]  }
 0x137   : > { %v8724_v53 = vld [vmem:[%s9984_s14 + $0x24] ss:$8 sps:$4 sm:$0xff]  }
 0x138   : > { %v824_v55 = vpop.f32.mrf.mxu0  ;;  %v1529_v58 = vpop.f32.mrf.mxu1 }
 0x139   : > { %v10069_v61 = vadd.f32 %v1529_v58, %v824_v55  ;;  %v8742_v58 = vld [vmem:[%s11431_s1 + $0x228] sm:$0xff]  }
 0x13a   : > { %v826_v62 = vpop.f32.mrf.mxu0  ;;  %v1531_v0 = vpop.f32.mrf.mxu1 }
 0x13c   : > { %v829_v3 = vpop.f32.mrf.mxu0  ;;  %1020 = vmatmul.mubr.bf16.gmra.mxu0 %v8694_v56  ;;  %v1534_v4 = vpop.f32.mrf.mxu1  ;;  %1725 = vmatmul.mubr.bf16.gmra.mxu1 %v8697_v59  ;;  %v8727_v56 = vld [vmem:[%s9990_s17 + $0x24] ss:$8 sps:$4 sm:$0xff]  }
 0x13d   : > { %1027 = vmatprep.mubr.bf16.mxu0 %v8704_v60  ;;  %v10072_v5 = vadd.f32 %v1534_v4, %v829_v3  ;;  %1732 = vmatprep.mubr.bf16.mxu1 %v8707_v63  ;;  %v8743_v60 = vld [vmem:[%s11431_s1 + $0x2a8] sm:$0xff]   ;;  %v8756_v4 = vld [vmem:[%s11431_s1 + $0x220] sm:$0xff]  }
 0x13e   : > { %v831_v6 = vpop.f32.mrf.mxu0  ;;  %v1536_v7 = vpop.f32.mrf.mxu1 }
 0x13f   : > { %v8757_v7 = vld [vmem:[%s11431_s1 + $0x2a0] sm:$0xff]  }
 0x140   : > { %v832_v9 = vpop.f32.mrf.mxu0  ;;  %v1537_v11 = vpop.f32.mrf.mxu1 }
 0x141   : > { %v10077_v14 = vadd.f32 %v1537_v11, %v832_v9 }
 0x142   : > { %v834_v15 = vpop.f32.mrf.mxu0  ;;  %v1539_v18 = vpop.f32.mrf.mxu1 }
 0x143   : > { %v8735_v18 = vld [vmem:[%s9990_s17 + $0x34] ss:$8 sps:$4 sm:$0xff]  }
 0x144   : > { %v837_v19 = vpop.f32.mrf.mxu0  ;;  %1028 = vmatmul.mubr.bf16.gmra.mxu0 %v8702_v10  ;;  %v1542_v20 = vpop.f32.mrf.mxu1  ;;  %1733 = vmatmul.mubr.bf16.gmra.mxu1 %v8705_v12  ;;  %v8722_v10 = vld [vmem:[%s9984_s14 + $0x20] ss:$8 sps:$4 sm:$0xff]  }
 0x145   : > { %2292 = vmatprep.mubr.bf16.mxu0 %v8710_v13  ;;  %v10080_v21 = vadd.f32 %v1542_v20, %v837_v19  ;;  %3164 = vmatprep.mubr.bf16.mxu1 %v8713_v17  ;;  %v8725_v12 = vld [vmem:[%s9990_s17 + $0x20] ss:$8 sps:$4 sm:$0xff]   ;;  %v8732_v13 = vld [vmem:[%s9984_s14 + $0x34] ss:$8 sps:$4 sm:$0xff]  }
 0x146   : > { %v839_v23 = vpop.f32.mrf.mxu0  ;;  %v1544_v24 = vpop.f32.mrf.mxu1  ;;  %v8770_v19 = vld [vmem:[%s11431_s1 + $0x218] sm:$0xff]  }
 0x147   : > { %v8771_v23 = vld [vmem:[%s11431_s1 + $0x298] sm:$0xff]  }
 0x148   : > { %v840_v25 = vpop.f32.mrf.mxu0  ;;  %v1545_v27 = vpop.f32.mrf.mxu1 }
 0x149   : > { %v10087_v31 = vadd.f32 %v1545_v27, %v840_v25 }
 0x14a   : > { %v842_v32 = vpop.f32.mrf.mxu0  ;;  %v1547_v35 = vpop.f32.mrf.mxu1 }
 0x14b   : > { %v8785_v32 = vld [vmem:[%s11431_s1 + $0x290] sm:$0xff]  }
 0x14c   : > { %v845_v38 = vpop.f32.mrf.mxu0  ;;  %2293 = vmatmul.mubr.bf16.vlgmr.msra.gmra.mxu0 %v8708_v26  ;;  %v1550_v39 = vpop.f32.mrf.mxu1  ;;  %3165 = vmatmul.mubr.bf16.vlgmr.msra.gmra.mxu1 %v8711_v28  ;;  %v8784_v28 = vld [vmem:[%s11431_s1 + $0x210] sm:$0xff]  }
 0x14d   : > { %4005 = vmatpush1.bf16.msra.mxu0 %v8714_v29  ;;  %v10097_v41 = vadd.f32 %v1550_v39, %v845_v38  ;;  %4877 = vmatpush1.bf16.msra.mxu1 %v8715_v33  ;;  %v8738_v38 = vld [vmem:[%s9984_s14 + $0x44] ss:$8 sps:$4 sm:$0xff]  }
 0x14e   : > { %v847_v42 = vpop.f32.mrf.mxu0  ;;  %2300 = vmatprep.mubr.bf16.mxu0 %v8718_v34  ;;  %v1552_v46 = vpop.f32.mrf.mxu1  ;;  %3172 = vmatprep.mubr.bf16.mxu1 %v8721_v37  ;;  %v8730_v34 = vld [vmem:[%s9984_s14 + $0x30] ss:$8 sps:$4 sm:$0xff]  }
 0x14f   : > { %4006 = vmatprep.subr.bf16.mxu0 %v11433_v1  ;;  %4878 = vmatprep.subr.bf16.mxu1 %v11433_v1  ;;  %v8733_v37 = vld [vmem:[%s9990_s17 + $0x30] ss:$8 sps:$4 sm:$0xff]   ;;  %v8741_v42 = vld [vmem:[%s9990_s17 + $0x44] ss:$8 sps:$4 sm:$0xff]  }
 0x150   : > { %v848_v47 = vpop.f32.mrf.mxu0  ;;  %v1553_v49 = vpop.f32.mrf.mxu1 }
 0x151   : > { %4007 = vmatpush1.bf16.msra.mxu0 %v8728_v40  ;;  %v10107_v54 = vadd.f32 %v1553_v49, %v848_v47  ;;  %4879 = vmatpush1.bf16.msra.mxu1 %v8729_v44  ;;  %v8798_v44 = vld [vmem:[%s11431_s1 + $0x208] sm:$0xff]  }
 0x152   : > { %v850_v55 = vpop.f32.mrf.mxu0  ;;  %4008 = vmatprep.subr.bf16.mxu0 %v11433_v1  ;;  %v1555_v59 = vpop.f32.mrf.mxu1  ;;  %4880 = vmatprep.subr.bf16.mxu1 %v11433_v1  ;;  %v8799_v47 = vld [vmem:[%s11431_s1 + $0x288] sm:$0xff]  }
 0x153   : > { %v8812_v55 = vld [vmem:[%s11431_s1 + $0x200] sm:$0xff]  }
 0x154   : > { %v853_v62 = vpop.f32.mrf.mxu0  ;;  %2301 = vmatmul.mubr.bf16.gmra.mxu0 %v8716_v48  ;;  %v1558_v63 = vpop.f32.mrf.mxu1  ;;  %3173 = vmatmul.mubr.bf16.gmra.mxu1 %v8719_v50 }
 0x155   : > { %2308 = vmatprep.mubr.bf16.mxu0 %v8724_v53  ;;  %v10118_v0 = vadd.f32 %v1558_v63, %v853_v62  ;;  %3180 = vmatprep.mubr.bf16.mxu1 %v8727_v56  ;;  %v8739_v63 = vld [vmem:[%s9990_s17 + $0x40] ss:$8 sps:$4 sm:$0xff]  }
 0x156   : > { %v855_v3 = vpop.f32.mrf.mxu0  ;;  %4009 = vmatpush1.bf16.msra.mxu0 %v8742_v58  ;;  %v1560_v6 = vpop.f32.mrf.mxu1  ;;  %4881 = vmatpush1.bf16.msra.mxu1 %v8743_v60  ;;  %v8813_v58 = vld [vmem:[%s11431_s1 + $0x280] sm:$0xff]  }
 0x157   : > { %4010 = vmatprep.subr.bf16.mxu0 %v11433_v1  ;;  %4882 = vmatprep.subr.bf16.mxu1 %v11433_v1  ;;  %v8736_v60 = vld [vmem:[%s9984_s14 + $0x40] ss:$8 sps:$4 sm:$0xff]   ;;  %v8746_v3 = vld [vmem:[%s9984_s14 + $0x54] ss:$8 sps:$4 sm:$0xff]  }
 0x158   : > { %v856_v9 = vpop.f32.mrf.mxu0  ;;  %v1561_v11 = vpop.f32.mrf.mxu1 }
 0x159   : > { %v10131_v15 = vadd.f32 %v1561_v11, %v856_v9  ;;  %v8826_v9 = vld [vmem:[%s11431_s1 + $0x278] sm:$0xff]  }
 0x15a   : > { %v858_v17 = vpop.f32.mrf.mxu0  ;;  %4011 = vmatpush1.bf16.msra.mxu0 %v8756_v4  ;;  %v1563_v20 = vpop.f32.mrf.mxu1  ;;  %4883 = vmatpush1.bf16.msra.mxu1 %v8757_v7  ;;  %v8749_v7 = vld [vmem:[%s9990_s17 + $0x54] ss:$8 sps:$4 sm:$0xff]  }
 0x15b   : > { %4012 = vmatprep.subr.bf16.mxu0 %v11433_v1  ;;  %4884 = vmatprep.subr.bf16.mxu1 %v11433_v1  ;;  %v8827_v11 = vld [vmem:[%s11431_s1 + $0x2f8] sm:$0xff]  }
 0x15c   : > { %v861_v24 = vpop.f32.mrf.mxu0  ;;  %2309 = vmatmul.mubr.bf16.gmra.mxu0 %v8722_v10  ;;  %v1566_v25 = vpop.f32.mrf.mxu1  ;;  %3181 = vmatmul.mubr.bf16.gmra.mxu1 %v8725_v12 }
 0x15d   : > { %2316 = vmatprep.mubr.bf16.mxu0 %v8732_v13  ;;  %v10142_v26 = vadd.f32 %v1566_v25, %v861_v24  ;;  %3188 = vmatprep.mubr.bf16.mxu1 %v8735_v18  ;;  %v8744_v25 = vld [vmem:[%s9984_s14 + $0x50] ss:$8 sps:$4 sm:$0xff]  }
 0x15e   : > { %v863_v27 = vpop.f32.mrf.mxu0  ;;  %4013 = vmatpush1.bf16.msra.mxu0 %v8770_v19  ;;  %v1568_v29 = vpop.f32.mrf.mxu1  ;;  %4885 = vmatpush1.bf16.msra.mxu1 %v8771_v23  ;;  %v8840_v19 = vld [vmem:[%s11431_s1 + $0x270] sm:$0xff]  }
 0x15f   : > { %4014 = vmatprep.subr.bf16.mxu0 %v11433_v1  ;;  %4886 = vmatprep.subr.bf16.mxu1 %v11433_v1  ;;  %v8841_v23 = vld [vmem:[%s11431_s1 + $0x2f0] sm:$0xff]   ;;  %v8752_v29 = vld [vmem:[%s9984_s14 + $0x64] ss:$8 sps:$4 sm:$0xff]  }
 0x160   : > { %v864_v33 = vpop.f32.mrf.mxu0  ;;  %v1569_v35 = vpop.f32.mrf.mxu1 }
 0x161   : > { %v10155_v39 = vadd.f32 %v1569_v35, %v864_v33  ;;  %v8854_v35 = vld [vmem:[%s11431_s1 + $0x268] sm:$0xff]  }
 0x162   : > { %v866_v40 = vpop.f32.mrf.mxu0  ;;  %4015 = vmatpush1.bf16.msra.mxu0 %v8784_v28  ;;  %v1571_v46 = vpop.f32.mrf.mxu1  ;;  %4887 = vmatpush1.bf16.msra.mxu1 %v8785_v32  ;;  %v8747_v28 = vld [vmem:[%s9990_s17 + $0x50] ss:$8 sps:$4 sm:$0xff]  }
 0x163   : > { %4016 = vmatprep.subr.bf16.mxu0 %v11433_v1  ;;  %4888 = vmatprep.subr.bf16.mxu1 %v11433_v1 }
 0x164   : > { %v869_v48 = vpop.f32.mrf.mxu0  ;;  %2317 = vmatmul.mubr.bf16.gmra.mxu0 %v8730_v34  ;;  %v1574_v49 = vpop.f32.mrf.mxu1  ;;  %3189 = vmatmul.mubr.bf16.gmra.mxu1 %v8733_v37  ;;  %v8755_v34 = vld [vmem:[%s9990_s17 + $0x64] ss:$8 sps:$4 sm:$0xff]  }
 0x165   : > { %2324 = vmatprep.mubr.bf16.mxu0 %v8738_v38  ;;  %v10166_v50 = vadd.f32 %v1574_v49, %v869_v48  ;;  %3196 = vmatprep.mubr.bf16.mxu1 %v8741_v42  ;;  %v8855_v38 = vld [vmem:[%s11431_s1 + $0x2e8] sm:$0xff]  }
 0x166   : > { %v871_v53 = vpop.f32.mrf.mxu0  ;;  %4017 = vmatpush1.bf16.msra.mxu0 %v8798_v44  ;;  %v1576_v56 = vpop.f32.mrf.mxu1  ;;  %4889 = vmatpush1.bf16.msra.mxu1 %v8799_v47  ;;  %v8750_v49 = vld [vmem:[%s9984_s14 + $0x60] ss:$8 sps:$4 sm:$0xff]  }
 0x167   : > { %4018 = vmatprep.subr.bf16.mxu0 %v11433_v1  ;;  %4890 = vmatprep.subr.bf16.mxu1 %v11433_v1  ;;  %v8760_v56 = vld [vmem:[%s9984_s14 + $0x74] ss:$8 sps:$4 sm:$0xff]  }
 0x168   : > { %v872_v59 = vpop.f32.mrf.mxu0  ;;  %v1577_v62 = vpop.f32.mrf.mxu1 }
 0x169   : > { %v10179_v4 = vadd.f32 %v1577_v62, %v872_v59 }
 0x16a   : > { %v874_v6 = vpop.f32.mrf.mxu0  ;;  %4019 = vmatpush1.bf16.msra.mxu0 %v8812_v55  ;;  %v1579_v10 = vpop.f32.mrf.mxu1  ;;  %4891 = vmatpush1.bf16.msra.mxu1 %v8813_v58  ;;  %v8753_v55 = vld [vmem:[%s9990_s17 + $0x60] ss:$8 sps:$4 sm:$0xff]  }
 0x16b   : > { %4020 = vmatprep.subr.bf16.mxu0 %v11433_v1  ;;  %4892 = vmatprep.subr.bf16.mxu1 %v11433_v1 }
 0x16c   : > { %v877_v12 = vpop.f32.mrf.mxu0  ;;  %2325 = vmatmul.mubr.bf16.gmra.mxu0 %v8736_v60  ;;  %v1582_v13 = vpop.f32.mrf.mxu1  ;;  %3197 = vmatmul.mubr.bf16.gmra.mxu1 %v8739_v63  ;;  %v8763_v60 = vld [vmem:[%s9990_s17 + $0x74] ss:$8 sps:$4 sm:$0xff]  }
 0x16d   : > { %2332 = vmatprep.mubr.bf16.mxu0 %v8746_v3  ;;  %v10190_v17 = vadd.f32 %v1582_v13, %v877_v12  ;;  %3204 = vmatprep.mubr.bf16.mxu1 %v8749_v7  ;;  %v8758_v13 = vld [vmem:[%s9984_s14 + $0x70] ss:$8 sps:$4 sm:$0xff]  }
 0x16e   : > { %v879_v18 = vpop.f32.mrf.mxu0  ;;  %4021 = vmatpush2.bf16.msra.mxu0 %v8826_v9  ;;  %v1584_v20 = vpop.f32.mrf.mxu1  ;;  %4893 = vmatpush2.bf16.msra.mxu1 %v8827_v11  ;;  %v8868_v9 = vld [vmem:[%s11431_s1 + $0x260] sm:$0xff]  }
 0x16f   : > { %4022 = vmatprep.subr.bf16.mxu0 %v11433_v1  ;;  %4894 = vmatprep.subr.bf16.mxu1 %v11433_v1  ;;  %v8869_v11 = vld [vmem:[%s11431_s1 + $0x2e0] sm:$0xff]  }
 0x170   : > { %v880_v24 = vpop.f32.mrf.mxu0  ;;  %v1585_v27 = vpop.f32.mrf.mxu1  ;;  %v8766_v20 = vld [vmem:[%s9984_s14 + $0x84] ss:$8 sps:$4 sm:$0xff]  }
 0x171   : > { %v10203_v32 = vadd.f32 %v1585_v27, %v880_v24 }
 0x172   : > { %v882_v33 = vpop.f32.mrf.mxu0  ;;  %4023 = vmatpush2.bf16.msra.mxu0 %v8840_v19  ;;  %v1587_v37 = vpop.f32.mrf.mxu1  ;;  %4895 = vmatpush2.bf16.msra.mxu1 %v8841_v23  ;;  %v8761_v19 = vld [vmem:[%s9990_s17 + $0x70] ss:$8 sps:$4 sm:$0xff]  }
 0x173   : > { %4024 = vmatprep.subr.bf16.mxu0 %v11433_v1  ;;  %4896 = vmatprep.subr.bf16.mxu1 %v11433_v1 }
 0x174   : > { %v885_v40 = vpop.f32.mrf.mxu0  ;;  %2333 = vmatmul.mubr.bf16.gmra.mxu0 %v8744_v25  ;;  %v1590_v42 = vpop.f32.mrf.mxu1  ;;  %3205 = vmatmul.mubr.bf16.gmra.mxu1 %v8747_v28  ;;  %v8769_v25 = vld [vmem:[%s9990_s17 + $0x84] ss:$8 sps:$4 sm:$0xff]  }
 0x175   : > { %2340 = vmatprep.mubr.bf16.mxu0 %v8752_v29  ;;  %v10214_v44 = vadd.f32 %v1590_v42, %v885_v40  ;;  %3212 = vmatprep.mubr.bf16.mxu1 %v8755_v34  ;;  %v8767_v42 = vld [vmem:[%s9990_s17 + $0x80] ss:$8 sps:$4 sm:$0xff]  }
 0x176   : > { %v887_v46 = vpop.f32.mrf.mxu0  ;;  %4025 = vmatpush2.bf16.msra.mxu0 %v8854_v35  ;;  %v1592_v47 = vpop.f32.mrf.mxu1  ;;  %4897 = vmatpush2.bf16.msra.mxu1 %v8855_v38  ;;  %v8764_v38 = vld [vmem:[%s9984_s14 + $0x80] ss:$8 sps:$4 sm:$0xff]  }
 0x177   : > { %4026 = vmatprep.subr.bf16.mxu0 %v11433_v1  ;;  %4898 = vmatprep.subr.bf16.mxu1 %v11433_v1  ;;  %v8774_v46 = vld [vmem:[%s9984_s14 + $0x94] ss:$8 sps:$4 sm:$0xff]  }
 0x178   : > { %v888_v48 = vpop.f32.mrf.mxu0  ;;  %v1593_v53 = vpop.f32.mrf.mxu1 }
 0x179   : > { %v10221_v58 = vadd.f32 %v1593_v53, %v888_v48 }
 0x17a   : > { %v890_v59 = vpop.f32.mrf.mxu0  ;;  %v1595_v62 = vpop.f32.mrf.mxu1  ;;  %4027 = vmatpush2.bf16.msra.mxu0 %v8868_v9  ;;  %4899 = vmatpush2.bf16.msra.mxu1 %v8869_v11  ;;  %v8772_v9 = vld [vmem:[%s9984_s14 + $0x90] ss:$8 sps:$4 sm:$0xff]  }
 0x17b   : > { %4028 = vmatprep.subr.bf16.mxu0 %v11433_v1  ;;  %4900 = vmatprep.subr.bf16.mxu1 %v11433_v1  ;;  %v8775_v11 = vld [vmem:[%s9990_s17 + $0x90] ss:$8 sps:$4 sm:$0xff]  }
 0x17c   : > { %v893_v63 = vpop.f32.mrf.mxu0  ;;  %2341 = vmatmul.mubr.bf16.gmra.mxu0 %v8750_v49  ;;  %v1598_v3 = vpop.f32.mrf.mxu1  ;;  %3213 = vmatmul.mubr.bf16.gmra.mxu1 %v8753_v55  ;;  %v8777_v49 = vld [vmem:[%s9990_s17 + $0x94] ss:$8 sps:$4 sm:$0xff]  }
 0x17d   : > { %2348 = vmatprep.mubr.bf16.mxu0 %v8760_v56  ;;  %v10224_v6 = vadd.f32 %v1598_v3, %v893_v63  ;;  %3220 = vmatprep.mubr.bf16.mxu1 %v8763_v60  ;;  %v8882_v63 = vld [vmem:[%s11431_s1 + $0x258] sm:$0xff]  }
 0x17e   : > { %v895_v7 = vpop.f32.mrf.mxu0  ;;  %v1600_v10 = vpop.f32.mrf.mxu1  ;;  %v8883_v3 = vld [vmem:[%s11431_s1 + $0x2d8] sm:$0xff]   ;;  %4029 = vmatpush2.bf16.msra.mxu0 %v8882_v63  ;;  %v8896_v63 = vld [vmem:[%s11431_s1 + $0x250] sm:$0xff]  }
 0x17f   : > { %4901 = vmatpush2.bf16.msra.mxu1 %v8883_v3  ;;  %4030 = vmatprep.subr.bf16.mxu0 %v11433_v1  ;;  %v8897_v3 = vld [vmem:[%s11431_s1 + $0x2d0] sm:$0xff]  }
 0x180   : > { %v896_v12 = vpop.f32.mrf.mxu0  ;;  %v1601_v18 = vpop.f32.mrf.mxu1  ;;  %4902 = vmatprep.subr.bf16.mxu1 %v11433_v1 }
 0x181   : > { %v10236_v23 = vadd.f32 %v1601_v18, %v896_v12  ;;  %v8780_v12 = vld [vmem:[%s9984_s14 + $0xa4] ss:$8 sps:$4 sm:$0xff]  }
 0x182   : > { %v898_v24 = vpop.f32.mrf.mxu0  ;;  %v1603_v27 = vpop.f32.mrf.mxu1  ;;  %4031 = vmatpush2.bf16.msra.mxu0 %v8896_v63 }
 0x183   : > { %4903 = vmatpush2.bf16.msra.mxu1 %v8897_v3  ;;  %4032 = vmatprep.subr.bf16.mxu0 %v11433_v1 }
 0x184   : > { %v901_v28 = vpop.f32.mrf.mxu0  ;;  %2349 = vmatmul.mubr.bf16.gmra.mxu0 %v8758_v13  ;;  %v1606_v29 = vpop.f32.mrf.mxu1  ;;  %3221 = vmatmul.mubr.bf16.gmra.mxu1 %v8761_v19  ;;  %v8783_v19 = vld [vmem:[%s9990_s17 + $0xa4] ss:$8 sps:$4 sm:$0xff]  }
 0x185   : > { %2356 = vmatprep.mubr.bf16.mxu0 %v8766_v20  ;;  %v10240_v33 = vadd.f32 %v1606_v29, %v901_v28  ;;  %3228 = vmatprep.mubr.bf16.mxu1 %v8769_v25 }
 0x186   : > { %v903_v34 = vpop.f32.mrf.mxu0  ;;  %v1608_v35 = vpop.f32.mrf.mxu1  ;;  %4904 = vmatprep.subr.bf16.mxu1 %v11433_v1 }
 0x187   : > { %v8778_v35 = vld [vmem:[%s9984_s14 + $0xa0] ss:$8 sps:$4 sm:$0xff]  }
 0x188   : > { %v904_v37 = vpop.f32.mrf.mxu0  ;;  %v1609_v40 = vpop.f32.mrf.mxu1 }
 0x189   : > { %v10245_v47 = vadd.f32 %v1609_v40, %v904_v37  ;;  %v8788_v40 = vld [vmem:[%s9984_s14 + $0xb4] ss:$8 sps:$4 sm:$0xff]  }
 0x18a   : > { %v906_v48 = vpop.f32.mrf.mxu0  ;;  %v1611_v53 = vpop.f32.mrf.mxu1 }
 0x18b   : > { %v8791_v48 = vld [vmem:[%s9990_s17 + $0xb4] ss:$8 sps:$4 sm:$0xff]  }
 0x18c   : > { %v909_v55 = vpop.f32.mrf.mxu0  ;;  %2357 = vmatmul.mubr.bf16.gmra.mxu0 %v8764_v38  ;;  %v1614_v56 = vpop.f32.mrf.mxu1  ;;  %3229 = vmatmul.mubr.bf16.gmra.mxu1 %v8767_v42  ;;  %v8781_v38 = vld [vmem:[%s9990_s17 + $0xa0] ss:$8 sps:$4 sm:$0xff]  }
 0x18d   : > { %2364 = vmatprep.mubr.bf16.mxu0 %v8774_v46  ;;  %v10248_v59 = vadd.f32 %v1614_v56, %v909_v55  ;;  %3236 = vmatprep.mubr.bf16.mxu1 %v8777_v49 }
 0x18e   : > { %v911_v60 = vpop.f32.mrf.mxu0  ;;  %v1616_v62 = vpop.f32.mrf.mxu1 }
 0x190   : > { %v912_v7 = vpop.f32.mrf.mxu0  ;;  %v1617_v10 = vpop.f32.mrf.mxu1 }
 0x191   : > { %v10259_v13 = vadd.f32 %v1617_v10, %v912_v7 }
 0x192   : > { %v914_v18 = vpop.f32.mrf.mxu0  ;;  %v1619_v20 = vpop.f32.mrf.mxu1 }
 0x193   : > { %v8797_v20 = vld [vmem:[%s9990_s17 + $0xc4] ss:$8 sps:$4 sm:$0xff]  }
 0x194   : > { %v917_v24 = vpop.f32.mrf.mxu0  ;;  %2365 = vmatmul.mubr.bf16.gmra.mxu0 %v8772_v9  ;;  %v1622_v25 = vpop.f32.mrf.mxu1  ;;  %3237 = vmatmul.mubr.bf16.gmra.mxu1 %v8775_v11  ;;  %v8786_v9 = vld [vmem:[%s9984_s14 + $0xb0] ss:$8 sps:$4 sm:$0xff]  }
 0x195   : > { %2372 = vmatprep.mubr.bf16.mxu0 %v8780_v12  ;;  %v10264_v27 = vadd.f32 %v1622_v25, %v917_v24  ;;  %3244 = vmatprep.mubr.bf16.mxu1 %v8783_v19  ;;  %v8789_v11 = vld [vmem:[%s9990_s17 + $0xb0] ss:$8 sps:$4 sm:$0xff]   ;;  %v8794_v12 = vld [vmem:[%s9984_s14 + $0xc4] ss:$8 sps:$4 sm:$0xff]  }
 0x196   : > { %v919_v28 = vpop.f32.mrf.mxu0  ;;  %v1624_v29 = vpop.f32.mrf.mxu1 }
 0x198   : > { %v920_v34 = vpop.f32.mrf.mxu0  ;;  %v1625_v37 = vpop.f32.mrf.mxu1 }
 0x199   : > { %v10269_v42 = vadd.f32 %v1625_v37, %v920_v34 }
 0x19a   : > { %v922_v46 = vpop.f32.mrf.mxu0  ;;  %v1627_v49 = vpop.f32.mrf.mxu1 }
 0x19b   : > { %v8795_v46 = vld [vmem:[%s9990_s17 + $0xc0] ss:$8 sps:$4 sm:$0xff]  }
 0x19c   : > { %v925_v53 = vpop.f32.mrf.mxu0  ;;  %2373 = vmatmul.mubr.bf16.gmra.mxu0 %v8778_v35  ;;  %v1630_v55 = vpop.f32.mrf.mxu1  ;;  %3245 = vmatmul.mubr.bf16.gmra.mxu1 %v8781_v38  ;;  %v8792_v38 = vld [vmem:[%s9984_s14 + $0xc0] ss:$8 sps:$4 sm:$0xff]  }
 0x19d   : > { %2380 = vmatprep.mubr.bf16.mxu0 %v8788_v40  ;;  %v10272_v56 = vadd.f32 %v1630_v55, %v925_v53  ;;  %3252 = vmatprep.mubr.bf16.mxu1 %v8791_v48  ;;  %v8802_v48 = vld [vmem:[%s9984_s14 + $0xd4] ss:$8 sps:$4 sm:$0xff]  }
 0x19e   : > { %v927_v60 = vpop.f32.mrf.mxu0  ;;  %v1632_v62 = vpop.f32.mrf.mxu1  ;;  %v8805_v55 = vld [vmem:[%s9990_s17 + $0xd4] ss:$8 sps:$4 sm:$0xff]  }
 0x1a0   : > { %v928_v7 = vpop.f32.mrf.mxu0  ;;  %v1633_v10 = vpop.f32.mrf.mxu1 }
 0x1a1   : > { %v10283_v18 = vadd.f32 %v1633_v10, %v928_v7  ;;  %v8910_v10 = vld [vmem:[%s11431_s1 + $0x248] sm:$0xff]  }
 0x1a2   : > { %v930_v19 = vpop.f32.mrf.mxu0  ;;  %v1635_v24 = vpop.f32.mrf.mxu1  ;;  %4033 = vmatpush2.bf16.msra.mxu0 %v8910_v10 }
 0x1a3   : > { %v8800_v19 = vld [vmem:[%s9984_s14 + $0xd0] ss:$8 sps:$4 sm:$0xff]   ;;  %4034 = vmatprep.subr.bf16.mxu0 %v11433_v1 }
 0x1a4   : > { %v933_v25 = vpop.f32.mrf.mxu0  ;;  %2381 = vmatmul.mubr.bf16.gmra.mxu0 %v8786_v9  ;;  %v1638_v28 = vpop.f32.mrf.mxu1  ;;  %3253 = vmatmul.mubr.bf16.gmra.mxu1 %v8789_v11  ;;  %v8911_v11 = vld [vmem:[%s11431_s1 + $0x2c8] sm:$0xff]   ;;  %v8803_v24 = vld [vmem:[%s9990_s17 + $0xd0] ss:$8 sps:$4 sm:$0xff]  }
 0x1a5   : > { %2388 = vmatprep.mubr.bf16.mxu0 %v8794_v12  ;;  %v10288_v29 = vadd.f32 %v1638_v28, %v933_v25  ;;  %3260 = vmatprep.mubr.bf16.mxu1 %v8797_v20  ;;  %v8808_v25 = vld [vmem:[%s9984_s14 + $0xe4] ss:$8 sps:$4 sm:$0xff]  }
 0x1a6   : > { %v935_v34 = vpop.f32.mrf.mxu0  ;;  %v1640_v35 = vpop.f32.mrf.mxu1  ;;  %4905 = vmatpush2.bf16.msra.mxu1 %v8911_v11  ;;  %v8819_v11 = vld [vmem:[%s9990_s17 + $0xf4] ss:$8 sps:$4 sm:$0xff]  }
 0x1a7   : > { %v8811_v35 = vld [vmem:[%s9990_s17 + $0xe4] ss:$8 sps:$4 sm:$0xff]   ;;  %4906 = vmatprep.subr.bf16.mxu1 %v11433_v1 }
 0x1a8   : > { %v936_v37 = vpop.f32.mrf.mxu0  ;;  %v1641_v40 = vpop.f32.mrf.mxu1 }
 0x1a9   : > { %v10293_v49 = vadd.f32 %v1641_v40, %v936_v37 }
 0x1aa   : > { %v938_v53 = vpop.f32.mrf.mxu0  ;;  %v1643_v60 = vpop.f32.mrf.mxu1 }
 0x1ab   : > { %v8806_v60 = vld [vmem:[%s9984_s14 + $0xe0] ss:$8 sps:$4 sm:$0xff]  }
 0x1ac   : > { %v941_v62 = vpop.f32.mrf.mxu0  ;;  %2389 = vmatmul.mubr.bf16.gmra.mxu0 %v8792_v38  ;;  %v1646_v63 = vpop.f32.mrf.mxu1  ;;  %3261 = vmatmul.mubr.bf16.gmra.mxu1 %v8795_v46 }
 0x1ad   : > { %2396 = vmatprep.mubr.bf16.mxu0 %v8802_v48  ;;  %v10296_v3 = vadd.f32 %v1646_v63, %v941_v62  ;;  %3268 = vmatprep.mubr.bf16.mxu1 %v8805_v55  ;;  %v8809_v63 = vld [vmem:[%s9990_s17 + $0xe0] ss:$8 sps:$4 sm:$0xff]  }
 0x1ae   : > { %v943_v7 = vpop.f32.mrf.mxu0  ;;  %v1648_v9 = vpop.f32.mrf.mxu1 }
 0x1af   : > { %v8816_v7 = vld [vmem:[%s9984_s14 + $0xf4] ss:$8 sps:$4 sm:$0xff]  }
 0x1b0   : > { %v944_v12 = vpop.f32.mrf.mxu0  ;;  %v1649_v20 = vpop.f32.mrf.mxu1 }
 0x1b1   : > { %v10307_v28 = vadd.f32 %v1649_v20, %v944_v12 }
 0x1b2   : > { %v946_v34 = vpop.f32.mrf.mxu0  ;;  %v1651_v37 = vpop.f32.mrf.mxu1 }
 0x1b3   : > { %v8925_v37 = vld [vmem:[%s11431_s1 + $0x2c0] sm:$0xff]  }
 0x1b4   : > { %v949_v38 = vpop.f32.mrf.mxu0  ;;  %2397 = vmatmul.mubr.bf16.gmra.mxu0 %v8800_v19  ;;  %v1654_v40 = vpop.f32.mrf.mxu1  ;;  %3269 = vmatmul.mubr.bf16.gmra.mxu1 %v8803_v24 }
 0x1b5   : > { %2404 = vmatprep.mubr.bf16.mxu0 %v8808_v25  ;;  %v10312_v46 = vadd.f32 %v1654_v40, %v949_v38  ;;  %3276 = vmatprep.mubr.bf16.mxu1 %v8811_v35  ;;  %v8924_v35 = vld [vmem:[%s11431_s1 + $0x240] sm:$0xff]   ;;  %v8814_v40 = vld [vmem:[%s9984_s14 + $0xf0] ss:$8 sps:$4 sm:$0xff]  }
 0x1b6   : > { %v951_v48 = vpop.f32.mrf.mxu0  ;;  %v1656_v53 = vpop.f32.mrf.mxu1  ;;  %4035 = vmatpush2.bf16.msra.mxu0 %v8924_v35  ;;  %4907 = vmatpush2.bf16.msra.mxu1 %v8925_v37  ;;  %v8823_v37 = vld [vmem:[%s9990_s17 + $0x100] ss:$8 sps:$4 sm:$0xff]  }
 0x1b7   : > { %v8817_v53 = vld [vmem:[%s9990_s17 + $0xf0] ss:$8 sps:$4 sm:$0xff]   ;;  %5748 = vmatprep.subr.bf16.mxu0 %v11433_v1  ;;  %6620 = vmatprep.subr.bf16.mxu1 %v11433_v1 }
 0x1b8   : > { %v952_v55 = vpop.f32.mrf.mxu0  ;;  %v1657_v62 = vpop.f32.mrf.mxu1 }
 0x1b9   : > { %v10317_v9 = vadd.f32 %v1657_v62, %v952_v55  ;;  %v8822_v55 = vld [vmem:[%s9984_s14 + $0x104] ss:$8 sps:$4 sm:$0xff]  }
 0x1ba   : > { %v954_v10 = vpop.f32.mrf.mxu0  ;;  %v1659_v12 = vpop.f32.mrf.mxu1 }
 0x1bc   : > { %v957_v19 = vpop.f32.mrf.mxu0  ;;  %2405 = vmatmul.mubr.bf16.gmra.mxu0 %v8806_v60  ;;  %v1662_v20 = vpop.f32.mrf.mxu1  ;;  %3277 = vmatmul.mubr.bf16.gmra.mxu1 %v8809_v63  ;;  %v8825_v63 = vld [vmem:[%s9990_s17 + $0x104] ss:$8 sps:$4 sm:$0xff]  }
 0x1bd   : > { %2412 = vmatprep.mubr.bf16.mxu0 %v8816_v7  ;;  %v10320_v24 = vadd.f32 %v1662_v20, %v957_v19  ;;  %3284 = vmatprep.mubr.bf16.mxu1 %v8819_v11 }
 0x1be   : > { %v959_v25 = vpop.f32.mrf.mxu0  ;;  %v1664_v34 = vpop.f32.mrf.mxu1 }
 0x1bf   : > { %v8820_v34 = vld [vmem:[%s9984_s14 + $0x100] ss:$8 sps:$4 sm:$0xff]  }
 0x1c0   : > { %v960_v38 = vpop.f32.mrf.mxu0  ;;  %v1665_v48 = vpop.f32.mrf.mxu1 }
 0x1c1   : > { %v10331_v60 = vadd.f32 %v1665_v48, %v960_v38  ;;  %v8830_v38 = vld [vmem:[%s9984_s14 + $0x114] ss:$8 sps:$4 sm:$0xff]  }
 0x1c2   : > { %v962_v62 = vpop.f32.mrf.mxu0  ;;  %v1667_v7 = vpop.f32.mrf.mxu1 }
 0x1c4   : > { %v965_v10 = vpop.f32.mrf.mxu0  ;;  %2413 = vmatmul.mubr.bf16.gmra.mxu0 %v8814_v40  ;;  %v1670_v11 = vpop.f32.mrf.mxu1  ;;  %3285 = vmatmul.mubr.bf16.gmra.mxu1 %v8817_v53  ;;  %v8833_v53 = vld [vmem:[%s9990_s17 + $0x114] ss:$8 sps:$4 sm:$0xff]  }
 0x1c5   : > { %2420 = vmatprep.mubr.bf16.mxu0 %v8822_v55  ;;  %v10336_v12 = vadd.f32 %v1670_v11, %v965_v10  ;;  %3292 = vmatprep.mubr.bf16.mxu1 %v8825_v63  ;;  %v8828_v11 = vld [vmem:[%s9984_s14 + $0x110] ss:$8 sps:$4 sm:$0xff]  }
 0x1c6   : > { %v967_v19 = vpop.f32.mrf.mxu0  ;;  %v1672_v20 = vpop.f32.mrf.mxu1 }
 0x1c7   : > { %11435 = vst [vmem:[#allocation2_spill] sm:$0xff] %v10336_v12  ;;  %v8831_v20 = vld [vmem:[%s9990_s17 + $0x110] ss:$8 sps:$4 sm:$0xff]  }
 0x1c8   : > { %v968_v25 = vpop.f32.mrf.mxu0  ;;  %v1673_v35 = vpop.f32.mrf.mxu1 }
 0x1c9   : > { %v10348_v40 = vadd.f32 %v1673_v35, %v968_v25  ;;  %v8836_v25 = vld [vmem:[%s9984_s14 + $0x124] ss:$8 sps:$4 sm:$0xff]  }
 0x1ca   : > { %v970_v48 = vpop.f32.mrf.mxu0  ;;  %v1675_v55 = vpop.f32.mrf.mxu1 }
 0x1cb   : > { %11436 = vst [vmem:[#allocation3_spill] sm:$0xff] %v10348_v40 }
 0x1cc   : > { %v973_v62 = vpop.f32.mrf.mxu0  ;;  %2421 = vmatmul.mubr.bf16.gmra.mxu0 %v8820_v34  ;;  %v1678_v63 = vpop.f32.mrf.mxu1  ;;  %3293 = vmatmul.mubr.bf16.gmra.mxu1 %v8823_v37  ;;  %v8839_v34 = vld [vmem:[%s9990_s17 + $0x124] ss:$8 sps:$4 sm:$0xff]  }
 0x1cd   : > { %2428 = vmatprep.mubr.bf16.mxu0 %v8830_v38  ;;  %v10356_v7 = vadd.f32 %v1678_v63, %v973_v62  ;;  %3300 = vmatprep.mubr.bf16.mxu1 %v8833_v53  ;;  %v8834_v63 = vld [vmem:[%s9984_s14 + $0x120] ss:$8 sps:$4 sm:$0xff]  }
 0x1ce   : > { %v975_v10 = vpop.f32.mrf.mxu0  ;;  %v1680_v19 = vpop.f32.mrf.mxu1 }
 0x1cf   : > { %11437 = vst [vmem:[#allocation4_spill] sm:$0xff] %v10356_v7  ;;  %v8837_v19 = vld [vmem:[%s9990_s17 + $0x120] ss:$8 sps:$4 sm:$0xff]   ;;  %v8844_v7 = vld [vmem:[%s9984_s14 + $0x134] ss:$8 sps:$4 sm:$0xff]  }
 0x1d0   : > { %v976_v35 = vpop.f32.mrf.mxu0  ;;  %v1681_v48 = vpop.f32.mrf.mxu1 }
 0x1d1   : > { %v10361_v55 = vadd.f32 %v1681_v48, %v976_v35 }
 0x1d2   : > { %v978_v1 = vpop.f32.mrf.mxu0  ;;  %v1683_v40 = vpop.f32.mrf.mxu1 }
 0x1d3   : > { %11438 = vst [vmem:[#allocation5_spill] sm:$0xff] %v10361_v55 }
 0x1d4   : > { %v981_v37 = vpop.f32.mrf.mxu0  ;;  %2429 = vmatmul.mubr.bf16.gmra.mxu0 %v8828_v11  ;;  %v1686_v38 = vpop.f32.mrf.mxu1  ;;  %3301 = vmatmul.mubr.bf16.gmra.mxu1 %v8831_v20  ;;  %v8847_v11 = vld [vmem:[%s9990_s17 + $0x134] ss:$8 sps:$4 sm:$0xff]  }
 0x1d5   : > { %2436 = vmatprep.mubr.bf16.mxu0 %v8836_v25  ;;  %v10364_v53 = vadd.f32 %v1686_v38, %v981_v37  ;;  %3308 = vmatprep.mubr.bf16.mxu1 %v8839_v34  ;;  %v8842_v38 = vld [vmem:[%s9984_s14 + $0x130] ss:$8 sps:$4 sm:$0xff]  }
 0x1d6   : > { %v983_v62 = vpop.f32.mrf.mxu0  ;;  %v1688_v10 = vpop.f32.mrf.mxu1 }
 0x1d7   : > { %11439 = vst [vmem:[#allocation6_spill] sm:$0xff] %v10364_v53  ;;  %v8845_v10 = vld [vmem:[%s9990_s17 + $0x130] ss:$8 sps:$4 sm:$0xff]   ;;  %v8850_v53 = vld [vmem:[%s9984_s14 + $0x144] ss:$8 sps:$4 sm:$0xff]  }
 0x1d8   : > { %v984_v35 = vpop.f32.mrf.mxu0  ;;  %v1689_v1 = vpop.f32.mrf.mxu1 }
 0x1d9   : > { %v10369_v40 = vadd.f32 %v1689_v1, %v984_v35 }
 0x1da   : > { %v986_v48 = vpop.f32.mrf.mxu0  ;;  %v1691_v55 = vpop.f32.mrf.mxu1 }
 0x1db   : > { %11440 = vst [vmem:[#allocation7_spill] sm:$0xff] %v10369_v40 }
 0x1dc   : > { %v989_v20 = vpop.f32.mrf.mxu0  ;;  %2437 = vmatmul.mubr.bf16.gmra.mxu0 %v8834_v63  ;;  %v1694_v25 = vpop.f32.mrf.mxu1  ;;  %3309 = vmatmul.mubr.bf16.gmra.mxu1 %v8837_v19  ;;  %v8853_v63 = vld [vmem:[%s9990_s17 + $0x144] ss:$8 sps:$4 sm:$0xff]  }
 0x1dd   : > { %2444 = vmatprep.mubr.bf16.mxu0 %v8844_v7  ;;  %v10372_v34 = vadd.f32 %v1694_v25, %v989_v20  ;;  %3316 = vmatprep.mubr.bf16.mxu1 %v8847_v11  ;;  %v8848_v25 = vld [vmem:[%s9984_s14 + $0x140] ss:$8 sps:$4 sm:$0xff]  }
 0x1de   : > { %v991_v37 = vpop.f32.mrf.mxu0  ;;  %v1696_v62 = vpop.f32.mrf.mxu1 }
 0x1df   : > { %11441 = vst [vmem:[#allocation8_spill] sm:$0xff] %v10372_v34  ;;  %v8851_v62 = vld [vmem:[%s9990_s17 + $0x140] ss:$8 sps:$4 sm:$0xff]   ;;  %v8858_v34 = vld [vmem:[%s9984_s14 + $0x154] ss:$8 sps:$4 sm:$0xff]  }
 0x1e0   : > { %v992_v35 = vpop.f32.mrf.mxu0  ;;  %v1697_v1 = vpop.f32.mrf.mxu1 }
 0x1e1   : > { %v10377_v55 = vadd.f32 %v1697_v1, %v992_v35 }
 0x1e2   : > { %v994_v48 = vpop.f32.mrf.mxu0  ;;  %v1699_v40 = vpop.f32.mrf.mxu1 }
 0x1e3   : > { %11442 = vst [vmem:[#allocation9_spill] sm:$0xff] %v10377_v55 }
 0x1e4   : > { %v997_v19 = vpop.f32.mrf.mxu0  ;;  %2445 = vmatmul.mubr.bf16.gmra.mxu0 %v8842_v38  ;;  %v1702_v7 = vpop.f32.mrf.mxu1  ;;  %3317 = vmatmul.mubr.bf16.gmra.mxu1 %v8845_v10  ;;  %v8861_v38 = vld [vmem:[%s9990_s17 + $0x154] ss:$8 sps:$4 sm:$0xff]  }
 0x1e5   : > { %2452 = vmatprep.mubr.bf16.mxu0 %v8850_v53  ;;  %v10380_v11 = vadd.f32 %v1702_v7, %v997_v19  ;;  %3324 = vmatprep.mubr.bf16.mxu1 %v8853_v63  ;;  %v8856_v7 = vld [vmem:[%s9984_s14 + $0x150] ss:$8 sps:$4 sm:$0xff]  }
 0x1e6   : > { %v999_v20 = vpop.f32.mrf.mxu0  ;;  %v1704_v37 = vpop.f32.mrf.mxu1 }
 0x1e7   : > { %11443 = vst [vmem:[#allocation10_spill] sm:$0xff] %v10380_v11  ;;  %v8859_v37 = vld [vmem:[%s9990_s17 + $0x150] ss:$8 sps:$4 sm:$0xff]   ;;  %v8864_v11 = vld [vmem:[%s9984_s14 + $0x164] ss:$8 sps:$4 sm:$0xff]  }
 0x1e8   : > { %v1000_v35 = vpop.f32.mrf.mxu0  ;;  %v1705_v1 = vpop.f32.mrf.mxu1 }
 0x1e9   : > { %v10385_v40 = vadd.f32 %v1705_v1, %v1000_v35 }
 0x1ea   : > { %v1002_v48 = vpop.f32.mrf.mxu0  ;;  %v1707_v55 = vpop.f32.mrf.mxu1 }
 0x1eb   : > { %11444 = vst [vmem:[#allocation11_spill] sm:$0xff] %v10385_v40 }
 0x1ec   : > { %v1005_v10 = vpop.f32.mrf.mxu0  ;;  %2453 = vmatmul.mubr.bf16.gmra.mxu0 %v8848_v25  ;;  %v1710_v53 = vpop.f32.mrf.mxu1  ;;  %3325 = vmatmul.mubr.bf16.gmra.mxu1 %v8851_v62  ;;  %v8867_v25 = vld [vmem:[%s9990_s17 + $0x164] ss:$8 sps:$4 sm:$0xff]  }
 0x1ed   : > { %2460 = vmatprep.mubr.bf16.mxu0 %v8858_v34  ;;  %v10388_v63 = vadd.f32 %v1710_v53, %v1005_v10  ;;  %3332 = vmatprep.mubr.bf16.mxu1 %v8861_v38  ;;  %v8862_v53 = vld [vmem:[%s9984_s14 + $0x160] ss:$8 sps:$4 sm:$0xff]  }
 0x1ee   : > { %v1007_v19 = vpop.f32.mrf.mxu0  ;;  %v1712_v20 = vpop.f32.mrf.mxu1 }
 0x1ef   : > { %11445 = vst [vmem:[#allocation12_spill] sm:$0xff] %v10388_v63  ;;  %v8865_v20 = vld [vmem:[%s9990_s17 + $0x160] ss:$8 sps:$4 sm:$0xff]   ;;  %v8872_v63 = vld [vmem:[%s9984_s14 + $0x174] ss:$8 sps:$4 sm:$0xff]  }
 0x1f0   : > { %v1008_v35 = vpop.f32.mrf.mxu0  ;;  %v1713_v1 = vpop.f32.mrf.mxu1 }
 0x1f1   : > { %v10393_v55 = vadd.f32 %v1713_v1, %v1008_v35 }
 0x1f2   : > { %v1010_v48 = vpop.f32.mrf.mxu0  ;;  %v1715_v40 = vpop.f32.mrf.mxu1 }
 0x1f3   : > { %11446 = vst [vmem:[#allocation13_spill] sm:$0xff] %v10393_v55 }
 0x1f4   : > { %v1013_v62 = vpop.f32.mrf.mxu0  ;;  %2461 = vmatmul.mubr.bf16.gmra.mxu0 %v8856_v7  ;;  %v1718_v34 = vpop.f32.mrf.mxu1  ;;  %3333 = vmatmul.mubr.bf16.gmra.mxu1 %v8859_v37  ;;  %v8875_v7 = vld [vmem:[%s9990_s17 + $0x174] ss:$8 sps:$4 sm:$0xff]  }
 0x1f5   : > { %2468 = vmatprep.mubr.bf16.mxu0 %v8864_v11  ;;  %v10396_v38 = vadd.f32 %v1718_v34, %v1013_v62  ;;  %3340 = vmatprep.mubr.bf16.mxu1 %v8867_v25 }
 0x1f6   : > { %v1015_v10 = vpop.f32.mrf.mxu0  ;;  %v1720_v19 = vpop.f32.mrf.mxu1 }
 0x1f7   : > { %11447 = vst [vmem:[#allocation14_spill] sm:$0xff] %v10396_v38  ;;  %v8870_v19 = vld [vmem:[%s9984_s14 + $0x170] ss:$8 sps:$4 sm:$0xff]  }
 0x1f8   : > { %v1016_v12 = vpop.f32.mrf.mxu0  ;;  %v1721_v35 = vpop.f32.mrf.mxu1 }
 0x1f9   : > { %v10401_v1 = vadd.f32 %v1721_v35, %v1016_v12  ;;  %v8873_v35 = vld [vmem:[%s9990_s17 + $0x170] ss:$8 sps:$4 sm:$0xff]  }
 0x1fa   : > { %v1018_v40 = vpop.f32.mrf.mxu0  ;;  %v1723_v48 = vpop.f32.mrf.mxu1 }
 0x1fb   : > { %11448 = vst [vmem:[#allocation15_spill] sm:$0xff] %v10401_v1  ;;  %v8878_v40 = vld [vmem:[%s9984_s14 + $0x184] ss:$8 sps:$4 sm:$0xff]  }
 0x1fc   : > { %v1021_v37 = vpop.f32.mrf.mxu0  ;;  %2469 = vmatmul.mubr.bf16.gmra.mxu0 %v8862_v53  ;;  %v1726_v11 = vpop.f32.mrf.mxu1  ;;  %3341 = vmatmul.mubr.bf16.gmra.mxu1 %v8865_v20  ;;  %v8881_v53 = vld [vmem:[%s9990_s17 + $0x184] ss:$8 sps:$4 sm:$0xff]  }
 0x1fd   : > { %2476 = vmatprep.mubr.bf16.mxu0 %v8872_v63  ;;  %v10404_v25 = vadd.f32 %v1726_v11, %v1021_v37  ;;  %3348 = vmatprep.mubr.bf16.mxu1 %v8875_v7 }
 0x1fe   : > { %v1023_v62 = vpop.f32.mrf.mxu0  ;;  %v1728_v34 = vpop.f32.mrf.mxu1 }
 0x1ff   : > { %11449 = vst [vmem:[#allocation16_spill] sm:$0xff] %v10404_v25  ;;  %v8876_v34 = vld [vmem:[%s9984_s14 + $0x180] ss:$8 sps:$4 sm:$0xff]   ;;  %v8889_v25 = vld [vmem:[%s9990_s17 + $0x194] ss:$8 sps:$4 sm:$0xff]  }
 0x200   : > { %v1024_v10 = vpop.f32.mrf.mxu0  ;;  %v1729_v12 = vpop.f32.mrf.mxu1 }
 0x201   : > { %v10409_v1 = vadd.f32 %v1729_v12, %v1024_v10  ;;  %v8879_v12 = vld [vmem:[%s9990_s17 + $0x180] ss:$8 sps:$4 sm:$0xff]  }
 0x202   : > { %v1026_v48 = vpop.f32.mrf.mxu0  ;;  %v1731_v38 = vpop.f32.mrf.mxu1 }
 0x203   : > { %11450 = vst [vmem:[#allocation17_spill] sm:$0xff] %v10409_v1  ;;  %v8886_v1 = vld [vmem:[%s9984_s14 + $0x194] ss:$8 sps:$4 sm:$0xff]  }
 0x204   : > { %v1029_v20 = vpop.f32.mrf.mxu0  ;;  %2477 = vmatmul.mubr.bf16.gmra.mxu0 %v8870_v19  ;;  %v1734_v63 = vpop.f32.mrf.mxu1  ;;  %3349 = vmatmul.mubr.bf16.gmra.mxu1 %v8873_v35 }
 0x205   : > { %2484 = vmatprep.mubr.bf16.mxu0 %v8878_v40  ;;  %v10412_v7 = vadd.f32 %v1734_v63, %v1029_v20  ;;  %3356 = vmatprep.mubr.bf16.mxu1 %v8881_v53 }
 0x206   : > { %v1031_v37 = vpop.f32.mrf.mxu0  ;;  %v1736_v11 = vpop.f32.mrf.mxu1 }
 0x207   : > { %11451 = vst [vmem:[#allocation18_spill] sm:$0xff] %v10412_v7  ;;  %v8895_v7 = vld [vmem:[%s9990_s17 + $0x1a4] ss:$8 sps:$4 sm:$0xff]  }
 0x208   : > { %v1032_v62 = vpop.f32.mrf.mxu0  ;;  %v1737_v10 = vpop.f32.mrf.mxu1 }
 0x209   : > { %v10417_v48 = vadd.f32 %v1737_v10, %v1032_v62  ;;  %v8884_v62 = vld [vmem:[%s9984_s14 + $0x190] ss:$8 sps:$4 sm:$0xff]  }
 0x20a   : > { %v1034_v38 = vpop.f32.mrf.mxu0  ;;  %v1739_v19 = vpop.f32.mrf.mxu1 }
 0x20b   : > { %11452 = vst [vmem:[#allocation19_spill] sm:$0xff] %v10417_v48  ;;  %v8887_v19 = vld [vmem:[%s9990_s17 + $0x190] ss:$8 sps:$4 sm:$0xff]   ;;  %v8892_v48 = vld [vmem:[%s9984_s14 + $0x1a4] ss:$8 sps:$4 sm:$0xff]  }
 0x20c   : > { %v2294_v35 = vpop.f32.mrf.mxu0  ;;  %2485 = vmatmul.mubr.bf16.gmra.mxu0 %v8876_v34  ;;  %v3166_v53 = vpop.f32.mrf.mxu1  ;;  %3357 = vmatmul.mubr.bf16.gmra.mxu1 %v8879_v12 }
 0x20d   : > { %v2549_v40 = vadd.f32 %v2294_v35, %v10024_v43  ;;  %2492 = vmatprep.mubr.bf16.mxu0 %v8886_v1  ;;  %3364 = vmatprep.mubr.bf16.mxu1 %v8889_v25 }
 0x20e   : > { %v2296_v20 = vpop.f32.mrf.mxu0  ;;  %v3168_v37 = vpop.f32.mrf.mxu1 }
 0x20f   : > { %v10421_v63 = vadd.f32 %v3166_v53, %v2549_v40  ;;  %v8890_v20 = vld [vmem:[%s9984_s14 + $0x1a0] ss:$8 sps:$4 sm:$0xff]  }
 0x210   : > { %v2297_v11 = vpop.f32.mrf.mxu0  ;;  %v3169_v38 = vpop.f32.mrf.mxu1 }
 0x211   : > { %v2550_v10 = vadd.f32 %v2297_v11, %v10029_v51 }
 0x212   : > { %v2299_v34 = vpop.f32.mrf.mxu0  ;;  %v3171_v43 = vpop.f32.mrf.mxu1 }
 0x213   : > { %v10428_v55 = vadd.f32 %v3169_v38, %v2550_v10  ;;  %v8893_v10 = vld [vmem:[%s9990_s17 + $0x1a0] ss:$8 sps:$4 sm:$0xff]   ;;  %v8900_v38 = vld [vmem:[%s9984_s14 + $0x1b4] ss:$8 sps:$4 sm:$0xff]  }
 0x214   : > { %v2302_v1 = vpop.f32.mrf.mxu0  ;;  %2493 = vmatmul.mubr.bf16.gmra.mxu0 %v8884_v62  ;;  %v3174_v12 = vpop.f32.mrf.mxu1  ;;  %3365 = vmatmul.mubr.bf16.gmra.mxu1 %v8887_v19  ;;  %v8903_v34 = vld [vmem:[%s9990_s17 + $0x1b4] ss:$8 sps:$4 sm:$0xff]  }
 0x215   : > { %v2551_v25 = vadd.f32 %v2302_v1, %v10032_v57  ;;  %2500 = vmatprep.mubr.bf16.mxu0 %v8892_v48  ;;  %3372 = vmatprep.mubr.bf16.mxu1 %v8895_v7 }
 0x216   : > { %v2304_v51 = vpop.f32.mrf.mxu0  ;;  %v3176_v40 = vpop.f32.mrf.mxu1 }
 0x217   : > { %v10431_v35 = vadd.f32 %v3174_v12, %v2551_v25  ;;  %v8898_v51 = vld [vmem:[%s9984_s14 + $0x1b0] ss:$8 sps:$4 sm:$0xff]  }
 0x218   : > { %v2305_v53 = vpop.f32.mrf.mxu0  ;;  %v3177_v11 = vpop.f32.mrf.mxu1 }
 0x219   : > { %v2552_v37 = vadd.f32 %v2305_v53, %v10037_v2 }
 0x21a   : > { %v2307_v62 = vpop.f32.mrf.mxu0  ;;  %v3179_v57 = vpop.f32.mrf.mxu1 }
 0x21b   : > { %v10438_v43 = vadd.f32 %v3177_v11, %v2552_v37  ;;  %v8901_v37 = vld [vmem:[%s9990_s17 + $0x1b0] ss:$8 sps:$4 sm:$0xff]   ;;  %v8906_v11 = vld [vmem:[%s9984_s14 + $0x1c4] ss:$8 sps:$4 sm:$0xff]  }
 0x21c   : > { %v2310_v48 = vpop.f32.mrf.mxu0  ;;  %2501 = vmatmul.mubr.bf16.gmra.mxu0 %v8890_v20  ;;  %v3182_v19 = vpop.f32.mrf.mxu1  ;;  %3373 = vmatmul.mubr.bf16.gmra.mxu1 %v8893_v10  ;;  %v8909_v62 = vld [vmem:[%s9990_s17 + $0x1c4] ss:$8 sps:$4 sm:$0xff]  }
 0x21d   : > { %v2553_v7 = vadd.f32 %v2310_v48, %v10040_v8  ;;  %2508 = vmatprep.mubr.bf16.mxu0 %v8900_v38  ;;  %3380 = vmatprep.mubr.bf16.mxu1 %v8903_v34 }
 0x21e   : > { %v2312_v2 = vpop.f32.mrf.mxu0  ;;  %v3184_v25 = vpop.f32.mrf.mxu1 }
 0x21f   : > { %v10441_v1 = vadd.f32 %v3182_v19, %v2553_v7  ;;  %v8904_v2 = vld [vmem:[%s9984_s14 + $0x1c0] ss:$8 sps:$4 sm:$0xff]  }
 0x220   : > { %v2313_v12 = vpop.f32.mrf.mxu0  ;;  %v3185_v53 = vpop.f32.mrf.mxu1 }
 0x221   : > { %v2554_v40 = vadd.f32 %v2313_v12, %v10045_v16 }
 0x222   : > { %v2315_v20 = vpop.f32.mrf.mxu0  ;;  %v3187_v8 = vpop.f32.mrf.mxu1 }
 0x223   : > { %v10448_v57 = vadd.f32 %v3185_v53, %v2554_v40  ;;  %v8907_v40 = vld [vmem:[%s9990_s17 + $0x1c0] ss:$8 sps:$4 sm:$0xff]   ;;  %v8914_v53 = vld [vmem:[%s9984_s14 + $0x1d4] ss:$8 sps:$4 sm:$0xff]  }
 0x224   : > { %v2318_v10 = vpop.f32.mrf.mxu0  ;;  %2509 = vmatmul.mubr.bf16.gmra.mxu0 %v8898_v51  ;;  %v3190_v34 = vpop.f32.mrf.mxu1  ;;  %3381 = vmatmul.mubr.bf16.gmra.mxu1 %v8901_v37  ;;  %v8917_v20 = vld [vmem:[%s9990_s17 + $0x1d4] ss:$8 sps:$4 sm:$0xff]  }
 0x225   : > { %v2555_v38 = vadd.f32 %v2318_v10, %v10048_v22  ;;  %2516 = vmatprep.mubr.bf16.mxu0 %v8906_v11  ;;  %3388 = vmatprep.mubr.bf16.mxu1 %v8909_v62 }
 0x226   : > { %v2320_v16 = vpop.f32.mrf.mxu0  ;;  %v3192_v7 = vpop.f32.mrf.mxu1 }
 0x227   : > { %v10451_v48 = vadd.f32 %v3190_v34, %v2555_v38  ;;  %v8912_v16 = vld [vmem:[%s9984_s14 + $0x1d0] ss:$8 sps:$4 sm:$0xff]  }
 0x228   : > { %v2321_v19 = vpop.f32.mrf.mxu0  ;;  %v3193_v12 = vpop.f32.mrf.mxu1 }
 0x229   : > { %v2556_v25 = vadd.f32 %v2321_v19, %v10053_v30 }
 0x22a   : > { %v2323_v51 = vpop.f32.mrf.mxu0  ;;  %v3195_v22 = vpop.f32.mrf.mxu1 }
 0x22b   : > { %v10458_v8 = vadd.f32 %v3193_v12, %v2556_v25  ;;  %v8915_v25 = vld [vmem:[%s9990_s17 + $0x1d0] ss:$8 sps:$4 sm:$0xff]   ;;  %v8920_v12 = vld [vmem:[%s9984_s14 + $0x1e4] ss:$8 sps:$4 sm:$0xff]  }
 0x22c   : > { %v2326_v37 = vpop.f32.mrf.mxu0  ;;  %2517 = vmatmul.mubr.bf16.gmra.mxu0 %v8904_v2  ;;  %v3198_v62 = vpop.f32.mrf.mxu1  ;;  %3389 = vmatmul.mubr.bf16.gmra.mxu1 %v8907_v40  ;;  %v8923_v51 = vld [vmem:[%s9990_s17 + $0x1e4] ss:$8 sps:$4 sm:$0xff]  }
 0x22d   : > { %v2557_v11 = vadd.f32 %v2326_v37, %v10056_v36  ;;  %2524 = vmatprep.mubr.bf16.mxu0 %v8914_v53  ;;  %3396 = vmatprep.mubr.bf16.mxu1 %v8917_v20 }
 0x22e   : > { %v2328_v30 = vpop.f32.mrf.mxu0  ;;  %v3200_v38 = vpop.f32.mrf.mxu1 }
 0x22f   : > { %v10461_v10 = vadd.f32 %v3198_v62, %v2557_v11  ;;  %v8918_v30 = vld [vmem:[%s9984_s14 + $0x1e0] ss:$8 sps:$4 sm:$0xff]  }
 0x230   : > { %v2329_v34 = vpop.f32.mrf.mxu0  ;;  %v3201_v19 = vpop.f32.mrf.mxu1 }
 0x231   : > { %v2558_v7 = vadd.f32 %v2329_v34, %v10061_v45 }
 0x232   : > { %v2331_v2 = vpop.f32.mrf.mxu0  ;;  %v3203_v36 = vpop.f32.mrf.mxu1 }
 0x233   : > { %v10468_v22 = vadd.f32 %v3201_v19, %v2558_v7  ;;  %v8921_v7 = vld [vmem:[%s9990_s17 + $0x1e0] ss:$8 sps:$4 sm:$0xff]   ;;  %v8928_v19 = vld [vmem:[%s9984_s14 + $0x1f4] ss:$8 sps:$4 sm:$0xff]  }
 0x234   : > { %v2334_v40 = vpop.f32.mrf.mxu0  ;;  %2525 = vmatmul.mubr.bf16.gmra.mxu0 %v8912_v16  ;;  %v3206_v20 = vpop.f32.mrf.mxu1  ;;  %3397 = vmatmul.mubr.bf16.gmra.mxu1 %v8915_v25  ;;  %v8931_v2 = vld [vmem:[%s9990_s17 + $0x1f4] ss:$8 sps:$4 sm:$0xff]  }
 0x235   : > { %v2559_v53 = vadd.f32 %v2334_v40, %v10064_v52  ;;  %2532 = vmatprep.mubr.bf16.mxu0 %v8920_v12  ;;  %3404 = vmatprep.mubr.bf16.mxu1 %v8923_v51 }
 0x236   : > { %v2336_v45 = vpop.f32.mrf.mxu0  ;;  %v3208_v11 = vpop.f32.mrf.mxu1 }
 0x237   : > { %v10471_v37 = vadd.f32 %v3206_v20, %v2559_v53  ;;  %v8926_v45 = vld [vmem:[%s9984_s14 + $0x1f0] ss:$8 sps:$4 sm:$0xff]   ;;  %s8442_s14 = sshll.u32 %s6102_s20, 3 }
 0x238   : > { %v2337_v62 = vpop.f32.mrf.mxu0  ;;  %v3209_v34 = vpop.f32.mrf.mxu1  ;;  %s10794_s27 = scalar_lea.vmem %s11430_s0, %s8442_s14 }
 0x239   : > { %v2560_v38 = vadd.f32 %v2337_v62, %v10069_v61 }
 0x23a   : > { %v2339_v16 = vpop.f32.mrf.mxu0  ;;  %v3211_v52 = vpop.f32.mrf.mxu1 }
 0x23b   : > { %v10478_v36 = vadd.f32 %v3209_v34, %v2560_v38  ;;  %v8929_v38 = vld [vmem:[%s9990_s17 + $0x1f0] ss:$8 sps:$4 sm:$0xff]   ;;  %v8934_v34 = vld [vmem:[%s10346_s19 + $0x4] ss:$8 sps:$4 sm:$0xff]  }
 0x23c   : > { %v2342_v25 = vpop.f32.mrf.mxu0  ;;  %2533 = vmatmul.mubr.bf16.gmra.mxu0 %v8918_v30  ;;  %v3214_v51 = vpop.f32.mrf.mxu1  ;;  %3405 = vmatmul.mubr.bf16.gmra.mxu1 %v8921_v7  ;;  %v8937_v16 = vld [vmem:[%s10354_s22 + $0x4] ss:$8 sps:$4 sm:$0xff]  }
 0x23d   : > { %v2561_v12 = vadd.f32 %v2342_v25, %v10072_v5  ;;  %2540 = vmatprep.mubr.bf16.mxu0 %v8928_v19  ;;  %3412 = vmatprep.mubr.bf16.mxu1 %v8931_v2 }
 0x23e   : > { %v2344_v61 = vpop.f32.mrf.mxu0  ;;  %v3216_v53 = vpop.f32.mrf.mxu1 }
 0x23f   : > { %v10481_v40 = vadd.f32 %v3214_v51, %v2561_v12  ;;  %v8932_v61 = vld [vmem:[%s10346_s19] ss:$8 sps:$4 sm:$0xff]  }
 0x240   : > { %v2345_v20 = vpop.f32.mrf.mxu0  ;;  %v3217_v62 = vpop.f32.mrf.mxu1 }
 0x241   : > { %v2562_v11 = vadd.f32 %v2345_v20, %v10077_v14 }
 0x242   : > { %v2347_v30 = vpop.f32.mrf.mxu0  ;;  %v3219_v5 = vpop.f32.mrf.mxu1 }
 0x243   : > { %v10488_v52 = vadd.f32 %v3217_v62, %v2562_v11  ;;  %v8935_v11 = vld [vmem:[%s10354_s22] ss:$8 sps:$4 sm:$0xff]   ;;  %v8939_v62 = vld [vmem:[%s11431_s1 + $0x3b8] sm:$0xff]  }
 0x244   : > { %v2350_v7 = vpop.f32.mrf.mxu0  ;;  %2541 = vmatmul.mubr.bf16.gmra.mxu0 %v8926_v45  ;;  %v3222_v2 = vpop.f32.mrf.mxu1  ;;  %3413 = vmatmul.mubr.bf16.gmra.mxu1 %v8929_v38  ;;  %v8942_v38 = vld [vmem:[%s10346_s19 + $0x14] ss:$8 sps:$4 sm:$0xff]  }
 0x245   : > { %v2563_v19 = vadd.f32 %v2350_v7, %v10080_v21  ;;  %4036 = vmatprep.mubr.bf16.mxu0 %v8934_v34  ;;  %4908 = vmatprep.mubr.bf16.mxu1 %v8937_v16  ;;  %v8938_v21 = vld [vmem:[%s11431_s1 + $0x338] sm:$0xff]  }
 0x246   : > { %v2352_v14 = vpop.f32.mrf.mxu0  ;;  %v3224_v12 = vpop.f32.mrf.mxu1  ;;  %v8945_v16 = vld [vmem:[%s10354_s22 + $0x14] ss:$8 sps:$4 sm:$0xff]  }
 0x247   : > { %v10491_v25 = vadd.f32 %v3222_v2, %v2563_v19  ;;  %v8952_v19 = vld [vmem:[%s11431_s1 + $0x330] sm:$0xff]  }
 0x248   : > { %v2353_v51 = vpop.f32.mrf.mxu0  ;;  %v3225_v20 = vpop.f32.mrf.mxu1  ;;  %v8953_v14 = vld [vmem:[%s11431_s1 + $0x3b0] sm:$0xff]  }
 0x249   : > { %v2564_v53 = vadd.f32 %v2353_v51, %v10087_v31  ;;  %v11453_v51 = vmov 0  }
 0x24a   : > { %v2355_v45 = vpop.f32.mrf.mxu0  ;;  %v3227_v30 = vpop.f32.mrf.mxu1 }
 0x24b   : > { %v10503_v34 = vadd.f32 %v3225_v20, %v2564_v53  ;;  %v8940_v53 = vld [vmem:[%s10346_s19 + $0x10] ss:$8 sps:$4 sm:$0xff]   ;;  %v8948_v45 = vld [vmem:[%s10346_s19 + $0x24] ss:$8 sps:$4 sm:$0xff]  }
 0x24c   : > { %v2358_v5 = vpop.f32.mrf.mxu0  ;;  %4037 = vmatmul.mubr.bf16.vlgmr.msra.gmra.mxu0 %v8932_v61  ;;  %v3230_v7 = vpop.f32.mrf.mxu1  ;;  %4909 = vmatmul.mubr.bf16.vlgmr.msra.gmra.mxu1 %v8935_v11  ;;  %v8966_v30 = vld [vmem:[%s11431_s1 + $0x328] sm:$0xff]  }
 0x24d   : > { %v2565_v31 = vadd.f32 %v2358_v5, %v10097_v41  ;;  %5749 = vmatpush1.bf16.msra.mxu0 %v8938_v21  ;;  %6621 = vmatpush1.bf16.msra.mxu1 %v8939_v62  ;;  %v8943_v21 = vld [vmem:[%s10354_s22 + $0x10] ss:$8 sps:$4 sm:$0xff]  }
 0x24e   : > { %v2360_v2 = vpop.f32.mrf.mxu0  ;;  %4044 = vmatprep.mubr.bf16.mxu0 %v8942_v38  ;;  %v3232_v41 = vpop.f32.mrf.mxu1  ;;  %4916 = vmatprep.mubr.bf16.mxu1 %v8945_v16  ;;  %v8951_v38 = vld [vmem:[%s10354_s22 + $0x24] ss:$8 sps:$4 sm:$0xff]  }
 0x24f   : > { %v10513_v12 = vadd.f32 %v3230_v7, %v2565_v31  ;;  %5750 = vmatprep.subr.bf16.mxu0 %v11453_v51  ;;  %6622 = vmatprep.subr.bf16.mxu1 %v11453_v51 }
 0x250   : > { %v2361_v61 = vpop.f32.mrf.mxu0  ;;  %v3233_v11 = vpop.f32.mrf.mxu1 }
 0x251   : > { %v2566_v20 = vadd.f32 %v2361_v61, %v10107_v54  ;;  %5751 = vmatpush1.bf16.msra.mxu0 %v8952_v19  ;;  %6623 = vmatpush1.bf16.msra.mxu1 %v8953_v14  ;;  %v8967_v54 = vld [vmem:[%s11431_s1 + $0x3a8] sm:$0xff]   ;;  %v8980_v14 = vld [vmem:[%s11431_s1 + $0x320] sm:$0xff]  }
 0x252   : > { %v2363_v62 = vpop.f32.mrf.mxu0  ;;  %5752 = vmatprep.subr.bf16.mxu0 %v11453_v51  ;;  %v3235_v5 = vpop.f32.mrf.mxu1  ;;  %6624 = vmatprep.subr.bf16.mxu1 %v11453_v51 }
 0x253   : > { %v10526_v16 = vadd.f32 %v3233_v11, %v2566_v20  ;;  %v8946_v20 = vld [vmem:[%s10346_s19 + $0x20] ss:$8 sps:$4 sm:$0xff]   ;;  %v8956_v62 = vld [vmem:[%s10346_s19 + $0x34] ss:$8 sps:$4 sm:$0xff]  }
 0x254   : > { %v2366_v31 = vpop.f32.mrf.mxu0  ;;  %4045 = vmatmul.mubr.bf16.gmra.mxu0 %v8940_v53  ;;  %v3238_v19 = vpop.f32.mrf.mxu1  ;;  %4917 = vmatmul.mubr.bf16.gmra.mxu1 %v8943_v21  ;;  %v8994_v5 = vld [vmem:[%s11431_s1 + $0x318] sm:$0xff]  }
 0x255   : > { %v2567_v7 = vadd.f32 %v2366_v31, %v10118_v0  ;;  %4052 = vmatprep.mubr.bf16.mxu0 %v8948_v45  ;;  %4924 = vmatprep.mubr.bf16.mxu1 %v8951_v38  ;;  %v8981_v0 = vld [vmem:[%s11431_s1 + $0x3a0] sm:$0xff]  }
 0x256   : > { %v2368_v2 = vpop.f32.mrf.mxu0  ;;  %5753 = vmatpush1.bf16.msra.mxu0 %v8966_v30  ;;  %v3240_v61 = vpop.f32.mrf.mxu1  ;;  %6625 = vmatpush1.bf16.msra.mxu1 %v8967_v54  ;;  %v8949_v45 = vld [vmem:[%s10354_s22 + $0x20] ss:$8 sps:$4 sm:$0xff]   ;;  %v8959_v30 = vld [vmem:[%s10354_s22 + $0x34] ss:$8 sps:$4 sm:$0xff]  }
 0x257   : > { %v10536_v41 = vadd.f32 %v3238_v19, %v2567_v7  ;;  %5754 = vmatprep.subr.bf16.mxu0 %v11453_v51  ;;  %6626 = vmatprep.subr.bf16.mxu1 %v11453_v51  ;;  %v9008_v61 = vld [vmem:[%s11431_s1 + $0x310] sm:$0xff]  }
 0x258   : > { %v2369_v53 = vpop.f32.mrf.mxu0  ;;  %v3241_v21 = vpop.f32.mrf.mxu1 }
 0x259   : > { %v2568_v11 = vadd.f32 %v2369_v53, %v10131_v15  ;;  %v8995_v15 = vld [vmem:[%s11431_s1 + $0x398] sm:$0xff]  }
 0x25a   : > { %v2371_v38 = vpop.f32.mrf.mxu0  ;;  %5755 = vmatpush1.bf16.msra.mxu0 %v8980_v14  ;;  %v3243_v31 = vpop.f32.mrf.mxu1  ;;  %6627 = vmatpush1.bf16.msra.mxu1 %v8981_v0 }
 0x25b   : > { %v10551_v54 = vadd.f32 %v3241_v21, %v2568_v11  ;;  %5756 = vmatprep.subr.bf16.mxu0 %v11453_v51  ;;  %6628 = vmatprep.subr.bf16.mxu1 %v11453_v51  ;;  %v8954_v11 = vld [vmem:[%s10346_s19 + $0x30] ss:$8 sps:$4 sm:$0xff]   ;;  %v8962_v38 = vld [vmem:[%s10346_s19 + $0x44] ss:$8 sps:$4 sm:$0xff]  }
 0x25c   : > { %v2374_v7 = vpop.f32.mrf.mxu0  ;;  %4053 = vmatmul.mubr.bf16.gmra.mxu0 %v8946_v20  ;;  %v3246_v2 = vpop.f32.mrf.mxu1  ;;  %4925 = vmatmul.mubr.bf16.gmra.mxu1 %v8949_v45  ;;  %v9022_v31 = vld [vmem:[%s11431_s1 + $0x308] sm:$0xff]  }
 0x25d   : > { %v2569_v19 = vadd.f32 %v2374_v7, %v10142_v26  ;;  %4060 = vmatprep.mubr.bf16.mxu0 %v8956_v62  ;;  %4932 = vmatprep.mubr.bf16.mxu1 %v8959_v30  ;;  %v9009_v26 = vld [vmem:[%s11431_s1 + $0x390] sm:$0xff]  }
 0x25e   : > { %v2376_v14 = vpop.f32.mrf.mxu0  ;;  %5757 = vmatpush1.bf16.msra.mxu0 %v8994_v5  ;;  %v3248_v53 = vpop.f32.mrf.mxu1  ;;  %6629 = vmatpush1.bf16.msra.mxu1 %v8995_v15  ;;  %v8957_v62 = vld [vmem:[%s10354_s22 + $0x30] ss:$8 sps:$4 sm:$0xff]   ;;  %v8965_v5 = vld [vmem:[%s10354_s22 + $0x44] ss:$8 sps:$4 sm:$0xff]  }
 0x25f   : > { %v10562_v0 = vadd.f32 %v3246_v2, %v2569_v19  ;;  %5758 = vmatprep.subr.bf16.mxu0 %v11453_v51  ;;  %6630 = vmatprep.subr.bf16.mxu1 %v11453_v51  ;;  %v9036_v53 = vld [vmem:[%s11431_s1 + $0x300] sm:$0xff]  }
 0x260   : > { %v2377_v20 = vpop.f32.mrf.mxu0  ;;  %v3249_v45 = vpop.f32.mrf.mxu1 }
 0x261   : > { %v2570_v21 = vadd.f32 %v2377_v20, %v10155_v39  ;;  %v9023_v39 = vld [vmem:[%s11431_s1 + $0x388] sm:$0xff]  }
 0x262   : > { %v2379_v30 = vpop.f32.mrf.mxu0  ;;  %5759 = vmatpush1.bf16.msra.mxu0 %v9008_v61  ;;  %v3251_v7 = vpop.f32.mrf.mxu1  ;;  %6631 = vmatpush1.bf16.msra.mxu1 %v9009_v26 }
 0x263   : > { %v10577_v15 = vadd.f32 %v3249_v45, %v2570_v21  ;;  %5760 = vmatprep.subr.bf16.mxu0 %v11453_v51  ;;  %6632 = vmatprep.subr.bf16.mxu1 %v11453_v51  ;;  %v8960_v21 = vld [vmem:[%s10346_s19 + $0x40] ss:$8 sps:$4 sm:$0xff]   ;;  %v8970_v30 = vld [vmem:[%s10346_s19 + $0x54] ss:$8 sps:$4 sm:$0xff]  }
 0x264   : > { %v2382_v19 = vpop.f32.mrf.mxu0  ;;  %4061 = vmatmul.mubr.bf16.gmra.mxu0 %v8954_v11  ;;  %v3254_v14 = vpop.f32.mrf.mxu1  ;;  %4933 = vmatmul.mubr.bf16.gmra.mxu1 %v8957_v62  ;;  %v9050_v7 = vld [vmem:[%s11431_s1 + $0x378] sm:$0xff]  }
 0x265   : > { %v2571_v2 = vadd.f32 %v2382_v19, %v10166_v50  ;;  %4068 = vmatprep.mubr.bf16.mxu0 %v8962_v38  ;;  %4940 = vmatprep.mubr.bf16.mxu1 %v8965_v5  ;;  %v9037_v50 = vld [vmem:[%s11431_s1 + $0x380] sm:$0xff]  }
 0x266   : > { %v2384_v61 = vpop.f32.mrf.mxu0  ;;  %5761 = vmatpush1.bf16.msra.mxu0 %v9022_v31  ;;  %v3256_v20 = vpop.f32.mrf.mxu1  ;;  %6633 = vmatpush1.bf16.msra.mxu1 %v9023_v39  ;;  %v8963_v38 = vld [vmem:[%s10354_s22 + $0x40] ss:$8 sps:$4 sm:$0xff]   ;;  %v8973_v31 = vld [vmem:[%s10354_s22 + $0x54] ss:$8 sps:$4 sm:$0xff]  }
 0x267   : > { %v10588_v26 = vadd.f32 %v3254_v14, %v2571_v2  ;;  %5762 = vmatprep.subr.bf16.mxu0 %v11453_v51  ;;  %6634 = vmatprep.subr.bf16.mxu1 %v11453_v51  ;;  %v9064_v20 = vld [vmem:[%s11431_s1 + $0x370] sm:$0xff]  }
 0x268   : > { %v2385_v11 = vpop.f32.mrf.mxu0  ;;  %v3257_v62 = vpop.f32.mrf.mxu1 }
 0x269   : > { %v2572_v45 = vadd.f32 %v2385_v11, %v10179_v4  ;;  %v9051_v4 = vld [vmem:[%s11431_s1 + $0x3f8] sm:$0xff]  }
 0x26a   : > { %v2387_v5 = vpop.f32.mrf.mxu0  ;;  %5763 = vmatpush1.bf16.msra.mxu0 %v9036_v53  ;;  %v3259_v19 = vpop.f32.mrf.mxu1  ;;  %6635 = vmatpush1.bf16.msra.mxu1 %v9037_v50 }
 0x26b   : > { %v10603_v39 = vadd.f32 %v3257_v62, %v2572_v45  ;;  %5764 = vmatprep.subr.bf16.mxu0 %v11453_v51  ;;  %6636 = vmatprep.subr.bf16.mxu1 %v11453_v51  ;;  %v8968_v45 = vld [vmem:[%s10346_s19 + $0x50] ss:$8 sps:$4 sm:$0xff]   ;;  %v8976_v5 = vld [vmem:[%s10346_s19 + $0x64] ss:$8 sps:$4 sm:$0xff]  }
 0x26c   : > { %v2390_v2 = vpop.f32.mrf.mxu0  ;;  %4069 = vmatmul.mubr.bf16.gmra.mxu0 %v8960_v21  ;;  %v3262_v61 = vpop.f32.mrf.mxu1  ;;  %4941 = vmatmul.mubr.bf16.gmra.mxu1 %v8963_v38  ;;  %v9078_v19 = vld [vmem:[%s11431_s1 + $0x368] sm:$0xff]  }
 0x26d   : > { %v2573_v14 = vadd.f32 %v2390_v2, %v10190_v17  ;;  %4076 = vmatprep.mubr.bf16.mxu0 %v8970_v30  ;;  %4948 = vmatprep.mubr.bf16.mxu1 %v8973_v31  ;;  %v9065_v17 = vld [vmem:[%s11431_s1 + $0x3f0] sm:$0xff]  }
 0x26e   : > { %v2392_v53 = vpop.f32.mrf.mxu0  ;;  %5765 = vmatpush2.bf16.msra.mxu0 %v9050_v7  ;;  %v3264_v11 = vpop.f32.mrf.mxu1  ;;  %6637 = vmatpush2.bf16.msra.mxu1 %v9051_v4  ;;  %v8971_v30 = vld [vmem:[%s10354_s22 + $0x50] ss:$8 sps:$4 sm:$0xff]   ;;  %v8979_v7 = vld [vmem:[%s10354_s22 + $0x64] ss:$8 sps:$4 sm:$0xff]  }
 0x26f   : > { %v10614_v50 = vadd.f32 %v3262_v61, %v2573_v14  ;;  %5766 = vmatprep.subr.bf16.mxu0 %v11453_v51  ;;  %6638 = vmatprep.subr.bf16.mxu1 %v11453_v51 }
 0x270   : > { %v2393_v21 = vpop.f32.mrf.mxu0  ;;  %v3265_v38 = vpop.f32.mrf.mxu1 }
 0x271   : > { %v2574_v62 = vadd.f32 %v2393_v21, %v10203_v32  ;;  %v9079_v32 = vld [vmem:[%s11431_s1 + $0x3e8] sm:$0xff]  }
 0x272   : > { %v2395_v31 = vpop.f32.mrf.mxu0  ;;  %5767 = vmatpush2.bf16.msra.mxu0 %v9064_v20  ;;  %v3267_v2 = vpop.f32.mrf.mxu1  ;;  %6639 = vmatpush2.bf16.msra.mxu1 %v9065_v17 }
 0x273   : > { %v10629_v4 = vadd.f32 %v3265_v38, %v2574_v62  ;;  %5768 = vmatprep.subr.bf16.mxu0 %v11453_v51  ;;  %6640 = vmatprep.subr.bf16.mxu1 %v11453_v51  ;;  %v8977_v38 = vld [vmem:[%s10354_s22 + $0x60] ss:$8 sps:$4 sm:$0xff]   ;;  %v8987_v31 = vld [vmem:[%s10354_s22 + $0x74] ss:$8 sps:$4 sm:$0xff]  }
 0x274   : > { %v2398_v14 = vpop.f32.mrf.mxu0  ;;  %4077 = vmatmul.mubr.bf16.gmra.mxu0 %v8968_v45  ;;  %v3270_v53 = vpop.f32.mrf.mxu1  ;;  %4949 = vmatmul.mubr.bf16.gmra.mxu1 %v8971_v30  ;;  %v8974_v45 = vld [vmem:[%s10346_s19 + $0x60] ss:$8 sps:$4 sm:$0xff]   ;;  %v8984_v30 = vld [vmem:[%s10346_s19 + $0x74] ss:$8 sps:$4 sm:$0xff]  }
 0x275   : > { %v2575_v61 = vadd.f32 %v2398_v14, %v10214_v44  ;;  %4084 = vmatprep.mubr.bf16.mxu0 %v8976_v5  ;;  %4956 = vmatprep.mubr.bf16.mxu1 %v8979_v7 }
 0x276   : > { %v2400_v20 = vpop.f32.mrf.mxu0  ;;  %5769 = vmatpush2.bf16.msra.mxu0 %v9078_v19  ;;  %v3272_v17 = vpop.f32.mrf.mxu1  ;;  %6641 = vmatpush2.bf16.msra.mxu1 %v9079_v32 }
 0x277   : > { %v10637_v11 = vadd.f32 %v3270_v53, %v2575_v61  ;;  %5770 = vmatprep.subr.bf16.mxu0 %v11453_v51  ;;  %6642 = vmatprep.subr.bf16.mxu1 %v11453_v51  ;;  %v9092_v20 = vld [vmem:[%s11431_s1 + $0x360] sm:$0xff]  }
 0x278   : > { %v2401_v21 = vpop.f32.mrf.mxu0  ;;  %v3273_v62 = vpop.f32.mrf.mxu1  ;;  %v9093_v17 = vld [vmem:[%s11431_s1 + $0x3e0] sm:$0xff]  }
 0x279   : > { %v2576_v44 = vadd.f32 %v2401_v21, %v10221_v58 }
 0x27a   : > { %v2403_v5 = vpop.f32.mrf.mxu0  ;;  %v3275_v19 = vpop.f32.mrf.mxu1  ;;  %5771 = vmatpush2.bf16.msra.mxu0 %v9092_v20  ;;  %6643 = vmatpush2.bf16.msra.mxu1 %v9093_v17  ;;  %v8988_v17 = vld [vmem:[%s10346_s19 + $0x80] ss:$8 sps:$4 sm:$0xff]  }
 0x27b   : > { %v10646_v7 = vadd.f32 %v3273_v62, %v2576_v44  ;;  %v8985_v62 = vld [vmem:[%s10354_s22 + $0x70] ss:$8 sps:$4 sm:$0xff]   ;;  %v8993_v5 = vld [vmem:[%s10354_s22 + $0x84] ss:$8 sps:$4 sm:$0xff]   ;;  %5772 = vmatprep.subr.bf16.mxu0 %v11453_v51  ;;  %6644 = vmatprep.subr.bf16.mxu1 %v11453_v51 }
 0x27c   : > { %v2406_v2 = vpop.f32.mrf.mxu0  ;;  %4085 = vmatmul.mubr.bf16.gmra.mxu0 %v8974_v45  ;;  %v3278_v14 = vpop.f32.mrf.mxu1  ;;  %4957 = vmatmul.mubr.bf16.gmra.mxu1 %v8977_v38  ;;  %v8982_v45 = vld [vmem:[%s10346_s19 + $0x70] ss:$8 sps:$4 sm:$0xff]   ;;  %v8990_v38 = vld [vmem:[%s10346_s19 + $0x84] ss:$8 sps:$4 sm:$0xff]  }
 0x27d   : > { %v2577_v32 = vadd.f32 %v2406_v2, %v10224_v6  ;;  %4092 = vmatprep.mubr.bf16.mxu0 %v8984_v30  ;;  %4964 = vmatprep.mubr.bf16.mxu1 %v8987_v31 }
 0x27e   : > { %v2408_v58 = vpop.f32.mrf.mxu0  ;;  %v3280_v53 = vpop.f32.mrf.mxu1 }
 0x27f   : > { %v10649_v61 = vadd.f32 %v3278_v14, %v2577_v32 }
 0x280   : > { %v2409_v21 = vpop.f32.mrf.mxu0  ;;  %v3281_v44 = vpop.f32.mrf.mxu1 }
 0x281   : > { %v2578_v6 = vadd.f32 %v2409_v21, %v10236_v23 }
 0x282   : > { %v2411_v30 = vpop.f32.mrf.mxu0  ;;  %v3283_v19 = vpop.f32.mrf.mxu1 }
 0x283   : > { %v10664_v31 = vadd.f32 %v3281_v44, %v2578_v6  ;;  %v8991_v44 = vld [vmem:[%s10354_s22 + $0x80] ss:$8 sps:$4 sm:$0xff]   ;;  %v8998_v30 = vld [vmem:[%s10346_s19 + $0x94] ss:$8 sps:$4 sm:$0xff]  }
 0x284   : > { %v2414_v2 = vpop.f32.mrf.mxu0  ;;  %4093 = vmatmul.mubr.bf16.gmra.mxu0 %v8982_v45  ;;  %v3286_v32 = vpop.f32.mrf.mxu1  ;;  %4965 = vmatmul.mubr.bf16.gmra.mxu1 %v8985_v62  ;;  %v9001_v45 = vld [vmem:[%s10354_s22 + $0x94] ss:$8 sps:$4 sm:$0xff]  }
 0x285   : > { %11454 = vst [vmem:[#allocation20_spill] sm:$0xff] %v10664_v31  ;;  %v2579_v23 = vadd.f32 %v2414_v2, %v10240_v33  ;;  %4100 = vmatprep.mubr.bf16.mxu0 %v8990_v38  ;;  %4972 = vmatprep.mubr.bf16.mxu1 %v8993_v5 }
 0x286   : > { %v2416_v14 = vpop.f32.mrf.mxu0  ;;  %v3288_v53 = vpop.f32.mrf.mxu1 }
 0x287   : > { %v10667_v58 = vadd.f32 %v3286_v32, %v2579_v23  ;;  %v9106_v32 = vld [vmem:[%s11431_s1 + $0x358] sm:$0xff]  }
 0x288   : > { %v2417_v20 = vpop.f32.mrf.mxu0  ;;  %v3289_v6 = vpop.f32.mrf.mxu1  ;;  %v9107_v14 = vld [vmem:[%s11431_s1 + $0x3d8] sm:$0xff]   ;;  %5773 = vmatpush2.bf16.msra.mxu0 %v9106_v32  ;;  %v9002_v32 = vld [vmem:[%s10346_s19 + $0xa0] ss:$8 sps:$4 sm:$0xff]  }
 0x289   : > { %v2580_v21 = vadd.f32 %v2417_v20, %v10245_v47  ;;  %v8996_v20 = vld [vmem:[%s10346_s19 + $0x90] ss:$8 sps:$4 sm:$0xff]   ;;  %6645 = vmatpush2.bf16.msra.mxu1 %v9107_v14  ;;  %5774 = vmatprep.subr.bf16.mxu0 %v11453_v51 }
 0x28a   : > { %v2419_v19 = vpop.f32.mrf.mxu0  ;;  %v3291_v33 = vpop.f32.mrf.mxu1  ;;  %6646 = vmatprep.subr.bf16.mxu1 %v11453_v51 }
 0x28b   : > { %v10674_v31 = vadd.f32 %v3289_v6, %v2580_v21  ;;  %v8999_v21 = vld [vmem:[%s10354_s22 + $0x90] ss:$8 sps:$4 sm:$0xff]   ;;  %v9004_v6 = vld [vmem:[%s10346_s19 + $0xa4] ss:$8 sps:$4 sm:$0xff]  }
 0x28c   : > { %v2422_v62 = vpop.f32.mrf.mxu0  ;;  %4101 = vmatmul.mubr.bf16.gmra.mxu0 %v8988_v17  ;;  %v3294_v5 = vpop.f32.mrf.mxu1  ;;  %4973 = vmatmul.mubr.bf16.gmra.mxu1 %v8991_v44 }
 0x28d   : > { %v2581_v38 = vadd.f32 %v2422_v62, %v10248_v59  ;;  %4108 = vmatprep.mubr.bf16.mxu0 %v8998_v30  ;;  %4980 = vmatprep.mubr.bf16.mxu1 %v9001_v45  ;;  %v9007_v30 = vld [vmem:[%s10354_s22 + $0xa4] ss:$8 sps:$4 sm:$0xff]  }
 0x28e   : > { %v2424_v47 = vpop.f32.mrf.mxu0  ;;  %v3296_v23 = vpop.f32.mrf.mxu1 }
 0x28f   : > { %v10677_v2 = vadd.f32 %v3294_v5, %v2581_v38 }
 0x290   : > { %v2425_v53 = vpop.f32.mrf.mxu0  ;;  %v3297_v17 = vpop.f32.mrf.mxu1 }
 0x291   : > { %v2582_v59 = vadd.f32 %v2425_v53, %v10259_v13 }
 0x292   : > { %v2427_v44 = vpop.f32.mrf.mxu0  ;;  %v3299_v45 = vpop.f32.mrf.mxu1 }
 0x293   : > { %v10692_v19 = vadd.f32 %v3297_v17, %v2582_v59  ;;  %v9005_v59 = vld [vmem:[%s10354_s22 + $0xa0] ss:$8 sps:$4 sm:$0xff]   ;;  %v9012_v17 = vld [vmem:[%s10346_s19 + $0xb4] ss:$8 sps:$4 sm:$0xff]  }
 0x294   : > { %v2430_v33 = vpop.f32.mrf.mxu0  ;;  %4109 = vmatmul.mubr.bf16.gmra.mxu0 %v8996_v20  ;;  %v3302_v62 = vpop.f32.mrf.mxu1  ;;  %4981 = vmatmul.mubr.bf16.gmra.mxu1 %v8999_v21  ;;  %v9015_v20 = vld [vmem:[%s10354_s22 + $0xb4] ss:$8 sps:$4 sm:$0xff]  }
 0x295   : > { %v2583_v13 = vadd.f32 %v2430_v33, %v10264_v27  ;;  %4116 = vmatprep.mubr.bf16.mxu0 %v9004_v6  ;;  %4988 = vmatprep.mubr.bf16.mxu1 %v9007_v30 }
 0x296   : > { %v2432_v38 = vpop.f32.mrf.mxu0  ;;  %v3304_v47 = vpop.f32.mrf.mxu1 }
 0x297   : > { %v10695_v5 = vadd.f32 %v3302_v62, %v2583_v13  ;;  %v9120_v62 = vld [vmem:[%s11431_s1 + $0x350] sm:$0xff]  }
 0x298   : > { %v2433_v23 = vpop.f32.mrf.mxu0  ;;  %v3305_v53 = vpop.f32.mrf.mxu1  ;;  %v9121_v38 = vld [vmem:[%s11431_s1 + $0x3d0] sm:$0xff]   ;;  %5775 = vmatpush2.bf16.msra.mxu0 %v9120_v62  ;;  %v9016_v62 = vld [vmem:[%s10346_s19 + $0xc0] ss:$8 sps:$4 sm:$0xff]  }
 0x299   : > { %v2584_v14 = vadd.f32 %v2433_v23, %v10269_v42  ;;  %v9010_v23 = vld [vmem:[%s10346_s19 + $0xb0] ss:$8 sps:$4 sm:$0xff]   ;;  %6647 = vmatpush2.bf16.msra.mxu1 %v9121_v38  ;;  %5776 = vmatprep.subr.bf16.mxu0 %v11453_v51 }
 0x29a   : > { %v2435_v44 = vpop.f32.mrf.mxu0  ;;  %v3307_v27 = vpop.f32.mrf.mxu1  ;;  %6648 = vmatprep.subr.bf16.mxu1 %v11453_v51 }
 0x29b   : > { %v10702_v45 = vadd.f32 %v3305_v53, %v2584_v14  ;;  %v9013_v14 = vld [vmem:[%s10354_s22 + $0xb0] ss:$8 sps:$4 sm:$0xff]   ;;  %v9018_v53 = vld [vmem:[%s10346_s19 + $0xc4] ss:$8 sps:$4 sm:$0xff]  }
 0x29c   : > { %v2438_v21 = vpop.f32.mrf.mxu0  ;;  %4117 = vmatmul.mubr.bf16.gmra.mxu0 %v9002_v32  ;;  %v3310_v30 = vpop.f32.mrf.mxu1  ;;  %4989 = vmatmul.mubr.bf16.gmra.mxu1 %v9005_v59 }
 0x29d   : > { %v2585_v6 = vadd.f32 %v2438_v21, %v10272_v56  ;;  %4124 = vmatprep.mubr.bf16.mxu0 %v9012_v17  ;;  %4996 = vmatprep.mubr.bf16.mxu1 %v9015_v20  ;;  %v9021_v17 = vld [vmem:[%s10354_s22 + $0xc4] ss:$8 sps:$4 sm:$0xff]  }
 0x29e   : > { %v2440_v42 = vpop.f32.mrf.mxu0  ;;  %v3312_v13 = vpop.f32.mrf.mxu1 }
 0x29f   : > { %v10705_v33 = vadd.f32 %v3310_v30, %v2585_v6 }
 0x2a0   : > { %v2441_v47 = vpop.f32.mrf.mxu0  ;;  %v3313_v32 = vpop.f32.mrf.mxu1 }
 0x2a1   : > { %v2586_v56 = vadd.f32 %v2441_v47, %v10283_v18 }
 0x2a2   : > { %v2443_v59 = vpop.f32.mrf.mxu0  ;;  %v3315_v20 = vpop.f32.mrf.mxu1 }
 0x2a3   : > { %v10720_v44 = vadd.f32 %v3313_v32, %v2586_v56  ;;  %v9019_v56 = vld [vmem:[%s10354_s22 + $0xc0] ss:$8 sps:$4 sm:$0xff]   ;;  %v9026_v32 = vld [vmem:[%s10346_s19 + $0xd4] ss:$8 sps:$4 sm:$0xff]  }
 0x2a4   : > { %v2446_v27 = vpop.f32.mrf.mxu0  ;;  %4125 = vmatmul.mubr.bf16.gmra.mxu0 %v9010_v23  ;;  %v3318_v21 = vpop.f32.mrf.mxu1  ;;  %4997 = vmatmul.mubr.bf16.gmra.mxu1 %v9013_v14  ;;  %v9029_v23 = vld [vmem:[%s10354_s22 + $0xd4] ss:$8 sps:$4 sm:$0xff]  }
 0x2a5   : > { %v2587_v18 = vadd.f32 %v2446_v27, %v10288_v29  ;;  %4132 = vmatprep.mubr.bf16.mxu0 %v9018_v53  ;;  %5004 = vmatprep.mubr.bf16.mxu1 %v9021_v17 }
 0x2a6   : > { %v2448_v6 = vpop.f32.mrf.mxu0  ;;  %v3320_v42 = vpop.f32.mrf.mxu1 }
 0x2a7   : > { %v10723_v30 = vadd.f32 %v3318_v21, %v2587_v18  ;;  %v9134_v21 = vld [vmem:[%s11431_s1 + $0x348] sm:$0xff]  }
 0x2a8   : > { %v2449_v13 = vpop.f32.mrf.mxu0  ;;  %v3321_v47 = vpop.f32.mrf.mxu1  ;;  %v9135_v6 = vld [vmem:[%s11431_s1 + $0x3c8] sm:$0xff]   ;;  %5777 = vmatpush2.bf16.msra.mxu0 %v9134_v21 }
 0x2a9   : > { %v2588_v38 = vadd.f32 %v2449_v13, %v10293_v49  ;;  %v9024_v13 = vld [vmem:[%s10346_s19 + $0xd0] ss:$8 sps:$4 sm:$0xff]   ;;  %6649 = vmatpush2.bf16.msra.mxu1 %v9135_v6  ;;  %5778 = vmatprep.subr.bf16.mxu0 %v11453_v51 }
 0x2aa   : > { %v2451_v59 = vpop.f32.mrf.mxu0  ;;  %v3323_v29 = vpop.f32.mrf.mxu1  ;;  %6650 = vmatprep.subr.bf16.mxu1 %v11453_v51  ;;  %v9030_v51 = vld [vmem:[%s10346_s19 + $0xe0] ss:$8 sps:$4 sm:$0xff]  }
 0x2ab   : > { %v10730_v20 = vadd.f32 %v3321_v47, %v2588_v38  ;;  %v9027_v38 = vld [vmem:[%s10354_s22 + $0xd0] ss:$8 sps:$4 sm:$0xff]   ;;  %v9032_v47 = vld [vmem:[%s10346_s19 + $0xe4] ss:$8 sps:$4 sm:$0xff]  }
 0x2ac   : > { %v2454_v14 = vpop.f32.mrf.mxu0  ;;  %4133 = vmatmul.mubr.bf16.gmra.mxu0 %v9016_v62  ;;  %v3326_v17 = vpop.f32.mrf.mxu1  ;;  %5005 = vmatmul.mubr.bf16.gmra.mxu1 %v9019_v56 }
 0x2ad   : > { %v2589_v53 = vadd.f32 %v2454_v14, %v10296_v3  ;;  %4140 = vmatprep.mubr.bf16.mxu0 %v9026_v32  ;;  %5012 = vmatprep.mubr.bf16.mxu1 %v9029_v23  ;;  %v9035_v32 = vld [vmem:[%s10354_s22 + $0xe4] ss:$8 sps:$4 sm:$0xff]  }
 0x2ae   : > { %v2456_v49 = vpop.f32.mrf.mxu0  ;;  %v3328_v18 = vpop.f32.mrf.mxu1 }
 0x2af   : > { %v10733_v27 = vadd.f32 %v3326_v17, %v2589_v53 }
 0x2b0   : > { %v2457_v42 = vpop.f32.mrf.mxu0  ;;  %v3329_v62 = vpop.f32.mrf.mxu1 }
 0x2b1   : > { %v2590_v3 = vadd.f32 %v2457_v42, %v10307_v28  ;;  %v9033_v42 = vld [vmem:[%s10354_s22 + $0xe0] ss:$8 sps:$4 sm:$0xff]  }
 0x2b2   : > { %v2459_v56 = vpop.f32.mrf.mxu0  ;;  %v3331_v23 = vpop.f32.mrf.mxu1 }
 0x2b3   : > { %v10748_v59 = vadd.f32 %v3329_v62, %v2590_v3  ;;  %v9040_v3 = vld [vmem:[%s10346_s19 + $0xf4] ss:$8 sps:$4 sm:$0xff]  }
 0x2b4   : > { %v2462_v29 = vpop.f32.mrf.mxu0  ;;  %4141 = vmatmul.mubr.bf16.gmra.mxu0 %v9024_v13  ;;  %v3334_v14 = vpop.f32.mrf.mxu1  ;;  %5013 = vmatmul.mubr.bf16.gmra.mxu1 %v9027_v38  ;;  %v9043_v13 = vld [vmem:[%s10354_s22 + $0xf4] ss:$8 sps:$4 sm:$0xff]  }
 0x2b5   : > { %v2591_v28 = vadd.f32 %v2462_v29, %v10312_v46  ;;  %4148 = vmatprep.mubr.bf16.mxu0 %v9032_v47  ;;  %5020 = vmatprep.mubr.bf16.mxu1 %v9035_v32 }
 0x2b6   : > { %v2464_v53 = vpop.f32.mrf.mxu0  ;;  %v3336_v49 = vpop.f32.mrf.mxu1 }
 0x2b7   : > { %v10751_v17 = vadd.f32 %v3334_v14, %v2591_v28  ;;  %v9148_v28 = vld [vmem:[%s11431_s1 + $0x340] sm:$0xff]   ;;  %v9038_v49 = vld [vmem:[%s10346_s19 + $0xf0] ss:$8 sps:$4 sm:$0xff]  }
 0x2b8   : > { %v2465_v18 = vpop.f32.mrf.mxu0  ;;  %v3337_v6 = vpop.f32.mrf.mxu1  ;;  %v9149_v14 = vld [vmem:[%s11431_s1 + $0x3c0] sm:$0xff]   ;;  %5779 = vmatpush2.bf16.msra.mxu0 %v9148_v28 }
 0x2b9   : > { %v2592_v21 = vadd.f32 %v2465_v18, %v10317_v9  ;;  %6651 = vmatpush2.bf16.msra.mxu1 %v9149_v14  ;;  %v9044_v28 = vld [vmem:[%s10346_s19 + $0x100] ss:$8 sps:$4 sm:$0xff]  }
 0x2ba   : > { %v2467_v62 = vpop.f32.mrf.mxu0  ;;  %v3339_v46 = vpop.f32.mrf.mxu1  ;;  %v11458_v14 = vld [vmem:[#allocation3_spill] sm:$0xff] }
 0x2bb   : > { %v10758_v56 = vadd.f32 %v3337_v6, %v2592_v21  ;;  %v9046_v21 = vld [vmem:[%s10346_s19 + $0x104] ss:$8 sps:$4 sm:$0xff]  }
 0x2bc   : > { %v2470_v38 = vpop.f32.mrf.mxu0  ;;  %4149 = vmatmul.mubr.bf16.gmra.mxu0 %v9030_v51  ;;  %v3342_v32 = vpop.f32.mrf.mxu1  ;;  %5021 = vmatmul.mubr.bf16.gmra.mxu1 %v9033_v42  ;;  %v9041_v51 = vld [vmem:[%s10354_s22 + $0xf0] ss:$8 sps:$4 sm:$0xff]   ;;  %v9049_v42 = vld [vmem:[%s10354_s22 + $0x104] ss:$8 sps:$4 sm:$0xff]  }
 0x2bd   : > { %v2593_v47 = vadd.f32 %v2470_v38, %v10320_v24  ;;  %4156 = vmatprep.mubr.bf16.mxu0 %v9040_v3  ;;  %5028 = vmatprep.mubr.bf16.mxu1 %v9043_v13  ;;  %v11456_v46 = vld [vmem:[#allocation2_spill] sm:$0xff] }
 0x2be   : > { %v2472_v9 = vpop.f32.mrf.mxu0  ;;  %v3344_v29 = vpop.f32.mrf.mxu1 }
 0x2bf   : > { %v10761_v23 = vadd.f32 %v3342_v32, %v2593_v47 }
 0x2c0   : > { %v2473_v53 = vpop.f32.mrf.mxu0  ;;  %v3345_v18 = vpop.f32.mrf.mxu1 }
 0x2c1   : > { %v2594_v24 = vadd.f32 %v2473_v53, %v10331_v60 }
 0x2c2   : > { %v2475_v6 = vpop.f32.mrf.mxu0  ;;  %v3347_v62 = vpop.f32.mrf.mxu1 }
 0x2c3   : > { %v10774_v3 = vadd.f32 %v3345_v18, %v2594_v24  ;;  %v9047_v24 = vld [vmem:[%s10354_s22 + $0x100] ss:$8 sps:$4 sm:$0xff]   ;;  %v9054_v18 = vld [vmem:[%s10346_s19 + $0x114] ss:$8 sps:$4 sm:$0xff]  }
 0x2c4   : > { %v2478_v13 = vpop.f32.mrf.mxu0  ;;  %4157 = vmatmul.mubr.bf16.gmra.mxu0 %v9038_v49  ;;  %v3350_v47 = vpop.f32.mrf.mxu1  ;;  %5029 = vmatmul.mubr.bf16.gmra.mxu1 %v9041_v51 }
 0x2c5   : > { %11455 = vst [vmem:[#allocation21_spill] sm:$0xff] %v10774_v3  ;;  %v2595_v38 = vadd.f32 %v2478_v13, %v11456_v46  ;;  %4164 = vmatprep.mubr.bf16.mxu0 %v9046_v21  ;;  %5036 = vmatprep.mubr.bf16.mxu1 %v9049_v42  ;;  %v9057_v21 = vld [vmem:[%s10354_s22 + $0x114] ss:$8 sps:$4 sm:$0xff]  }
 0x2c6   : > { %v2480_v60 = vpop.f32.mrf.mxu0  ;;  %v3352_v9 = vpop.f32.mrf.mxu1  ;;  %v11460_v13 = vld [vmem:[#allocation4_spill] sm:$0xff] }
 0x2c7   : > { %v10779_v32 = vadd.f32 %v3350_v47, %v2595_v38  ;;  %v9052_v60 = vld [vmem:[%s10346_s19 + $0x110] ss:$8 sps:$4 sm:$0xff]  }
 0x2c8   : > { %v2481_v29 = vpop.f32.mrf.mxu0  ;;  %v3353_v49 = vpop.f32.mrf.mxu1 }
 0x2c9   : > { %11457 = vst [vmem:[#allocation2_spill] sm:$0xff] %v10779_v32  ;;  %v2596_v53 = vadd.f32 %v2481_v29, %v11458_v14  ;;  %v9055_v14 = vld [vmem:[%s10354_s22 + $0x110] ss:$8 sps:$4 sm:$0xff]  }
 0x2ca   : > { %v2483_v51 = vpop.f32.mrf.mxu0  ;;  %v3355_v42 = vpop.f32.mrf.mxu1 }
 0x2cb   : > { %v10796_v6 = vadd.f32 %v3353_v49, %v2596_v53  ;;  %v9060_v51 = vld [vmem:[%s10346_s19 + $0x124] ss:$8 sps:$4 sm:$0xff]   ;;  %v11462_v49 = vld [vmem:[#allocation5_spill] sm:$0xff] }
 0x2cc   : > { %v2486_v62 = vpop.f32.mrf.mxu0  ;;  %4165 = vmatmul.mubr.bf16.gmra.mxu0 %v9044_v28  ;;  %v3358_v38 = vpop.f32.mrf.mxu1  ;;  %5037 = vmatmul.mubr.bf16.gmra.mxu1 %v9047_v24 }
 0x2cd   : > { %11459 = vst [vmem:[#allocation3_spill] sm:$0xff] %v10796_v6  ;;  %v2597_v46 = vadd.f32 %v2486_v62, %v11460_v13  ;;  %4172 = vmatprep.mubr.bf16.mxu0 %v9054_v18  ;;  %5044 = vmatprep.mubr.bf16.mxu1 %v9057_v21  ;;  %v9063_v62 = vld [vmem:[%s10354_s22 + $0x124] ss:$8 sps:$4 sm:$0xff]  }
 0x2ce   : > { %v2488_v47 = vpop.f32.mrf.mxu0  ;;  %v3360_v29 = vpop.f32.mrf.mxu1  ;;  %v11464_v21 = vld [vmem:[#allocation6_spill] sm:$0xff] }
 0x2cf   : > { %v10800_v9 = vadd.f32 %v3358_v38, %v2597_v46  ;;  %v9058_v29 = vld [vmem:[%s10346_s19 + $0x120] ss:$8 sps:$4 sm:$0xff]  }
 0x2d0   : > { %v2489_v53 = vpop.f32.mrf.mxu0  ;;  %v3361_v6 = vpop.f32.mrf.mxu1 }
 0x2d1   : > { %11461 = vst [vmem:[#allocation4_spill] sm:$0xff] %v10800_v9  ;;  %v2598_v42 = vadd.f32 %v2489_v53, %v11462_v49  ;;  %v9068_v9 = vld [vmem:[%s10346_s19 + $0x134] ss:$8 sps:$4 sm:$0xff]  }
 0x2d2   : > { %v2491_v28 = vpop.f32.mrf.mxu0  ;;  %v3363_v24 = vpop.f32.mrf.mxu1 }
 0x2d3   : > { %v10806_v13 = vadd.f32 %v3361_v6, %v2598_v42  ;;  %v9061_v28 = vld [vmem:[%s10354_s22 + $0x120] ss:$8 sps:$4 sm:$0xff]  }
 0x2d4   : > { %v2494_v18 = vpop.f32.mrf.mxu0  ;;  %4173 = vmatmul.mubr.bf16.gmra.mxu0 %v9052_v60  ;;  %v3366_v38 = vpop.f32.mrf.mxu1  ;;  %5045 = vmatmul.mubr.bf16.gmra.mxu1 %v9055_v14  ;;  %v11466_v42 = vld [vmem:[#allocation7_spill] sm:$0xff] }
 0x2d5   : > { %11463 = vst [vmem:[#allocation5_spill] sm:$0xff] %v10806_v13  ;;  %v2599_v46 = vadd.f32 %v2494_v18, %v11464_v21  ;;  %4180 = vmatprep.mubr.bf16.mxu0 %v9060_v51  ;;  %5052 = vmatprep.mubr.bf16.mxu1 %v9063_v62  ;;  %v9071_v18 = vld [vmem:[%s10354_s22 + $0x134] ss:$8 sps:$4 sm:$0xff]  }
 0x2d6   : > { %v2496_v47 = vpop.f32.mrf.mxu0  ;;  %v3368_v49 = vpop.f32.mrf.mxu1  ;;  %v11468_v62 = vld [vmem:[#allocation8_spill] sm:$0xff] }
 0x2d7   : > { %v10810_v53 = vadd.f32 %v3366_v38, %v2599_v46  ;;  %v9066_v49 = vld [vmem:[%s10346_s19 + $0x130] ss:$8 sps:$4 sm:$0xff]  }
 0x2d8   : > { %v2497_v6 = vpop.f32.mrf.mxu0  ;;  %v3369_v13 = vpop.f32.mrf.mxu1 }
 0x2d9   : > { %11465 = vst [vmem:[#allocation6_spill] sm:$0xff] %v10810_v53  ;;  %v2600_v24 = vadd.f32 %v2497_v6, %v11466_v42  ;;  %v9074_v53 = vld [vmem:[%s10346_s19 + $0x144] ss:$8 sps:$4 sm:$0xff]  }
 0x2da   : > { %v2499_v60 = vpop.f32.mrf.mxu0  ;;  %v3371_v14 = vpop.f32.mrf.mxu1 }
 0x2db   : > { %v10816_v21 = vadd.f32 %v3369_v13, %v2600_v24  ;;  %v9069_v60 = vld [vmem:[%s10354_s22 + $0x130] ss:$8 sps:$4 sm:$0xff]  }
 0x2dc   : > { %v2502_v51 = vpop.f32.mrf.mxu0  ;;  %4181 = vmatmul.mubr.bf16.gmra.mxu0 %v9058_v29  ;;  %v3374_v38 = vpop.f32.mrf.mxu1  ;;  %5053 = vmatmul.mubr.bf16.gmra.mxu1 %v9061_v28  ;;  %v11470_v24 = vld [vmem:[#allocation9_spill] sm:$0xff] }
 0x2dd   : > { %11467 = vst [vmem:[#allocation7_spill] sm:$0xff] %v10816_v21  ;;  %v2601_v46 = vadd.f32 %v2502_v51, %v11468_v62  ;;  %4188 = vmatprep.mubr.bf16.mxu0 %v9068_v9  ;;  %5060 = vmatprep.mubr.bf16.mxu1 %v9071_v18  ;;  %v9077_v51 = vld [vmem:[%s10354_s22 + $0x144] ss:$8 sps:$4 sm:$0xff]  }
 0x2de   : > { %v2504_v47 = vpop.f32.mrf.mxu0  ;;  %v3376_v42 = vpop.f32.mrf.mxu1  ;;  %v11472_v18 = vld [vmem:[#allocation10_spill] sm:$0xff] }
 0x2df   : > { %v10820_v6 = vadd.f32 %v3374_v38, %v2601_v46  ;;  %v9072_v42 = vld [vmem:[%s10346_s19 + $0x140] ss:$8 sps:$4 sm:$0xff]  }
 0x2e0   : > { %v2505_v13 = vpop.f32.mrf.mxu0  ;;  %v3377_v21 = vpop.f32.mrf.mxu1 }
 0x2e1   : > { %11469 = vst [vmem:[#allocation8_spill] sm:$0xff] %v10820_v6  ;;  %v2602_v14 = vadd.f32 %v2505_v13, %v11470_v24  ;;  %v9082_v6 = vld [vmem:[%s10346_s19 + $0x154] ss:$8 sps:$4 sm:$0xff]  }
 0x2e2   : > { %v2507_v29 = vpop.f32.mrf.mxu0  ;;  %v3379_v9 = vpop.f32.mrf.mxu1 }
 0x2e3   : > { %v10826_v62 = vadd.f32 %v3377_v21, %v2602_v14  ;;  %v9075_v29 = vld [vmem:[%s10354_s22 + $0x140] ss:$8 sps:$4 sm:$0xff]  }
 0x2e4   : > { %v2510_v28 = vpop.f32.mrf.mxu0  ;;  %4189 = vmatmul.mubr.bf16.gmra.mxu0 %v9066_v49  ;;  %v3382_v38 = vpop.f32.mrf.mxu1  ;;  %5061 = vmatmul.mubr.bf16.gmra.mxu1 %v9069_v60  ;;  %v11474_v14 = vld [vmem:[#allocation11_spill] sm:$0xff] }
 0x2e5   : > { %11471 = vst [vmem:[#allocation9_spill] sm:$0xff] %v10826_v62  ;;  %v2603_v46 = vadd.f32 %v2510_v28, %v11472_v18  ;;  %4196 = vmatprep.mubr.bf16.mxu0 %v9074_v53  ;;  %5068 = vmatprep.mubr.bf16.mxu1 %v9077_v51  ;;  %v9085_v28 = vld [vmem:[%s10354_s22 + $0x154] ss:$8 sps:$4 sm:$0xff]  }
 0x2e6   : > { %v2512_v47 = vpop.f32.mrf.mxu0  ;;  %v3384_v24 = vpop.f32.mrf.mxu1  ;;  %v11476_v51 = vld [vmem:[#allocation12_spill] sm:$0xff] }
 0x2e7   : > { %v10830_v13 = vadd.f32 %v3382_v38, %v2603_v46  ;;  %v9080_v24 = vld [vmem:[%s10346_s19 + $0x150] ss:$8 sps:$4 sm:$0xff]  }
 0x2e8   : > { %v2513_v21 = vpop.f32.mrf.mxu0  ;;  %v3385_v62 = vpop.f32.mrf.mxu1 }
 0x2e9   : > { %11473 = vst [vmem:[#allocation10_spill] sm:$0xff] %v10830_v13  ;;  %v2604_v9 = vadd.f32 %v2513_v21, %v11474_v14  ;;  %v9088_v13 = vld [vmem:[%s10346_s19 + $0x164] ss:$8 sps:$4 sm:$0xff]  }
 0x2ea   : > { %v2515_v49 = vpop.f32.mrf.mxu0  ;;  %v3387_v53 = vpop.f32.mrf.mxu1 }
 0x2eb   : > { %v10836_v18 = vadd.f32 %v3385_v62, %v2604_v9  ;;  %v9083_v49 = vld [vmem:[%s10354_s22 + $0x150] ss:$8 sps:$4 sm:$0xff]  }
 0x2ec   : > { %v2518_v60 = vpop.f32.mrf.mxu0  ;;  %4197 = vmatmul.mubr.bf16.gmra.mxu0 %v9072_v42  ;;  %v3390_v38 = vpop.f32.mrf.mxu1  ;;  %5069 = vmatmul.mubr.bf16.gmra.mxu1 %v9075_v29  ;;  %v11478_v9 = vld [vmem:[#allocation13_spill] sm:$0xff] }
 0x2ed   : > { %11475 = vst [vmem:[#allocation11_spill] sm:$0xff] %v10836_v18  ;;  %v2605_v46 = vadd.f32 %v2518_v60, %v11476_v51  ;;  %4204 = vmatprep.mubr.bf16.mxu0 %v9082_v6  ;;  %5076 = vmatprep.mubr.bf16.mxu1 %v9085_v28  ;;  %v9091_v60 = vld [vmem:[%s10354_s22 + $0x164] ss:$8 sps:$4 sm:$0xff]  }
 0x2ee   : > { %v2520_v47 = vpop.f32.mrf.mxu0  ;;  %v3392_v14 = vpop.f32.mrf.mxu1  ;;  %v11480_v28 = vld [vmem:[#allocation14_spill] sm:$0xff] }
 0x2ef   : > { %v10840_v21 = vadd.f32 %v3390_v38, %v2605_v46  ;;  %v9086_v14 = vld [vmem:[%s10346_s19 + $0x160] ss:$8 sps:$4 sm:$0xff]  }
 0x2f0   : > { %v2521_v62 = vpop.f32.mrf.mxu0  ;;  %v3393_v18 = vpop.f32.mrf.mxu1 }
 0x2f1   : > { %11477 = vst [vmem:[#allocation12_spill] sm:$0xff] %v10840_v21  ;;  %v2606_v53 = vadd.f32 %v2521_v62, %v11478_v9  ;;  %v9096_v21 = vld [vmem:[%s10346_s19 + $0x174] ss:$8 sps:$4 sm:$0xff]  }
 0x2f2   : > { %v2523_v42 = vpop.f32.mrf.mxu0  ;;  %v3395_v6 = vpop.f32.mrf.mxu1 }
 0x2f3   : > { %v10846_v51 = vadd.f32 %v3393_v18, %v2606_v53  ;;  %v9089_v42 = vld [vmem:[%s10354_s22 + $0x160] ss:$8 sps:$4 sm:$0xff]  }
 0x2f4   : > { %v2526_v29 = vpop.f32.mrf.mxu0  ;;  %4205 = vmatmul.mubr.bf16.gmra.mxu0 %v9080_v24  ;;  %v3398_v38 = vpop.f32.mrf.mxu1  ;;  %5077 = vmatmul.mubr.bf16.gmra.mxu1 %v9083_v49  ;;  %v11482_v18 = vld [vmem:[#allocation15_spill] sm:$0xff] }
 0x2f5   : > { %11479 = vst [vmem:[#allocation13_spill] sm:$0xff] %v10846_v51  ;;  %v2607_v46 = vadd.f32 %v2526_v29, %v11480_v28  ;;  %4212 = vmatprep.mubr.bf16.mxu0 %v9088_v13  ;;  %5084 = vmatprep.mubr.bf16.mxu1 %v9091_v60  ;;  %v9099_v51 = vld [vmem:[%s10354_s22 + $0x174] ss:$8 sps:$4 sm:$0xff]  }
 0x2f6   : > { %v2528_v47 = vpop.f32.mrf.mxu0  ;;  %v3400_v9 = vpop.f32.mrf.mxu1  ;;  %v11484_v60 = vld [vmem:[#allocation16_spill] sm:$0xff] }
 0x2f7   : > { %v10850_v62 = vadd.f32 %v3398_v38, %v2607_v46  ;;  %v9094_v9 = vld [vmem:[%s10346_s19 + $0x170] ss:$8 sps:$4 sm:$0xff]  }
 0x2f8   : > { %v2529_v32 = vpop.f32.mrf.mxu0  ;;  %v3401_v6 = vpop.f32.mrf.mxu1 }
 0x2f9   : > { %11481 = vst [vmem:[#allocation14_spill] sm:$0xff] %v10850_v62  ;;  %v2608_v53 = vadd.f32 %v2529_v32, %v11482_v18  ;;  %v11486_v18 = vld [vmem:[#allocation17_spill] sm:$0xff] }
 0x2fa   : > { %v2531_v24 = vpop.f32.mrf.mxu0  ;;  %v3403_v49 = vpop.f32.mrf.mxu1 }
 0x2fb   : > { %v10856_v3 = vadd.f32 %v3401_v6, %v2608_v53  ;;  %v9097_v24 = vld [vmem:[%s10354_s22 + $0x170] ss:$8 sps:$4 sm:$0xff]   ;;  %v9102_v49 = vld [vmem:[%s10346_s19 + $0x184] ss:$8 sps:$4 sm:$0xff]  }
 0x2fc   : > { %v2534_v13 = vpop.f32.mrf.mxu0  ;;  %4213 = vmatmul.mubr.bf16.gmra.mxu0 %v9086_v14  ;;  %v3406_v28 = vpop.f32.mrf.mxu1  ;;  %5085 = vmatmul.mubr.bf16.gmra.mxu1 %v9089_v42 }
 0x2fd   : > { %11483 = vst [vmem:[#allocation15_spill] sm:$0xff] %v10856_v3  ;;  %v2609_v29 = vadd.f32 %v2534_v13, %v11484_v60  ;;  %4220 = vmatprep.mubr.bf16.mxu0 %v9096_v21  ;;  %5092 = vmatprep.mubr.bf16.mxu1 %v9099_v51  ;;  %v9105_v3 = vld [vmem:[%s10354_s22 + $0x184] ss:$8 sps:$4 sm:$0xff]  }
 0x2fe   : > { %v2536_v46 = vpop.f32.mrf.mxu0  ;;  %v3408_v38 = vpop.f32.mrf.mxu1  ;;  %v11488_v51 = vld [vmem:[#allocation18_spill] sm:$0xff] }
 0x2ff   : > { %v10859_v32 = vadd.f32 %v3406_v28, %v2609_v29 }
 0x300   : > { %v2537_v47 = vpop.f32.mrf.mxu0  ;;  %v3409_v6 = vpop.f32.mrf.mxu1 }
 0x301   : > { %11485 = vst [vmem:[#allocation16_spill] sm:$0xff] %v10859_v32  ;;  %v2610_v53 = vadd.f32 %v2537_v47, %v11486_v18  ;;  %v9100_v47 = vld [vmem:[%s10346_s19 + $0x180] ss:$8 sps:$4 sm:$0xff]  }
 0x302   : > { %v2539_v14 = vpop.f32.mrf.mxu0  ;;  %v3411_v42 = vpop.f32.mrf.mxu1  ;;  %v11489_v18 = vld [vmem:[#allocation19_spill] sm:$0xff] }
 0x303   : > { %v10866_v62 = vadd.f32 %v3409_v6, %v2610_v53  ;;  %v9103_v14 = vld [vmem:[%s10354_s22 + $0x180] ss:$8 sps:$4 sm:$0xff]   ;;  %v9110_v42 = vld [vmem:[%s10346_s19 + $0x194] ss:$8 sps:$4 sm:$0xff]  }
 0x304   : > { %v2542_v21 = vpop.f32.mrf.mxu0  ;;  %4221 = vmatmul.mubr.bf16.gmra.mxu0 %v9094_v9  ;;  %v3414_v60 = vpop.f32.mrf.mxu1  ;;  %5093 = vmatmul.mubr.bf16.gmra.mxu1 %v9097_v24 }
 0x305   : > { %11487 = vst [vmem:[#allocation17_spill] sm:$0xff] %v10866_v62  ;;  %v2611_v13 = vadd.f32 %v2542_v21, %v11488_v51  ;;  %4228 = vmatprep.mubr.bf16.mxu0 %v9102_v49  ;;  %5100 = vmatprep.mubr.bf16.mxu1 %v9105_v3  ;;  %v9113_v62 = vld [vmem:[%s10354_s22 + $0x194] ss:$8 sps:$4 sm:$0xff]  }
 0x306   : > { %v2544_v29 = vpop.f32.mrf.mxu0  ;;  %v3416_v46 = vpop.f32.mrf.mxu1 }
 0x307   : > { %v10869_v28 = vadd.f32 %v3414_v60, %v2611_v13  ;;  %v9108_v46 = vld [vmem:[%s10346_s19 + $0x190] ss:$8 sps:$4 sm:$0xff]  }
 0x308   : > { %v2545_v38 = vpop.f32.mrf.mxu0  ;;  %v3417_v6 = vpop.f32.mrf.mxu1 }
 0x309   : > { %v2612_v53 = vadd.f32 %v2545_v38, %v11489_v18 }
 0x30a   : > { %v2547_v9 = vpop.f32.mrf.mxu0  ;;  %v3419_v24 = vpop.f32.mrf.mxu1 }
 0x30b   : > { %v10876_v32 = vadd.f32 %v3417_v6, %v2612_v53  ;;  %v9111_v53 = vld [vmem:[%s10354_s22 + $0x190] ss:$8 sps:$4 sm:$0xff]   ;;  %v9116_v6 = vld [vmem:[%s10346_s19 + $0x1a4] ss:$8 sps:$4 sm:$0xff]  }
 0x30c   : > { %v4038_v49 = vpop.f32.mrf.mxu0  ;;  %4229 = vmatmul.mubr.bf16.gmra.mxu0 %v9100_v47  ;;  %v4910_v21 = vpop.f32.mrf.mxu1  ;;  %5101 = vmatmul.mubr.bf16.gmra.mxu1 %v9103_v14  ;;  %v9119_v9 = vld [vmem:[%s10354_s22 + $0x1a4] ss:$8 sps:$4 sm:$0xff]  }
 0x30d   : > { %v4293_v3 = vadd.f32 %v4038_v49, %v10421_v63  ;;  %4236 = vmatprep.mubr.bf16.mxu0 %v9110_v42  ;;  %5108 = vmatprep.mubr.bf16.mxu1 %v9113_v62 }
 0x30e   : > { %v4040_v51 = vpop.f32.mrf.mxu0  ;;  %v4912_v60 = vpop.f32.mrf.mxu1 }
 0x30f   : > { %v10879_v13 = vadd.f32 %v4910_v21, %v4293_v3  ;;  %v9114_v51 = vld [vmem:[%s10346_s19 + $0x1a0] ss:$8 sps:$4 sm:$0xff]  }
 0x310   : > { %v4041_v29 = vpop.f32.mrf.mxu0  ;;  %v4913_v18 = vpop.f32.mrf.mxu1 }
 0x311   : > { %v4294_v38 = vadd.f32 %v4041_v29, %v10428_v55 }
 0x312   : > { %v4043_v47 = vpop.f32.mrf.mxu0  ;;  %v4915_v63 = vpop.f32.mrf.mxu1 }
 0x313   : > { %v10886_v24 = vadd.f32 %v4913_v18, %v4294_v38  ;;  %v9117_v38 = vld [vmem:[%s10354_s22 + $0x1a0] ss:$8 sps:$4 sm:$0xff]   ;;  %v9124_v18 = vld [vmem:[%s10346_s19 + $0x1b4] ss:$8 sps:$4 sm:$0xff]  }
 0x314   : > { %v4046_v14 = vpop.f32.mrf.mxu0  ;;  %4237 = vmatmul.mubr.bf16.gmra.mxu0 %v9108_v46  ;;  %v4918_v42 = vpop.f32.mrf.mxu1  ;;  %5109 = vmatmul.mubr.bf16.gmra.mxu1 %v9111_v53  ;;  %v9127_v47 = vld [vmem:[%s10354_s22 + $0x1b4] ss:$8 sps:$4 sm:$0xff]  }
 0x315   : > { %v4295_v62 = vadd.f32 %v4046_v14, %v10431_v35  ;;  %4244 = vmatprep.mubr.bf16.mxu0 %v9116_v6  ;;  %5116 = vmatprep.mubr.bf16.mxu1 %v9119_v9 }
 0x316   : > { %v4048_v55 = vpop.f32.mrf.mxu0  ;;  %v4920_v3 = vpop.f32.mrf.mxu1 }
 0x317   : > { %v10889_v49 = vadd.f32 %v4918_v42, %v4295_v62  ;;  %v9122_v55 = vld [vmem:[%s10346_s19 + $0x1b0] ss:$8 sps:$4 sm:$0xff]  }
 0x318   : > { %v4049_v21 = vpop.f32.mrf.mxu0  ;;  %v4921_v29 = vpop.f32.mrf.mxu1 }
 0x319   : > { %v4296_v60 = vadd.f32 %v4049_v21, %v10438_v43 }
 0x31a   : > { %v4051_v46 = vpop.f32.mrf.mxu0  ;;  %v4923_v35 = vpop.f32.mrf.mxu1 }
 0x31b   : > { %v10896_v63 = vadd.f32 %v4921_v29, %v4296_v60  ;;  %v9125_v60 = vld [vmem:[%s10354_s22 + $0x1b0] ss:$8 sps:$4 sm:$0xff]   ;;  %v9130_v29 = vld [vmem:[%s10346_s19 + $0x1c4] ss:$8 sps:$4 sm:$0xff]  }
 0x31c   : > { %v4054_v53 = vpop.f32.mrf.mxu0  ;;  %4245 = vmatmul.mubr.bf16.gmra.mxu0 %v9114_v51  ;;  %v4926_v9 = vpop.f32.mrf.mxu1  ;;  %5117 = vmatmul.mubr.bf16.gmra.mxu1 %v9117_v38  ;;  %v9133_v46 = vld [vmem:[%s10354_s22 + $0x1c4] ss:$8 sps:$4 sm:$0xff]  }
 0x31d   : > { %v4297_v6 = vadd.f32 %v4054_v53, %v10441_v1  ;;  %4252 = vmatprep.mubr.bf16.mxu0 %v9124_v18  ;;  %5124 = vmatprep.mubr.bf16.mxu1 %v9127_v47 }
 0x31e   : > { %v4056_v43 = vpop.f32.mrf.mxu0  ;;  %v4928_v62 = vpop.f32.mrf.mxu1 }
 0x31f   : > { %v10899_v14 = vadd.f32 %v4926_v9, %v4297_v6  ;;  %v9128_v43 = vld [vmem:[%s10346_s19 + $0x1c0] ss:$8 sps:$4 sm:$0xff]  }
 0x320   : > { %v4057_v42 = vpop.f32.mrf.mxu0  ;;  %v4929_v21 = vpop.f32.mrf.mxu1 }
 0x321   : > { %v4298_v3 = vadd.f32 %v4057_v42, %v10448_v57 }
 0x322   : > { %v4059_v51 = vpop.f32.mrf.mxu0  ;;  %v4931_v1 = vpop.f32.mrf.mxu1 }
 0x323   : > { %v10906_v35 = vadd.f32 %v4929_v21, %v4298_v3  ;;  %v9131_v3 = vld [vmem:[%s10354_s22 + $0x1c0] ss:$8 sps:$4 sm:$0xff]   ;;  %v9138_v21 = vld [vmem:[%s10346_s19 + $0x1d4] ss:$8 sps:$4 sm:$0xff]  }
 0x324   : > { %v4062_v38 = vpop.f32.mrf.mxu0  ;;  %4253 = vmatmul.mubr.bf16.gmra.mxu0 %v9122_v55  ;;  %v4934_v47 = vpop.f32.mrf.mxu1  ;;  %5125 = vmatmul.mubr.bf16.gmra.mxu1 %v9125_v60  ;;  %v9141_v51 = vld [vmem:[%s10354_s22 + $0x1d4] ss:$8 sps:$4 sm:$0xff]  }
 0x325   : > { %v4299_v18 = vadd.f32 %v4062_v38, %v10451_v48  ;;  %4260 = vmatprep.mubr.bf16.mxu0 %v9130_v29  ;;  %5132 = vmatprep.mubr.bf16.mxu1 %v9133_v46 }
 0x326   : > { %v4064_v57 = vpop.f32.mrf.mxu0  ;;  %v4936_v6 = vpop.f32.mrf.mxu1 }
 0x327   : > { %v10909_v53 = vadd.f32 %v4934_v47, %v4299_v18  ;;  %v9136_v57 = vld [vmem:[%s10346_s19 + $0x1d0] ss:$8 sps:$4 sm:$0xff]  }
 0x328   : > { %v4065_v9 = vpop.f32.mrf.mxu0  ;;  %v4937_v42 = vpop.f32.mrf.mxu1 }
 0x329   : > { %v4300_v62 = vadd.f32 %v4065_v9, %v10458_v8 }
 0x32a   : > { %v4067_v55 = vpop.f32.mrf.mxu0  ;;  %v4939_v48 = vpop.f32.mrf.mxu1 }
 0x32b   : > { %v10916_v1 = vadd.f32 %v4937_v42, %v4300_v62  ;;  %v9139_v62 = vld [vmem:[%s10354_s22 + $0x1d0] ss:$8 sps:$4 sm:$0xff]   ;;  %v9144_v42 = vld [vmem:[%s10346_s19 + $0x1e4] ss:$8 sps:$4 sm:$0xff]  }
 0x32c   : > { %v4070_v60 = vpop.f32.mrf.mxu0  ;;  %4261 = vmatmul.mubr.bf16.gmra.mxu0 %v9128_v43  ;;  %v4942_v46 = vpop.f32.mrf.mxu1  ;;  %5133 = vmatmul.mubr.bf16.gmra.mxu1 %v9131_v3  ;;  %v9147_v55 = vld [vmem:[%s10354_s22 + $0x1e4] ss:$8 sps:$4 sm:$0xff]  }
 0x32d   : > { %v4301_v29 = vadd.f32 %v4070_v60, %v10461_v10  ;;  %4268 = vmatprep.mubr.bf16.mxu0 %v9138_v21  ;;  %5140 = vmatprep.mubr.bf16.mxu1 %v9141_v51 }
 0x32e   : > { %v4072_v8 = vpop.f32.mrf.mxu0  ;;  %v4944_v18 = vpop.f32.mrf.mxu1 }
 0x32f   : > { %v10919_v38 = vadd.f32 %v4942_v46, %v4301_v29  ;;  %v9142_v8 = vld [vmem:[%s10346_s19 + $0x1e0] ss:$8 sps:$4 sm:$0xff]  }
 0x330   : > { %v4073_v47 = vpop.f32.mrf.mxu0  ;;  %v4945_v9 = vpop.f32.mrf.mxu1 }
 0x331   : > { %v4302_v6 = vadd.f32 %v4073_v47, %v10468_v22 }
 0x332   : > { %v4075_v43 = vpop.f32.mrf.mxu0  ;;  %v4947_v10 = vpop.f32.mrf.mxu1 }
 0x333   : > { %v10926_v48 = vadd.f32 %v4945_v9, %v4302_v6  ;;  %v9145_v6 = vld [vmem:[%s10354_s22 + $0x1e0] ss:$8 sps:$4 sm:$0xff]   ;;  %v9152_v9 = vld [vmem:[%s10346_s19 + $0x1f4] ss:$8 sps:$4 sm:$0xff]  }
 0x334   : > { %v4078_v3 = vpop.f32.mrf.mxu0  ;;  %4269 = vmatmul.mubr.bf16.gmra.mxu0 %v9136_v57  ;;  %v4950_v51 = vpop.f32.mrf.mxu1  ;;  %5141 = vmatmul.mubr.bf16.gmra.mxu1 %v9139_v62  ;;  %v9155_v43 = vld [vmem:[%s10354_s22 + $0x1f4] ss:$8 sps:$4 sm:$0xff]  }
 0x335   : > { %v4303_v21 = vadd.f32 %v4078_v3, %v10471_v37  ;;  %4276 = vmatprep.mubr.bf16.mxu0 %v9144_v42  ;;  %5148 = vmatprep.mubr.bf16.mxu1 %v9147_v55 }
 0x336   : > { %v4080_v22 = vpop.f32.mrf.mxu0  ;;  %v4952_v29 = vpop.f32.mrf.mxu1 }
 0x337   : > { %v10929_v60 = vadd.f32 %v4950_v51, %v4303_v21  ;;  %v9150_v22 = vld [vmem:[%s10346_s19 + $0x1f0] ss:$8 sps:$4 sm:$0xff]   ;;  %s7486_s19 = sshll.u32 %s7482_s10, 6 }
 0x338   : > { %v4081_v46 = vpop.f32.mrf.mxu0  ;;  %v4953_v47 = vpop.f32.mrf.mxu1  ;;  %p120_p3 = scmp.lt.s32.totalorder %s7486_s19, 2239 }
 0x339   : > { %v4304_v18 = vadd.f32 %v4081_v46, %v10478_v36 }
 0x33a   : > { %v4083_v57 = vpop.f32.mrf.mxu0  ;;  %v4955_v37 = vpop.f32.mrf.mxu1  ;;  %s11545_s19 = smov (!%p120_p3, %s7486_s19), 2239 }
 0x33b   : > { %v10936_v10 = vadd.f32 %v4953_v47, %v4304_v18  ;;  %v9153_v18 = vld [vmem:[%s10354_s22 + $0x1f0] ss:$8 sps:$4 sm:$0xff]   ;;  %v9158_v47 = vld [vmem:[%s10788_s24 + $0x4] ss:$8 sps:$4 sm:$0xff]   ;;  %s7487_s10 = sshll.u32 %s11545_s19, 3 }
 0x33c   : > { %v4086_v62 = vpop.f32.mrf.mxu0  ;;  %4277 = vmatmul.mubr.bf16.gmra.mxu0 %v9142_v8  ;;  %v4958_v55 = vpop.f32.mrf.mxu1  ;;  %5149 = vmatmul.mubr.bf16.gmra.mxu1 %v9145_v6  ;;  %v9161_v57 = vld [vmem:[%s10794_s27 + $0x4] ss:$8 sps:$4 sm:$0xff]   ;;  %s11232_s29 = scalar_lea.vmem %s11432_s2, %s7487_s10 }
 0x33d   : > { %v4305_v42 = vadd.f32 %v4086_v62, %v10481_v40  ;;  %4284 = vmatprep.mubr.bf16.mxu0 %v9152_v9  ;;  %5156 = vmatprep.mubr.bf16.mxu1 %v9155_v43 }
 0x33e   : > { %v4088_v36 = vpop.f32.mrf.mxu0  ;;  %v4960_v21 = vpop.f32.mrf.mxu1 }
 0x33f   : > { %v10939_v3 = vadd.f32 %v4958_v55, %v4305_v42  ;;  %v9156_v36 = vld [vmem:[%s10788_s24] ss:$8 sps:$4 sm:$0xff]  }
 0x340   : > { %v4089_v51 = vpop.f32.mrf.mxu0  ;;  %v4961_v46 = vpop.f32.mrf.mxu1 }
 0x341   : > { %v4306_v29 = vadd.f32 %v4089_v51, %v10488_v52 }
 0x342   : > { %v4091_v8 = vpop.f32.mrf.mxu0  ;;  %v4963_v40 = vpop.f32.mrf.mxu1 }
 0x343   : > { %v10946_v37 = vadd.f32 %v4961_v46, %v4306_v29  ;;  %v9159_v29 = vld [vmem:[%s10794_s27] ss:$8 sps:$4 sm:$0xff]   ;;  %v9164_v46 = vld [vmem:[%s10788_s24 + $0x14] ss:$8 sps:$4 sm:$0xff]  }
 0x344   : > { %v4094_v6 = vpop.f32.mrf.mxu0  ;;  %4285 = vmatmul.mubr.bf16.gmra.mxu0 %v9150_v22  ;;  %v4966_v43 = vpop.f32.mrf.mxu1  ;;  %5157 = vmatmul.mubr.bf16.gmra.mxu1 %v9153_v18  ;;  %v9167_v8 = vld [vmem:[%s10794_s27 + $0x14] ss:$8 sps:$4 sm:$0xff]  }
 0x345   : > { %v4307_v9 = vadd.f32 %v4094_v6, %v10491_v25  ;;  %5780 = vmatprep.mubr.bf16.mxu0 %v9158_v47  ;;  %6652 = vmatprep.mubr.bf16.mxu1 %v9161_v57 }
 0x346   : > { %v4096_v52 = vpop.f32.mrf.mxu0  ;;  %v4968_v42 = vpop.f32.mrf.mxu1 }
 0x347   : > { %v10949_v62 = vadd.f32 %v4966_v43, %v4307_v9  ;;  %v9162_v52 = vld [vmem:[%s10788_s24 + $0x10] ss:$8 sps:$4 sm:$0xff]  }
 0x348   : > { %v4097_v55 = vpop.f32.mrf.mxu0  ;;  %v4969_v51 = vpop.f32.mrf.mxu1 }
 0x349   : > { %v4308_v21 = vadd.f32 %v4097_v55, %v10503_v34 }
 0x34a   : > { %v4099_v22 = vpop.f32.mrf.mxu0  ;;  %v4971_v25 = vpop.f32.mrf.mxu1 }
 0x34b   : > { %v10956_v40 = vadd.f32 %v4969_v51, %v4308_v21  ;;  %v9165_v21 = vld [vmem:[%s10794_s27 + $0x10] ss:$8 sps:$4 sm:$0xff]   ;;  %v9170_v51 = vld [vmem:[%s10788_s24 + $0x24] ss:$8 sps:$4 sm:$0xff]  }
 0x34c   : > { %v4102_v18 = vpop.f32.mrf.mxu0  ;;  %5781 = vmatmul.mubr.bf16.vlgmr.msra.gmra.mxu0 %v9156_v36  ;;  %v4974_v57 = vpop.f32.mrf.mxu1  ;;  %6653 = vmatmul.mubr.bf16.vlgmr.msra.gmra.mxu1 %v9159_v29  ;;  %v9173_v22 = vld [vmem:[%s10794_s27 + $0x24] ss:$8 sps:$4 sm:$0xff]  }
 0x34d   : > { %v4309_v47 = vadd.f32 %v4102_v18, %v10513_v12  ;;  %5788 = vmatprep.mubr.bf16.mxu0 %v9164_v46  ;;  %6660 = vmatprep.mubr.bf16.mxu1 %v9167_v8 }
 0x34e   : > { %v4104_v34 = vpop.f32.mrf.mxu0  ;;  %v4976_v9 = vpop.f32.mrf.mxu1 }
 0x34f   : > { %v10959_v6 = vadd.f32 %v4974_v57, %v4309_v47  ;;  %v9168_v34 = vld [vmem:[%s10788_s24 + $0x20] ss:$8 sps:$4 sm:$0xff]  }
 0x350   : > { %v4105_v43 = vpop.f32.mrf.mxu0  ;;  %v4977_v55 = vpop.f32.mrf.mxu1 }
 0x351   : > { %v4310_v42 = vadd.f32 %v4105_v43, %v10526_v16 }
 0x352   : > { %v4107_v36 = vpop.f32.mrf.mxu0  ;;  %v4979_v12 = vpop.f32.mrf.mxu1 }
 0x353   : > { %v10966_v25 = vadd.f32 %v4977_v55, %v4310_v42  ;;  %v9171_v42 = vld [vmem:[%s10794_s27 + $0x20] ss:$8 sps:$4 sm:$0xff]   ;;  %v9176_v55 = vld [vmem:[%s10788_s24 + $0x34] ss:$8 sps:$4 sm:$0xff]  }
 0x354   : > { %v4110_v29 = vpop.f32.mrf.mxu0  ;;  %5789 = vmatmul.mubr.bf16.gmra.mxu0 %v9162_v52  ;;  %v4982_v8 = vpop.f32.mrf.mxu1  ;;  %6661 = vmatmul.mubr.bf16.gmra.mxu1 %v9165_v21  ;;  %v9179_v36 = vld [vmem:[%s10794_s27 + $0x34] ss:$8 sps:$4 sm:$0xff]  }
 0x355   : > { %v4311_v46 = vadd.f32 %v4110_v29, %v10536_v41  ;;  %5796 = vmatprep.mubr.bf16.mxu0 %v9170_v51  ;;  %6668 = vmatprep.mubr.bf16.mxu1 %v9173_v22 }
 0x356   : > { %v4112_v16 = vpop.f32.mrf.mxu0  ;;  %v4984_v47 = vpop.f32.mrf.mxu1 }
 0x357   : > { %v10969_v18 = vadd.f32 %v4982_v8, %v4311_v46  ;;  %v9174_v16 = vld [vmem:[%s10788_s24 + $0x30] ss:$8 sps:$4 sm:$0xff]  }
 0x358   : > { %v4113_v57 = vpop.f32.mrf.mxu0  ;;  %v4985_v43 = vpop.f32.mrf.mxu1 }
 0x359   : > { %v4312_v9 = vadd.f32 %v4113_v57, %v10551_v54 }
 0x35a   : > { %v4115_v52 = vpop.f32.mrf.mxu0  ;;  %v4987_v41 = vpop.f32.mrf.mxu1 }
 0x35b   : > { %v10976_v12 = vadd.f32 %v4985_v43, %v4312_v9  ;;  %v9177_v9 = vld [vmem:[%s10794_s27 + $0x30] ss:$8 sps:$4 sm:$0xff]   ;;  %v9182_v43 = vld [vmem:[%s10788_s24 + $0x44] ss:$8 sps:$4 sm:$0xff]  }
 0x35c   : > { %v4118_v21 = vpop.f32.mrf.mxu0  ;;  %5797 = vmatmul.mubr.bf16.gmra.mxu0 %v9168_v34  ;;  %v4990_v22 = vpop.f32.mrf.mxu1  ;;  %6669 = vmatmul.mubr.bf16.gmra.mxu1 %v9171_v42  ;;  %v9185_v52 = vld [vmem:[%s10794_s27 + $0x44] ss:$8 sps:$4 sm:$0xff]  }
 0x35d   : > { %v4313_v51 = vadd.f32 %v4118_v21, %v10562_v0  ;;  %5804 = vmatprep.mubr.bf16.mxu0 %v9176_v55  ;;  %6676 = vmatprep.mubr.bf16.mxu1 %v9179_v36 }
 0x35e   : > { %v4120_v54 = vpop.f32.mrf.mxu0  ;;  %v4992_v46 = vpop.f32.mrf.mxu1 }
 0x35f   : > { %v10979_v29 = vadd.f32 %v4990_v22, %v4313_v51  ;;  %v9180_v54 = vld [vmem:[%s10788_s24 + $0x40] ss:$8 sps:$4 sm:$0xff]  }
 0x360   : > { %v4121_v8 = vpop.f32.mrf.mxu0  ;;  %v4993_v57 = vpop.f32.mrf.mxu1 }
 0x361   : > { %v4314_v47 = vadd.f32 %v4121_v8, %v10577_v15 }
 0x362   : > { %v4123_v34 = vpop.f32.mrf.mxu0  ;;  %v4995_v0 = vpop.f32.mrf.mxu1 }
 0x363   : > { %v10986_v41 = vadd.f32 %v4993_v57, %v4314_v47  ;;  %v9183_v47 = vld [vmem:[%s10794_s27 + $0x40] ss:$8 sps:$4 sm:$0xff]   ;;  %v9188_v57 = vld [vmem:[%s10788_s24 + $0x54] ss:$8 sps:$4 sm:$0xff]  }
 0x364   : > { %v4126_v42 = vpop.f32.mrf.mxu0  ;;  %5805 = vmatmul.mubr.bf16.gmra.mxu0 %v9174_v16  ;;  %v4998_v36 = vpop.f32.mrf.mxu1  ;;  %6677 = vmatmul.mubr.bf16.gmra.mxu1 %v9177_v9  ;;  %v9191_v34 = vld [vmem:[%s10794_s27 + $0x54] ss:$8 sps:$4 sm:$0xff]  }
 0x365   : > { %v4315_v55 = vadd.f32 %v4126_v42, %v10588_v26  ;;  %5812 = vmatprep.mubr.bf16.mxu0 %v9182_v43  ;;  %6684 = vmatprep.mubr.bf16.mxu1 %v9185_v52 }
 0x366   : > { %v4128_v15 = vpop.f32.mrf.mxu0  ;;  %v5000_v51 = vpop.f32.mrf.mxu1 }
 0x367   : > { %v10989_v21 = vadd.f32 %v4998_v36, %v4315_v55  ;;  %v9186_v15 = vld [vmem:[%s10788_s24 + $0x50] ss:$8 sps:$4 sm:$0xff]  }
 0x368   : > { %v4129_v22 = vpop.f32.mrf.mxu0  ;;  %v5001_v8 = vpop.f32.mrf.mxu1 }
 0x369   : > { %v4316_v46 = vadd.f32 %v4129_v22, %v10603_v39 }
 0x36a   : > { %v4131_v16 = vpop.f32.mrf.mxu0  ;;  %v5003_v26 = vpop.f32.mrf.mxu1 }
 0x36b   : > { %v10996_v0 = vadd.f32 %v5001_v8, %v4316_v46  ;;  %v9189_v46 = vld [vmem:[%s10794_s27 + $0x50] ss:$8 sps:$4 sm:$0xff]   ;;  %v9194_v8 = vld [vmem:[%s10788_s24 + $0x64] ss:$8 sps:$4 sm:$0xff]  }
 0x36c   : > { %v4134_v9 = vpop.f32.mrf.mxu0  ;;  %5813 = vmatmul.mubr.bf16.gmra.mxu0 %v9180_v54  ;;  %v5006_v52 = vpop.f32.mrf.mxu1  ;;  %6685 = vmatmul.mubr.bf16.gmra.mxu1 %v9183_v47  ;;  %v9197_v16 = vld [vmem:[%s10794_s27 + $0x64] ss:$8 sps:$4 sm:$0xff]  }
 0x36d   : > { %v4317_v43 = vadd.f32 %v4134_v9, %v10614_v50  ;;  %5820 = vmatprep.mubr.bf16.mxu0 %v9188_v57  ;;  %6692 = vmatprep.mubr.bf16.mxu1 %v9191_v34 }
 0x36e   : > { %v4136_v39 = vpop.f32.mrf.mxu0  ;;  %v5008_v55 = vpop.f32.mrf.mxu1 }
 0x36f   : > { %v10999_v42 = vadd.f32 %v5006_v52, %v4317_v43  ;;  %v9192_v39 = vld [vmem:[%s10788_s24 + $0x60] ss:$8 sps:$4 sm:$0xff]  }
 0x370   : > { %v4137_v36 = vpop.f32.mrf.mxu0  ;;  %v5009_v22 = vpop.f32.mrf.mxu1 }
 0x371   : > { %v4318_v51 = vadd.f32 %v4137_v36, %v10629_v4 }
 0x372   : > { %v4139_v54 = vpop.f32.mrf.mxu0  ;;  %v5011_v50 = vpop.f32.mrf.mxu1 }
 0x373   : > { %v11006_v26 = vadd.f32 %v5009_v22, %v4318_v51  ;;  %v9195_v51 = vld [vmem:[%s10794_s27 + $0x60] ss:$8 sps:$4 sm:$0xff]   ;;  %v9200_v22 = vld [vmem:[%s10788_s24 + $0x74] ss:$8 sps:$4 sm:$0xff]  }
 0x374   : > { %v4142_v47 = vpop.f32.mrf.mxu0  ;;  %5821 = vmatmul.mubr.bf16.gmra.mxu0 %v9186_v15  ;;  %v5014_v34 = vpop.f32.mrf.mxu1  ;;  %6693 = vmatmul.mubr.bf16.gmra.mxu1 %v9189_v46  ;;  %v9203_v54 = vld [vmem:[%s10794_s27 + $0x74] ss:$8 sps:$4 sm:$0xff]  }
 0x375   : > { %v4319_v57 = vadd.f32 %v4142_v47, %v10637_v11  ;;  %5828 = vmatprep.mubr.bf16.mxu0 %v9194_v8  ;;  %6700 = vmatprep.mubr.bf16.mxu1 %v9197_v16 }
 0x376   : > { %v4144_v4 = vpop.f32.mrf.mxu0  ;;  %v5016_v43 = vpop.f32.mrf.mxu1 }
 0x377   : > { %v11009_v9 = vadd.f32 %v5014_v34, %v4319_v57  ;;  %v9198_v4 = vld [vmem:[%s10788_s24 + $0x70] ss:$8 sps:$4 sm:$0xff]  }
 0x378   : > { %v4145_v52 = vpop.f32.mrf.mxu0  ;;  %v5017_v36 = vpop.f32.mrf.mxu1  ;;  %v11491_v43 = vld [vmem:[#allocation20_spill] sm:$0xff] }
 0x379   : > { %v4320_v55 = vadd.f32 %v4145_v52, %v10646_v7 }
 0x37a   : > { %v4147_v15 = vpop.f32.mrf.mxu0  ;;  %v5019_v11 = vpop.f32.mrf.mxu1 }
 0x37b   : > { %v11016_v50 = vadd.f32 %v5017_v36, %v4320_v55  ;;  %v9201_v36 = vld [vmem:[%s10794_s27 + $0x70] ss:$8 sps:$4 sm:$0xff]   ;;  %v9206_v15 = vld [vmem:[%s10788_s24 + $0x84] ss:$8 sps:$4 sm:$0xff]  }
 0x37c   : > { %v4150_v46 = vpop.f32.mrf.mxu0  ;;  %5829 = vmatmul.mubr.bf16.gmra.mxu0 %v9192_v39  ;;  %v5022_v16 = vpop.f32.mrf.mxu1  ;;  %6701 = vmatmul.mubr.bf16.gmra.mxu1 %v9195_v51  ;;  %v9209_v11 = vld [vmem:[%s10794_s27 + $0x84] ss:$8 sps:$4 sm:$0xff]  }
 0x37d   : > { %11490 = vst [vmem:[#allocation18_spill] sm:$0xff] %v11016_v50  ;;  %v4321_v8 = vadd.f32 %v4150_v46, %v10649_v61  ;;  %5836 = vmatprep.mubr.bf16.mxu0 %v9200_v22  ;;  %6708 = vmatprep.mubr.bf16.mxu1 %v9203_v54 }
 0x37e   : > { %v4152_v7 = vpop.f32.mrf.mxu0  ;;  %v5024_v57 = vpop.f32.mrf.mxu1 }
 0x37f   : > { %v11019_v47 = vadd.f32 %v5022_v16, %v4321_v8  ;;  %v9204_v57 = vld [vmem:[%s10788_s24 + $0x80] ss:$8 sps:$4 sm:$0xff]  }
 0x380   : > { %v4153_v34 = vpop.f32.mrf.mxu0  ;;  %v5025_v55 = vpop.f32.mrf.mxu1 }
 0x381   : > { %v4322_v52 = vadd.f32 %v4153_v34, %v11491_v43 }
 0x382   : > { %v4155_v39 = vpop.f32.mrf.mxu0  ;;  %v5027_v61 = vpop.f32.mrf.mxu1 }
 0x383   : > { %v11026_v50 = vadd.f32 %v5025_v55, %v4322_v52  ;;  %v9207_v52 = vld [vmem:[%s10794_s27 + $0x80] ss:$8 sps:$4 sm:$0xff]   ;;  %v9212_v55 = vld [vmem:[%s10788_s24 + $0x94] ss:$8 sps:$4 sm:$0xff]  }
 0x384   : > { %v4158_v51 = vpop.f32.mrf.mxu0  ;;  %5837 = vmatmul.mubr.bf16.gmra.mxu0 %v9198_v4  ;;  %v5030_v54 = vpop.f32.mrf.mxu1  ;;  %6709 = vmatmul.mubr.bf16.gmra.mxu1 %v9201_v36  ;;  %v9215_v39 = vld [vmem:[%s10794_s27 + $0x94] ss:$8 sps:$4 sm:$0xff]  }
 0x385   : > { %v4323_v22 = vadd.f32 %v4158_v51, %v10667_v58  ;;  %5844 = vmatprep.mubr.bf16.mxu0 %v9206_v15  ;;  %6716 = vmatprep.mubr.bf16.mxu1 %v9209_v11 }
 0x386   : > { %v4160_v46 = vpop.f32.mrf.mxu0  ;;  %v5032_v16 = vpop.f32.mrf.mxu1 }
 0x387   : > { %v11029_v8 = vadd.f32 %v5030_v54, %v4323_v22  ;;  %v9210_v46 = vld [vmem:[%s10788_s24 + $0x90] ss:$8 sps:$4 sm:$0xff]  }
 0x388   : > { %v4161_v7 = vpop.f32.mrf.mxu0  ;;  %v5033_v43 = vpop.f32.mrf.mxu1 }
 0x389   : > { %v4324_v34 = vadd.f32 %v4161_v7, %v10674_v31 }
 0x38a   : > { %v4163_v4 = vpop.f32.mrf.mxu0  ;;  %v5035_v58 = vpop.f32.mrf.mxu1 }
 0x38b   : > { %v11036_v61 = vadd.f32 %v5033_v43, %v4324_v34  ;;  %v9213_v34 = vld [vmem:[%s10794_s27 + $0x90] ss:$8 sps:$4 sm:$0xff]   ;;  %v9218_v43 = vld [vmem:[%s10788_s24 + $0xa4] ss:$8 sps:$4 sm:$0xff]  }
 0x38c   : > { %v4166_v36 = vpop.f32.mrf.mxu0  ;;  %5845 = vmatmul.mubr.bf16.gmra.mxu0 %v9204_v57  ;;  %v5038_v11 = vpop.f32.mrf.mxu1  ;;  %6717 = vmatmul.mubr.bf16.gmra.mxu1 %v9207_v52  ;;  %v9221_v4 = vld [vmem:[%s10794_s27 + $0xa4] ss:$8 sps:$4 sm:$0xff]  }
 0x38d   : > { %v4325_v15 = vadd.f32 %v4166_v36, %v10677_v2  ;;  %5852 = vmatprep.mubr.bf16.mxu0 %v9212_v55  ;;  %6724 = vmatprep.mubr.bf16.mxu1 %v9215_v39 }
 0x38e   : > { %v4168_v31 = vpop.f32.mrf.mxu0  ;;  %v5040_v22 = vpop.f32.mrf.mxu1 }
 0x38f   : > { %v11039_v51 = vadd.f32 %v5038_v11, %v4325_v15  ;;  %v9216_v31 = vld [vmem:[%s10788_s24 + $0xa0] ss:$8 sps:$4 sm:$0xff]  }
 0x390   : > { %v4169_v54 = vpop.f32.mrf.mxu0  ;;  %v5041_v7 = vpop.f32.mrf.mxu1 }
 0x391   : > { %v4326_v16 = vadd.f32 %v4169_v54, %v10692_v19 }
 0x392   : > { %v4171_v57 = vpop.f32.mrf.mxu0  ;;  %v5043_v2 = vpop.f32.mrf.mxu1 }
 0x393   : > { %v11046_v58 = vadd.f32 %v5041_v7, %v4326_v16  ;;  %v9219_v16 = vld [vmem:[%s10794_s27 + $0xa0] ss:$8 sps:$4 sm:$0xff]   ;;  %v9224_v7 = vld [vmem:[%s10788_s24 + $0xb4] ss:$8 sps:$4 sm:$0xff]  }
 0x394   : > { %v4174_v52 = vpop.f32.mrf.mxu0  ;;  %5853 = vmatmul.mubr.bf16.gmra.mxu0 %v9210_v46  ;;  %v5046_v39 = vpop.f32.mrf.mxu1  ;;  %6725 = vmatmul.mubr.bf16.gmra.mxu1 %v9213_v34  ;;  %v9227_v57 = vld [vmem:[%s10794_s27 + $0xb4] ss:$8 sps:$4 sm:$0xff]  }
 0x395   : > { %v4327_v55 = vadd.f32 %v4174_v52, %v10695_v5  ;;  %5860 = vmatprep.mubr.bf16.mxu0 %v9218_v43  ;;  %6732 = vmatprep.mubr.bf16.mxu1 %v9221_v4 }
 0x396   : > { %v4176_v19 = vpop.f32.mrf.mxu0  ;;  %v5048_v15 = vpop.f32.mrf.mxu1 }
 0x397   : > { %v11049_v36 = vadd.f32 %v5046_v39, %v4327_v55  ;;  %v9222_v19 = vld [vmem:[%s10788_s24 + $0xb0] ss:$8 sps:$4 sm:$0xff]  }
 0x398   : > { %v4177_v11 = vpop.f32.mrf.mxu0  ;;  %v5049_v54 = vpop.f32.mrf.mxu1 }
 0x399   : > { %v4328_v22 = vadd.f32 %v4177_v11, %v10702_v45 }
 0x39a   : > { %v4179_v46 = vpop.f32.mrf.mxu0  ;;  %v5051_v5 = vpop.f32.mrf.mxu1 }
 0x39b   : > { %v11056_v2 = vadd.f32 %v5049_v54, %v4328_v22  ;;  %v9225_v22 = vld [vmem:[%s10794_s27 + $0xb0] ss:$8 sps:$4 sm:$0xff]   ;;  %v9230_v54 = vld [vmem:[%s10788_s24 + $0xc4] ss:$8 sps:$4 sm:$0xff]  }
 0x39c   : > { %v4182_v34 = vpop.f32.mrf.mxu0  ;;  %5861 = vmatmul.mubr.bf16.gmra.mxu0 %v9216_v31  ;;  %v5054_v4 = vpop.f32.mrf.mxu1  ;;  %6733 = vmatmul.mubr.bf16.gmra.mxu1 %v9219_v16  ;;  %v9233_v46 = vld [vmem:[%s10794_s27 + $0xc4] ss:$8 sps:$4 sm:$0xff]  }
 0x39d   : > { %v4329_v43 = vadd.f32 %v4182_v34, %v10705_v33  ;;  %5868 = vmatprep.mubr.bf16.mxu0 %v9224_v7  ;;  %6740 = vmatprep.mubr.bf16.mxu1 %v9227_v57 }
 0x39e   : > { %v4184_v45 = vpop.f32.mrf.mxu0  ;;  %v5056_v55 = vpop.f32.mrf.mxu1 }
 0x39f   : > { %v11059_v52 = vadd.f32 %v5054_v4, %v4329_v43  ;;  %v9228_v45 = vld [vmem:[%s10788_s24 + $0xc0] ss:$8 sps:$4 sm:$0xff]  }
 0x3a0   : > { %v4185_v39 = vpop.f32.mrf.mxu0  ;;  %v5057_v11 = vpop.f32.mrf.mxu1 }
 0x3a1   : > { %v4330_v15 = vadd.f32 %v4185_v39, %v10720_v44 }
 0x3a2   : > { %v4187_v31 = vpop.f32.mrf.mxu0  ;;  %v5059_v33 = vpop.f32.mrf.mxu1 }
 0x3a3   : > { %v11066_v5 = vadd.f32 %v5057_v11, %v4330_v15  ;;  %v9231_v15 = vld [vmem:[%s10794_s27 + $0xc0] ss:$8 sps:$4 sm:$0xff]   ;;  %v9236_v11 = vld [vmem:[%s10788_s24 + $0xd4] ss:$8 sps:$4 sm:$0xff]  }
 0x3a4   : > { %v4190_v16 = vpop.f32.mrf.mxu0  ;;  %5869 = vmatmul.mubr.bf16.gmra.mxu0 %v9222_v19  ;;  %v5062_v57 = vpop.f32.mrf.mxu1  ;;  %6741 = vmatmul.mubr.bf16.gmra.mxu1 %v9225_v22  ;;  %v9239_v31 = vld [vmem:[%s10794_s27 + $0xd4] ss:$8 sps:$4 sm:$0xff]  }
 0x3a5   : > { %v4331_v7 = vadd.f32 %v4190_v16, %v10723_v30  ;;  %5876 = vmatprep.mubr.bf16.mxu0 %v9230_v54  ;;  %6748 = vmatprep.mubr.bf16.mxu1 %v9233_v46 }
 0x3a6   : > { %v4192_v44 = vpop.f32.mrf.mxu0  ;;  %v5064_v43 = vpop.f32.mrf.mxu1 }
 0x3a7   : > { %v11069_v34 = vadd.f32 %v5062_v57, %v4331_v7  ;;  %v9234_v44 = vld [vmem:[%s10788_s24 + $0xd0] ss:$8 sps:$4 sm:$0xff]  }
 0x3a8   : > { %v4193_v4 = vpop.f32.mrf.mxu0  ;;  %v5065_v39 = vpop.f32.mrf.mxu1 }
 0x3a9   : > { %v4332_v55 = vadd.f32 %v4193_v4, %v10730_v20 }
 0x3aa   : > { %v4195_v19 = vpop.f32.mrf.mxu0  ;;  %v5067_v30 = vpop.f32.mrf.mxu1 }
 0x3ab   : > { %v11076_v33 = vadd.f32 %v5065_v39, %v4332_v55  ;;  %v9237_v55 = vld [vmem:[%s10794_s27 + $0xd0] ss:$8 sps:$4 sm:$0xff]   ;;  %v9242_v39 = vld [vmem:[%s10788_s24 + $0xe4] ss:$8 sps:$4 sm:$0xff]  }
 0x3ac   : > { %v4198_v22 = vpop.f32.mrf.mxu0  ;;  %5877 = vmatmul.mubr.bf16.gmra.mxu0 %v9228_v45  ;;  %v5070_v46 = vpop.f32.mrf.mxu1  ;;  %6749 = vmatmul.mubr.bf16.gmra.mxu1 %v9231_v15  ;;  %v9245_v19 = vld [vmem:[%s10794_s27 + $0xe4] ss:$8 sps:$4 sm:$0xff]  }
 0x3ad   : > { %v4333_v54 = vadd.f32 %v4198_v22, %v10733_v27  ;;  %5884 = vmatprep.mubr.bf16.mxu0 %v9236_v11  ;;  %6756 = vmatprep.mubr.bf16.mxu1 %v9239_v31 }
 0x3ae   : > { %v4200_v20 = vpop.f32.mrf.mxu0  ;;  %v5072_v7 = vpop.f32.mrf.mxu1 }
 0x3af   : > { %v11079_v16 = vadd.f32 %v5070_v46, %v4333_v54  ;;  %v9240_v20 = vld [vmem:[%s10788_s24 + $0xe0] ss:$8 sps:$4 sm:$0xff]  }
 0x3b0   : > { %v4201_v57 = vpop.f32.mrf.mxu0  ;;  %v5073_v4 = vpop.f32.mrf.mxu1 }
 0x3b1   : > { %v4334_v43 = vadd.f32 %v4201_v57, %v10748_v59 }
 0x3b2   : > { %v4203_v45 = vpop.f32.mrf.mxu0  ;;  %v5075_v27 = vpop.f32.mrf.mxu1 }
 0x3b3   : > { %v11086_v30 = vadd.f32 %v5073_v4, %v4334_v43  ;;  %v9243_v43 = vld [vmem:[%s10794_s27 + $0xe0] ss:$8 sps:$4 sm:$0xff]   ;;  %v9248_v4 = vld [vmem:[%s10788_s24 + $0xf4] ss:$8 sps:$4 sm:$0xff]  }
 0x3b4   : > { %v4206_v15 = vpop.f32.mrf.mxu0  ;;  %5885 = vmatmul.mubr.bf16.gmra.mxu0 %v9234_v44  ;;  %v5078_v31 = vpop.f32.mrf.mxu1  ;;  %6757 = vmatmul.mubr.bf16.gmra.mxu1 %v9237_v55  ;;  %v9251_v45 = vld [vmem:[%s10794_s27 + $0xf4] ss:$8 sps:$4 sm:$0xff]  }
 0x3b5   : > { %v4335_v11 = vadd.f32 %v4206_v15, %v10751_v17  ;;  %5892 = vmatprep.mubr.bf16.mxu0 %v9242_v39  ;;  %6764 = vmatprep.mubr.bf16.mxu1 %v9245_v19 }
 0x3b6   : > { %v4208_v59 = vpop.f32.mrf.mxu0  ;;  %v5080_v54 = vpop.f32.mrf.mxu1 }
 0x3b7   : > { %v11089_v22 = vadd.f32 %v5078_v31, %v4335_v11  ;;  %v9246_v59 = vld [vmem:[%s10788_s24 + $0xf0] ss:$8 sps:$4 sm:$0xff]  }
 0x3b8   : > { %v4209_v46 = vpop.f32.mrf.mxu0  ;;  %v5081_v57 = vpop.f32.mrf.mxu1  ;;  %v11494_v54 = vld [vmem:[#allocation21_spill] sm:$0xff] }
 0x3b9   : > { %v4336_v7 = vadd.f32 %v4209_v46, %v10758_v56 }
 0x3ba   : > { %v4211_v44 = vpop.f32.mrf.mxu0  ;;  %v5083_v17 = vpop.f32.mrf.mxu1 }
 0x3bb   : > { %v11096_v27 = vadd.f32 %v5081_v57, %v4336_v7  ;;  %v9249_v57 = vld [vmem:[%s10794_s27 + $0xf0] ss:$8 sps:$4 sm:$0xff]   ;;  %v9254_v44 = vld [vmem:[%s10788_s24 + $0x104] ss:$8 sps:$4 sm:$0xff]  }
 0x3bc   : > { %v4214_v55 = vpop.f32.mrf.mxu0  ;;  %5893 = vmatmul.mubr.bf16.gmra.mxu0 %v9240_v20  ;;  %v5086_v19 = vpop.f32.mrf.mxu1  ;;  %6765 = vmatmul.mubr.bf16.gmra.mxu1 %v9243_v43  ;;  %v9257_v17 = vld [vmem:[%s10794_s27 + $0x104] ss:$8 sps:$4 sm:$0xff]  }
 0x3bd   : > { %11492 = vst [vmem:[#allocation19_spill] sm:$0xff] %v11096_v27  ;;  %v4337_v39 = vadd.f32 %v4214_v55, %v10761_v23  ;;  %5900 = vmatprep.mubr.bf16.mxu0 %v9248_v4  ;;  %6772 = vmatprep.mubr.bf16.mxu1 %v9251_v45  ;;  %v11496_v4 = vld [vmem:[#allocation2_spill] sm:$0xff] }
 0x3be   : > { %v4216_v56 = vpop.f32.mrf.mxu0  ;;  %v5088_v11 = vpop.f32.mrf.mxu1 }
 0x3bf   : > { %v11099_v15 = vadd.f32 %v5086_v19, %v4337_v39 }
 0x3c0   : > { %v4217_v31 = vpop.f32.mrf.mxu0  ;;  %v5089_v7 = vpop.f32.mrf.mxu1 }
 0x3c1   : > { %11493 = vst [vmem:[#allocation20_spill] sm:$0xff] %v11099_v15  ;;  %v4338_v46 = vadd.f32 %v4217_v31, %v11494_v54  ;;  %v9252_v31 = vld [vmem:[%s10788_s24 + $0x100] ss:$8 sps:$4 sm:$0xff]  }
 0x3c2   : > { %v4219_v20 = vpop.f32.mrf.mxu0  ;;  %v5091_v23 = vpop.f32.mrf.mxu1  ;;  %v11498_v54 = vld [vmem:[#allocation3_spill] sm:$0xff] }
 0x3c3   : > { %v11106_v27 = vadd.f32 %v5089_v7, %v4338_v46  ;;  %v9255_v20 = vld [vmem:[%s10794_s27 + $0x100] ss:$8 sps:$4 sm:$0xff]   ;;  %v9260_v23 = vld [vmem:[%s10788_s24 + $0x114] ss:$8 sps:$4 sm:$0xff]  }
 0x3c4   : > { %v4222_v43 = vpop.f32.mrf.mxu0  ;;  %5901 = vmatmul.mubr.bf16.gmra.mxu0 %v9246_v59  ;;  %v5094_v55 = vpop.f32.mrf.mxu1  ;;  %6773 = vmatmul.mubr.bf16.gmra.mxu1 %v9249_v57 }
 0x3c5   : > { %11495 = vst [vmem:[#allocation21_spill] sm:$0xff] %v11106_v27  ;;  %v4339_v45 = vadd.f32 %v4222_v43, %v11496_v4  ;;  %5908 = vmatprep.mubr.bf16.mxu0 %v9254_v44  ;;  %6780 = vmatprep.mubr.bf16.mxu1 %v9257_v17  ;;  %v9263_v27 = vld [vmem:[%s10794_s27 + $0x114] ss:$8 sps:$4 sm:$0xff]  }
 0x3c6   : > { %v4224_v39 = vpop.f32.mrf.mxu0  ;;  %v5096_v56 = vpop.f32.mrf.mxu1  ;;  %v11500_v17 = vld [vmem:[#allocation4_spill] sm:$0xff] }
 0x3c7   : > { %v11109_v19 = vadd.f32 %v5094_v55, %v4339_v45 }
 0x3c8   : > { %v4225_v11 = vpop.f32.mrf.mxu0  ;;  %v5097_v7 = vpop.f32.mrf.mxu1 }
 0x3c9   : > { %11497 = vst [vmem:[#allocation2_spill] sm:$0xff] %v11109_v19  ;;  %v4340_v46 = vadd.f32 %v4225_v11, %v11498_v54  ;;  %v9258_v11 = vld [vmem:[%s10788_s24 + $0x110] ss:$8 sps:$4 sm:$0xff]  }
 0x3ca   : > { %v4227_v59 = vpop.f32.mrf.mxu0  ;;  %v5099_v57 = vpop.f32.mrf.mxu1  ;;  %v11502_v54 = vld [vmem:[#allocation5_spill] sm:$0xff] }
 0x3cb   : > { %v11116_v15 = vadd.f32 %v5097_v7, %v4340_v46  ;;  %v9261_v59 = vld [vmem:[%s10794_s27 + $0x110] ss:$8 sps:$4 sm:$0xff]   ;;  %v9266_v57 = vld [vmem:[%s10788_s24 + $0x124] ss:$8 sps:$4 sm:$0xff]  }
 0x3cc   : > { %v4230_v44 = vpop.f32.mrf.mxu0  ;;  %5909 = vmatmul.mubr.bf16.gmra.mxu0 %v9252_v31  ;;  %v5102_v4 = vpop.f32.mrf.mxu1  ;;  %6781 = vmatmul.mubr.bf16.gmra.mxu1 %v9255_v20 }
 0x3cd   : > { %11499 = vst [vmem:[#allocation3_spill] sm:$0xff] %v11116_v15  ;;  %v4341_v43 = vadd.f32 %v4230_v44, %v11500_v17  ;;  %5916 = vmatprep.mubr.bf16.mxu0 %v9260_v23  ;;  %6788 = vmatprep.mubr.bf16.mxu1 %v9263_v27  ;;  %v9269_v15 = vld [vmem:[%s10794_s27 + $0x124] ss:$8 sps:$4 sm:$0xff]  }
 0x3ce   : > { %v4232_v45 = vpop.f32.mrf.mxu0  ;;  %v5104_v39 = vpop.f32.mrf.mxu1  ;;  %v11504_v27 = vld [vmem:[#allocation6_spill] sm:$0xff] }
 0x3cf   : > { %v11119_v55 = vadd.f32 %v5102_v4, %v4341_v43 }
 0x3d0   : > { %v4233_v56 = vpop.f32.mrf.mxu0  ;;  %v5105_v7 = vpop.f32.mrf.mxu1 }
 0x3d1   : > { %11501 = vst [vmem:[#allocation4_spill] sm:$0xff] %v11119_v55  ;;  %v4342_v46 = vadd.f32 %v4233_v56, %v11502_v54  ;;  %v9264_v56 = vld [vmem:[%s10788_s24 + $0x120] ss:$8 sps:$4 sm:$0xff]  }
 0x3d2   : > { %v4235_v31 = vpop.f32.mrf.mxu0  ;;  %v5107_v20 = vpop.f32.mrf.mxu1  ;;  %v11506_v54 = vld [vmem:[#allocation7_spill] sm:$0xff] }
 0x3d3   : > { %v11126_v19 = vadd.f32 %v5105_v7, %v4342_v46  ;;  %v9267_v31 = vld [vmem:[%s10794_s27 + $0x120] ss:$8 sps:$4 sm:$0xff]   ;;  %v9272_v20 = vld [vmem:[%s10788_s24 + $0x134] ss:$8 sps:$4 sm:$0xff]  }
 0x3d4   : > { %v4238_v23 = vpop.f32.mrf.mxu0  ;;  %5917 = vmatmul.mubr.bf16.gmra.mxu0 %v9258_v11  ;;  %v5110_v17 = vpop.f32.mrf.mxu1  ;;  %6789 = vmatmul.mubr.bf16.gmra.mxu1 %v9261_v59 }
 0x3d5   : > { %11503 = vst [vmem:[#allocation5_spill] sm:$0xff] %v11126_v19  ;;  %v4343_v44 = vadd.f32 %v4238_v23, %v11504_v27  ;;  %5924 = vmatprep.mubr.bf16.mxu0 %v9266_v57  ;;  %6796 = vmatprep.mubr.bf16.mxu1 %v9269_v15  ;;  %v9275_v19 = vld [vmem:[%s10794_s27 + $0x134] ss:$8 sps:$4 sm:$0xff]  }
 0x3d6   : > { %v4240_v43 = vpop.f32.mrf.mxu0  ;;  %v5112_v45 = vpop.f32.mrf.mxu1  ;;  %v11508_v15 = vld [vmem:[#allocation8_spill] sm:$0xff] }
 0x3d7   : > { %v11129_v4 = vadd.f32 %v5110_v17, %v4343_v44 }
 0x3d8   : > { %v4241_v39 = vpop.f32.mrf.mxu0  ;;  %v5113_v7 = vpop.f32.mrf.mxu1 }
 0x3d9   : > { %11505 = vst [vmem:[#allocation6_spill] sm:$0xff] %v11129_v4  ;;  %v4344_v46 = vadd.f32 %v4241_v39, %v11506_v54  ;;  %v9270_v39 = vld [vmem:[%s10788_s24 + $0x130] ss:$8 sps:$4 sm:$0xff]  }
 0x3da   : > { %v4243_v11 = vpop.f32.mrf.mxu0  ;;  %v5115_v59 = vpop.f32.mrf.mxu1  ;;  %v11510_v54 = vld [vmem:[#allocation9_spill] sm:$0xff] }
 0x3db   : > { %v11136_v55 = vadd.f32 %v5113_v7, %v4344_v46  ;;  %v9273_v11 = vld [vmem:[%s10794_s27 + $0x130] ss:$8 sps:$4 sm:$0xff]   ;;  %v9278_v59 = vld [vmem:[%s10788_s24 + $0x144] ss:$8 sps:$4 sm:$0xff]  }
 0x3dc   : > { %v4246_v57 = vpop.f32.mrf.mxu0  ;;  %5925 = vmatmul.mubr.bf16.gmra.mxu0 %v9264_v56  ;;  %v5118_v27 = vpop.f32.mrf.mxu1  ;;  %6797 = vmatmul.mubr.bf16.gmra.mxu1 %v9267_v31 }
 0x3dd   : > { %11507 = vst [vmem:[#allocation7_spill] sm:$0xff] %v11136_v55  ;;  %v4345_v23 = vadd.f32 %v4246_v57, %v11508_v15  ;;  %5932 = vmatprep.mubr.bf16.mxu0 %v9272_v20  ;;  %6804 = vmatprep.mubr.bf16.mxu1 %v9275_v19  ;;  %v9281_v55 = vld [vmem:[%s10794_s27 + $0x144] ss:$8 sps:$4 sm:$0xff]  }
 0x3de   : > { %v4248_v44 = vpop.f32.mrf.mxu0  ;;  %v5120_v43 = vpop.f32.mrf.mxu1  ;;  %v11512_v19 = vld [vmem:[#allocation10_spill] sm:$0xff] }
 0x3df   : > { %v11139_v17 = vadd.f32 %v5118_v27, %v4345_v23 }
 0x3e0   : > { %v4249_v45 = vpop.f32.mrf.mxu0  ;;  %v5121_v7 = vpop.f32.mrf.mxu1 }
 0x3e1   : > { %11509 = vst [vmem:[#allocation8_spill] sm:$0xff] %v11139_v17  ;;  %v4346_v46 = vadd.f32 %v4249_v45, %v11510_v54  ;;  %v9276_v45 = vld [vmem:[%s10788_s24 + $0x140] ss:$8 sps:$4 sm:$0xff]  }
 0x3e2   : > { %v4251_v56 = vpop.f32.mrf.mxu0  ;;  %v5123_v31 = vpop.f32.mrf.mxu1  ;;  %v11514_v54 = vld [vmem:[#allocation11_spill] sm:$0xff] }
 0x3e3   : > { %v11146_v4 = vadd.f32 %v5121_v7, %v4346_v46  ;;  %v9279_v56 = vld [vmem:[%s10794_s27 + $0x140] ss:$8 sps:$4 sm:$0xff]   ;;  %v9284_v31 = vld [vmem:[%s10788_s24 + $0x154] ss:$8 sps:$4 sm:$0xff]  }
 0x3e4   : > { %v4254_v20 = vpop.f32.mrf.mxu0  ;;  %5933 = vmatmul.mubr.bf16.gmra.mxu0 %v9270_v39  ;;  %v5126_v15 = vpop.f32.mrf.mxu1  ;;  %6805 = vmatmul.mubr.bf16.gmra.mxu1 %v9273_v11 }
 0x3e5   : > { %11511 = vst [vmem:[#allocation9_spill] sm:$0xff] %v11146_v4  ;;  %v4347_v57 = vadd.f32 %v4254_v20, %v11512_v19  ;;  %5940 = vmatprep.mubr.bf16.mxu0 %v9278_v59  ;;  %6812 = vmatprep.mubr.bf16.mxu1 %v9281_v55  ;;  %v9287_v4 = vld [vmem:[%s10794_s27 + $0x154] ss:$8 sps:$4 sm:$0xff]  }
 0x3e6   : > { %v4256_v23 = vpop.f32.mrf.mxu0  ;;  %v5128_v44 = vpop.f32.mrf.mxu1  ;;  %v11516_v55 = vld [vmem:[#allocation12_spill] sm:$0xff] }
 0x3e7   : > { %v11149_v27 = vadd.f32 %v5126_v15, %v4347_v57 }
 0x3e8   : > { %v4257_v43 = vpop.f32.mrf.mxu0  ;;  %v5129_v7 = vpop.f32.mrf.mxu1 }
 0x3e9   : > { %11513 = vst [vmem:[#allocation10_spill] sm:$0xff] %v11149_v27  ;;  %v4348_v46 = vadd.f32 %v4257_v43, %v11514_v54  ;;  %v9282_v43 = vld [vmem:[%s10788_s24 + $0x150] ss:$8 sps:$4 sm:$0xff]  }
 0x3ea   : > { %v4259_v39 = vpop.f32.mrf.mxu0  ;;  %v5131_v11 = vpop.f32.mrf.mxu1  ;;  %v11518_v54 = vld [vmem:[#allocation13_spill] sm:$0xff] }
 0x3eb   : > { %v11156_v17 = vadd.f32 %v5129_v7, %v4348_v46  ;;  %v9285_v39 = vld [vmem:[%s10794_s27 + $0x150] ss:$8 sps:$4 sm:$0xff]   ;;  %v9290_v11 = vld [vmem:[%s10788_s24 + $0x164] ss:$8 sps:$4 sm:$0xff]  }
 0x3ec   : > { %v4262_v59 = vpop.f32.mrf.mxu0  ;;  %5941 = vmatmul.mubr.bf16.gmra.mxu0 %v9276_v45  ;;  %v5134_v19 = vpop.f32.mrf.mxu1  ;;  %6813 = vmatmul.mubr.bf16.gmra.mxu1 %v9279_v56 }
 0x3ed   : > { %11515 = vst [vmem:[#allocation11_spill] sm:$0xff] %v11156_v17  ;;  %v4349_v20 = vadd.f32 %v4262_v59, %v11516_v55  ;;  %5948 = vmatprep.mubr.bf16.mxu0 %v9284_v31  ;;  %6820 = vmatprep.mubr.bf16.mxu1 %v9287_v4  ;;  %v9293_v17 = vld [vmem:[%s10794_s27 + $0x164] ss:$8 sps:$4 sm:$0xff]  }
 0x3ee   : > { %v4264_v57 = vpop.f32.mrf.mxu0  ;;  %v5136_v23 = vpop.f32.mrf.mxu1  ;;  %v11520_v4 = vld [vmem:[#allocation14_spill] sm:$0xff] }
 0x3ef   : > { %v11159_v15 = vadd.f32 %v5134_v19, %v4349_v20 }
 0x3f0   : > { %v4265_v44 = vpop.f32.mrf.mxu0  ;;  %v5137_v7 = vpop.f32.mrf.mxu1 }
 0x3f1   : > { %11517 = vst [vmem:[#allocation12_spill] sm:$0xff] %v11159_v15  ;;  %v4350_v46 = vadd.f32 %v4265_v44, %v11518_v54  ;;  %v9288_v44 = vld [vmem:[%s10788_s24 + $0x160] ss:$8 sps:$4 sm:$0xff]  }
 0x3f2   : > { %v4267_v45 = vpop.f32.mrf.mxu0  ;;  %v5139_v56 = vpop.f32.mrf.mxu1  ;;  %v11522_v54 = vld [vmem:[#allocation15_spill] sm:$0xff] }
 0x3f3   : > { %v11166_v27 = vadd.f32 %v5137_v7, %v4350_v46  ;;  %v9291_v45 = vld [vmem:[%s10794_s27 + $0x160] ss:$8 sps:$4 sm:$0xff]   ;;  %v9296_v56 = vld [vmem:[%s10788_s24 + $0x174] ss:$8 sps:$4 sm:$0xff]  }
 0x3f4   : > { %v4270_v31 = vpop.f32.mrf.mxu0  ;;  %5949 = vmatmul.mubr.bf16.gmra.mxu0 %v9282_v43  ;;  %v5142_v55 = vpop.f32.mrf.mxu1  ;;  %6821 = vmatmul.mubr.bf16.gmra.mxu1 %v9285_v39 }
 0x3f5   : > { %11519 = vst [vmem:[#allocation13_spill] sm:$0xff] %v11166_v27  ;;  %v4351_v59 = vadd.f32 %v4270_v31, %v11520_v4  ;;  %5956 = vmatprep.mubr.bf16.mxu0 %v9290_v11  ;;  %6828 = vmatprep.mubr.bf16.mxu1 %v9293_v17  ;;  %v9299_v27 = vld [vmem:[%s10794_s27 + $0x174] ss:$8 sps:$4 sm:$0xff]  }
 0x3f6   : > { %v4272_v20 = vpop.f32.mrf.mxu0  ;;  %v5144_v57 = vpop.f32.mrf.mxu1  ;;  %v11524_v17 = vld [vmem:[#allocation16_spill] sm:$0xff] }
 0x3f7   : > { %v11169_v19 = vadd.f32 %v5142_v55, %v4351_v59 }
 0x3f8   : > { %v4273_v23 = vpop.f32.mrf.mxu0  ;;  %v5145_v7 = vpop.f32.mrf.mxu1 }
 0x3f9   : > { %11521 = vst [vmem:[#allocation14_spill] sm:$0xff] %v11169_v19  ;;  %v4352_v46 = vadd.f32 %v4273_v23, %v11522_v54  ;;  %v9294_v23 = vld [vmem:[%s10788_s24 + $0x170] ss:$8 sps:$4 sm:$0xff]  }
 0x3fa   : > { %v4275_v43 = vpop.f32.mrf.mxu0  ;;  %v5147_v39 = vpop.f32.mrf.mxu1  ;;  %v11525_v54 = vld [vmem:[#allocation17_spill] sm:$0xff] }
 0x3fb   : > { %v11176_v15 = vadd.f32 %v5145_v7, %v4352_v46  ;;  %v9297_v43 = vld [vmem:[%s10794_s27 + $0x170] ss:$8 sps:$4 sm:$0xff]   ;;  %v9302_v39 = vld [vmem:[%s10788_s24 + $0x184] ss:$8 sps:$4 sm:$0xff]  }
 0x3fc   : > { %v4278_v11 = vpop.f32.mrf.mxu0  ;;  %5957 = vmatmul.mubr.bf16.gmra.mxu0 %v9288_v44  ;;  %v5150_v4 = vpop.f32.mrf.mxu1  ;;  %6829 = vmatmul.mubr.bf16.gmra.mxu1 %v9291_v45 }
 0x3fd   : > { %11523 = vst [vmem:[#allocation15_spill] sm:$0xff] %v11176_v15  ;;  %v4353_v31 = vadd.f32 %v4278_v11, %v11524_v17  ;;  %5964 = vmatprep.mubr.bf16.mxu0 %v9296_v56  ;;  %6836 = vmatprep.mubr.bf16.mxu1 %v9299_v27  ;;  %v9305_v15 = vld [vmem:[%s10794_s27 + $0x184] ss:$8 sps:$4 sm:$0xff]  }
 0x3fe   : > { %v4280_v59 = vpop.f32.mrf.mxu0  ;;  %v5152_v20 = vpop.f32.mrf.mxu1 }
 0x3ff   : > { %v11179_v55 = vadd.f32 %v5150_v4, %v4353_v31  ;;  %v9300_v20 = vld [vmem:[%s10788_s24 + $0x180] ss:$8 sps:$4 sm:$0xff]  }
 0x400   : > { %v4281_v57 = vpop.f32.mrf.mxu0  ;;  %v5153_v7 = vpop.f32.mrf.mxu1 }
 0x401   : > { %v4354_v46 = vadd.f32 %v4281_v57, %v11525_v54 }
 0x402   : > { %v4283_v44 = vpop.f32.mrf.mxu0  ;;  %v5155_v45 = vpop.f32.mrf.mxu1 }
 0x403   : > { %v11186_v19 = vadd.f32 %v5153_v7, %v4354_v46  ;;  %v9303_v46 = vld [vmem:[%s10794_s27 + $0x180] ss:$8 sps:$4 sm:$0xff]   ;;  %v9308_v7 = vld [vmem:[%s10788_s24 + $0x194] ss:$8 sps:$4 sm:$0xff]  }
 0x404   : > { %v4286_v56 = vpop.f32.mrf.mxu0  ;;  %5965 = vmatmul.mubr.bf16.gmra.mxu0 %v9294_v23  ;;  %v5158_v11 = vpop.f32.mrf.mxu1  ;;  %6837 = vmatmul.mubr.bf16.gmra.mxu1 %v9297_v43  ;;  %v9311_v44 = vld [vmem:[%s10794_s27 + $0x194] ss:$8 sps:$4 sm:$0xff]  }
 0x405   : > { %v4355_v27 = vadd.f32 %v4286_v56, %v10869_v28  ;;  %5972 = vmatprep.mubr.bf16.mxu0 %v9302_v39  ;;  %6844 = vmatprep.mubr.bf16.mxu1 %v9305_v15 }
 0x406   : > { %v4288_v17 = vpop.f32.mrf.mxu0  ;;  %v5160_v4 = vpop.f32.mrf.mxu1 }
 0x407   : > { %v11189_v31 = vadd.f32 %v5158_v11, %v4355_v27  ;;  %v9306_v17 = vld [vmem:[%s10788_s24 + $0x190] ss:$8 sps:$4 sm:$0xff]  }
 0x408   : > { %v4289_v59 = vpop.f32.mrf.mxu0  ;;  %v5161_v54 = vpop.f32.mrf.mxu1 }
 0x409   : > { %v4356_v57 = vadd.f32 %v4289_v59, %v10876_v32 }
 0x40a   : > { %v4291_v23 = vpop.f32.mrf.mxu0  ;;  %v5163_v28 = vpop.f32.mrf.mxu1 }
 0x40b   : > { %v11196_v45 = vadd.f32 %v5161_v54, %v4356_v57  ;;  %v9309_v54 = vld [vmem:[%s10794_s27 + $0x190] ss:$8 sps:$4 sm:$0xff]   ;;  %v9314_v23 = vld [vmem:[%s10788_s24 + $0x1a4] ss:$8 sps:$4 sm:$0xff]  }
 0x40c   : > { %v5782_v43 = vpop.f32.mrf.mxu0  ;;  %5973 = vmatmul.mubr.bf16.gmra.mxu0 %v9300_v20  ;;  %v6654_v39 = vpop.f32.mrf.mxu1  ;;  %6845 = vmatmul.mubr.bf16.gmra.mxu1 %v9303_v46  ;;  %v9317_v20 = vld [vmem:[%s10794_s27 + $0x1a4] ss:$8 sps:$4 sm:$0xff]  }
 0x40d   : > { %v6037_v15 = vadd.f32 %v5782_v43, %v10879_v13  ;;  %5980 = vmatprep.mubr.bf16.mxu0 %v9308_v7  ;;  %6852 = vmatprep.mubr.bf16.mxu1 %v9311_v44 }
 0x40e   : > { %v5784_v32 = vpop.f32.mrf.mxu0  ;;  %v6656_v27 = vpop.f32.mrf.mxu1 }
 0x40f   : > { %v6909_v56 = vadd.f32 %v6654_v39, %v6037_v15  ;;  %v9312_v27 = vld [vmem:[%s10788_s24 + $0x1a0] ss:$8 sps:$4 sm:$0xff]  }
 0x410   : > { %v5785_v11 = vpop.f32.mrf.mxu0  ;;  %v6657_v57 = vpop.f32.mrf.mxu1 }
 0x411   : > { %v8369_v4 = vmul.f32 -1.442695, %v6909_v56  ;;  %v6038_v59 = vadd.f32 %v5785_v11, %v10886_v24 }
 0x412   : > { %v5787_v28 = vpop.f32.mrf.mxu0  ;;  %v6659_v43 = vpop.f32.mrf.mxu1 }
 0x413   : > { %9348 = vpow2.f32 %v8369_v4  ;;  %v6910_v13 = vadd.f32 %v6657_v57, %v6038_v59  ;;  %v9315_v59 = vld [vmem:[%s10794_s27 + $0x1a0] ss:$8 sps:$4 sm:$0xff]   ;;  %v9320_v57 = vld [vmem:[%s10788_s24 + $0x1b4] ss:$8 sps:$4 sm:$0xff]  }
 0x414   : > { %v5790_v46 = vpop.f32.mrf.mxu0  ;;  %5981 = vmatmul.mubr.bf16.gmra.mxu0 %v9306_v17  ;;  %v6662_v15 = vpop.f32.mrf.mxu1  ;;  %6853 = vmatmul.mubr.bf16.gmra.mxu1 %v9309_v54 }
 0x415   : > { %v8370_v7 = vmul.f32 -1.442695, %v6910_v13  ;;  %v6039_v44 = vadd.f32 %v5790_v46, %v10889_v49  ;;  %5988 = vmatprep.mubr.bf16.mxu0 %v9314_v23  ;;  %6860 = vmatprep.mubr.bf16.mxu1 %v9317_v20  ;;  %v9323_v13 = vld [vmem:[%s10794_s27 + $0x1b4] ss:$8 sps:$4 sm:$0xff]  }
 0x416   : > { %v5792_v24 = vpop.f32.mrf.mxu0  ;;  %v6664_v32 = vpop.f32.mrf.mxu1 }
 0x417   : > { %9350 = vpow2.f32 %v8370_v7  ;;  %v6911_v39 = vadd.f32 %v6662_v15, %v6039_v44  ;;  %v9321_v32 = vld [vmem:[%s10794_s27 + $0x1b0] ss:$8 sps:$4 sm:$0xff]  }
 0x418   : > { %v5793_v56 = vpop.f32.mrf.mxu0  ;;  %v6665_v17 = vpop.f32.mrf.mxu1 }
 0x419   : > { %v8371_v11 = vmul.f32 -1.442695, %v6911_v39  ;;  %v6040_v4 = vadd.f32 %v5793_v56, %v10896_v63  ;;  %v9318_v39 = vld [vmem:[%s10788_s24 + $0x1b0] ss:$8 sps:$4 sm:$0xff]  }
 0x41a   : > { %v5795_v28 = vpop.f32.mrf.mxu0  ;;  %v6667_v54 = vpop.f32.mrf.mxu1 }
 0x41b   : > { %9352 = vpow2.f32 %v8371_v11  ;;  %v6912_v49 = vadd.f32 %v6665_v17, %v6040_v4  ;;  %v9326_v4 = vld [vmem:[%s10788_s24 + $0x1c4] ss:$8 sps:$4 sm:$0xff]  }
 0x41c   : > { %v5798_v23 = vpop.f32.mrf.mxu0  ;;  %5989 = vmatmul.mubr.bf16.gmra.mxu0 %v9312_v27  ;;  %v6670_v46 = vpop.f32.mrf.mxu1  ;;  %6861 = vmatmul.mubr.bf16.gmra.mxu1 %v9315_v59  ;;  %v9329_v59 = vld [vmem:[%s10794_s27 + $0x1c4] ss:$8 sps:$4 sm:$0xff]  }
 0x41d   : > { %v8372_v20 = vmul.f32 -1.442695, %v6912_v49  ;;  %v6041_v43 = vadd.f32 %v5798_v23, %v10899_v14  ;;  %5996 = vmatprep.mubr.bf16.mxu0 %v9320_v57  ;;  %6868 = vmatprep.mubr.bf16.mxu1 %v9323_v13 }
 0x41e   : > { %v5800_v63 = vpop.f32.mrf.mxu0  ;;  %v6672_v44 = vpop.f32.mrf.mxu1 }
 0x41f   : > { %9354 = vpow2.f32 %v8372_v20  ;;  %v6913_v7 = vadd.f32 %v6670_v46, %v6041_v43 }
 0x420   : > { %v9349_v15 = vpop.eup %9348  ;;  %v5801_v24 = vpop.f32.mrf.mxu0 }
 0x421   : > { %v7165_v56 = vadd.f32 1.0, %v9349_v15  ;;  %v8373_v27 = vmul.f32 -1.442695, %v6913_v7  ;;  %v6042_v14 = vadd.f32 %v5801_v24, %v10906_v35  ;;  %v6673_v11 = vpop.f32.mrf.mxu1  ;;  %v9324_v15 = vld [vmem:[%s10788_s24 + $0x1c0] ss:$8 sps:$4 sm:$0xff]  }
 0x422   : > { %v5803_v17 = vpop.f32.mrf.mxu0  ;;  %v9327_v24 = vld [vmem:[%s10794_s27 + $0x1c0] ss:$8 sps:$4 sm:$0xff]  }
 0x423   : > { %9356 = vrcp.f32 %v7165_v56  ;;  %v6914_v57 = vadd.f32 %v6673_v11, %v6042_v14  ;;  %v6675_v28 = vpop.f32.mrf.mxu1  ;;  %v9335_v11 = vld [vmem:[%s10794_s27 + $0x1d4] ss:$8 sps:$4 sm:$0xff]  }
 0x424   : > { %v9351_v13 = vpop.eup %9350  ;;  %9358 = vpow2.f32 %v8373_v27  ;;  %v5806_v49 = vpop.f32.mrf.mxu0  ;;  %5997 = vmatmul.mubr.bf16.gmra.mxu0 %v9318_v39  ;;  %6869 = vmatmul.mubr.bf16.gmra.mxu1 %v9321_v32  ;;  %v9332_v27 = vld [vmem:[%s10788_s24 + $0x1d4] ss:$8 sps:$4 sm:$0xff]  }
 0x425   : > { %v7166_v54 = vadd.f32 1.0, %v9351_v13  ;;  %v8374_v23 = vmul.f32 -1.442695, %v6914_v57  ;;  %v6043_v20 = vadd.f32 %v5806_v49, %v10909_v53  ;;  %v6678_v43 = vpop.f32.mrf.mxu1  ;;  %6004 = vmatprep.mubr.bf16.mxu0 %v9326_v4  ;;  %6876 = vmatprep.mubr.bf16.mxu1 %v9329_v59 }
 0x426   : > { %v5808_v35 = vpop.f32.mrf.mxu0 }
 0x427   : > { %9360 = vrcp.f32 %v7166_v54  ;;  %v6915_v46 = vadd.f32 %v6678_v43, %v6043_v20  ;;  %v6680_v63 = vpop.f32.mrf.mxu1  ;;  %v9330_v35 = vld [vmem:[%s10788_s24 + $0x1d0] ss:$8 sps:$4 sm:$0xff]  }
 0x428   : > { %v9353_v7 = vpop.eup %9352  ;;  %9362 = vpow2.f32 %v8374_v23  ;;  %v5809_v44 = vpop.f32.mrf.mxu0 }
 0x429   : > { %v7167_v53 = vadd.f32 1.0, %v9353_v7  ;;  %v8375_v39 = vmul.f32 -1.442695, %v6915_v46  ;;  %v6044_v32 = vadd.f32 %v5809_v44, %v10916_v1  ;;  %v6681_v56 = vpop.f32.mrf.mxu1 }
 0x42a   : > { %v5811_v14 = vpop.f32.mrf.mxu0 }
 0x42b   : > { %9364 = vrcp.f32 %v7167_v53  ;;  %v6916_v4 = vadd.f32 %v6681_v56, %v6044_v32  ;;  %v6683_v17 = vpop.f32.mrf.mxu1  ;;  %v9341_v32 = vld [vmem:[%s10794_s27 + $0x1e4] ss:$8 sps:$4 sm:$0xff]  }
 0x42c   : > { %v9355_v59 = vpop.eup %9354  ;;  %9366 = vpow2.f32 %v8375_v39  ;;  %v5814_v57 = vpop.f32.mrf.mxu0  ;;  %6005 = vmatmul.mubr.bf16.gmra.mxu0 %v9324_v15  ;;  %6877 = vmatmul.mubr.bf16.gmra.mxu1 %v9327_v24  ;;  %v9333_v15 = vld [vmem:[%s10794_s27 + $0x1d0] ss:$8 sps:$4 sm:$0xff]   ;;  %v9338_v24 = vld [vmem:[%s10788_s24 + $0x1e4] ss:$8 sps:$4 sm:$0xff]  }
 0x42d   : > { %v7168_v28 = vadd.f32 1.0, %v9355_v59  ;;  %v8376_v13 = vmul.f32 -1.442695, %v6916_v4  ;;  %v6045_v49 = vadd.f32 %v5814_v57, %v10919_v38  ;;  %v6686_v54 = vpop.f32.mrf.mxu1  ;;  %6012 = vmatprep.mubr.bf16.mxu0 %v9332_v27  ;;  %6884 = vmatprep.mubr.bf16.mxu1 %v9335_v11 }
 0x42e   : > { %v5816_v1 = vpop.f32.mrf.mxu0 }
 0x42f   : > { %9368 = vrcp.f32 %v7168_v28  ;;  %v6917_v23 = vadd.f32 %v6686_v54, %v6045_v49  ;;  %v6688_v20 = vpop.f32.mrf.mxu1 }
 0x430   : > { %v9357_v43 = vpop.eup %9356  ;;  %9370 = vpow2.f32 %v8376_v13  ;;  %v5817_v38 = vpop.f32.mrf.mxu0 }
 0x431   : > { %v9359_v46 = vpop.eup %9358  ;;  %7358 = vst.msk [vmem:[%s11232_s29] sm:$0xff] %vm7357_vm0, %v9357_v43  ;;  %v8377_v63 = vmul.f32 -1.442695, %v6917_v23  ;;  %v6046_v7 = vadd.f32 %v5817_v38, %v10926_v48  ;;  %v6689_v44 = vpop.f32.mrf.mxu1  ;;  %v9336_v23 = vld [vmem:[%s10788_s24 + $0x1e0] ss:$8 sps:$4 sm:$0xff]  }
 0x432   : > { %v7169_v53 = vadd.f32 1.0, %v9359_v46  ;;  %v5819_v39 = vpop.f32.mrf.mxu0  ;;  %v9344_v46 = vld [vmem:[%s10788_s24 + $0x1f4] ss:$8 sps:$4 sm:$0xff]  }
 0x433   : > { %9372 = vpow2.f32 %v8377_v63  ;;  %v6918_v56 = vadd.f32 %v6689_v44, %v6046_v7  ;;  %v6691_v27 = vpop.f32.mrf.mxu1  ;;  %v9347_v44 = vld [vmem:[%s10794_s27 + $0x1f4] ss:$8 sps:$4 sm:$0xff]  }
 0x434   : > { %v9361_v14 = vpop.eup %9360  ;;  %9374 = vrcp.f32 %v7169_v53  ;;  %v5822_v11 = vpop.f32.mrf.mxu0  ;;  %6013 = vmatmul.mubr.bf16.gmra.mxu0 %v9330_v35  ;;  %6885 = vmatmul.mubr.bf16.gmra.mxu1 %v9333_v15  ;;  %v9339_v35 = vld [vmem:[%s10794_s27 + $0x1e0] ss:$8 sps:$4 sm:$0xff]  }
 0x435   : > { %v9363_v4 = vpop.eup %9362  ;;  %7359 = vst.msk [vmem:[%s11232_s29 + $0x8] sm:$0xff] %vm7357_vm0, %v9361_v14  ;;  %v8378_v17 = vmul.f32 -1.442695, %v6918_v56  ;;  %v6047_v48 = vadd.f32 %v5822_v11, %v10929_v60  ;;  %v6694_v59 = vpop.f32.mrf.mxu1  ;;  %6020 = vmatprep.mubr.bf16.mxu0 %v9338_v24  ;;  %6892 = vmatprep.mubr.bf16.mxu1 %v9341_v32 }
 0x436   : > { %v7170_v57 = vadd.f32 1.0, %v9363_v4  ;;  %v5824_v28 = vpop.f32.mrf.mxu0 }
 0x437   : > { %9376 = vpow2.f32 %v8378_v17  ;;  %v6919_v13 = vadd.f32 %v6694_v59, %v6047_v48  ;;  %v6696_v49 = vpop.f32.mrf.mxu1 }
 0x438   : > { %v9365_v54 = vpop.eup %9364  ;;  %9378 = vrcp.f32 %v7170_v57  ;;  %v5825_v1 = vpop.f32.mrf.mxu0  ;;  %v9342_v57 = vld [vmem:[%s10788_s24 + $0x1f0] ss:$8 sps:$4 sm:$0xff]  }
 0x439   : > { %v9367_v20 = vpop.eup %9366  ;;  %7360 = vst.msk [vmem:[%s11232_s29 + $0x10] sm:$0xff] %vm7357_vm0, %v9365_v54  ;;  %v8379_v60 = vmul.f32 -1.442695, %v6919_v13  ;;  %v6048_v43 = vadd.f32 %v5825_v1, %v10936_v10  ;;  %v6697_v38 = vpop.f32.mrf.mxu1  ;;  %v9345_v1 = vld [vmem:[%s10794_s27 + $0x1f0] ss:$8 sps:$4 sm:$0xff]  }
 0x43a   : > { %v7171_v63 = vadd.f32 1.0, %v9367_v20  ;;  %v5827_v7 = vpop.f32.mrf.mxu0 }
 0x43b   : > { %9380 = vpow2.f32 %v8379_v60  ;;  %v6920_v15 = vadd.f32 %v6697_v38, %v6048_v43  ;;  %v6699_v24 = vpop.f32.mrf.mxu1 }
 0x43c   : > { %v9369_v53 = vpop.eup %9368  ;;  %9382 = vrcp.f32 %v7171_v63  ;;  %v5830_v39 = vpop.f32.mrf.mxu0  ;;  %6021 = vmatmul.mubr.bf16.gmra.mxu0 %v9336_v23  ;;  %6893 = vmatmul.mubr.bf16.gmra.mxu1 %v9339_v35 }
 0x43d   : > { %v9371_v32 = vpop.eup %9370  ;;  %7361 = vst.msk [vmem:[%s11232_s29 + $0x18] sm:$0xff] %vm7357_vm0, %v9369_v53  ;;  %v8380_v56 = vmul.f32 -1.442695, %v6920_v15  ;;  %v6049_v10 = vadd.f32 %v5830_v39, %v10939_v3  ;;  %v6702_v27 = vpop.f32.mrf.mxu1  ;;  %6028 = vmatprep.mubr.bf16.mxu0 %v9344_v46  ;;  %6900 = vmatprep.mubr.bf16.mxu1 %v9347_v44 }
 0x43e   : > { %v7172_v14 = vadd.f32 1.0, %v9371_v32  ;;  %v5832_v11 = vpop.f32.mrf.mxu0 }
 0x43f   : > { %9384 = vpow2.f32 %v8380_v56  ;;  %v6921_v4 = vadd.f32 %v6702_v27, %v6049_v10  ;;  %v6704_v17 = vpop.f32.mrf.mxu1 }
 0x440   : > { %v9373_v48 = vpop.eup %9372  ;;  %9386 = vrcp.f32 %v7172_v14  ;;  %v5833_v59 = vpop.f32.mrf.mxu0 }
 0x441   : > { %v9375_v28 = vpop.eup %9374  ;;  %v7173_v13 = vadd.f32 1.0, %v9373_v48  ;;  %v8381_v49 = vmul.f32 -1.442695, %v6921_v4  ;;  %v6050_v3 = vadd.f32 %v5833_v59, %v10946_v37  ;;  %v6705_v54 = vpop.f32.mrf.mxu1 }
 0x442   : > { %7362 = vst.msk [vmem:[%s11232_s29 + $0x20] sm:$0xff] %vm7357_vm0, %v9375_v28  ;;  %v5835_v23 = vpop.f32.mrf.mxu0 }
 0x443   : > { %9388 = vrcp.f32 %v7173_v13  ;;  %v6922_v20 = vadd.f32 %v6705_v54, %v6050_v3  ;;  %v6707_v60 = vpop.f32.mrf.mxu1 }
 0x444   : > { %v9377_v43 = vpop.eup %9376  ;;  %9390 = vpow2.f32 %v8381_v49  ;;  %v5838_v38 = vpop.f32.mrf.mxu0  ;;  %6029 = vmatmul.mubr.bf16.gmra.mxu0 %v9342_v57  ;;  %6901 = vmatmul.mubr.bf16.gmra.mxu1 %v9345_v1 }
 0x445   : > { %v9379_v35 = vpop.eup %9378  ;;  %v7174_v46 = vadd.f32 1.0, %v9377_v43  ;;  %v8382_v63 = vmul.f32 -1.442695, %v6922_v20  ;;  %v6051_v7 = vadd.f32 %v5838_v38, %v10949_v62  ;;  %v6710_v37 = vpop.f32.mrf.mxu1 }
 0x446   : > { %7363 = vst.msk [vmem:[%s11232_s29 + $0x28] sm:$0xff] %vm7357_vm0, %v9379_v35  ;;  %v5840_v44 = vpop.f32.mrf.mxu0 }
 0x447   : > { %9392 = vrcp.f32 %v7174_v46  ;;  %v6923_v15 = vadd.f32 %v6710_v37, %v6051_v7  ;;  %v6712_v24 = vpop.f32.mrf.mxu1 }
 0x448   : > { %v9381_v53 = vpop.eup %9380  ;;  %9394 = vpow2.f32 %v8382_v63  ;;  %v5841_v39 = vpop.f32.mrf.mxu0 }
 0x449   : > { %v9383_v32 = vpop.eup %9382  ;;  %v7175_v56 = vadd.f32 1.0, %v9381_v53  ;;  %v8383_v10 = vmul.f32 -1.442695, %v6923_v15  ;;  %v6052_v27 = vadd.f32 %v5841_v39, %v10956_v40  ;;  %v6713_v14 = vpop.f32.mrf.mxu1 }
 0x44a   : > { %7364 = vst.msk [vmem:[%s11232_s29 + $0x30] sm:$0xff] %vm7357_vm0, %v9383_v32  ;;  %v5843_v62 = vpop.f32.mrf.mxu0 }
 0x44b   : > { %9396 = vrcp.f32 %v7175_v56  ;;  %v6924_v11 = vadd.f32 %v6713_v14, %v6052_v27  ;;  %v6715_v4 = vpop.f32.mrf.mxu1 }
 0x44c   : > { %v9385_v17 = vpop.eup %9384  ;;  %9398 = vpow2.f32 %v8383_v10  ;;  %v5846_v48 = vpop.f32.mrf.mxu0 }
 0x44d   : > { %v9387_v59 = vpop.eup %9386  ;;  %v7176_v57 = vadd.f32 1.0, %v9385_v17  ;;  %v8384_v28 = vmul.f32 -1.442695, %v6924_v11  ;;  %v6053_v13 = vadd.f32 %v5846_v48, %v10959_v6  ;;  %v6718_v49 = vpop.f32.mrf.mxu1 }
 0x44e   : > { %7365 = vst.msk [vmem:[%s11232_s29 + $0x38] sm:$0xff] %vm7357_vm0, %v9387_v59  ;;  %v5848_v40 = vpop.f32.mrf.mxu0 }
 0x44f   : > { %9400 = vrcp.f32 %v7176_v57  ;;  %v6925_v3 = vadd.f32 %v6718_v49, %v6053_v13  ;;  %v6720_v54 = vpop.f32.mrf.mxu1 }
 0x450   : > { %v9389_v1 = vpop.eup %9388  ;;  %9402 = vpow2.f32 %v8384_v28  ;;  %v5849_v23 = vpop.f32.mrf.mxu0 }
 0x451   : > { %v9391_v20 = vpop.eup %9390  ;;  %7366 = vst.msk [vmem:[%s11232_s29 + $0x40] sm:$0xff] %vm7357_vm0, %v9389_v1  ;;  %v8385_v60 = vmul.f32 -1.442695, %v6925_v3  ;;  %v6054_v43 = vadd.f32 %v5849_v23, %v10966_v25  ;;  %v6721_v38 = vpop.f32.mrf.mxu1 }
 0x452   : > { %v7177_v35 = vadd.f32 1.0, %v9391_v20  ;;  %v5851_v6 = vpop.f32.mrf.mxu0 }
 0x453   : > { %9404 = vpow2.f32 %v8385_v60  ;;  %v6926_v46 = vadd.f32 %v6721_v38, %v6054_v43  ;;  %v6723_v63 = vpop.f32.mrf.mxu1 }
 0x454   : > { %v9393_v7 = vpop.eup %9392  ;;  %9406 = vrcp.f32 %v7177_v35  ;;  %v5854_v37 = vpop.f32.mrf.mxu0 }
 0x455   : > { %v9395_v44 = vpop.eup %9394  ;;  %7367 = vst.msk [vmem:[%s11232_s29 + $0x48] sm:$0xff] %vm7357_vm0, %v9393_v7  ;;  %v8386_v15 = vmul.f32 -1.442695, %v6926_v46  ;;  %v6055_v24 = vadd.f32 %v5854_v37, %v10969_v18  ;;  %v6726_v53 = vpop.f32.mrf.mxu1 }
 0x456   : > { %v7178_v39 = vadd.f32 1.0, %v9395_v44  ;;  %v5856_v32 = vpop.f32.mrf.mxu0 }
 0x457   : > { %9408 = vpow2.f32 %v8386_v15  ;;  %v6927_v25 = vadd.f32 %v6726_v53, %v6055_v24  ;;  %v6728_v56 = vpop.f32.mrf.mxu1 }
 0x458   : > { %v9397_v10 = vpop.eup %9396  ;;  %9410 = vrcp.f32 %v7178_v39  ;;  %v5857_v27 = vpop.f32.mrf.mxu0 }
 0x459   : > { %v9399_v14 = vpop.eup %9398  ;;  %7368 = vst.msk [vmem:[%s11232_s29 + $0x50] sm:$0xff] %vm7357_vm0, %v9397_v10  ;;  %v8387_v62 = vmul.f32 -1.442695, %v6927_v25  ;;  %v6056_v11 = vadd.f32 %v5857_v27, %v10976_v12  ;;  %v6729_v4 = vpop.f32.mrf.mxu1 }
 0x45a   : > { %v7179_v17 = vadd.f32 1.0, %v9399_v14  ;;  %v5859_v48 = vpop.f32.mrf.mxu0 }
 0x45b   : > { %9412 = vpow2.f32 %v8387_v62  ;;  %v6928_v18 = vadd.f32 %v6729_v4, %v6056_v11  ;;  %v6731_v59 = vpop.f32.mrf.mxu1 }
 0x45c   : > { %v9401_v57 = vpop.eup %9400  ;;  %9414 = vrcp.f32 %v7179_v17  ;;  %v5862_v28 = vpop.f32.mrf.mxu0 }
 0x45d   : > { %v9403_v13 = vpop.eup %9402  ;;  %7369 = vst.msk [vmem:[%s11232_s29 + $0x58] sm:$0xff] %vm7357_vm0, %v9401_v57  ;;  %v8388_v49 = vmul.f32 -1.442695, %v6928_v18  ;;  %v6057_v40 = vadd.f32 %v5862_v28, %v10979_v29  ;;  %v6734_v3 = vpop.f32.mrf.mxu1 }
 0x45e   : > { %v7180_v54 = vadd.f32 1.0, %v9403_v13  ;;  %v5864_v1 = vpop.f32.mrf.mxu0 }
 0x45f   : > { %9416 = vpow2.f32 %v8388_v49  ;;  %v6929_v12 = vadd.f32 %v6734_v3, %v6057_v40  ;;  %v6736_v23 = vpop.f32.mrf.mxu1 }
 0x460   : > { %v9405_v20 = vpop.eup %9404  ;;  %9418 = vrcp.f32 %v7180_v54  ;;  %v5865_v60 = vpop.f32.mrf.mxu0 }
 0x461   : > { %v9407_v43 = vpop.eup %9406  ;;  %v7181_v38 = vadd.f32 1.0, %v9405_v20  ;;  %v8389_v35 = vmul.f32 -1.442695, %v6929_v12  ;;  %v6058_v6 = vadd.f32 %v5865_v60, %v10986_v41  ;;  %v6737_v46 = vpop.f32.mrf.mxu1 }
 0x462   : > { %7370 = vst.msk [vmem:[%s11232_s29 + $0x60] sm:$0xff] %vm7357_vm0, %v9407_v43  ;;  %v5867_v63 = vpop.f32.mrf.mxu0 }
 0x463   : > { %9420 = vrcp.f32 %v7181_v38  ;;  %v6930_v29 = vadd.f32 %v6737_v46, %v6058_v6  ;;  %v6739_v7 = vpop.f32.mrf.mxu1 }
 0x464   : > { %v9409_v37 = vpop.eup %9408  ;;  %9422 = vpow2.f32 %v8389_v35  ;;  %v5870_v44 = vpop.f32.mrf.mxu0 }
 0x465   : > { %v9411_v15 = vpop.eup %9410  ;;  %v7182_v24 = vadd.f32 1.0, %v9409_v37  ;;  %v8390_v53 = vmul.f32 -1.442695, %v6930_v29  ;;  %v6059_v39 = vadd.f32 %v5870_v44, %v10989_v21  ;;  %v6742_v32 = vpop.f32.mrf.mxu1 }
 0x466   : > { %7371 = vst.msk [vmem:[%s11232_s29 + $0x68] sm:$0xff] %vm7357_vm0, %v9411_v15  ;;  %v5872_v41 = vpop.f32.mrf.mxu0 }
 0x467   : > { %9424 = vrcp.f32 %v7182_v24  ;;  %v6931_v25 = vadd.f32 %v6742_v32, %v6059_v39  ;;  %v6744_v56 = vpop.f32.mrf.mxu1 }
 0x468   : > { %v9413_v10 = vpop.eup %9412  ;;  %9426 = vpow2.f32 %v8390_v53  ;;  %v5873_v27 = vpop.f32.mrf.mxu0 }
 0x469   : > { %v9415_v14 = vpop.eup %9414  ;;  %v7183_v62 = vadd.f32 1.0, %v9413_v10  ;;  %v8391_v11 = vmul.f32 -1.442695, %v6931_v25  ;;  %v6060_v4 = vadd.f32 %v5873_v27, %v10996_v0  ;;  %v6745_v17 = vpop.f32.mrf.mxu1  ;;  %v11526_v10 = vld [vmem:[#allocation18_spill] sm:$0xff] }
 0x46a   : > { %7372 = vst.msk [vmem:[%s11232_s29 + $0x70] sm:$0xff] %vm7357_vm0, %v9415_v14  ;;  %v5875_v21 = vpop.f32.mrf.mxu0 }
 0x46b   : > { %9428 = vrcp.f32 %v7183_v62  ;;  %v6932_v48 = vadd.f32 %v6745_v17, %v6060_v4  ;;  %v6747_v18 = vpop.f32.mrf.mxu1 }
 0x46c   : > { %v9417_v59 = vpop.eup %9416  ;;  %9430 = vpow2.f32 %v8391_v11  ;;  %v5878_v57 = vpop.f32.mrf.mxu0 }
 0x46d   : > { %v9419_v28 = vpop.eup %9418  ;;  %v7184_v13 = vadd.f32 1.0, %v9417_v59  ;;  %v8392_v49 = vmul.f32 -1.442695, %v6932_v48  ;;  %v6061_v40 = vadd.f32 %v5878_v57, %v10999_v42  ;;  %v6750_v3 = vpop.f32.mrf.mxu1 }
 0x46e   : > { %7373 = vst.msk [vmem:[%s11232_s29 + $0x78] sm:$0xff] %vm7357_vm0, %v9419_v28  ;;  %v5880_v0 = vpop.f32.mrf.mxu0 }
 0x46f   : > { %9432 = vrcp.f32 %v7184_v13  ;;  %v6933_v54 = vadd.f32 %v6750_v3, %v6061_v40  ;;  %v6752_v1 = vpop.f32.mrf.mxu1 }
 0x470   : > { %v9421_v12 = vpop.eup %9420  ;;  %9434 = vpow2.f32 %v8392_v49  ;;  %v5881_v23 = vpop.f32.mrf.mxu0 }
 0x471   : > { %v9423_v20 = vpop.eup %9422  ;;  %7374 = vst.msk [vmem:[%s11232_s29 + $0x80] sm:$0xff] %vm7357_vm0, %v9421_v12  ;;  %v8393_v60 = vmul.f32 -1.442695, %v6933_v54  ;;  %v6062_v43 = vadd.f32 %v5881_v23, %v11006_v26  ;;  %v6753_v38 = vpop.f32.mrf.mxu1 }
 0x472   : > { %v7185_v35 = vadd.f32 1.0, %v9423_v20  ;;  %v5883_v42 = vpop.f32.mrf.mxu0 }
 0x473   : > { %9436 = vpow2.f32 %v8393_v60  ;;  %v6934_v6 = vadd.f32 %v6753_v38, %v6062_v43  ;;  %v6755_v46 = vpop.f32.mrf.mxu1 }
 0x474   : > { %v9425_v63 = vpop.eup %9424  ;;  %9438 = vrcp.f32 %v7185_v35  ;;  %v5886_v29 = vpop.f32.mrf.mxu0 }
 0x475   : > { %v9427_v7 = vpop.eup %9426  ;;  %7375 = vst.msk [vmem:[%s11232_s29 + $0x88] sm:$0xff] %vm7357_vm0, %v9425_v63  ;;  %v8394_v37 = vmul.f32 -1.442695, %v6934_v6  ;;  %v6063_v44 = vadd.f32 %v5886_v29, %v11009_v9  ;;  %v6758_v15 = vpop.f32.mrf.mxu1 }
 0x476   : > { %v7186_v24 = vadd.f32 1.0, %v9427_v7  ;;  %v5888_v53 = vpop.f32.mrf.mxu0 }
 0x477   : > { %9440 = vpow2.f32 %v8394_v37  ;;  %v6935_v26 = vadd.f32 %v6758_v15, %v6063_v44  ;;  %v6760_v39 = vpop.f32.mrf.mxu1 }
 0x478   : > { %v9429_v32 = vpop.eup %9428  ;;  %9442 = vrcp.f32 %v7186_v24  ;;  %v5889_v41 = vpop.f32.mrf.mxu0 }
 0x479   : > { %v9431_v25 = vpop.eup %9430  ;;  %7376 = vst.msk [vmem:[%s11232_s29 + $0x90] sm:$0xff] %vm7357_vm0, %v9429_v32  ;;  %v8395_v56 = vmul.f32 -1.442695, %v6935_v26  ;;  %v6064_v27 = vadd.f32 %v5889_v41, %v11526_v10  ;;  %v6761_v14 = vpop.f32.mrf.mxu1 }
 0x47a   : > { %v7187_v62 = vadd.f32 1.0, %v9431_v25  ;;  %v5891_v11 = vpop.f32.mrf.mxu0 }
 0x47b   : > { %9444 = vpow2.f32 %v8395_v56  ;;  %v6936_v9 = vadd.f32 %v6761_v14, %v6064_v27  ;;  %v6763_v4 = vpop.f32.mrf.mxu1 }
 0x47c   : > { %v9433_v17 = vpop.eup %9432  ;;  %9446 = vrcp.f32 %v7187_v62  ;;  %v5894_v21 = vpop.f32.mrf.mxu0 }
 0x47d   : > { %v9435_v48 = vpop.eup %9434  ;;  %7377 = vst.msk [vmem:[%s11232_s29 + $0x98] sm:$0xff] %vm7357_vm0, %v9433_v17  ;;  %v8396_v18 = vmul.f32 -1.442695, %v6936_v9  ;;  %v6065_v59 = vadd.f32 %v5894_v21, %v11019_v47  ;;  %v6766_v57 = vpop.f32.mrf.mxu1 }
 0x47e   : > { %v7188_v28 = vadd.f32 1.0, %v9435_v48  ;;  %v5896_v13 = vpop.f32.mrf.mxu0 }
 0x47f   : > { %9448 = vpow2.f32 %v8396_v18  ;;  %v6937_v49 = vadd.f32 %v6766_v57, %v6065_v59  ;;  %v6768_v40 = vpop.f32.mrf.mxu1 }
 0x480   : > { %v9437_v3 = vpop.eup %9436  ;;  %9450 = vrcp.f32 %v7188_v28  ;;  %v5897_v0 = vpop.f32.mrf.mxu0 }
 0x481   : > { %v9439_v54 = vpop.eup %9438  ;;  %v7189_v1 = vadd.f32 1.0, %v9437_v3  ;;  %v8397_v12 = vmul.f32 -1.442695, %v6937_v49  ;;  %v6066_v23 = vadd.f32 %v5897_v0, %v11026_v50  ;;  %v6769_v20 = vpop.f32.mrf.mxu1 }
 0x482   : > { %7378 = vst.msk [vmem:[%s11232_s29 + $0xa0] sm:$0xff] %vm7357_vm0, %v9439_v54  ;;  %v5899_v60 = vpop.f32.mrf.mxu0 }
 0x483   : > { %9452 = vrcp.f32 %v7189_v1  ;;  %v6938_v47 = vadd.f32 %v6769_v20, %v6066_v23  ;;  %v6771_v43 = vpop.f32.mrf.mxu1 }
 0x484   : > { %v9441_v38 = vpop.eup %9440  ;;  %9454 = vpow2.f32 %v8397_v12  ;;  %v5902_v35 = vpop.f32.mrf.mxu0 }
 0x485   : > { %v9443_v42 = vpop.eup %9442  ;;  %v7190_v6 = vadd.f32 1.0, %v9441_v38  ;;  %v8398_v46 = vmul.f32 -1.442695, %v6938_v47  ;;  %v6067_v63 = vadd.f32 %v5902_v35, %v11029_v8  ;;  %v6774_v29 = vpop.f32.mrf.mxu1 }
 0x486   : > { %7379 = vst.msk [vmem:[%s11232_s29 + $0xa8] sm:$0xff] %vm7357_vm0, %v9443_v42  ;;  %v5904_v50 = vpop.f32.mrf.mxu0 }
 0x487   : > { %9456 = vrcp.f32 %v7190_v6  ;;  %v6939_v7 = vadd.f32 %v6774_v29, %v6067_v63  ;;  %v6776_v37 = vpop.f32.mrf.mxu1 }
 0x488   : > { %v9445_v44 = vpop.eup %9444  ;;  %9458 = vpow2.f32 %v8398_v46  ;;  %v5905_v15 = vpop.f32.mrf.mxu0 }
 0x489   : > { %v9447_v24 = vpop.eup %9446  ;;  %v7191_v53 = vadd.f32 1.0, %v9445_v44  ;;  %v8399_v26 = vmul.f32 -1.442695, %v6939_v7  ;;  %v6068_v39 = vadd.f32 %v5905_v15, %v11036_v61  ;;  %v6777_v32 = vpop.f32.mrf.mxu1 }
 0x48a   : > { %7380 = vst.msk [vmem:[%s11232_s29 + $0xb0] sm:$0xff] %vm7357_vm0, %v9447_v24  ;;  %v5907_v8 = vpop.f32.mrf.mxu0 }
 0x48b   : > { %9460 = vrcp.f32 %v7191_v53  ;;  %v6940_v41 = vadd.f32 %v6777_v32, %v6068_v39  ;;  %v6779_v25 = vpop.f32.mrf.mxu1 }
 0x48c   : > { %v9449_v56 = vpop.eup %9448  ;;  %9462 = vpow2.f32 %v8399_v26  ;;  %v5910_v10 = vpop.f32.mrf.mxu0 }
 0x48d   : > { %v9451_v27 = vpop.eup %9450  ;;  %v7192_v14 = vadd.f32 1.0, %v9449_v56  ;;  %v8400_v62 = vmul.f32 -1.442695, %v6940_v41  ;;  %v6069_v11 = vadd.f32 %v5910_v10, %v11039_v51  ;;  %v6782_v9 = vpop.f32.mrf.mxu1 }
 0x48e   : > { %7381 = vst.msk [vmem:[%s11232_s29 + $0xb8] sm:$0xff] %vm7357_vm0, %v9451_v27  ;;  %v5912_v61 = vpop.f32.mrf.mxu0 }
 0x48f   : > { %9464 = vrcp.f32 %v7192_v14  ;;  %v6941_v4 = vadd.f32 %v6782_v9, %v6069_v11  ;;  %v6784_v17 = vpop.f32.mrf.mxu1 }
 0x490   : > { %v9453_v21 = vpop.eup %9452  ;;  %9466 = vpow2.f32 %v8400_v62  ;;  %v5913_v48 = vpop.f32.mrf.mxu0 }
 0x491   : > { %v9455_v18 = vpop.eup %9454  ;;  %7382 = vst.msk [vmem:[%s11232_s29 + $0xc0] sm:$0xff] %vm7357_vm0, %v9453_v21  ;;  %v8401_v59 = vmul.f32 -1.442695, %v6941_v4  ;;  %v6070_v57 = vadd.f32 %v5913_v48, %v11046_v58  ;;  %v6785_v28 = vpop.f32.mrf.mxu1 }
 0x492   : > { %v7193_v13 = vadd.f32 1.0, %v9455_v18  ;;  %v5915_v51 = vpop.f32.mrf.mxu0 }
 0x493   : > { %9468 = vpow2.f32 %v8401_v59  ;;  %v6942_v49 = vadd.f32 %v6785_v28, %v6070_v57  ;;  %v6787_v40 = vpop.f32.mrf.mxu1 }
 0x494   : > { %v9457_v3 = vpop.eup %9456  ;;  %9470 = vrcp.f32 %v7193_v13  ;;  %v5918_v0 = vpop.f32.mrf.mxu0 }
 0x495   : > { %v9459_v54 = vpop.eup %9458  ;;  %7383 = vst.msk [vmem:[%s11232_s29 + $0xc8] sm:$0xff] %vm7357_vm0, %v9457_v3  ;;  %v8402_v1 = vmul.f32 -1.442695, %v6942_v49  ;;  %v6071_v12 = vadd.f32 %v5918_v0, %v11049_v36  ;;  %v6790_v23 = vpop.f32.mrf.mxu1 }
 0x496   : > { %v7194_v20 = vadd.f32 1.0, %v9459_v54  ;;  %v5920_v60 = vpop.f32.mrf.mxu0 }
 0x497   : > { %9472 = vpow2.f32 %v8402_v1  ;;  %v6943_v58 = vadd.f32 %v6790_v23, %v6071_v12  ;;  %v6792_v47 = vpop.f32.mrf.mxu1 }
 0x498   : > { %v9461_v43 = vpop.eup %9460  ;;  %9474 = vrcp.f32 %v7194_v20  ;;  %v5921_v38 = vpop.f32.mrf.mxu0 }
 0x499   : > { %v9463_v35 = vpop.eup %9462  ;;  %7384 = vst.msk [vmem:[%s11232_s29 + $0xd0] sm:$0xff] %vm7357_vm0, %v9461_v43  ;;  %v8403_v42 = vmul.f32 -1.442695, %v6943_v58  ;;  %v6072_v6 = vadd.f32 %v5921_v38, %v11056_v2  ;;  %v6793_v46 = vpop.f32.mrf.mxu1 }
 0x49a   : > { %v7195_v63 = vadd.f32 1.0, %v9463_v35  ;;  %v5923_v29 = vpop.f32.mrf.mxu0 }
 0x49b   : > { %9476 = vpow2.f32 %v8403_v42  ;;  %v6944_v36 = vadd.f32 %v6793_v46, %v6072_v6  ;;  %v6795_v50 = vpop.f32.mrf.mxu1 }
 0x49c   : > { %v9465_v7 = vpop.eup %9464  ;;  %9478 = vrcp.f32 %v7195_v63  ;;  %v5926_v37 = vpop.f32.mrf.mxu0 }
 0x49d   : > { %v9467_v44 = vpop.eup %9466  ;;  %7385 = vst.msk [vmem:[%s11232_s29 + $0xd8] sm:$0xff] %vm7357_vm0, %v9465_v7  ;;  %v8404_v15 = vmul.f32 -1.442695, %v6944_v36  ;;  %v6073_v24 = vadd.f32 %v5926_v37, %v11059_v52  ;;  %v6798_v53 = vpop.f32.mrf.mxu1 }
 0x49e   : > { %v7196_v26 = vadd.f32 1.0, %v9467_v44  ;;  %v5928_v39 = vpop.f32.mrf.mxu0 }
 0x49f   : > { %9480 = vpow2.f32 %v8404_v15  ;;  %v6945_v2 = vadd.f32 %v6798_v53, %v6073_v24  ;;  %v6800_v32 = vpop.f32.mrf.mxu1 }
 0x4a0   : > { %v9469_v8 = vpop.eup %9468  ;;  %9482 = vrcp.f32 %v7196_v26  ;;  %v5929_v41 = vpop.f32.mrf.mxu0 }
 0x4a1   : > { %v9471_v25 = vpop.eup %9470  ;;  %v7197_v56 = vadd.f32 1.0, %v9469_v8  ;;  %v8405_v10 = vmul.f32 -1.442695, %v6945_v2  ;;  %v6074_v27 = vadd.f32 %v5929_v41, %v11066_v5  ;;  %v6801_v14 = vpop.f32.mrf.mxu1 }
 0x4a2   : > { %7386 = vst.msk [vmem:[%s11232_s29 + $0xe0] sm:$0xff] %vm7357_vm0, %v9471_v25  ;;  %v5931_v62 = vpop.f32.mrf.mxu0 }
 0x4a3   : > { %9484 = vrcp.f32 %v7197_v56  ;;  %v6946_v52 = vadd.f32 %v6801_v14, %v6074_v27  ;;  %v6803_v11 = vpop.f32.mrf.mxu1  ;;  %v11527_v27 = vld [vmem:[#allocation19_spill] sm:$0xff] }
 0x4a4   : > { %v9473_v9 = vpop.eup %9472  ;;  %9486 = vpow2.f32 %v8405_v10  ;;  %v5934_v61 = vpop.f32.mrf.mxu0 }
 0x4a5   : > { %v9475_v4 = vpop.eup %9474  ;;  %v7198_v17 = vadd.f32 1.0, %v9473_v9  ;;  %v8406_v21 = vmul.f32 -1.442695, %v6946_v52  ;;  %v6075_v48 = vadd.f32 %v5934_v61, %v11069_v34  ;;  %v6806_v18 = vpop.f32.mrf.mxu1 }
 0x4a6   : > { %7387 = vst.msk [vmem:[%s11232_s29 + $0xe8] sm:$0xff] %vm7357_vm0, %v9475_v4  ;;  %v5936_v5 = vpop.f32.mrf.mxu0 }
 0x4a7   : > { %9488 = vrcp.f32 %v7198_v17  ;;  %v6947_v59 = vadd.f32 %v6806_v18, %v6075_v48  ;;  %v6808_v57 = vpop.f32.mrf.mxu1  ;;  %v11528_v48 = vld [vmem:[#allocation20_spill] sm:$0xff] }
 0x4a8   : > { %v9477_v28 = vpop.eup %9476  ;;  %9490 = vpow2.f32 %v8406_v21  ;;  %v5937_v13 = vpop.f32.mrf.mxu0 }
 0x4a9   : > { %v9479_v51 = vpop.eup %9478  ;;  %v7199_v49 = vadd.f32 1.0, %v9477_v28  ;;  %v8407_v40 = vmul.f32 -1.442695, %v6947_v59  ;;  %v6076_v3 = vadd.f32 %v5937_v13, %v11076_v33  ;;  %v6809_v0 = vpop.f32.mrf.mxu1 }
 0x4aa   : > { %7388 = vst.msk [vmem:[%s11232_s29 + $0xf0] sm:$0xff] %vm7357_vm0, %v9479_v51  ;;  %v5939_v34 = vpop.f32.mrf.mxu0 }
 0x4ab   : > { %9492 = vrcp.f32 %v7199_v49  ;;  %v6948_v54 = vadd.f32 %v6809_v0, %v6076_v3  ;;  %v6811_v1 = vpop.f32.mrf.mxu1  ;;  %v11529_v34 = vld [vmem:[#allocation21_spill] sm:$0xff] }
 0x4ac   : > { %v9481_v12 = vpop.eup %9480  ;;  %9494 = vpow2.f32 %v8407_v40  ;;  %v5942_v23 = vpop.f32.mrf.mxu0 }
 0x4ad   : > { %v9483_v20 = vpop.eup %9482  ;;  %v7200_v60 = vadd.f32 1.0, %v9481_v12  ;;  %v8408_v58 = vmul.f32 -1.442695, %v6948_v54  ;;  %v6077_v47 = vadd.f32 %v5942_v23, %v11079_v16  ;;  %v6814_v43 = vpop.f32.mrf.mxu1 }
 0x4ae   : > { %7389 = vst.msk [vmem:[%s11232_s29 + $0xf8] sm:$0xff] %vm7357_vm0, %v9483_v20  ;;  %v5944_v33 = vpop.f32.mrf.mxu0 }
 0x4af   : > { %9496 = vrcp.f32 %v7200_v60  ;;  %v6949_v38 = vadd.f32 %v6814_v43, %v6077_v47  ;;  %v6816_v35 = vpop.f32.mrf.mxu1 }
 0x4b0   : > { %v9485_v42 = vpop.eup %9484  ;;  %9498 = vpow2.f32 %v8408_v58  ;;  %v5945_v6 = vpop.f32.mrf.mxu0 }
 0x4b1   : > { %v9487_v46 = vpop.eup %9486  ;;  %7390 = vst.msk [vmem:[%s11232_s29 + $0x100] sm:$0xff] %vm7357_vm0, %v9485_v42  ;;  %v8409_v63 = vmul.f32 -1.442695, %v6949_v38  ;;  %v6078_v29 = vadd.f32 %v5945_v6, %v11086_v30  ;;  %v6817_v36 = vpop.f32.mrf.mxu1  ;;  %v11530_v38 = vld [vmem:[#allocation2_spill] sm:$0xff] }
 0x4b2   : > { %v7201_v50 = vadd.f32 1.0, %v9487_v46  ;;  %v5947_v16 = vpop.f32.mrf.mxu0 }
 0x4b3   : > { %9500 = vpow2.f32 %v8409_v63  ;;  %v6950_v7 = vadd.f32 %v6817_v36, %v6078_v29  ;;  %v6819_v37 = vpop.f32.mrf.mxu1 }
 0x4b4   : > { %v9489_v44 = vpop.eup %9488  ;;  %9502 = vrcp.f32 %v7201_v50  ;;  %v5950_v15 = vpop.f32.mrf.mxu0  ;;  %v11531_v37 = vld [vmem:[#allocation3_spill] sm:$0xff] }
 0x4b5   : > { %v9491_v24 = vpop.eup %9490  ;;  %7391 = vst.msk [vmem:[%s11232_s29 + $0x108] sm:$0xff] %vm7357_vm0, %v9489_v44  ;;  %v8410_v53 = vmul.f32 -1.442695, %v6950_v7  ;;  %v6079_v26 = vadd.f32 %v5950_v15, %v11089_v22  ;;  %v6822_v39 = vpop.f32.mrf.mxu1 }
 0x4b6   : > { %v7202_v2 = vadd.f32 1.0, %v9491_v24  ;;  %v5952_v32 = vpop.f32.mrf.mxu0 }
 0x4b7   : > { %9504 = vpow2.f32 %v8410_v53  ;;  %v6951_v30 = vadd.f32 %v6822_v39, %v6079_v26  ;;  %v6824_v8 = vpop.f32.mrf.mxu1 }
 0x4b8   : > { %v9493_v41 = vpop.eup %9492  ;;  %9506 = vrcp.f32 %v7202_v2  ;;  %v5953_v25 = vpop.f32.mrf.mxu0 }
 0x4b9   : > { %v9495_v56 = vpop.eup %9494  ;;  %7392 = vst.msk [vmem:[%s11232_s29 + $0x110] sm:$0xff] %vm7357_vm0, %v9493_v41  ;;  %v8411_v10 = vmul.f32 -1.442695, %v6951_v30  ;;  %v6080_v14 = vadd.f32 %v5953_v25, %v11527_v27  ;;  %v6825_v62 = vpop.f32.mrf.mxu1  ;;  %v11532_v41 = vld [vmem:[#allocation4_spill] sm:$0xff] }
 0x4ba   : > { %v7203_v52 = vadd.f32 1.0, %v9495_v56  ;;  %v5955_v11 = vpop.f32.mrf.mxu0 }
 0x4bb   : > { %9508 = vpow2.f32 %v8411_v10  ;;  %v6952_v22 = vadd.f32 %v6825_v62, %v6080_v14  ;;  %v6827_v9 = vpop.f32.mrf.mxu1 }
 0x4bc   : > { %v9497_v61 = vpop.eup %9496  ;;  %9510 = vrcp.f32 %v7203_v52  ;;  %v5958_v4 = vpop.f32.mrf.mxu0  ;;  %v11533_v9 = vld [vmem:[#allocation5_spill] sm:$0xff] }
 0x4bd   : > { %v9499_v17 = vpop.eup %9498  ;;  %7393 = vst.msk [vmem:[%s11232_s29 + $0x118] sm:$0xff] %vm7357_vm0, %v9497_v61  ;;  %v8412_v21 = vmul.f32 -1.442695, %v6952_v22  ;;  %v6081_v18 = vadd.f32 %v5958_v4, %v11528_v48  ;;  %v6830_v5 = vpop.f32.mrf.mxu1 }
 0x4be   : > { %v7204_v59 = vadd.f32 1.0, %v9499_v17  ;;  %v5960_v57 = vpop.f32.mrf.mxu0 }
 0x4bf   : > { %9512 = vpow2.f32 %v8412_v21  ;;  %v6953_v28 = vadd.f32 %v6830_v5, %v6081_v18  ;;  %v6832_v13 = vpop.f32.mrf.mxu1 }
 0x4c0   : > { %v9501_v51 = vpop.eup %9500  ;;  %9514 = vrcp.f32 %v7204_v59  ;;  %v5961_v49 = vpop.f32.mrf.mxu0  ;;  %v11534_v13 = vld [vmem:[#allocation6_spill] sm:$0xff] }
 0x4c1   : > { %v9503_v40 = vpop.eup %9502  ;;  %v7205_v3 = vadd.f32 1.0, %v9501_v51  ;;  %v8413_v0 = vmul.f32 -1.442695, %v6953_v28  ;;  %v6082_v54 = vadd.f32 %v5961_v49, %v11529_v34  ;;  %v6833_v1 = vpop.f32.mrf.mxu1 }
 0x4c2   : > { %7394 = vst.msk [vmem:[%s11232_s29 + $0x120] sm:$0xff] %vm7357_vm0, %v9503_v40  ;;  %v5963_v12 = vpop.f32.mrf.mxu0 }
 0x4c3   : > { %9516 = vrcp.f32 %v7205_v3  ;;  %v6954_v23 = vadd.f32 %v6833_v1, %v6082_v54  ;;  %v6835_v20 = vpop.f32.mrf.mxu1 }
 0x4c4   : > { %v9505_v60 = vpop.eup %9504  ;;  %9518 = vpow2.f32 %v8413_v0  ;;  %v5966_v58 = vpop.f32.mrf.mxu0  ;;  %v11535_v20 = vld [vmem:[#allocation7_spill] sm:$0xff] }
 0x4c5   : > { %v9507_v47 = vpop.eup %9506  ;;  %v7206_v43 = vadd.f32 1.0, %v9505_v60  ;;  %v8414_v33 = vmul.f32 -1.442695, %v6954_v23  ;;  %v6083_v35 = vadd.f32 %v5966_v58, %v11530_v38  ;;  %v6838_v42 = vpop.f32.mrf.mxu1 }
 0x4c6   : > { %7395 = vst.msk [vmem:[%s11232_s29 + $0x128] sm:$0xff] %vm7357_vm0, %v9507_v47  ;;  %v5968_v6 = vpop.f32.mrf.mxu0 }
 0x4c7   : > { %9520 = vrcp.f32 %v7206_v43  ;;  %v6955_v46 = vadd.f32 %v6838_v42, %v6083_v35  ;;  %v6840_v63 = vpop.f32.mrf.mxu1 }
 0x4c8   : > { %v9509_v29 = vpop.eup %9508  ;;  %9522 = vpow2.f32 %v8414_v33  ;;  %v5969_v36 = vpop.f32.mrf.mxu0  ;;  %v11536_v63 = vld [vmem:[#allocation8_spill] sm:$0xff] }
 0x4c9   : > { %v9511_v50 = vpop.eup %9510  ;;  %v7207_v16 = vadd.f32 1.0, %v9509_v29  ;;  %v8415_v7 = vmul.f32 -1.442695, %v6955_v46  ;;  %v6084_v44 = vadd.f32 %v5969_v36, %v11531_v37  ;;  %v6841_v15 = vpop.f32.mrf.mxu1 }
 0x4ca   : > { %7396 = vst.msk [vmem:[%s11232_s29 + $0x130] sm:$0xff] %vm7357_vm0, %v9511_v50  ;;  %v5971_v24 = vpop.f32.mrf.mxu0 }
 0x4cb   : > { %9524 = vrcp.f32 %v7207_v16  ;;  %v6956_v53 = vadd.f32 %v6841_v15, %v6084_v44  ;;  %v6843_v26 = vpop.f32.mrf.mxu1 }
 0x4cc   : > { %v9513_v39 = vpop.eup %9512  ;;  %9526 = vpow2.f32 %v8415_v7  ;;  %v5974_v2 = vpop.f32.mrf.mxu0 }
 0x4cd   : > { %v9515_v32 = vpop.eup %9514  ;;  %v7208_v30 = vadd.f32 1.0, %v9513_v39  ;;  %v8416_v8 = vmul.f32 -1.442695, %v6956_v53  ;;  %v6085_v25 = vadd.f32 %v5974_v2, %v11532_v41  ;;  %v6846_v56 = vpop.f32.mrf.mxu1  ;;  %v11537_v39 = vld [vmem:[#allocation9_spill] sm:$0xff] }
 0x4ce   : > { %7397 = vst.msk [vmem:[%s11232_s29 + $0x138] sm:$0xff] %vm7357_vm0, %v9515_v32  ;;  %v5976_v10 = vpop.f32.mrf.mxu0 }
 0x4cf   : > { %9528 = vrcp.f32 %v7208_v30  ;;  %v6957_v27 = vadd.f32 %v6846_v56, %v6085_v25  ;;  %v6848_v14 = vpop.f32.mrf.mxu1 }
 0x4d0   : > { %v9517_v62 = vpop.eup %9516  ;;  %9530 = vpow2.f32 %v8416_v8  ;;  %v5977_v52 = vpop.f32.mrf.mxu0 }
 0x4d1   : > { %v9519_v11 = vpop.eup %9518  ;;  %7398 = vst.msk [vmem:[%s11232_s29 + $0x140] sm:$0xff] %vm7357_vm0, %v9517_v62  ;;  %v8417_v22 = vmul.f32 -1.442695, %v6957_v27  ;;  %v6086_v61 = vadd.f32 %v5977_v52, %v11533_v9  ;;  %v6849_v4 = vpop.f32.mrf.mxu1  ;;  %v11538_v62 = vld [vmem:[#allocation10_spill] sm:$0xff] }
 0x4d2   : > { %v7209_v17 = vadd.f32 1.0, %v9519_v11  ;;  %v5979_v21 = vpop.f32.mrf.mxu0 }
 0x4d3   : > { %9532 = vpow2.f32 %v8417_v22  ;;  %v6958_v48 = vadd.f32 %v6849_v4, %v6086_v61  ;;  %v6851_v18 = vpop.f32.mrf.mxu1 }
 0x4d4   : > { %v9521_v5 = vpop.eup %9520  ;;  %9534 = vrcp.f32 %v7209_v17  ;;  %v5982_v59 = vpop.f32.mrf.mxu0 }
 0x4d5   : > { %v9523_v57 = vpop.eup %9522  ;;  %7399 = vst.msk [vmem:[%s11232_s29 + $0x148] sm:$0xff] %vm7357_vm0, %v9521_v5  ;;  %v8418_v28 = vmul.f32 -1.442695, %v6958_v48  ;;  %v6087_v51 = vadd.f32 %v5982_v59, %v11534_v13  ;;  %v6854_v49 = vpop.f32.mrf.mxu1  ;;  %v11539_v5 = vld [vmem:[#allocation11_spill] sm:$0xff] }
 0x4d6   : > { %v7210_v40 = vadd.f32 1.0, %v9523_v57  ;;  %v5984_v3 = vpop.f32.mrf.mxu0 }
 0x4d7   : > { %9536 = vpow2.f32 %v8418_v28  ;;  %v6959_v0 = vadd.f32 %v6854_v49, %v6087_v51  ;;  %v6856_v34 = vpop.f32.mrf.mxu1 }
 0x4d8   : > { %v9525_v54 = vpop.eup %9524  ;;  %9538 = vrcp.f32 %v7210_v40  ;;  %v5985_v1 = vpop.f32.mrf.mxu0 }
 0x4d9   : > { %v9527_v12 = vpop.eup %9526  ;;  %7400 = vst.msk [vmem:[%s11232_s29 + $0x150] sm:$0xff] %vm7357_vm0, %v9525_v54  ;;  %v8419_v23 = vmul.f32 -1.442695, %v6959_v0  ;;  %v6088_v60 = vadd.f32 %v5985_v1, %v11535_v20  ;;  %v6857_v58 = vpop.f32.mrf.mxu1  ;;  %v11540_v54 = vld [vmem:[#allocation12_spill] sm:$0xff] }
 0x4da   : > { %v7211_v47 = vadd.f32 1.0, %v9527_v12  ;;  %v5987_v43 = vpop.f32.mrf.mxu0 }
 0x4db   : > { %9540 = vpow2.f32 %v8419_v23  ;;  %v6960_v33 = vadd.f32 %v6857_v58, %v6088_v60  ;;  %v6859_v38 = vpop.f32.mrf.mxu1 }
 0x4dc   : > { %v9529_v35 = vpop.eup %9528  ;;  %9542 = vrcp.f32 %v7211_v47  ;;  %v5990_v42 = vpop.f32.mrf.mxu0  ;;  %v11541_v38 = vld [vmem:[#allocation13_spill] sm:$0xff] }
 0x4dd   : > { %v9531_v6 = vpop.eup %9530  ;;  %7401 = vst.msk [vmem:[%s11232_s29 + $0x158] sm:$0xff] %vm7357_vm0, %v9529_v35  ;;  %v8420_v46 = vmul.f32 -1.442695, %v6960_v33  ;;  %v6089_v29 = vadd.f32 %v5990_v42, %v11536_v63  ;;  %v6862_v36 = vpop.f32.mrf.mxu1 }
 0x4de   : > { %v7212_v50 = vadd.f32 1.0, %v9531_v6  ;;  %v5992_v16 = vpop.f32.mrf.mxu0 }
 0x4df   : > { %9544 = vpow2.f32 %v8420_v46  ;;  %v6961_v7 = vadd.f32 %v6862_v36, %v6089_v29  ;;  %v6864_v37 = vpop.f32.mrf.mxu1 }
 0x4e0   : > { %v9533_v44 = vpop.eup %9532  ;;  %9546 = vrcp.f32 %v7212_v50  ;;  %v5993_v15 = vpop.f32.mrf.mxu0  ;;  %v11542_v37 = vld [vmem:[#allocation14_spill] sm:$0xff] }
 0x4e1   : > { %v9535_v24 = vpop.eup %9534  ;;  %v7213_v53 = vadd.f32 1.0, %v9533_v44  ;;  %v8421_v26 = vmul.f32 -1.442695, %v6961_v7  ;;  %v6090_v2 = vadd.f32 %v5993_v15, %v11537_v39  ;;  %v6865_v32 = vpop.f32.mrf.mxu1 }
 0x4e2   : > { %7402 = vst.msk [vmem:[%s11232_s29 + $0x160] sm:$0xff] %vm7357_vm0, %v9535_v24  ;;  %v5995_v30 = vpop.f32.mrf.mxu0 }
 0x4e3   : > { %9548 = vrcp.f32 %v7213_v53  ;;  %v6962_v8 = vadd.f32 %v6865_v32, %v6090_v2  ;;  %v6867_v41 = vpop.f32.mrf.mxu1 }
 0x4e4   : > { %v9537_v25 = vpop.eup %9536  ;;  %9550 = vpow2.f32 %v8421_v26  ;;  %v5998_v56 = vpop.f32.mrf.mxu0  ;;  %v11543_v41 = vld [vmem:[#allocation15_spill] sm:$0xff] }
 0x4e5   : > { %v9539_v10 = vpop.eup %9538  ;;  %v7214_v27 = vadd.f32 1.0, %v9537_v25  ;;  %v8422_v14 = vmul.f32 -1.442695, %v6962_v8  ;;  %v6091_v52 = vadd.f32 %v5998_v56, %v11538_v62  ;;  %v6870_v11 = vpop.f32.mrf.mxu1 }
 0x4e6   : > { %7403 = vst.msk [vmem:[%s11232_s29 + $0x168] sm:$0xff] %vm7357_vm0, %v9539_v10  ;;  %v6000_v22 = vpop.f32.mrf.mxu0 }
 0x4e7   : > { %9552 = vrcp.f32 %v7214_v27  ;;  %v6963_v9 = vadd.f32 %v6870_v11, %v6091_v52  ;;  %v6872_v61 = vpop.f32.mrf.mxu1 }
 0x4e8   : > { %v9541_v4 = vpop.eup %9540  ;;  %9554 = vpow2.f32 %v8422_v14  ;;  %v6001_v17 = vpop.f32.mrf.mxu0 }
 0x4e9   : > { %v9543_v21 = vpop.eup %9542  ;;  %v7215_v48 = vadd.f32 1.0, %v9541_v4  ;;  %v8423_v18 = vmul.f32 -1.442695, %v6963_v9  ;;  %v6092_v59 = vadd.f32 %v6001_v17, %v11539_v5  ;;  %v6873_v57 = vpop.f32.mrf.mxu1 }
 0x4ea   : > { %7404 = vst.msk [vmem:[%s11232_s29 + $0x170] sm:$0xff] %vm7357_vm0, %v9543_v21  ;;  %v6003_v28 = vpop.f32.mrf.mxu0 }
 0x4eb   : > { %9556 = vrcp.f32 %v7215_v48  ;;  %v6964_v13 = vadd.f32 %v6873_v57, %v6092_v59  ;;  %v6875_v51 = vpop.f32.mrf.mxu1 }
 0x4ec   : > { %v9545_v49 = vpop.eup %9544  ;;  %9558 = vpow2.f32 %v8423_v18  ;;  %v6006_v40 = vpop.f32.mrf.mxu0 }
 0x4ed   : > { %v9547_v3 = vpop.eup %9546  ;;  %v7216_v0 = vadd.f32 1.0, %v9545_v49  ;;  %v8424_v34 = vmul.f32 -1.442695, %v6964_v13  ;;  %v6093_v1 = vadd.f32 %v6006_v40, %v11540_v54  ;;  %v6878_v12 = vpop.f32.mrf.mxu1 }
 0x4ee   : > { %7405 = vst.msk [vmem:[%s11232_s29 + $0x178] sm:$0xff] %vm7357_vm0, %v9547_v3  ;;  %v6008_v23 = vpop.f32.mrf.mxu0 }
 0x4ef   : > { %9560 = vrcp.f32 %v7216_v0  ;;  %v6965_v20 = vadd.f32 %v6878_v12, %v6093_v1  ;;  %v6880_v60 = vpop.f32.mrf.mxu1 }
 0x4f0   : > { %v9549_v58 = vpop.eup %9548  ;;  %9562 = vpow2.f32 %v8424_v34  ;;  %v6009_v47 = vpop.f32.mrf.mxu0 }
 0x4f1   : > { %v9551_v43 = vpop.eup %9550  ;;  %7406 = vst.msk [vmem:[%s11232_s29 + $0x180] sm:$0xff] %vm7357_vm0, %v9549_v58  ;;  %v8425_v33 = vmul.f32 -1.442695, %v6965_v20  ;;  %v6094_v35 = vadd.f32 %v6009_v47, %v11541_v38  ;;  %v6881_v42 = vpop.f32.mrf.mxu1 }
 0x4f2   : > { %v7217_v6 = vadd.f32 1.0, %v9551_v43  ;;  %v6011_v46 = vpop.f32.mrf.mxu0 }
 0x4f3   : > { %9564 = vpow2.f32 %v8425_v33  ;;  %v6966_v63 = vadd.f32 %v6881_v42, %v6094_v35  ;;  %v6883_v29 = vpop.f32.mrf.mxu1 }
 0x4f4   : > { %v9553_v36 = vpop.eup %9552  ;;  %9566 = vrcp.f32 %v7217_v6  ;;  %v6014_v50 = vpop.f32.mrf.mxu0 }
 0x4f5   : > { %v9555_v16 = vpop.eup %9554  ;;  %7407 = vst.msk [vmem:[%s11232_s29 + $0x188] sm:$0xff] %vm7357_vm0, %v9553_v36  ;;  %v8426_v7 = vmul.f32 -1.442695, %v6966_v63  ;;  %v6095_v44 = vadd.f32 %v6014_v50, %v11542_v37  ;;  %v6886_v15 = vpop.f32.mrf.mxu1 }
 0x4f6   : > { %v7218_v24 = vadd.f32 1.0, %v9555_v16  ;;  %v6016_v53 = vpop.f32.mrf.mxu0 }
 0x4f7   : > { %9568 = vpow2.f32 %v8426_v7  ;;  %v6967_v26 = vadd.f32 %v6886_v15, %v6095_v44  ;;  %v6888_v39 = vpop.f32.mrf.mxu1 }
 0x4f8   : > { %v9557_v2 = vpop.eup %9556  ;;  %9570 = vrcp.f32 %v7218_v24  ;;  %v6017_v32 = vpop.f32.mrf.mxu0 }
 0x4f9   : > { %v9559_v30 = vpop.eup %9558  ;;  %7408 = vst.msk [vmem:[%s11232_s29 + $0x190] sm:$0xff] %vm7357_vm0, %v9557_v2  ;;  %v8427_v8 = vmul.f32 -1.442695, %v6967_v26  ;;  %v6096_v25 = vadd.f32 %v6017_v32, %v11543_v41  ;;  %v6889_v56 = vpop.f32.mrf.mxu1 }
 0x4fa   : > { %v7219_v10 = vadd.f32 1.0, %v9559_v30  ;;  %v6019_v27 = vpop.f32.mrf.mxu0 }
 0x4fb   : > { %9572 = vpow2.f32 %v8427_v8  ;;  %v6968_v14 = vadd.f32 %v6889_v56, %v6096_v25  ;;  %v6891_v62 = vpop.f32.mrf.mxu1 }
 0x4fc   : > { %v9561_v52 = vpop.eup %9560  ;;  %9574 = vrcp.f32 %v7219_v10  ;;  %v6022_v11 = vpop.f32.mrf.mxu0 }
 0x4fd   : > { %v9563_v22 = vpop.eup %9562  ;;  %7409 = vst.msk [vmem:[%s11232_s29 + $0x198] sm:$0xff] %vm7357_vm0, %v9561_v52  ;;  %v8428_v9 = vmul.f32 -1.442695, %v6968_v14  ;;  %v6097_v61 = vadd.f32 %v6022_v11, %v11179_v55  ;;  %v6894_v4 = vpop.f32.mrf.mxu1 }
 0x4fe   : > { %v7220_v17 = vadd.f32 1.0, %v9563_v22  ;;  %v6024_v21 = vpop.f32.mrf.mxu0 }
 0x4ff   : > { %9576 = vpow2.f32 %v8428_v9  ;;  %v6969_v48 = vadd.f32 %v6894_v4, %v6097_v61  ;;  %v6896_v18 = vpop.f32.mrf.mxu1 }
 0x500   : > { %v9565_v5 = vpop.eup %9564  ;;  %9578 = vrcp.f32 %v7220_v17  ;;  %v6025_v59 = vpop.f32.mrf.mxu0 }
 0x501   : > { %v9567_v57 = vpop.eup %9566  ;;  %v7221_v28 = vadd.f32 1.0, %v9565_v5  ;;  %v8429_v13 = vmul.f32 -1.442695, %v6969_v48  ;;  %v6098_v51 = vadd.f32 %v6025_v59, %v11186_v19  ;;  %v6897_v49 = vpop.f32.mrf.mxu1 }
 0x502   : > { %7410 = vst.msk [vmem:[%s11232_s29 + $0x1a0] sm:$0xff] %vm7357_vm0, %v9567_v57  ;;  %v6027_v40 = vpop.f32.mrf.mxu0 }
 0x503   : > { %9580 = vrcp.f32 %v7221_v28  ;;  %v6970_v55 = vadd.f32 %v6897_v49, %v6098_v51  ;;  %v6899_v3 = vpop.f32.mrf.mxu1 }
 0x504   : > { %v9569_v0 = vpop.eup %9568  ;;  %9582 = vpow2.f32 %v8429_v13  ;;  %v6030_v34 = vpop.f32.mrf.mxu0 }
 0x505   : > { %v9571_v54 = vpop.eup %9570  ;;  %v7222_v1 = vadd.f32 1.0, %v9569_v0  ;;  %v8430_v12 = vmul.f32 -1.442695, %v6970_v55  ;;  %v6099_v23 = vadd.f32 %v6030_v34, %v11189_v31  ;;  %v6902_v20 = vpop.f32.mrf.mxu1 }
 0x506   : > { %7411 = vst.msk [vmem:[%s11232_s29 + $0x1a8] sm:$0xff] %vm7357_vm0, %v9571_v54  ;;  %v6032_v19 = vpop.f32.mrf.mxu0 }
 0x507   : > { %9584 = vrcp.f32 %v7222_v1  ;;  %v6971_v60 = vadd.f32 %v6902_v20, %v6099_v23  ;;  %v6904_v58 = vpop.f32.mrf.mxu1 }
 0x508   : > { %v9573_v47 = vpop.eup %9572  ;;  %9586 = vpow2.f32 %v8430_v12  ;;  %v6033_v43 = vpop.f32.mrf.mxu0 }
 0x509   : > { %v9575_v33 = vpop.eup %9574  ;;  %v7223_v38 = vadd.f32 1.0, %v9573_v47  ;;  %v8431_v35 = vmul.f32 -1.442695, %v6971_v60  ;;  %v6100_v42 = vadd.f32 %v6033_v43, %v11196_v45  ;;  %v6905_v6 = vpop.f32.mrf.mxu1 }
 0x50a   : > { %7412 = vst.msk [vmem:[%s11232_s29 + $0x1b0] sm:$0xff] %vm7357_vm0, %v9575_v33  ;;  %v6035_v31 = vpop.f32.mrf.mxu0 }
 0x50b   : > { %9588 = vrcp.f32 %v7223_v38  ;;  %v6972_v46 = vadd.f32 %v6905_v6, %v6100_v42  ;;  %v6907_v63 = vpop.f32.mrf.mxu1 }
 0x50c   : > { %v9577_v29 = vpop.eup %9576  ;;  %9590 = vpow2.f32 %v8431_v35 }
 0x50d   : > { %v9579_v36 = vpop.eup %9578  ;;  %v7224_v50 = vadd.f32 1.0, %v9577_v29  ;;  %v8432_v16 = vmul.f32 -1.442695, %v6972_v46 }
 0x50e   : > { %7413 = vst.msk [vmem:[%s11232_s29 + $0x1b8] sm:$0xff] %vm7357_vm0, %v9579_v36 }
 0x50f   : > { %9592 = vrcp.f32 %v7224_v50 }
 0x510   : > { %v9581_v7 = vpop.eup %9580  ;;  %9594 = vpow2.f32 %v8432_v16 }
 0x511   : > { %v9583_v45 = vpop.eup %9582  ;;  %7414 = vst.msk [vmem:[%s11232_s29 + $0x1c0] sm:$0xff] %vm7357_vm0, %v9581_v7 }
 0x512   : > { %v7225_v37 = vadd.f32 1.0, %v9583_v45 }
 0x514   : > { %v9585_v44 = vpop.eup %9584  ;;  %9596 = vrcp.f32 %v7225_v37 }
 0x515   : > { %v9587_v15 = vpop.eup %9586  ;;  %7415 = vst.msk [vmem:[%s11232_s29 + $0x1c8] sm:$0xff] %vm7357_vm0, %v9585_v44 }
 0x516   : > { %v7226_v24 = vadd.f32 1.0, %v9587_v15 }
 0x518   : > { %v9589_v53 = vpop.eup %9588  ;;  %9598 = vrcp.f32 %v7226_v24 }
 0x519   : > { %v9591_v26 = vpop.eup %9590  ;;  %7416 = vst.msk [vmem:[%s11232_s29 + $0x1d0] sm:$0xff] %vm7357_vm0, %v9589_v53 }
 0x51a   : > { %v7227_v39 = vadd.f32 1.0, %v9591_v26 }
 0x51c   : > { %v9593_v2 = vpop.eup %9592  ;;  %9600 = vrcp.f32 %v7227_v39 }
 0x51d   : > { %v9595_v32 = vpop.eup %9594  ;;  %7417 = vst.msk [vmem:[%s11232_s29 + $0x1d8] sm:$0xff] %vm7357_vm0, %v9593_v2 }
 0x51e   : > { %v7228_v30 = vadd.f32 1.0, %v9595_v32 }
 0x520   : > { %9602 = vrcp.f32 %v7228_v30 }
 0x521   : > { %v9597_v8 = vpop.eup %9596 }
 0x522   : > { %7418 = vst.msk [vmem:[%s11232_s29 + $0x1e0] sm:$0xff] %vm7357_vm0, %v9597_v8 }
 0x525   : > { %v9599_v41 = vpop.eup %9598 }
 0x526   : > { %7419 = vst.msk [vmem:[%s11232_s29 + $0x1e8] sm:$0xff] %vm7357_vm0, %v9599_v41 }
 0x529   : > { %v9601_v25 = vpop.eup %9600 }
 0x52a   : > { %7420 = vst.msk [vmem:[%s11232_s29 + $0x1f0] sm:$0xff] %vm7357_vm0, %v9601_v25 }
 0x52d   : > { %v9603_v56 = vpop.eup %9602 }
 0x52e   : > { %7421 = vst.msk [vmem:[%s11232_s29 + $0x1f8] sm:$0xff] %vm7357_vm0, %v9603_v56 }
 0x52f PF: > { %s12_s9 = sadd.s32 1, %s9610_s9  }
 0x530   : > { %p9_p4 = scmp.ge.s32.totalorder %s12_s9, 37  }
 0x532   :  { %11 = sbr.rel (!%p9_p4) target bundleno = 1 (0x1), region = 70 }

</bundles_post_ra>
